<compile_context>
chip_gen: v7x
topology: tpu7x:2x2x1
jax: 0.10.0
libtpu: 0.0.40
codegen_flags: <defaults>
</compile_context>

<pallas_src>
import functools
import numpy as np

import jax
import jax.numpy as jnp
from jax.experimental import pallas as pl
from jax.experimental.pallas import tpu as pltpu


def _cdiv(a, b):
    return (a + b - 1) // b


def _round_up(a, b):
    return _cdiv(a, b) * b


# ----------------------------------------------------------------------------
# Pallas kernels
# ----------------------------------------------------------------------------
def _make_mm_kernel(n_inputs, has_res):
    """Fused (sum_i x_i @ w_i) + bias -> SiLU [-> + residual] matmul kernel.

    bf16 operands feed the MXU; accumulation and the epilogue are f32; results
    are stored in the output dtype (bf16 activations between layers).
    """

    def kernel(*refs):
        x_refs = refs[:n_inputs]
        w_refs = refs[n_inputs:2 * n_inputs]
        b_ref = refs[2 * n_inputs]
        o_ref = refs[-1]
        acc = jnp.dot(x_refs[0][...], w_refs[0][...],
                      preferred_element_type=jnp.float32)
        for xr, wr in zip(x_refs[1:], w_refs[1:]):
            acc = acc + jnp.dot(xr[...], wr[...],
                                preferred_element_type=jnp.float32)
        y = acc + b_ref[...]          # folded-BN bias (scale folded into w)
        y = y * jax.nn.sigmoid(y)     # SiLU
        if has_res:                   # fused bottleneck shortcut
            y = y + refs[2 * n_inputs + 1][...].astype(jnp.float32)
        o_ref[...] = y.astype(o_ref.dtype)

    return kernel


def _sppf_pool_kernel(xp_ref, o_ref):
    # Three chained 5x5/stride-1 maxpools (PyTorch -inf padding semantics),
    # computed with separable 5x1 + 1x5 maxes on an input padded once by 6.
    # Writes the concat [x, y1, y2, y3] directly (lane-dense 4*C output).
    H, W = o_ref.shape[1], o_ref.shape[2]
    C = xp_ref.shape[3]

    def pool5(a):
        h, w = a.shape[1], a.shape[2]
        r = a[:, 0:h - 4]
        for dy in range(1, 5):
            r = jnp.maximum(r, a[:, dy:dy + h - 4])
        c = r[:, :, 0:w - 4]
        for dx in range(1, 5):
            c = jnp.maximum(c, r[:, :, dx:dx + w - 4])
        return c

    a0 = xp_ref[...]          # (1, H+12, W+12, C)
    a1 = pool5(a0)            # (1, H+8,  W+8,  C)
    a2 = pool5(a1)            # (1, H+4,  W+4,  C)
    a3 = pool5(a2)            # (1, H,    W,    C)
    o_ref[:, :, :, 0 * C:1 * C] = a0[:, 6:6 + H, 6:6 + W]
    o_ref[:, :, :, 1 * C:2 * C] = a1[:, 4:4 + H, 4:4 + W]
    o_ref[:, :, :, 2 * C:3 * C] = a2[:, 2:2 + H, 2:2 + W]
    o_ref[:, :, :, 3 * C:4 * C] = a3


# ----------------------------------------------------------------------------
# Kernel wrappers
# ----------------------------------------------------------------------------
def _plan_m(M):
    """Pick (TM, Mp, GM): round rows up to a multiple of 8, cap tiles at 128,
    and use >= 2 grid steps when M >= 16 (so v7x's two TCs can both work)."""
    mp8 = _round_up(max(M, 8), 8)
    if mp8 < 16:
        return mp8, mp8, 1
    gm = max(2, _cdiv(mp8, 128))
    tm = _round_up(_cdiv(mp8, gm), 8)
    return tm, tm * gm, gm


def _fused_matmul(xs, ws, bias, residual=None, out_dtype=jnp.bfloat16):
    """out = SiLU(sum_i xs[i] @ ws[i] + bias) (+ residual), tiled over rows."""
    M = xs[0].shape[0]
    N = ws[0].shape[1]
    TM, Mp, GM = _plan_m(M)

    def pad_rows(a):
        return a if a.shape[0] == Mp else jnp.pad(a, ((0, Mp - a.shape[0]), (0, 0)))

    xs = [pad_rows(x) for x in xs]
    args = list(xs) + list(ws) + [bias]
    in_specs = [pl.BlockSpec((TM, x.shape[1]), lambda i: (i, 0)) for x in xs]
    in_specs += [pl.BlockSpec(w.shape, lambda i: (0, 0)) for w in ws]
    in_specs += [pl.BlockSpec((1, N), lambda i: (0, 0))]
    if residual is not None:
        args.append(pad_rows(residual))
        in_specs.append(pl.BlockSpec((TM, N), lambda i: (i, 0)))

    out = pl.pallas_call(
        _make_mm_kernel(len(xs), residual is not None),
        out_shape=jax.ShapeDtypeStruct((Mp, N), out_dtype),
        grid=(GM,),
        in_specs=in_specs,
        out_specs=pl.BlockSpec((TM, N), lambda i: (i, 0)),
        compiler_params=pltpu.CompilerParams(dimension_semantics=("parallel",)),
    )(*args)
    return out if Mp == M else out[:M]


def _im2col(x, k, s, p):
    # x: (N, H, W, C) bf16 -> patches (N*Ho*Wo, k*k*C), feature order (dy, dx, c).
    N, H, W, C = x.shape
    xp = jnp.pad(x, ((0, 0), (p, p), (p, p), (0, 0))) if p else x
    Ho = (H + 2 * p - k) // s + 1
    Wo = (W + 2 * p - k) // s + 1
    cols = [xp[:, dy:dy + s * Ho:s, dx:dx + s * Wo:s, :]
            for dy in range(k) for dx in range(k)]
    patches = jnp.concatenate(cols, axis=-1)
    return patches.reshape(N * Ho * Wo, k * k * C), (N, Ho, Wo)


def conv_bn_silu(x, p, residual=None):
    if p["k"] == 1:
        N, H, W, C = x.shape
        patches, dims = x.reshape(N * H * W, C), (N, H, W)
    else:
        patches, dims = _im2col(x, p["k"], p["s"], p["p"])
    res = None
    if residual is not None:
        res = residual.reshape(-1, residual.shape[-1])
    out = _fused_matmul([patches], [p["w"]], p["bias"], residual=res)
    N, Ho, Wo = dims
    return out.reshape(N, Ho, Wo, -1)


def sppf_pool_concat(x):
    # One kernel: [x, pool(x), pool^2(x), pool^3(x)] with 5x5/s1/-inf-pad pools.
    N, H, W, C = x.shape
    xp = jnp.pad(x, ((0, 0), (6, 6), (6, 6), (0, 0)), constant_values=-jnp.inf)
    return pl.pallas_call(
        _sppf_pool_kernel,
        out_shape=jax.ShapeDtypeStruct((N, H, W, 4 * C), x.dtype),
        grid=(N,),
        in_specs=[pl.BlockSpec((1, H + 12, W + 12, C), lambda n: (n, 0, 0, 0))],
        out_specs=pl.BlockSpec((1, H, W, 4 * C), lambda n: (n, 0, 0, 0)),
        compiler_params=pltpu.CompilerParams(dimension_semantics=("parallel",)),
    )(xp)


# ----------------------------------------------------------------------------
# Deterministic parameter construction (synthetic weights, folded BatchNorm)
# ----------------------------------------------------------------------------
def _fold_bn(key, cout):
    g_key, b_key, m_key, v_key = jax.random.split(key, 4)
    gamma = jax.random.uniform(g_key, (cout,), jnp.float32, 0.9, 1.1)
    beta = jax.random.normal(b_key, (cout,), jnp.float32) * 0.01
    mean = jax.random.normal(m_key, (cout,), jnp.float32) * 0.01
    var = jax.random.uniform(v_key, (cout,), jnp.float32, 0.9, 1.1)
    scale = gamma / jnp.sqrt(var + 1e-5)
    bias = beta - mean * scale
    return scale, bias


def make_conv(key, cin, cout, k, p=0, s=1):
    w_key, bn_key = jax.random.split(key)
    fan_in = cin * k * k
    w = jax.random.normal(w_key, (k, k, cin, cout), jnp.float32) / np.sqrt(fan_in)
    scale, bias = _fold_bn(bn_key, cout)
    w = (w * scale).reshape(k * k * cin, cout).astype(jnp.bfloat16)  # scale folded in
    return {"w": w, "bias": bias.reshape(1, cout).astype(jnp.float32),
            "k": k, "s": s, "p": p}


def make_csp_block(key, in_dim, out_dim, expand_ratio, nblocks):
    inter = int(out_dim * expand_ratio)
    keys = jax.random.split(key, 3 + 2 * nblocks)
    cv1 = make_conv(keys[0], in_dim, inter, 1)
    cv2 = make_conv(keys[1], in_dim, inter, 1)
    # Fuse cv1|cv2 into one 1x1 conv with 2*inter output lanes.
    cv12 = {"w": jnp.concatenate([cv1["w"], cv2["w"]], axis=1),
            "bias": jnp.concatenate([cv1["bias"], cv2["bias"]], axis=1),
            "k": 1, "s": 1, "p": 0}
    cv3 = make_conv(keys[2], 2 * inter, out_dim, 1)
    cv3_split = {"w1": cv3["w"][:inter], "w2": cv3["w"][inter:], "bias": cv3["bias"]}
    m = [{"cv1": make_conv(keys[3 + 2 * i], inter, inter, 1),
          "cv2": make_conv(keys[4 + 2 * i], inter, inter, 3, p=1)}
         for i in range(nblocks)]
    return {"cv12": cv12, "cv3": cv3_split, "m": m, "inter": inter}


def make_sppf(key, in_dim, out_dim, expand_ratio=0.5):
    inter = int(in_dim * expand_ratio)
    k1, k2 = jax.random.split(key)
    return {"cv1": make_conv(k1, in_dim, inter, 1),
            "cv2": make_conv(k2, inter * 4, out_dim, 1)}


def make_cspdarknet(key, depth=1.0, width=1.0):
    fd = [round(64 * width), round(128 * width), round(256 * width),
          round(512 * width), round(1024 * width)]
    keys = jax.random.split(key, 10)
    return {
        "layer_1": make_conv(keys[0], 3, fd[0], 6, p=2, s=2),
        "layer_2": {"conv": make_conv(keys[1], fd[0], fd[1], 3, p=1, s=2),
                    "csp": make_csp_block(keys[2], fd[1], fd[1], 0.5, round(3 * depth))},
        "layer_3": {"conv": make_conv(keys[3], fd[1], fd[2], 3, p=1, s=2),
                    "csp": make_csp_block(keys[4], fd[2], fd[2], 0.5, round(9 * depth))},
        "layer_4": {"conv": make_conv(keys[5], fd[2], fd[3], 3, p=1, s=2),
                    "csp": make_csp_block(keys[6], fd[3], fd[3], 0.5, round(9 * depth))},
        "layer_5": {"conv": make_conv(keys[7], fd[3], fd[4], 3, p=1, s=2),
                    "sppf": make_sppf(keys[8], fd[4], fd[4], 0.5),
                    "csp": make_csp_block(keys[9], fd[4], fd[4], 0.5, round(3 * depth))},
    }, fd


# ----------------------------------------------------------------------------
# Forward pass (NHWC / bf16 internally)
# ----------------------------------------------------------------------------
def csp_block(x, p):
    y = conv_bn_silu(x, p["cv12"])              # fused cv1|cv2, 2*inter lanes
    inter = p["inter"]
    x1, x2 = y[..., :inter], y[..., inter:]
    for bp in p["m"]:                           # Bottleneck(shortcut=True)
        h = conv_bn_silu(x1, bp["cv1"])
        x1 = conv_bn_silu(h, bp["cv2"], residual=x1)   # fused residual add
    # cv3 on concat([x1, x2]) without materializing the concat: K-split matmul.
    N, H, W, _ = x1.shape
    out = _fused_matmul([x1.reshape(N * H * W, inter), x2.reshape(N * H * W, inter)],
                        [p["cv3"]["w1"], p["cv3"]["w2"]], p["cv3"]["bias"])
    return out.reshape(N, H, W, -1)


def sppf(x, p):
    # TODO(synk): SPPF's default act_type in the reference repo is ambiguous; SiLU assumed.
    x = conv_bn_silu(x, p["cv1"])
    pooled = sppf_pool_concat(x)                # [x, y1, y2, y3] in one kernel
    return conv_bn_silu(pooled, p["cv2"])


def cspdarknet_forward(params, x_nchw):
    x = jnp.transpose(x_nchw, (0, 2, 3, 1)).astype(jnp.bfloat16)   # NCHW -> NHWC bf16
    c1 = conv_bn_silu(x, params["layer_1"])
    c2 = csp_block(conv_bn_silu(c1, params["layer_2"]["conv"]), params["layer_2"]["csp"])
    c3 = csp_block(conv_bn_silu(c2, params["layer_3"]["conv"]), params["layer_3"]["csp"])
    c4 = csp_block(conv_bn_silu(c3, params["layer_4"]["conv"]), params["layer_4"]["csp"])
    t = conv_bn_silu(c4, params["layer_5"]["conv"])
    t = sppf(t, params["layer_5"]["sppf"])
    c5 = csp_block(t, params["layer_5"]["csp"])
    # back to NCHW / f32 to match the PyTorch module's output convention
    return [jnp.transpose(o.astype(jnp.float32), (0, 3, 1, 2)) for o in (c3, c4, c5)]


# ----------------------------------------------------------------------------
if __name__ == "__main__":
    key = jax.random.PRNGKey(0)
    pkey, xkey = jax.random.split(key)

    depth, width = 0.34, 0.25  # yolov5s-style scaling -> small channel counts
    params, fd = make_cspdarknet(pkey, depth=depth, width=width)

    # PyTorch-convention NCHW input, 3 channels (as required by layer_1).
    x = jax.random.normal(xkey, (2, 3, 32, 32), jnp.float32)

    fwd = jax.jit(functools.partial(cspdarknet_forward, params))
    outs = jax.block_until_ready(fwd(x))

    # strides 8 / 16 / 32
    assert outs[0].shape == (2, fd[2], 4, 4), outs[0].shape
    assert outs[1].shape == (2, fd[3], 2, 2), outs[1].shape
    assert outs[2].shape == (2, fd[4], 1, 1), outs[2].shape
    assert all(bool(jnp.all(jnp.isfinite(o))) for o in outs)

    print("KERNEL_OK")
</pallas_src>

<mosaic_0001>
module attributes {stable_mosaic.version = 11 : i64} {
  func.func @kernel(%arg0: i32, %arg1: memref<128x108xbf16, #tpu.memory_space<vmem>>, %arg2: memref<108x16xbf16, #tpu.memory_space<vmem>>, %arg3: memref<1x16xf32, #tpu.memory_space<vmem>>, %arg4: memref<128x16xbf16, #tpu.memory_space<vmem>>) attributes {dimension_semantics = [#tpu.dimension_semantics<parallel>], iteration_bounds = array<i64: 4>, scalar_prefetch = 0 : i64, scratch_operands = 0 : i64, tpu.core_type = #tpu.core_type<tc>, window_params = [{transform_indices = @transform_0, window_bounds = array<i64: 128, 108>}, {pipeline_mode = #tpu.pipeline_mode<synchronous>, transform_indices = @transform_1, window_bounds = array<i64: 108, 16>}, {pipeline_mode = #tpu.pipeline_mode<synchronous>, transform_indices = @transform_2, window_bounds = array<i64: 1, 16>}, {transform_indices = @transform_3, window_bounds = array<i64: 128, 16>}]} {
    %c0 = arith.constant 0 : index
    %c0_0 = arith.constant 0 : index
    %0 = vector.load %arg1[%c0, %c0_0] : memref<128x108xbf16, #tpu.memory_space<vmem>>, vector<128x108xbf16>
    %c0_1 = arith.constant 0 : index
    %c0_2 = arith.constant 0 : index
    %1 = vector.load %arg2[%c0_1, %c0_2] : memref<108x16xbf16, #tpu.memory_space<vmem>>, vector<108x16xbf16>
    %cst = arith.constant dense<0.000000e+00> : vector<128x16xf32>
    %2 = tpu.matmul %0, %1, %cst {dimension_numbers = #tpu.dot_dimension_numbers<[1], [0], [0], [1], [0, 0, 1, 1], [], []>} : vector<128x108xbf16>, vector<108x16xbf16>, vector<128x16xf32> -> vector<128x16xf32>
    %c0_3 = arith.constant 0 : index
    %c0_4 = arith.constant 0 : index
    %3 = vector.load %arg3[%c0_3, %c0_4] : memref<1x16xf32, #tpu.memory_space<vmem>>, vector<1x16xf32>
    %4 = vector.broadcast %3 : vector<1x16xf32> to vector<128x16xf32>
    %5 = arith.addf %2, %4 : vector<128x16xf32>
    %6 = arith.negf %5 : vector<128x16xf32>
    %7 = math.exp %6 : vector<128x16xf32>
    %cst_5 = arith.constant 1.000000e+00 : f32
    %8 = vector.broadcast %cst_5 : f32 to vector<128x16xf32>
    %9 = arith.addf %8, %7 : vector<128x16xf32>
    %10 = arith.divf %8, %9 : vector<128x16xf32>
    %11 = arith.mulf %5, %10 : vector<128x16xf32>
    %12 = arith.truncf %11 : vector<128x16xf32> to vector<128x16xbf16>
    %c0_6 = arith.constant 0 : index
    %c0_7 = arith.constant 0 : index
    %13 = vector.load %arg4[%c0_6, %c0_7] : memref<128x16xbf16, #tpu.memory_space<vmem>>, vector<128x16xbf16>
    tpu.vector_store %arg4[%c0_6, %c0_7], %12 {strides = array<i32>} : memref<128x16xbf16, #tpu.memory_space<vmem>>, vector<128x16xbf16>,
    return
  }
  func.func @transform_0(%arg0: i32) -> (i32, i32) {
    %c0_i32 = arith.constant 0 : i32
    %c0_i32_0 = arith.constant 0 : i32
    return %arg0, %c0_i32 : i32, i32
  }
  func.func @transform_1(%arg0: i32) -> (i32, i32) {
    %c0_i32 = arith.constant 0 : i32
    %c0_i32_0 = arith.constant 0 : i32
    %c0_i32_1 = arith.constant 0 : i32
    return %c0_i32, %c0_i32_0 : i32, i32
  }
  func.func @transform_2(%arg0: i32) -> (i32, i32) {
    %c0_i32 = arith.constant 0 : i32
    %c0_i32_0 = arith.constant 0 : i32
    %c0_i32_1 = arith.constant 0 : i32
    return %c0_i32, %c0_i32_0 : i32, i32
  }
  func.func @transform_3(%arg0: i32) -> (i32, i32) {
    %c0_i32 = arith.constant 0 : i32
    %c0_i32_0 = arith.constant 0 : i32
    return %arg0, %c0_i32 : i32, i32
  }
}

module attributes {stable_mosaic.version = 11 : i64} {
  func.func @kernel(%arg0: i32, %arg1: memref<64x32xbf16, #tpu.memory_space<vmem>>, %arg2: memref<32x32xbf16, #tpu.memory_space<vmem>>, %arg3: memref<1x32xf32, #tpu.memory_space<vmem>>, %arg4: memref<64x32xbf16, #tpu.memory_space<vmem>>) attributes {dimension_semantics = [#tpu.dimension_semantics<parallel>], iteration_bounds = array<i64: 2>, scalar_prefetch = 0 : i64, scratch_operands = 0 : i64, tpu.core_type = #tpu.core_type<tc>, window_params = [{transform_indices = @transform_0, window_bounds = array<i64: 64, 32>}, {pipeline_mode = #tpu.pipeline_mode<synchronous>, transform_indices = @transform_1, window_bounds = array<i64: 32, 32>}, {pipeline_mode = #tpu.pipeline_mode<synchronous>, transform_indices = @transform_2, window_bounds = array<i64: 1, 32>}, {transform_indices = @transform_3, window_bounds = array<i64: 64, 32>}]} {
    %c0 = arith.constant 0 : index
    %c0_0 = arith.constant 0 : index
    %0 = vector.load %arg1[%c0, %c0_0] : memref<64x32xbf16, #tpu.memory_space<vmem>>, vector<64x32xbf16>
    %c0_1 = arith.constant 0 : index
    %c0_2 = arith.constant 0 : index
    %1 = vector.load %arg2[%c0_1, %c0_2] : memref<32x32xbf16, #tpu.memory_space<vmem>>, vector<32x32xbf16>
    %cst = arith.constant dense<0.000000e+00> : vector<64x32xf32>
    %2 = tpu.matmul %0, %1, %cst {dimension_numbers = #tpu.dot_dimension_numbers<[1], [0], [0], [1], [0, 0, 1, 1], [], []>} : vector<64x32xbf16>, vector<32x32xbf16>, vector<64x32xf32> -> vector<64x32xf32>
    %c0_3 = arith.constant 0 : index
    %c0_4 = arith.constant 0 : index
    %3 = vector.load %arg3[%c0_3, %c0_4] : memref<1x32xf32, #tpu.memory_space<vmem>>, vector<1x32xf32>
    %4 = vector.broadcast %3 : vector<1x32xf32> to vector<64x32xf32>
    %5 = arith.addf %2, %4 : vector<64x32xf32>
    %6 = arith.negf %5 : vector<64x32xf32>
    %7 = math.exp %6 : vector<64x32xf32>
    %cst_5 = arith.constant 1.000000e+00 : f32
    %8 = vector.broadcast %cst_5 : f32 to vector<64x32xf32>
    %9 = arith.addf %8, %7 : vector<64x32xf32>
    %10 = arith.divf %8, %9 : vector<64x32xf32>
    %11 = arith.mulf %5, %10 : vector<64x32xf32>
    %12 = arith.truncf %11 : vector<64x32xf32> to vector<64x32xbf16>
    %c0_6 = arith.constant 0 : index
    %c0_7 = arith.constant 0 : index
    %13 = vector.load %arg4[%c0_6, %c0_7] : memref<64x32xbf16, #tpu.memory_space<vmem>>, vector<64x32xbf16>
    tpu.vector_store %arg4[%c0_6, %c0_7], %12 {strides = array<i32>} : memref<64x32xbf16, #tpu.memory_space<vmem>>, vector<64x32xbf16>,
    return
  }
  func.func @transform_0(%arg0: i32) -> (i32, i32) {
    %c0_i32 = arith.constant 0 : i32
    %c0_i32_0 = arith.constant 0 : i32
    return %arg0, %c0_i32 : i32, i32
  }
  func.func @transform_1(%arg0: i32) -> (i32, i32) {
    %c0_i32 = arith.constant 0 : i32
    %c0_i32_0 = arith.constant 0 : i32
    %c0_i32_1 = arith.constant 0 : i32
    return %c0_i32, %c0_i32_0 : i32, i32
  }
  func.func @transform_2(%arg0: i32) -> (i32, i32) {
    %c0_i32 = arith.constant 0 : i32
    %c0_i32_0 = arith.constant 0 : i32
    %c0_i32_1 = arith.constant 0 : i32
    return %c0_i32, %c0_i32_0 : i32, i32
  }
  func.func @transform_3(%arg0: i32) -> (i32, i32) {
    %c0_i32 = arith.constant 0 : i32
    %c0_i32_0 = arith.constant 0 : i32
    return %arg0, %c0_i32 : i32, i32
  }
}

module attributes {stable_mosaic.version = 11 : i64} {
  func.func @kernel(%arg0: i32, %arg1: memref<64x144xbf16, #tpu.memory_space<vmem>>, %arg2: memref<144x32xbf16, #tpu.memory_space<vmem>>, %arg3: memref<1x32xf32, #tpu.memory_space<vmem>>, %arg4: memref<64x32xbf16, #tpu.memory_space<vmem>>) attributes {dimension_semantics = [#tpu.dimension_semantics<parallel>], iteration_bounds = array<i64: 2>, scalar_prefetch = 0 : i64, scratch_operands = 0 : i64, tpu.core_type = #tpu.core_type<tc>, window_params = [{transform_indices = @transform_0, window_bounds = array<i64: 64, 144>}, {pipeline_mode = #tpu.pipeline_mode<synchronous>, transform_indices = @transform_1, window_bounds = array<i64: 144, 32>}, {pipeline_mode = #tpu.pipeline_mode<synchronous>, transform_indices = @transform_2, window_bounds = array<i64: 1, 32>}, {transform_indices = @transform_3, window_bounds = array<i64: 64, 32>}]} {
    %c0 = arith.constant 0 : index
    %c0_0 = arith.constant 0 : index
    %0 = vector.load %arg1[%c0, %c0_0] : memref<64x144xbf16, #tpu.memory_space<vmem>>, vector<64x144xbf16>
    %c0_1 = arith.constant 0 : index
    %c0_2 = arith.constant 0 : index
    %1 = vector.load %arg2[%c0_1, %c0_2] : memref<144x32xbf16, #tpu.memory_space<vmem>>, vector<144x32xbf16>
    %cst = arith.constant dense<0.000000e+00> : vector<64x32xf32>
    %2 = tpu.matmul %0, %1, %cst {dimension_numbers = #tpu.dot_dimension_numbers<[1], [0], [0], [1], [0, 0, 1, 1], [], []>} : vector<64x144xbf16>, vector<144x32xbf16>, vector<64x32xf32> -> vector<64x32xf32>
    %c0_3 = arith.constant 0 : index
    %c0_4 = arith.constant 0 : index
    %3 = vector.load %arg3[%c0_3, %c0_4] : memref<1x32xf32, #tpu.memory_space<vmem>>, vector<1x32xf32>
    %4 = vector.broadcast %3 : vector<1x32xf32> to vector<64x32xf32>
    %5 = arith.addf %2, %4 : vector<64x32xf32>
    %6 = arith.negf %5 : vector<64x32xf32>
    %7 = math.exp %6 : vector<64x32xf32>
    %cst_5 = arith.constant 1.000000e+00 : f32
    %8 = vector.broadcast %cst_5 : f32 to vector<64x32xf32>
    %9 = arith.addf %8, %7 : vector<64x32xf32>
    %10 = arith.divf %8, %9 : vector<64x32xf32>
    %11 = arith.mulf %5, %10 : vector<64x32xf32>
    %12 = arith.truncf %11 : vector<64x32xf32> to vector<64x32xbf16>
    %c0_6 = arith.constant 0 : index
    %c0_7 = arith.constant 0 : index
    %13 = vector.load %arg4[%c0_6, %c0_7] : memref<64x32xbf16, #tpu.memory_space<vmem>>, vector<64x32xbf16>
    tpu.vector_store %arg4[%c0_6, %c0_7], %12 {strides = array<i32>} : memref<64x32xbf16, #tpu.memory_space<vmem>>, vector<64x32xbf16>,
    return
  }
  func.func @transform_0(%arg0: i32) -> (i32, i32) {
    %c0_i32 = arith.constant 0 : i32
    %c0_i32_0 = arith.constant 0 : i32
    return %arg0, %c0_i32 : i32, i32
  }
  func.func @transform_1(%arg0: i32) -> (i32, i32) {
    %c0_i32 = arith.constant 0 : i32
    %c0_i32_0 = arith.constant 0 : i32
    %c0_i32_1 = arith.constant 0 : i32
    return %c0_i32, %c0_i32_0 : i32, i32
  }
  func.func @transform_2(%arg0: i32) -> (i32, i32) {
    %c0_i32 = arith.constant 0 : i32
    %c0_i32_0 = arith.constant 0 : i32
    %c0_i32_1 = arith.constant 0 : i32
    return %c0_i32, %c0_i32_0 : i32, i32
  }
  func.func @transform_3(%arg0: i32) -> (i32, i32) {
    %c0_i32 = arith.constant 0 : i32
    %c0_i32_0 = arith.constant 0 : i32
    return %arg0, %c0_i32 : i32, i32
  }
}

module attributes {stable_mosaic.version = 11 : i64} {
  func.func @kernel(%arg0: i32, %arg1: memref<64x16xbf16, #tpu.memory_space<vmem>>, %arg2: memref<16x16xbf16, #tpu.memory_space<vmem>>, %arg3: memref<1x16xf32, #tpu.memory_space<vmem>>, %arg4: memref<64x16xbf16, #tpu.memory_space<vmem>>) attributes {dimension_semantics = [#tpu.dimension_semantics<parallel>], iteration_bounds = array<i64: 2>, scalar_prefetch = 0 : i64, scratch_operands = 0 : i64, tpu.core_type = #tpu.core_type<tc>, window_params = [{transform_indices = @transform_0, window_bounds = array<i64: 64, 16>}, {pipeline_mode = #tpu.pipeline_mode<synchronous>, transform_indices = @transform_1, window_bounds = array<i64: 16, 16>}, {pipeline_mode = #tpu.pipeline_mode<synchronous>, transform_indices = @transform_2, window_bounds = array<i64: 1, 16>}, {transform_indices = @transform_3, window_bounds = array<i64: 64, 16>}]} {
    %c0 = arith.constant 0 : index
    %c0_0 = arith.constant 0 : index
    %0 = vector.load %arg1[%c0, %c0_0] : memref<64x16xbf16, #tpu.memory_space<vmem>>, vector<64x16xbf16>
    %c0_1 = arith.constant 0 : index
    %c0_2 = arith.constant 0 : index
    %1 = vector.load %arg2[%c0_1, %c0_2] : memref<16x16xbf16, #tpu.memory_space<vmem>>, vector<16x16xbf16>
    %cst = arith.constant dense<0.000000e+00> : vector<64x16xf32>
    %2 = tpu.matmul %0, %1, %cst {dimension_numbers = #tpu.dot_dimension_numbers<[1], [0], [0], [1], [0, 0, 1, 1], [], []>} : vector<64x16xbf16>, vector<16x16xbf16>, vector<64x16xf32> -> vector<64x16xf32>
    %c0_3 = arith.constant 0 : index
    %c0_4 = arith.constant 0 : index
    %3 = vector.load %arg3[%c0_3, %c0_4] : memref<1x16xf32, #tpu.memory_space<vmem>>, vector<1x16xf32>
    %4 = vector.broadcast %3 : vector<1x16xf32> to vector<64x16xf32>
    %5 = arith.addf %2, %4 : vector<64x16xf32>
    %6 = arith.negf %5 : vector<64x16xf32>
    %7 = math.exp %6 : vector<64x16xf32>
    %cst_5 = arith.constant 1.000000e+00 : f32
    %8 = vector.broadcast %cst_5 : f32 to vector<64x16xf32>
    %9 = arith.addf %8, %7 : vector<64x16xf32>
    %10 = arith.divf %8, %9 : vector<64x16xf32>
    %11 = arith.mulf %5, %10 : vector<64x16xf32>
    %12 = arith.truncf %11 : vector<64x16xf32> to vector<64x16xbf16>
    %c0_6 = arith.constant 0 : index
    %c0_7 = arith.constant 0 : index
    %13 = vector.load %arg4[%c0_6, %c0_7] : memref<64x16xbf16, #tpu.memory_space<vmem>>, vector<64x16xbf16>
    tpu.vector_store %arg4[%c0_6, %c0_7], %12 {strides = array<i32>} : memref<64x16xbf16, #tpu.memory_space<vmem>>, vector<64x16xbf16>,
    return
  }
  func.func @transform_0(%arg0: i32) -> (i32, i32) {
    %c0_i32 = arith.constant 0 : i32
    %c0_i32_0 = arith.constant 0 : i32
    return %arg0, %c0_i32 : i32, i32
  }
  func.func @transform_1(%arg0: i32) -> (i32, i32) {
    %c0_i32 = arith.constant 0 : i32
    %c0_i32_0 = arith.constant 0 : i32
    %c0_i32_1 = arith.constant 0 : i32
    return %c0_i32, %c0_i32_0 : i32, i32
  }
  func.func @transform_2(%arg0: i32) -> (i32, i32) {
    %c0_i32 = arith.constant 0 : i32
    %c0_i32_0 = arith.constant 0 : i32
    %c0_i32_1 = arith.constant 0 : i32
    return %c0_i32, %c0_i32_0 : i32, i32
  }
  func.func @transform_3(%arg0: i32) -> (i32, i32) {
    %c0_i32 = arith.constant 0 : i32
    %c0_i32_0 = arith.constant 0 : i32
    return %arg0, %c0_i32 : i32, i32
  }
}

module attributes {stable_mosaic.version = 11 : i64} {
  func.func @kernel(%arg0: i32, %arg1: memref<64x144xbf16, #tpu.memory_space<vmem>>, %arg2: memref<144x16xbf16, #tpu.memory_space<vmem>>, %arg3: memref<1x16xf32, #tpu.memory_space<vmem>>, %arg4: memref<64x16xbf16, #tpu.memory_space<vmem>>, %arg5: memref<64x16xbf16, #tpu.memory_space<vmem>>) attributes {dimension_semantics = [#tpu.dimension_semantics<parallel>], iteration_bounds = array<i64: 2>, scalar_prefetch = 0 : i64, scratch_operands = 0 : i64, tpu.core_type = #tpu.core_type<tc>, window_params = [{transform_indices = @transform_0, window_bounds = array<i64: 64, 144>}, {pipeline_mode = #tpu.pipeline_mode<synchronous>, transform_indices = @transform_1, window_bounds = array<i64: 144, 16>}, {pipeline_mode = #tpu.pipeline_mode<synchronous>, transform_indices = @transform_2, window_bounds = array<i64: 1, 16>}, {transform_indices = @transform_3, window_bounds = array<i64: 64, 16>}, {transform_indices = @transform_4, window_bounds = array<i64: 64, 16>}]} {
    %c0 = arith.constant 0 : index
    %c0_0 = arith.constant 0 : index
    %0 = vector.load %arg1[%c0, %c0_0] : memref<64x144xbf16, #tpu.memory_space<vmem>>, vector<64x144xbf16>
    %c0_1 = arith.constant 0 : index
    %c0_2 = arith.constant 0 : index
    %1 = vector.load %arg2[%c0_1, %c0_2] : memref<144x16xbf16, #tpu.memory_space<vmem>>, vector<144x16xbf16>
    %cst = arith.constant dense<0.000000e+00> : vector<64x16xf32>
    %2 = tpu.matmul %0, %1, %cst {dimension_numbers = #tpu.dot_dimension_numbers<[1], [0], [0], [1], [0, 0, 1, 1], [], []>} : vector<64x144xbf16>, vector<144x16xbf16>, vector<64x16xf32> -> vector<64x16xf32>
    %c0_3 = arith.constant 0 : index
    %c0_4 = arith.constant 0 : index
    %3 = vector.load %arg3[%c0_3, %c0_4] : memref<1x16xf32, #tpu.memory_space<vmem>>, vector<1x16xf32>
    %4 = vector.broadcast %3 : vector<1x16xf32> to vector<64x16xf32>
    %5 = arith.addf %2, %4 : vector<64x16xf32>
    %6 = arith.negf %5 : vector<64x16xf32>
    %7 = math.exp %6 : vector<64x16xf32>
    %cst_5 = arith.constant 1.000000e+00 : f32
    %8 = vector.broadcast %cst_5 : f32 to vector<64x16xf32>
    %9 = arith.addf %8, %7 : vector<64x16xf32>
    %10 = arith.divf %8, %9 : vector<64x16xf32>
    %11 = arith.mulf %5, %10 : vector<64x16xf32>
    %c0_6 = arith.constant 0 : index
    %c0_7 = arith.constant 0 : index
    %12 = vector.load %arg4[%c0_6, %c0_7] : memref<64x16xbf16, #tpu.memory_space<vmem>>, vector<64x16xbf16>
    %13 = arith.extf %12 : vector<64x16xbf16> to vector<64x16xf32>
    %14 = arith.addf %11, %13 : vector<64x16xf32>
    %15 = arith.truncf %14 : vector<64x16xf32> to vector<64x16xbf16>
    %c0_8 = arith.constant 0 : index
    %c0_9 = arith.constant 0 : index
    %16 = vector.load %arg5[%c0_8, %c0_9] : memref<64x16xbf16, #tpu.memory_space<vmem>>, vector<64x16xbf16>
    tpu.vector_store %arg5[%c0_8, %c0_9], %15 {strides = array<i32>} : memref<64x16xbf16, #tpu.memory_space<vmem>>, vector<64x16xbf16>,
    return
  }
  func.func @transform_0(%arg0: i32) -> (i32, i32) {
    %c0_i32 = arith.constant 0 : i32
    %c0_i32_0 = arith.constant 0 : i32
    return %arg0, %c0_i32 : i32, i32
  }
  func.func @transform_1(%arg0: i32) -> (i32, i32) {
    %c0_i32 = arith.constant 0 : i32
    %c0_i32_0 = arith.constant 0 : i32
    %c0_i32_1 = arith.constant 0 : i32
    return %c0_i32, %c0_i32_0 : i32, i32
  }
  func.func @transform_2(%arg0: i32) -> (i32, i32) {
    %c0_i32 = arith.constant 0 : i32
    %c0_i32_0 = arith.constant 0 : i32
    %c0_i32_1 = arith.constant 0 : i32
    return %c0_i32, %c0_i32_0 : i32, i32
  }
  func.func @transform_3(%arg0: i32) -> (i32, i32) {
    %c0_i32 = arith.constant 0 : i32
    %c0_i32_0 = arith.constant 0 : i32
    return %arg0, %c0_i32 : i32, i32
  }
  func.func @transform_4(%arg0: i32) -> (i32, i32) {
    %c0_i32 = arith.constant 0 : i32
    %c0_i32_0 = arith.constant 0 : i32
    return %arg0, %c0_i32 : i32, i32
  }
}

module attributes {stable_mosaic.version = 11 : i64} {
  func.func @kernel(%arg0: i32, %arg1: memref<64x16xbf16, #tpu.memory_space<vmem>>, %arg2: memref<64x16xbf16, #tpu.memory_space<vmem>>, %arg3: memref<16x32xbf16, #tpu.memory_space<vmem>>, %arg4: memref<16x32xbf16, #tpu.memory_space<vmem>>, %arg5: memref<1x32xf32, #tpu.memory_space<vmem>>, %arg6: memref<64x32xbf16, #tpu.memory_space<vmem>>) attributes {dimension_semantics = [#tpu.dimension_semantics<parallel>], iteration_bounds = array<i64: 2>, scalar_prefetch = 0 : i64, scratch_operands = 0 : i64, tpu.core_type = #tpu.core_type<tc>, window_params = [{transform_indices = @transform_0, window_bounds = array<i64: 64, 16>}, {transform_indices = @transform_1, window_bounds = array<i64: 64, 16>}, {pipeline_mode = #tpu.pipeline_mode<synchronous>, transform_indices = @transform_2, window_bounds = array<i64: 16, 32>}, {pipeline_mode = #tpu.pipeline_mode<synchronous>, transform_indices = @transform_3, window_bounds = array<i64: 16, 32>}, {pipeline_mode = #tpu.pipeline_mode<synchronous>, transform_indices = @transform_4, window_bounds = array<i64: 1, 32>}, {transform_indices = @transform_5, window_bounds = array<i64: 64, 32>}]} {
    %c0 = arith.constant 0 : index
    %c0_0 = arith.constant 0 : index
    %0 = vector.load %arg1[%c0, %c0_0] : memref<64x16xbf16, #tpu.memory_space<vmem>>, vector<64x16xbf16>
    %c0_1 = arith.constant 0 : index
    %c0_2 = arith.constant 0 : index
    %1 = vector.load %arg3[%c0_1, %c0_2] : memref<16x32xbf16, #tpu.memory_space<vmem>>, vector<16x32xbf16>
    %cst = arith.constant dense<0.000000e+00> : vector<64x32xf32>
    %2 = tpu.matmul %0, %1, %cst {dimension_numbers = #tpu.dot_dimension_numbers<[1], [0], [0], [1], [0, 0, 1, 1], [], []>} : vector<64x16xbf16>, vector<16x32xbf16>, vector<64x32xf32> -> vector<64x32xf32>
    %c0_3 = arith.constant 0 : index
    %c0_4 = arith.constant 0 : index
    %3 = vector.load %arg2[%c0_3, %c0_4] : memref<64x16xbf16, #tpu.memory_space<vmem>>, vector<64x16xbf16>
    %c0_5 = arith.constant 0 : index
    %c0_6 = arith.constant 0 : index
    %4 = vector.load %arg4[%c0_5, %c0_6] : memref<16x32xbf16, #tpu.memory_space<vmem>>, vector<16x32xbf16>
    %cst_7 = arith.constant dense<0.000000e+00> : vector<64x32xf32>
    %5 = tpu.matmul %3, %4, %cst_7 {dimension_numbers = #tpu.dot_dimension_numbers<[1], [0], [0], [1], [0, 0, 1, 1], [], []>} : vector<64x16xbf16>, vector<16x32xbf16>, vector<64x32xf32> -> vector<64x32xf32>
    %6 = arith.addf %2, %5 : vector<64x32xf32>
    %c0_8 = arith.constant 0 : index
    %c0_9 = arith.constant 0 : index
    %7 = vector.load %arg5[%c0_8, %c0_9] : memref<1x32xf32, #tpu.memory_space<vmem>>, vector<1x32xf32>
    %8 = vector.broadcast %7 : vector<1x32xf32> to vector<64x32xf32>
    %9 = arith.addf %6, %8 : vector<64x32xf32>
    %10 = arith.negf %9 : vector<64x32xf32>
    %11 = math.exp %10 : vector<64x32xf32>
    %cst_10 = arith.constant 1.000000e+00 : f32
    %12 = vector.broadcast %cst_10 : f32 to vector<64x32xf32>
    %13 = arith.addf %12, %11 : vector<64x32xf32>
    %14 = arith.divf %12, %13 : vector<64x32xf32>
    %15 = arith.mulf %9, %14 : vector<64x32xf32>
    %16 = arith.truncf %15 : vector<64x32xf32> to vector<64x32xbf16>
    %c0_11 = arith.constant 0 : index
    %c0_12 = arith.constant 0 : index
    %17 = vector.load %arg6[%c0_11, %c0_12] : memref<64x32xbf16, #tpu.memory_space<vmem>>, vector<64x32xbf16>
    tpu.vector_store %arg6[%c0_11, %c0_12], %16 {strides = array<i32>} : memref<64x32xbf16, #tpu.memory_space<vmem>>, vector<64x32xbf16>,
    return
  }
  func.func @transform_0(%arg0: i32) -> (i32, i32) {
    %c0_i32 = arith.constant 0 : i32
    %c0_i32_0 = arith.constant 0 : i32
    return %arg0, %c0_i32 : i32, i32
  }
  func.func @transform_1(%arg0: i32) -> (i32, i32) {
    %c0_i32 = arith.constant 0 : i32
    %c0_i32_0 = arith.constant 0 : i32
    return %arg0, %c0_i32 : i32, i32
  }
  func.func @transform_2(%arg0: i32) -> (i32, i32) {
    %c0_i32 = arith.constant 0 : i32
    %c0_i32_0 = arith.constant 0 : i32
    %c0_i32_1 = arith.constant 0 : i32
    return %c0_i32, %c0_i32_0 : i32, i32
  }
  func.func @transform_3(%arg0: i32) -> (i32, i32) {
    %c0_i32 = arith.constant 0 : i32
    %c0_i32_0 = arith.constant 0 : i32
    %c0_i32_1 = arith.constant 0 : i32
    return %c0_i32, %c0_i32_0 : i32, i32
  }
  func.func @transform_4(%arg0: i32) -> (i32, i32) {
    %c0_i32 = arith.constant 0 : i32
    %c0_i32_0 = arith.constant 0 : i32
    %c0_i32_1 = arith.constant 0 : i32
    return %c0_i32, %c0_i32_0 : i32, i32
  }
  func.func @transform_5(%arg0: i32) -> (i32, i32) {
    %c0_i32 = arith.constant 0 : i32
    %c0_i32_0 = arith.constant 0 : i32
    return %arg0, %c0_i32 : i32, i32
  }
}

module attributes {stable_mosaic.version = 11 : i64} {
  func.func @kernel(%arg0: i32, %arg1: memref<16x288xbf16, #tpu.memory_space<vmem>>, %arg2: memref<288x64xbf16, #tpu.memory_space<vmem>>, %arg3: memref<1x64xf32, #tpu.memory_space<vmem>>, %arg4: memref<16x64xbf16, #tpu.memory_space<vmem>>) attributes {dimension_semantics = [#tpu.dimension_semantics<parallel>], iteration_bounds = array<i64: 2>, scalar_prefetch = 0 : i64, scratch_operands = 0 : i64, tpu.core_type = #tpu.core_type<tc>, window_params = [{transform_indices = @transform_0, window_bounds = array<i64: 16, 288>}, {pipeline_mode = #tpu.pipeline_mode<synchronous>, transform_indices = @transform_1, window_bounds = array<i64: 288, 64>}, {pipeline_mode = #tpu.pipeline_mode<synchronous>, transform_indices = @transform_2, window_bounds = array<i64: 1, 64>}, {transform_indices = @transform_3, window_bounds = array<i64: 16, 64>}]} {
    %c0 = arith.constant 0 : index
    %c0_0 = arith.constant 0 : index
    %0 = vector.load %arg1[%c0, %c0_0] : memref<16x288xbf16, #tpu.memory_space<vmem>>, vector<16x288xbf16>
    %c0_1 = arith.constant 0 : index
    %c0_2 = arith.constant 0 : index
    %1 = vector.load %arg2[%c0_1, %c0_2] : memref<288x64xbf16, #tpu.memory_space<vmem>>, vector<288x64xbf16>
    %cst = arith.constant dense<0.000000e+00> : vector<16x64xf32>
    %2 = tpu.matmul %0, %1, %cst {dimension_numbers = #tpu.dot_dimension_numbers<[1], [0], [0], [1], [0, 0, 1, 1], [], []>} : vector<16x288xbf16>, vector<288x64xbf16>, vector<16x64xf32> -> vector<16x64xf32>
    %c0_3 = arith.constant 0 : index
    %c0_4 = arith.constant 0 : index
    %3 = vector.load %arg3[%c0_3, %c0_4] : memref<1x64xf32, #tpu.memory_space<vmem>>, vector<1x64xf32>
    %4 = vector.broadcast %3 : vector<1x64xf32> to vector<16x64xf32>
    %5 = arith.addf %2, %4 : vector<16x64xf32>
    %6 = arith.negf %5 : vector<16x64xf32>
    %7 = math.exp %6 : vector<16x64xf32>
    %cst_5 = arith.constant 1.000000e+00 : f32
    %8 = vector.broadcast %cst_5 : f32 to vector<16x64xf32>
    %9 = arith.addf %8, %7 : vector<16x64xf32>
    %10 = arith.divf %8, %9 : vector<16x64xf32>
    %11 = arith.mulf %5, %10 : vector<16x64xf32>
    %12 = arith.truncf %11 : vector<16x64xf32> to vector<16x64xbf16>
    %c0_6 = arith.constant 0 : index
    %c0_7 = arith.constant 0 : index
    %13 = vector.load %arg4[%c0_6, %c0_7] : memref<16x64xbf16, #tpu.memory_space<vmem>>, vector<16x64xbf16>
    tpu.vector_store %arg4[%c0_6, %c0_7], %12 {strides = array<i32>} : memref<16x64xbf16, #tpu.memory_space<vmem>>, vector<16x64xbf16>,
    return
  }
  func.func @transform_0(%arg0: i32) -> (i32, i32) {
    %c0_i32 = arith.constant 0 : i32
    %c0_i32_0 = arith.constant 0 : i32
    return %arg0, %c0_i32 : i32, i32
  }
  func.func @transform_1(%arg0: i32) -> (i32, i32) {
    %c0_i32 = arith.constant 0 : i32
    %c0_i32_0 = arith.constant 0 : i32
    %c0_i32_1 = arith.constant 0 : i32
    return %c0_i32, %c0_i32_0 : i32, i32
  }
  func.func @transform_2(%arg0: i32) -> (i32, i32) {
    %c0_i32 = arith.constant 0 : i32
    %c0_i32_0 = arith.constant 0 : i32
    %c0_i32_1 = arith.constant 0 : i32
    return %c0_i32, %c0_i32_0 : i32, i32
  }
  func.func @transform_3(%arg0: i32) -> (i32, i32) {
    %c0_i32 = arith.constant 0 : i32
    %c0_i32_0 = arith.constant 0 : i32
    return %arg0, %c0_i32 : i32, i32
  }
}

module attributes {stable_mosaic.version = 11 : i64} {
  func.func @kernel(%arg0: i32, %arg1: memref<16x64xbf16, #tpu.memory_space<vmem>>, %arg2: memref<64x64xbf16, #tpu.memory_space<vmem>>, %arg3: memref<1x64xf32, #tpu.memory_space<vmem>>, %arg4: memref<16x64xbf16, #tpu.memory_space<vmem>>) attributes {dimension_semantics = [#tpu.dimension_semantics<parallel>], iteration_bounds = array<i64: 2>, scalar_prefetch = 0 : i64, scratch_operands = 0 : i64, tpu.core_type = #tpu.core_type<tc>, window_params = [{transform_indices = @transform_0, window_bounds = array<i64: 16, 64>}, {pipeline_mode = #tpu.pipeline_mode<synchronous>, transform_indices = @transform_1, window_bounds = array<i64: 64, 64>}, {pipeline_mode = #tpu.pipeline_mode<synchronous>, transform_indices = @transform_2, window_bounds = array<i64: 1, 64>}, {transform_indices = @transform_3, window_bounds = array<i64: 16, 64>}]} {
    %c0 = arith.constant 0 : index
    %c0_0 = arith.constant 0 : index
    %0 = vector.load %arg1[%c0, %c0_0] : memref<16x64xbf16, #tpu.memory_space<vmem>>, vector<16x64xbf16>
    %c0_1 = arith.constant 0 : index
    %c0_2 = arith.constant 0 : index
    %1 = vector.load %arg2[%c0_1, %c0_2] : memref<64x64xbf16, #tpu.memory_space<vmem>>, vector<64x64xbf16>
    %cst = arith.constant dense<0.000000e+00> : vector<16x64xf32>
    %2 = tpu.matmul %0, %1, %cst {dimension_numbers = #tpu.dot_dimension_numbers<[1], [0], [0], [1], [0, 0, 1, 1], [], []>} : vector<16x64xbf16>, vector<64x64xbf16>, vector<16x64xf32> -> vector<16x64xf32>
    %c0_3 = arith.constant 0 : index
    %c0_4 = arith.constant 0 : index
    %3 = vector.load %arg3[%c0_3, %c0_4] : memref<1x64xf32, #tpu.memory_space<vmem>>, vector<1x64xf32>
    %4 = vector.broadcast %3 : vector<1x64xf32> to vector<16x64xf32>
    %5 = arith.addf %2, %4 : vector<16x64xf32>
    %6 = arith.negf %5 : vector<16x64xf32>
    %7 = math.exp %6 : vector<16x64xf32>
    %cst_5 = arith.constant 1.000000e+00 : f32
    %8 = vector.broadcast %cst_5 : f32 to vector<16x64xf32>
    %9 = arith.addf %8, %7 : vector<16x64xf32>
    %10 = arith.divf %8, %9 : vector<16x64xf32>
    %11 = arith.mulf %5, %10 : vector<16x64xf32>
    %12 = arith.truncf %11 : vector<16x64xf32> to vector<16x64xbf16>
    %c0_6 = arith.constant 0 : index
    %c0_7 = arith.constant 0 : index
    %13 = vector.load %arg4[%c0_6, %c0_7] : memref<16x64xbf16, #tpu.memory_space<vmem>>, vector<16x64xbf16>
    tpu.vector_store %arg4[%c0_6, %c0_7], %12 {strides = array<i32>} : memref<16x64xbf16, #tpu.memory_space<vmem>>, vector<16x64xbf16>,
    return
  }
  func.func @transform_0(%arg0: i32) -> (i32, i32) {
    %c0_i32 = arith.constant 0 : i32
    %c0_i32_0 = arith.constant 0 : i32
    return %arg0, %c0_i32 : i32, i32
  }
  func.func @transform_1(%arg0: i32) -> (i32, i32) {
    %c0_i32 = arith.constant 0 : i32
    %c0_i32_0 = arith.constant 0 : i32
    %c0_i32_1 = arith.constant 0 : i32
    return %c0_i32, %c0_i32_0 : i32, i32
  }
  func.func @transform_2(%arg0: i32) -> (i32, i32) {
    %c0_i32 = arith.constant 0 : i32
    %c0_i32_0 = arith.constant 0 : i32
    %c0_i32_1 = arith.constant 0 : i32
    return %c0_i32, %c0_i32_0 : i32, i32
  }
  func.func @transform_3(%arg0: i32) -> (i32, i32) {
    %c0_i32 = arith.constant 0 : i32
    %c0_i32_0 = arith.constant 0 : i32
    return %arg0, %c0_i32 : i32, i32
  }
}

module attributes {stable_mosaic.version = 11 : i64} {
  func.func @kernel(%arg0: i32, %arg1: memref<16x32xbf16, #tpu.memory_space<vmem>>, %arg2: memref<32x32xbf16, #tpu.memory_space<vmem>>, %arg3: memref<1x32xf32, #tpu.memory_space<vmem>>, %arg4: memref<16x32xbf16, #tpu.memory_space<vmem>>) attributes {dimension_semantics = [#tpu.dimension_semantics<parallel>], iteration_bounds = array<i64: 2>, scalar_prefetch = 0 : i64, scratch_operands = 0 : i64, tpu.core_type = #tpu.core_type<tc>, window_params = [{transform_indices = @transform_0, window_bounds = array<i64: 16, 32>}, {pipeline_mode = #tpu.pipeline_mode<synchronous>, transform_indices = @transform_1, window_bounds = array<i64: 32, 32>}, {pipeline_mode = #tpu.pipeline_mode<synchronous>, transform_indices = @transform_2, window_bounds = array<i64: 1, 32>}, {transform_indices = @transform_3, window_bounds = array<i64: 16, 32>}]} {
    %c0 = arith.constant 0 : index
    %c0_0 = arith.constant 0 : index
    %0 = vector.load %arg1[%c0, %c0_0] : memref<16x32xbf16, #tpu.memory_space<vmem>>, vector<16x32xbf16>
    %c0_1 = arith.constant 0 : index
    %c0_2 = arith.constant 0 : index
    %1 = vector.load %arg2[%c0_1, %c0_2] : memref<32x32xbf16, #tpu.memory_space<vmem>>, vector<32x32xbf16>
    %cst = arith.constant dense<0.000000e+00> : vector<16x32xf32>
    %2 = tpu.matmul %0, %1, %cst {dimension_numbers = #tpu.dot_dimension_numbers<[1], [0], [0], [1], [0, 0, 1, 1], [], []>} : vector<16x32xbf16>, vector<32x32xbf16>, vector<16x32xf32> -> vector<16x32xf32>
    %c0_3 = arith.constant 0 : index
    %c0_4 = arith.constant 0 : index
    %3 = vector.load %arg3[%c0_3, %c0_4] : memref<1x32xf32, #tpu.memory_space<vmem>>, vector<1x32xf32>
    %4 = vector.broadcast %3 : vector<1x32xf32> to vector<16x32xf32>
    %5 = arith.addf %2, %4 : vector<16x32xf32>
    %6 = arith.negf %5 : vector<16x32xf32>
    %7 = math.exp %6 : vector<16x32xf32>
    %cst_5 = arith.constant 1.000000e+00 : f32
    %8 = vector.broadcast %cst_5 : f32 to vector<16x32xf32>
    %9 = arith.addf %8, %7 : vector<16x32xf32>
    %10 = arith.divf %8, %9 : vector<16x32xf32>
    %11 = arith.mulf %5, %10 : vector<16x32xf32>
    %12 = arith.truncf %11 : vector<16x32xf32> to vector<16x32xbf16>
    %c0_6 = arith.constant 0 : index
    %c0_7 = arith.constant 0 : index
    %13 = vector.load %arg4[%c0_6, %c0_7] : memref<16x32xbf16, #tpu.memory_space<vmem>>, vector<16x32xbf16>
    tpu.vector_store %arg4[%c0_6, %c0_7], %12 {strides = array<i32>} : memref<16x32xbf16, #tpu.memory_space<vmem>>, vector<16x32xbf16>,
    return
  }
  func.func @transform_0(%arg0: i32) -> (i32, i32) {
    %c0_i32 = arith.constant 0 : i32
    %c0_i32_0 = arith.constant 0 : i32
    return %arg0, %c0_i32 : i32, i32
  }
  func.func @transform_1(%arg0: i32) -> (i32, i32) {
    %c0_i32 = arith.constant 0 : i32
    %c0_i32_0 = arith.constant 0 : i32
    %c0_i32_1 = arith.constant 0 : i32
    return %c0_i32, %c0_i32_0 : i32, i32
  }
  func.func @transform_2(%arg0: i32) -> (i32, i32) {
    %c0_i32 = arith.constant 0 : i32
    %c0_i32_0 = arith.constant 0 : i32
    %c0_i32_1 = arith.constant 0 : i32
    return %c0_i32, %c0_i32_0 : i32, i32
  }
  func.func @transform_3(%arg0: i32) -> (i32, i32) {
    %c0_i32 = arith.constant 0 : i32
    %c0_i32_0 = arith.constant 0 : i32
    return %arg0, %c0_i32 : i32, i32
  }
}

module attributes {stable_mosaic.version = 11 : i64} {
  func.func @kernel(%arg0: i32, %arg1: memref<16x288xbf16, #tpu.memory_space<vmem>>, %arg2: memref<288x32xbf16, #tpu.memory_space<vmem>>, %arg3: memref<1x32xf32, #tpu.memory_space<vmem>>, %arg4: memref<16x32xbf16, #tpu.memory_space<vmem>>, %arg5: memref<16x32xbf16, #tpu.memory_space<vmem>>) attributes {dimension_semantics = [#tpu.dimension_semantics<parallel>], iteration_bounds = array<i64: 2>, scalar_prefetch = 0 : i64, scratch_operands = 0 : i64, tpu.core_type = #tpu.core_type<tc>, window_params = [{transform_indices = @transform_0, window_bounds = array<i64: 16, 288>}, {pipeline_mode = #tpu.pipeline_mode<synchronous>, transform_indices = @transform_1, window_bounds = array<i64: 288, 32>}, {pipeline_mode = #tpu.pipeline_mode<synchronous>, transform_indices = @transform_2, window_bounds = array<i64: 1, 32>}, {transform_indices = @transform_3, window_bounds = array<i64: 16, 32>}, {transform_indices = @transform_4, window_bounds = array<i64: 16, 32>}]} {
    %c0 = arith.constant 0 : index
    %c0_0 = arith.constant 0 : index
    %0 = vector.load %arg1[%c0, %c0_0] : memref<16x288xbf16, #tpu.memory_space<vmem>>, vector<16x288xbf16>
    %c0_1 = arith.constant 0 : index
    %c0_2 = arith.constant 0 : index
    %1 = vector.load %arg2[%c0_1, %c0_2] : memref<288x32xbf16, #tpu.memory_space<vmem>>, vector<288x32xbf16>
    %cst = arith.constant dense<0.000000e+00> : vector<16x32xf32>
    %2 = tpu.matmul %0, %1, %cst {dimension_numbers = #tpu.dot_dimension_numbers<[1], [0], [0], [1], [0, 0, 1, 1], [], []>} : vector<16x288xbf16>, vector<288x32xbf16>, vector<16x32xf32> -> vector<16x32xf32>
    %c0_3 = arith.constant 0 : index
    %c0_4 = arith.constant 0 : index
    %3 = vector.load %arg3[%c0_3, %c0_4] : memref<1x32xf32, #tpu.memory_space<vmem>>, vector<1x32xf32>
    %4 = vector.broadcast %3 : vector<1x32xf32> to vector<16x32xf32>
    %5 = arith.addf %2, %4 : vector<16x32xf32>
    %6 = arith.negf %5 : vector<16x32xf32>
    %7 = math.exp %6 : vector<16x32xf32>
    %cst_5 = arith.constant 1.000000e+00 : f32
    %8 = vector.broadcast %cst_5 : f32 to vector<16x32xf32>
    %9 = arith.addf %8, %7 : vector<16x32xf32>
    %10 = arith.divf %8, %9 : vector<16x32xf32>
    %11 = arith.mulf %5, %10 : vector<16x32xf32>
    %c0_6 = arith.constant 0 : index
    %c0_7 = arith.constant 0 : index
    %12 = vector.load %arg4[%c0_6, %c0_7] : memref<16x32xbf16, #tpu.memory_space<vmem>>, vector<16x32xbf16>
    %13 = arith.extf %12 : vector<16x32xbf16> to vector<16x32xf32>
    %14 = arith.addf %11, %13 : vector<16x32xf32>
    %15 = arith.truncf %14 : vector<16x32xf32> to vector<16x32xbf16>
    %c0_8 = arith.constant 0 : index
    %c0_9 = arith.constant 0 : index
    %16 = vector.load %arg5[%c0_8, %c0_9] : memref<16x32xbf16, #tpu.memory_space<vmem>>, vector<16x32xbf16>
    tpu.vector_store %arg5[%c0_8, %c0_9], %15 {strides = array<i32>} : memref<16x32xbf16, #tpu.memory_space<vmem>>, vector<16x32xbf16>,
    return
  }
  func.func @transform_0(%arg0: i32) -> (i32, i32) {
    %c0_i32 = arith.constant 0 : i32
    %c0_i32_0 = arith.constant 0 : i32
    return %arg0, %c0_i32 : i32, i32
  }
  func.func @transform_1(%arg0: i32) -> (i32, i32) {
    %c0_i32 = arith.constant 0 : i32
    %c0_i32_0 = arith.constant 0 : i32
    %c0_i32_1 = arith.constant 0 : i32
    return %c0_i32, %c0_i32_0 : i32, i32
  }
  func.func @transform_2(%arg0: i32) -> (i32, i32) {
    %c0_i32 = arith.constant 0 : i32
    %c0_i32_0 = arith.constant 0 : i32
    %c0_i32_1 = arith.constant 0 : i32
    return %c0_i32, %c0_i32_0 : i32, i32
  }
  func.func @transform_3(%arg0: i32) -> (i32, i32) {
    %c0_i32 = arith.constant 0 : i32
    %c0_i32_0 = arith.constant 0 : i32
    return %arg0, %c0_i32 : i32, i32
  }
  func.func @transform_4(%arg0: i32) -> (i32, i32) {
    %c0_i32 = arith.constant 0 : i32
    %c0_i32_0 = arith.constant 0 : i32
    return %arg0, %c0_i32 : i32, i32
  }
}

module attributes {stable_mosaic.version = 11 : i64} {
  func.func @kernel(%arg0: i32, %arg1: memref<16x32xbf16, #tpu.memory_space<vmem>>, %arg2: memref<16x32xbf16, #tpu.memory_space<vmem>>, %arg3: memref<32x64xbf16, #tpu.memory_space<vmem>>, %arg4: memref<32x64xbf16, #tpu.memory_space<vmem>>, %arg5: memref<1x64xf32, #tpu.memory_space<vmem>>, %arg6: memref<16x64xbf16, #tpu.memory_space<vmem>>) attributes {dimension_semantics = [#tpu.dimension_semantics<parallel>], iteration_bounds = array<i64: 2>, scalar_prefetch = 0 : i64, scratch_operands = 0 : i64, tpu.core_type = #tpu.core_type<tc>, window_params = [{transform_indices = @transform_0, window_bounds = array<i64: 16, 32>}, {transform_indices = @transform_1, window_bounds = array<i64: 16, 32>}, {pipeline_mode = #tpu.pipeline_mode<synchronous>, transform_indices = @transform_2, window_bounds = array<i64: 32, 64>}, {pipeline_mode = #tpu.pipeline_mode<synchronous>, transform_indices = @transform_3, window_bounds = array<i64: 32, 64>}, {pipeline_mode = #tpu.pipeline_mode<synchronous>, transform_indices = @transform_4, window_bounds = array<i64: 1, 64>}, {transform_indices = @transform_5, window_bounds = array<i64: 16, 64>}]} {
    %c0 = arith.constant 0 : index
    %c0_0 = arith.constant 0 : index
    %0 = vector.load %arg1[%c0, %c0_0] : memref<16x32xbf16, #tpu.memory_space<vmem>>, vector<16x32xbf16>
    %c0_1 = arith.constant 0 : index
    %c0_2 = arith.constant 0 : index
    %1 = vector.load %arg3[%c0_1, %c0_2] : memref<32x64xbf16, #tpu.memory_space<vmem>>, vector<32x64xbf16>
    %cst = arith.constant dense<0.000000e+00> : vector<16x64xf32>
    %2 = tpu.matmul %0, %1, %cst {dimension_numbers = #tpu.dot_dimension_numbers<[1], [0], [0], [1], [0, 0, 1, 1], [], []>} : vector<16x32xbf16>, vector<32x64xbf16>, vector<16x64xf32> -> vector<16x64xf32>
    %c0_3 = arith.constant 0 : index
    %c0_4 = arith.constant 0 : index
    %3 = vector.load %arg2[%c0_3, %c0_4] : memref<16x32xbf16, #tpu.memory_space<vmem>>, vector<16x32xbf16>
    %c0_5 = arith.constant 0 : index
    %c0_6 = arith.constant 0 : index
    %4 = vector.load %arg4[%c0_5, %c0_6] : memref<32x64xbf16, #tpu.memory_space<vmem>>, vector<32x64xbf16>
    %cst_7 = arith.constant dense<0.000000e+00> : vector<16x64xf32>
    %5 = tpu.matmul %3, %4, %cst_7 {dimension_numbers = #tpu.dot_dimension_numbers<[1], [0], [0], [1], [0, 0, 1, 1], [], []>} : vector<16x32xbf16>, vector<32x64xbf16>, vector<16x64xf32> -> vector<16x64xf32>
    %6 = arith.addf %2, %5 : vector<16x64xf32>
    %c0_8 = arith.constant 0 : index
    %c0_9 = arith.constant 0 : index
    %7 = vector.load %arg5[%c0_8, %c0_9] : memref<1x64xf32, #tpu.memory_space<vmem>>, vector<1x64xf32>
    %8 = vector.broadcast %7 : vector<1x64xf32> to vector<16x64xf32>
    %9 = arith.addf %6, %8 : vector<16x64xf32>
    %10 = arith.negf %9 : vector<16x64xf32>
    %11 = math.exp %10 : vector<16x64xf32>
    %cst_10 = arith.constant 1.000000e+00 : f32
    %12 = vector.broadcast %cst_10 : f32 to vector<16x64xf32>
    %13 = arith.addf %12, %11 : vector<16x64xf32>
    %14 = arith.divf %12, %13 : vector<16x64xf32>
    %15 = arith.mulf %9, %14 : vector<16x64xf32>
    %16 = arith.truncf %15 : vector<16x64xf32> to vector<16x64xbf16>
    %c0_11 = arith.constant 0 : index
    %c0_12 = arith.constant 0 : index
    %17 = vector.load %arg6[%c0_11, %c0_12] : memref<16x64xbf16, #tpu.memory_space<vmem>>, vector<16x64xbf16>
    tpu.vector_store %arg6[%c0_11, %c0_12], %16 {strides = array<i32>} : memref<16x64xbf16, #tpu.memory_space<vmem>>, vector<16x64xbf16>,
    return
  }
  func.func @transform_0(%arg0: i32) -> (i32, i32) {
    %c0_i32 = arith.constant 0 : i32
    %c0_i32_0 = arith.constant 0 : i32
    return %arg0, %c0_i32 : i32, i32
  }
  func.func @transform_1(%arg0: i32) -> (i32, i32) {
    %c0_i32 = arith.constant 0 : i32
    %c0_i32_0 = arith.constant 0 : i32
    return %arg0, %c0_i32 : i32, i32
  }
  func.func @transform_2(%arg0: i32) -> (i32, i32) {
    %c0_i32 = arith.constant 0 : i32
    %c0_i32_0 = arith.constant 0 : i32
    %c0_i32_1 = arith.constant 0 : i32
    return %c0_i32, %c0_i32_0 : i32, i32
  }
  func.func @transform_3(%arg0: i32) -> (i32, i32) {
    %c0_i32 = arith.constant 0 : i32
    %c0_i32_0 = arith.constant 0 : i32
    %c0_i32_1 = arith.constant 0 : i32
    return %c0_i32, %c0_i32_0 : i32, i32
  }
  func.func @transform_4(%arg0: i32) -> (i32, i32) {
    %c0_i32 = arith.constant 0 : i32
    %c0_i32_0 = arith.constant 0 : i32
    %c0_i32_1 = arith.constant 0 : i32
    return %c0_i32, %c0_i32_0 : i32, i32
  }
  func.func @transform_5(%arg0: i32) -> (i32, i32) {
    %c0_i32 = arith.constant 0 : i32
    %c0_i32_0 = arith.constant 0 : i32
    return %arg0, %c0_i32 : i32, i32
  }
}

module attributes {stable_mosaic.version = 11 : i64} {
  func.func @kernel(%arg0: i32, %arg1: memref<8x576xbf16, #tpu.memory_space<vmem>>, %arg2: memref<576x128xbf16, #tpu.memory_space<vmem>>, %arg3: memref<1x128xf32, #tpu.memory_space<vmem>>, %arg4: memref<8x128xbf16, #tpu.memory_space<vmem>>) attributes {dimension_semantics = [#tpu.dimension_semantics<parallel>], iteration_bounds = array<i64: 1>, scalar_prefetch = 0 : i64, scratch_operands = 0 : i64, tpu.core_type = #tpu.core_type<tc>, window_params = [{transform_indices = @transform_0, window_bounds = array<i64: 8, 576>}, {pipeline_mode = #tpu.pipeline_mode<synchronous>, transform_indices = @transform_1, window_bounds = array<i64: 576, 128>}, {pipeline_mode = #tpu.pipeline_mode<synchronous>, transform_indices = @transform_2, window_bounds = array<i64: 1, 128>}, {transform_indices = @transform_3, window_bounds = array<i64: 8, 128>}]} {
    %c0 = arith.constant 0 : index
    %c0_0 = arith.constant 0 : index
    %0 = vector.load %arg1[%c0, %c0_0] : memref<8x576xbf16, #tpu.memory_space<vmem>>, vector<8x576xbf16>
    %c0_1 = arith.constant 0 : index
    %c0_2 = arith.constant 0 : index
    %1 = vector.load %arg2[%c0_1, %c0_2] : memref<576x128xbf16, #tpu.memory_space<vmem>>, vector<576x128xbf16>
    %cst = arith.constant dense<0.000000e+00> : vector<8x128xf32>
    %2 = tpu.matmul %0, %1, %cst {dimension_numbers = #tpu.dot_dimension_numbers<[1], [0], [0], [1], [0, 0, 1, 1], [], []>} : vector<8x576xbf16>, vector<576x128xbf16>, vector<8x128xf32> -> vector<8x128xf32>
    %c0_3 = arith.constant 0 : index
    %c0_4 = arith.constant 0 : index
    %3 = vector.load %arg3[%c0_3, %c0_4] : memref<1x128xf32, #tpu.memory_space<vmem>>, vector<1x128xf32>
    %4 = vector.broadcast %3 : vector<1x128xf32> to vector<8x128xf32>
    %5 = arith.addf %2, %4 : vector<8x128xf32>
    %6 = arith.negf %5 : vector<8x128xf32>
    %7 = math.exp %6 : vector<8x128xf32>
    %cst_5 = arith.constant 1.000000e+00 : f32
    %8 = vector.broadcast %cst_5 : f32 to vector<8x128xf32>
    %9 = arith.addf %8, %7 : vector<8x128xf32>
    %10 = arith.divf %8, %9 : vector<8x128xf32>
    %11 = arith.mulf %5, %10 : vector<8x128xf32>
    %12 = arith.truncf %11 : vector<8x128xf32> to vector<8x128xbf16>
    %c0_6 = arith.constant 0 : index
    %c0_7 = arith.constant 0 : index
    %13 = vector.load %arg4[%c0_6, %c0_7] : memref<8x128xbf16, #tpu.memory_space<vmem>>, vector<8x128xbf16>
    tpu.vector_store %arg4[%c0_6, %c0_7], %12 {strides = array<i32>} : memref<8x128xbf16, #tpu.memory_space<vmem>>, vector<8x128xbf16>,
    return
  }
  func.func @transform_0(%arg0: i32) -> (i32, i32) {
    %c0_i32 = arith.constant 0 : i32
    %c0_i32_0 = arith.constant 0 : i32
    return %arg0, %c0_i32 : i32, i32
  }
  func.func @transform_1(%arg0: i32) -> (i32, i32) {
    %c0_i32 = arith.constant 0 : i32
    %c0_i32_0 = arith.constant 0 : i32
    %c0_i32_1 = arith.constant 0 : i32
    return %c0_i32, %c0_i32_0 : i32, i32
  }
  func.func @transform_2(%arg0: i32) -> (i32, i32) {
    %c0_i32 = arith.constant 0 : i32
    %c0_i32_0 = arith.constant 0 : i32
    %c0_i32_1 = arith.constant 0 : i32
    return %c0_i32, %c0_i32_0 : i32, i32
  }
  func.func @transform_3(%arg0: i32) -> (i32, i32) {
    %c0_i32 = arith.constant 0 : i32
    %c0_i32_0 = arith.constant 0 : i32
    return %arg0, %c0_i32 : i32, i32
  }
}

module attributes {stable_mosaic.version = 11 : i64} {
  func.func @kernel(%arg0: i32, %arg1: memref<8x128xbf16, #tpu.memory_space<vmem>>, %arg2: memref<128x128xbf16, #tpu.memory_space<vmem>>, %arg3: memref<1x128xf32, #tpu.memory_space<vmem>>, %arg4: memref<8x128xbf16, #tpu.memory_space<vmem>>) attributes {dimension_semantics = [#tpu.dimension_semantics<parallel>], iteration_bounds = array<i64: 1>, scalar_prefetch = 0 : i64, scratch_operands = 0 : i64, tpu.core_type = #tpu.core_type<tc>, window_params = [{transform_indices = @transform_0, window_bounds = array<i64: 8, 128>}, {pipeline_mode = #tpu.pipeline_mode<synchronous>, transform_indices = @transform_1, window_bounds = array<i64: 128, 128>}, {pipeline_mode = #tpu.pipeline_mode<synchronous>, transform_indices = @transform_2, window_bounds = array<i64: 1, 128>}, {transform_indices = @transform_3, window_bounds = array<i64: 8, 128>}]} {
    %c0 = arith.constant 0 : index
    %c0_0 = arith.constant 0 : index
    %0 = vector.load %arg1[%c0, %c0_0] : memref<8x128xbf16, #tpu.memory_space<vmem>>, vector<8x128xbf16>
    %c0_1 = arith.constant 0 : index
    %c0_2 = arith.constant 0 : index
    %1 = vector.load %arg2[%c0_1, %c0_2] : memref<128x128xbf16, #tpu.memory_space<vmem>>, vector<128x128xbf16>
    %cst = arith.constant dense<0.000000e+00> : vector<8x128xf32>
    %2 = tpu.matmul %0, %1, %cst {dimension_numbers = #tpu.dot_dimension_numbers<[1], [0], [0], [1], [0, 0, 1, 1], [], []>} : vector<8x128xbf16>, vector<128x128xbf16>, vector<8x128xf32> -> vector<8x128xf32>
    %c0_3 = arith.constant 0 : index
    %c0_4 = arith.constant 0 : index
    %3 = vector.load %arg3[%c0_3, %c0_4] : memref<1x128xf32, #tpu.memory_space<vmem>>, vector<1x128xf32>
    %4 = vector.broadcast %3 : vector<1x128xf32> to vector<8x128xf32>
    %5 = arith.addf %2, %4 : vector<8x128xf32>
    %6 = arith.negf %5 : vector<8x128xf32>
    %7 = math.exp %6 : vector<8x128xf32>
    %cst_5 = arith.constant 1.000000e+00 : f32
    %8 = vector.broadcast %cst_5 : f32 to vector<8x128xf32>
    %9 = arith.addf %8, %7 : vector<8x128xf32>
    %10 = arith.divf %8, %9 : vector<8x128xf32>
    %11 = arith.mulf %5, %10 : vector<8x128xf32>
    %12 = arith.truncf %11 : vector<8x128xf32> to vector<8x128xbf16>
    %c0_6 = arith.constant 0 : index
    %c0_7 = arith.constant 0 : index
    %13 = vector.load %arg4[%c0_6, %c0_7] : memref<8x128xbf16, #tpu.memory_space<vmem>>, vector<8x128xbf16>
    tpu.vector_store %arg4[%c0_6, %c0_7], %12 {strides = array<i32>} : memref<8x128xbf16, #tpu.memory_space<vmem>>, vector<8x128xbf16>,
    return
  }
  func.func @transform_0(%arg0: i32) -> (i32, i32) {
    %c0_i32 = arith.constant 0 : i32
    %c0_i32_0 = arith.constant 0 : i32
    return %arg0, %c0_i32 : i32, i32
  }
  func.func @transform_1(%arg0: i32) -> (i32, i32) {
    %c0_i32 = arith.constant 0 : i32
    %c0_i32_0 = arith.constant 0 : i32
    %c0_i32_1 = arith.constant 0 : i32
    return %c0_i32, %c0_i32_0 : i32, i32
  }
  func.func @transform_2(%arg0: i32) -> (i32, i32) {
    %c0_i32 = arith.constant 0 : i32
    %c0_i32_0 = arith.constant 0 : i32
    %c0_i32_1 = arith.constant 0 : i32
    return %c0_i32, %c0_i32_0 : i32, i32
  }
  func.func @transform_3(%arg0: i32) -> (i32, i32) {
    %c0_i32 = arith.constant 0 : i32
    %c0_i32_0 = arith.constant 0 : i32
    return %arg0, %c0_i32 : i32, i32
  }
}

module attributes {stable_mosaic.version = 11 : i64} {
  func.func @kernel(%arg0: i32, %arg1: memref<8x64xbf16, #tpu.memory_space<vmem>>, %arg2: memref<64x64xbf16, #tpu.memory_space<vmem>>, %arg3: memref<1x64xf32, #tpu.memory_space<vmem>>, %arg4: memref<8x64xbf16, #tpu.memory_space<vmem>>) attributes {dimension_semantics = [#tpu.dimension_semantics<parallel>], iteration_bounds = array<i64: 1>, scalar_prefetch = 0 : i64, scratch_operands = 0 : i64, tpu.core_type = #tpu.core_type<tc>, window_params = [{transform_indices = @transform_0, window_bounds = array<i64: 8, 64>}, {pipeline_mode = #tpu.pipeline_mode<synchronous>, transform_indices = @transform_1, window_bounds = array<i64: 64, 64>}, {pipeline_mode = #tpu.pipeline_mode<synchronous>, transform_indices = @transform_2, window_bounds = array<i64: 1, 64>}, {transform_indices = @transform_3, window_bounds = array<i64: 8, 64>}]} {
    %c0 = arith.constant 0 : index
    %c0_0 = arith.constant 0 : index
    %0 = vector.load %arg1[%c0, %c0_0] : memref<8x64xbf16, #tpu.memory_space<vmem>>, vector<8x64xbf16>
    %c0_1 = arith.constant 0 : index
    %c0_2 = arith.constant 0 : index
    %1 = vector.load %arg2[%c0_1, %c0_2] : memref<64x64xbf16, #tpu.memory_space<vmem>>, vector<64x64xbf16>
    %cst = arith.constant dense<0.000000e+00> : vector<8x64xf32>
    %2 = tpu.matmul %0, %1, %cst {dimension_numbers = #tpu.dot_dimension_numbers<[1], [0], [0], [1], [0, 0, 1, 1], [], []>} : vector<8x64xbf16>, vector<64x64xbf16>, vector<8x64xf32> -> vector<8x64xf32>
    %c0_3 = arith.constant 0 : index
    %c0_4 = arith.constant 0 : index
    %3 = vector.load %arg3[%c0_3, %c0_4] : memref<1x64xf32, #tpu.memory_space<vmem>>, vector<1x64xf32>
    %4 = vector.broadcast %3 : vector<1x64xf32> to vector<8x64xf32>
    %5 = arith.addf %2, %4 : vector<8x64xf32>
    %6 = arith.negf %5 : vector<8x64xf32>
    %7 = math.exp %6 : vector<8x64xf32>
    %cst_5 = arith.constant 1.000000e+00 : f32
    %8 = vector.broadcast %cst_5 : f32 to vector<8x64xf32>
    %9 = arith.addf %8, %7 : vector<8x64xf32>
    %10 = arith.divf %8, %9 : vector<8x64xf32>
    %11 = arith.mulf %5, %10 : vector<8x64xf32>
    %12 = arith.truncf %11 : vector<8x64xf32> to vector<8x64xbf16>
    %c0_6 = arith.constant 0 : index
    %c0_7 = arith.constant 0 : index
    %13 = vector.load %arg4[%c0_6, %c0_7] : memref<8x64xbf16, #tpu.memory_space<vmem>>, vector<8x64xbf16>
    tpu.vector_store %arg4[%c0_6, %c0_7], %12 {strides = array<i32>} : memref<8x64xbf16, #tpu.memory_space<vmem>>, vector<8x64xbf16>,
    return
  }
  func.func @transform_0(%arg0: i32) -> (i32, i32) {
    %c0_i32 = arith.constant 0 : i32
    %c0_i32_0 = arith.constant 0 : i32
    return %arg0, %c0_i32 : i32, i32
  }
  func.func @transform_1(%arg0: i32) -> (i32, i32) {
    %c0_i32 = arith.constant 0 : i32
    %c0_i32_0 = arith.constant 0 : i32
    %c0_i32_1 = arith.constant 0 : i32
    return %c0_i32, %c0_i32_0 : i32, i32
  }
  func.func @transform_2(%arg0: i32) -> (i32, i32) {
    %c0_i32 = arith.constant 0 : i32
    %c0_i32_0 = arith.constant 0 : i32
    %c0_i32_1 = arith.constant 0 : i32
    return %c0_i32, %c0_i32_0 : i32, i32
  }
  func.func @transform_3(%arg0: i32) -> (i32, i32) {
    %c0_i32 = arith.constant 0 : i32
    %c0_i32_0 = arith.constant 0 : i32
    return %arg0, %c0_i32 : i32, i32
  }
}

module attributes {stable_mosaic.version = 11 : i64} {
  func.func @kernel(%arg0: i32, %arg1: memref<8x576xbf16, #tpu.memory_space<vmem>>, %arg2: memref<576x64xbf16, #tpu.memory_space<vmem>>, %arg3: memref<1x64xf32, #tpu.memory_space<vmem>>, %arg4: memref<8x64xbf16, #tpu.memory_space<vmem>>, %arg5: memref<8x64xbf16, #tpu.memory_space<vmem>>) attributes {dimension_semantics = [#tpu.dimension_semantics<parallel>], iteration_bounds = array<i64: 1>, scalar_prefetch = 0 : i64, scratch_operands = 0 : i64, tpu.core_type = #tpu.core_type<tc>, window_params = [{transform_indices = @transform_0, window_bounds = array<i64: 8, 576>}, {pipeline_mode = #tpu.pipeline_mode<synchronous>, transform_indices = @transform_1, window_bounds = array<i64: 576, 64>}, {pipeline_mode = #tpu.pipeline_mode<synchronous>, transform_indices = @transform_2, window_bounds = array<i64: 1, 64>}, {transform_indices = @transform_3, window_bounds = array<i64: 8, 64>}, {transform_indices = @transform_4, window_bounds = array<i64: 8, 64>}]} {
    %c0 = arith.constant 0 : index
    %c0_0 = arith.constant 0 : index
    %0 = vector.load %arg1[%c0, %c0_0] : memref<8x576xbf16, #tpu.memory_space<vmem>>, vector<8x576xbf16>
    %c0_1 = arith.constant 0 : index
    %c0_2 = arith.constant 0 : index
    %1 = vector.load %arg2[%c0_1, %c0_2] : memref<576x64xbf16, #tpu.memory_space<vmem>>, vector<576x64xbf16>
    %cst = arith.constant dense<0.000000e+00> : vector<8x64xf32>
    %2 = tpu.matmul %0, %1, %cst {dimension_numbers = #tpu.dot_dimension_numbers<[1], [0], [0], [1], [0, 0, 1, 1], [], []>} : vector<8x576xbf16>, vector<576x64xbf16>, vector<8x64xf32> -> vector<8x64xf32>
    %c0_3 = arith.constant 0 : index
    %c0_4 = arith.constant 0 : index
    %3 = vector.load %arg3[%c0_3, %c0_4] : memref<1x64xf32, #tpu.memory_space<vmem>>, vector<1x64xf32>
    %4 = vector.broadcast %3 : vector<1x64xf32> to vector<8x64xf32>
    %5 = arith.addf %2, %4 : vector<8x64xf32>
    %6 = arith.negf %5 : vector<8x64xf32>
    %7 = math.exp %6 : vector<8x64xf32>
    %cst_5 = arith.constant 1.000000e+00 : f32
    %8 = vector.broadcast %cst_5 : f32 to vector<8x64xf32>
    %9 = arith.addf %8, %7 : vector<8x64xf32>
    %10 = arith.divf %8, %9 : vector<8x64xf32>
    %11 = arith.mulf %5, %10 : vector<8x64xf32>
    %c0_6 = arith.constant 0 : index
    %c0_7 = arith.constant 0 : index
    %12 = vector.load %arg4[%c0_6, %c0_7] : memref<8x64xbf16, #tpu.memory_space<vmem>>, vector<8x64xbf16>
    %13 = arith.extf %12 : vector<8x64xbf16> to vector<8x64xf32>
    %14 = arith.addf %11, %13 : vector<8x64xf32>
    %15 = arith.truncf %14 : vector<8x64xf32> to vector<8x64xbf16>
    %c0_8 = arith.constant 0 : index
    %c0_9 = arith.constant 0 : index
    %16 = vector.load %arg5[%c0_8, %c0_9] : memref<8x64xbf16, #tpu.memory_space<vmem>>, vector<8x64xbf16>
    tpu.vector_store %arg5[%c0_8, %c0_9], %15 {strides = array<i32>} : memref<8x64xbf16, #tpu.memory_space<vmem>>, vector<8x64xbf16>,
    return
  }
  func.func @transform_0(%arg0: i32) -> (i32, i32) {
    %c0_i32 = arith.constant 0 : i32
    %c0_i32_0 = arith.constant 0 : i32
    return %arg0, %c0_i32 : i32, i32
  }
  func.func @transform_1(%arg0: i32) -> (i32, i32) {
    %c0_i32 = arith.constant 0 : i32
    %c0_i32_0 = arith.constant 0 : i32
    %c0_i32_1 = arith.constant 0 : i32
    return %c0_i32, %c0_i32_0 : i32, i32
  }
  func.func @transform_2(%arg0: i32) -> (i32, i32) {
    %c0_i32 = arith.constant 0 : i32
    %c0_i32_0 = arith.constant 0 : i32
    %c0_i32_1 = arith.constant 0 : i32
    return %c0_i32, %c0_i32_0 : i32, i32
  }
  func.func @transform_3(%arg0: i32) -> (i32, i32) {
    %c0_i32 = arith.constant 0 : i32
    %c0_i32_0 = arith.constant 0 : i32
    return %arg0, %c0_i32 : i32, i32
  }
  func.func @transform_4(%arg0: i32) -> (i32, i32) {
    %c0_i32 = arith.constant 0 : i32
    %c0_i32_0 = arith.constant 0 : i32
    return %arg0, %c0_i32 : i32, i32
  }
}

module attributes {stable_mosaic.version = 11 : i64} {
  func.func @kernel(%arg0: i32, %arg1: memref<8x64xbf16, #tpu.memory_space<vmem>>, %arg2: memref<8x64xbf16, #tpu.memory_space<vmem>>, %arg3: memref<64x128xbf16, #tpu.memory_space<vmem>>, %arg4: memref<64x128xbf16, #tpu.memory_space<vmem>>, %arg5: memref<1x128xf32, #tpu.memory_space<vmem>>, %arg6: memref<8x128xbf16, #tpu.memory_space<vmem>>) attributes {dimension_semantics = [#tpu.dimension_semantics<parallel>], iteration_bounds = array<i64: 1>, scalar_prefetch = 0 : i64, scratch_operands = 0 : i64, tpu.core_type = #tpu.core_type<tc>, window_params = [{transform_indices = @transform_0, window_bounds = array<i64: 8, 64>}, {transform_indices = @transform_1, window_bounds = array<i64: 8, 64>}, {pipeline_mode = #tpu.pipeline_mode<synchronous>, transform_indices = @transform_2, window_bounds = array<i64: 64, 128>}, {pipeline_mode = #tpu.pipeline_mode<synchronous>, transform_indices = @transform_3, window_bounds = array<i64: 64, 128>}, {pipeline_mode = #tpu.pipeline_mode<synchronous>, transform_indices = @transform_4, window_bounds = array<i64: 1, 128>}, {transform_indices = @transform_5, window_bounds = array<i64: 8, 128>}]} {
    %c0 = arith.constant 0 : index
    %c0_0 = arith.constant 0 : index
    %0 = vector.load %arg1[%c0, %c0_0] : memref<8x64xbf16, #tpu.memory_space<vmem>>, vector<8x64xbf16>
    %c0_1 = arith.constant 0 : index
    %c0_2 = arith.constant 0 : index
    %1 = vector.load %arg3[%c0_1, %c0_2] : memref<64x128xbf16, #tpu.memory_space<vmem>>, vector<64x128xbf16>
    %cst = arith.constant dense<0.000000e+00> : vector<8x128xf32>
    %2 = tpu.matmul %0, %1, %cst {dimension_numbers = #tpu.dot_dimension_numbers<[1], [0], [0], [1], [0, 0, 1, 1], [], []>} : vector<8x64xbf16>, vector<64x128xbf16>, vector<8x128xf32> -> vector<8x128xf32>
    %c0_3 = arith.constant 0 : index
    %c0_4 = arith.constant 0 : index
    %3 = vector.load %arg2[%c0_3, %c0_4] : memref<8x64xbf16, #tpu.memory_space<vmem>>, vector<8x64xbf16>
    %c0_5 = arith.constant 0 : index
    %c0_6 = arith.constant 0 : index
    %4 = vector.load %arg4[%c0_5, %c0_6] : memref<64x128xbf16, #tpu.memory_space<vmem>>, vector<64x128xbf16>
    %cst_7 = arith.constant dense<0.000000e+00> : vector<8x128xf32>
    %5 = tpu.matmul %3, %4, %cst_7 {dimension_numbers = #tpu.dot_dimension_numbers<[1], [0], [0], [1], [0, 0, 1, 1], [], []>} : vector<8x64xbf16>, vector<64x128xbf16>, vector<8x128xf32> -> vector<8x128xf32>
    %6 = arith.addf %2, %5 : vector<8x128xf32>
    %c0_8 = arith.constant 0 : index
    %c0_9 = arith.constant 0 : index
    %7 = vector.load %arg5[%c0_8, %c0_9] : memref<1x128xf32, #tpu.memory_space<vmem>>, vector<1x128xf32>
    %8 = vector.broadcast %7 : vector<1x128xf32> to vector<8x128xf32>
    %9 = arith.addf %6, %8 : vector<8x128xf32>
    %10 = arith.negf %9 : vector<8x128xf32>
    %11 = math.exp %10 : vector<8x128xf32>
    %cst_10 = arith.constant 1.000000e+00 : f32
    %12 = vector.broadcast %cst_10 : f32 to vector<8x128xf32>
    %13 = arith.addf %12, %11 : vector<8x128xf32>
    %14 = arith.divf %12, %13 : vector<8x128xf32>
    %15 = arith.mulf %9, %14 : vector<8x128xf32>
    %16 = arith.truncf %15 : vector<8x128xf32> to vector<8x128xbf16>
    %c0_11 = arith.constant 0 : index
    %c0_12 = arith.constant 0 : index
    %17 = vector.load %arg6[%c0_11, %c0_12] : memref<8x128xbf16, #tpu.memory_space<vmem>>, vector<8x128xbf16>
    tpu.vector_store %arg6[%c0_11, %c0_12], %16 {strides = array<i32>} : memref<8x128xbf16, #tpu.memory_space<vmem>>, vector<8x128xbf16>,
    return
  }
  func.func @transform_0(%arg0: i32) -> (i32, i32) {
    %c0_i32 = arith.constant 0 : i32
    %c0_i32_0 = arith.constant 0 : i32
    return %arg0, %c0_i32 : i32, i32
  }
  func.func @transform_1(%arg0: i32) -> (i32, i32) {
    %c0_i32 = arith.constant 0 : i32
    %c0_i32_0 = arith.constant 0 : i32
    return %arg0, %c0_i32 : i32, i32
  }
  func.func @transform_2(%arg0: i32) -> (i32, i32) {
    %c0_i32 = arith.constant 0 : i32
    %c0_i32_0 = arith.constant 0 : i32
    %c0_i32_1 = arith.constant 0 : i32
    return %c0_i32, %c0_i32_0 : i32, i32
  }
  func.func @transform_3(%arg0: i32) -> (i32, i32) {
    %c0_i32 = arith.constant 0 : i32
    %c0_i32_0 = arith.constant 0 : i32
    %c0_i32_1 = arith.constant 0 : i32
    return %c0_i32, %c0_i32_0 : i32, i32
  }
  func.func @transform_4(%arg0: i32) -> (i32, i32) {
    %c0_i32 = arith.constant 0 : i32
    %c0_i32_0 = arith.constant 0 : i32
    %c0_i32_1 = arith.constant 0 : i32
    return %c0_i32, %c0_i32_0 : i32, i32
  }
  func.func @transform_5(%arg0: i32) -> (i32, i32) {
    %c0_i32 = arith.constant 0 : i32
    %c0_i32_0 = arith.constant 0 : i32
    return %arg0, %c0_i32 : i32, i32
  }
}

module attributes {stable_mosaic.version = 11 : i64} {
  func.func @kernel(%arg0: i32, %arg1: memref<8x1152xbf16, #tpu.memory_space<vmem>>, %arg2: memref<1152x256xbf16, #tpu.memory_space<vmem>>, %arg3: memref<1x256xf32, #tpu.memory_space<vmem>>, %arg4: memref<8x256xbf16, #tpu.memory_space<vmem>>) attributes {dimension_semantics = [#tpu.dimension_semantics<parallel>], iteration_bounds = array<i64: 1>, scalar_prefetch = 0 : i64, scratch_operands = 0 : i64, tpu.core_type = #tpu.core_type<tc>, window_params = [{transform_indices = @transform_0, window_bounds = array<i64: 8, 1152>}, {pipeline_mode = #tpu.pipeline_mode<synchronous>, transform_indices = @transform_1, window_bounds = array<i64: 1152, 256>}, {pipeline_mode = #tpu.pipeline_mode<synchronous>, transform_indices = @transform_2, window_bounds = array<i64: 1, 256>}, {transform_indices = @transform_3, window_bounds = array<i64: 8, 256>}]} {
    %c0 = arith.constant 0 : index
    %c0_0 = arith.constant 0 : index
    %0 = vector.load %arg1[%c0, %c0_0] : memref<8x1152xbf16, #tpu.memory_space<vmem>>, vector<8x1152xbf16>
    %c0_1 = arith.constant 0 : index
    %c0_2 = arith.constant 0 : index
    %1 = vector.load %arg2[%c0_1, %c0_2] : memref<1152x256xbf16, #tpu.memory_space<vmem>>, vector<1152x256xbf16>
    %cst = arith.constant dense<0.000000e+00> : vector<8x256xf32>
    %2 = tpu.matmul %0, %1, %cst {dimension_numbers = #tpu.dot_dimension_numbers<[1], [0], [0], [1], [0, 0, 1, 1], [], []>} : vector<8x1152xbf16>, vector<1152x256xbf16>, vector<8x256xf32> -> vector<8x256xf32>
    %c0_3 = arith.constant 0 : index
    %c0_4 = arith.constant 0 : index
    %3 = vector.load %arg3[%c0_3, %c0_4] : memref<1x256xf32, #tpu.memory_space<vmem>>, vector<1x256xf32>
    %4 = vector.broadcast %3 : vector<1x256xf32> to vector<8x256xf32>
    %5 = arith.addf %2, %4 : vector<8x256xf32>
    %6 = arith.negf %5 : vector<8x256xf32>
    %7 = math.exp %6 : vector<8x256xf32>
    %cst_5 = arith.constant 1.000000e+00 : f32
    %8 = vector.broadcast %cst_5 : f32 to vector<8x256xf32>
    %9 = arith.addf %8, %7 : vector<8x256xf32>
    %10 = arith.divf %8, %9 : vector<8x256xf32>
    %11 = arith.mulf %5, %10 : vector<8x256xf32>
    %12 = arith.truncf %11 : vector<8x256xf32> to vector<8x256xbf16>
    %c0_6 = arith.constant 0 : index
    %c0_7 = arith.constant 0 : index
    %13 = vector.load %arg4[%c0_6, %c0_7] : memref<8x256xbf16, #tpu.memory_space<vmem>>, vector<8x256xbf16>
    tpu.vector_store %arg4[%c0_6, %c0_7], %12 {strides = array<i32>} : memref<8x256xbf16, #tpu.memory_space<vmem>>, vector<8x256xbf16>,
    return
  }
  func.func @transform_0(%arg0: i32) -> (i32, i32) {
    %c0_i32 = arith.constant 0 : i32
    %c0_i32_0 = arith.constant 0 : i32
    return %arg0, %c0_i32 : i32, i32
  }
  func.func @transform_1(%arg0: i32) -> (i32, i32) {
    %c0_i32 = arith.constant 0 : i32
    %c0_i32_0 = arith.constant 0 : i32
    %c0_i32_1 = arith.constant 0 : i32
    return %c0_i32, %c0_i32_0 : i32, i32
  }
  func.func @transform_2(%arg0: i32) -> (i32, i32) {
    %c0_i32 = arith.constant 0 : i32
    %c0_i32_0 = arith.constant 0 : i32
    %c0_i32_1 = arith.constant 0 : i32
    return %c0_i32, %c0_i32_0 : i32, i32
  }
  func.func @transform_3(%arg0: i32) -> (i32, i32) {
    %c0_i32 = arith.constant 0 : i32
    %c0_i32_0 = arith.constant 0 : i32
    return %arg0, %c0_i32 : i32, i32
  }
}

module attributes {stable_mosaic.version = 11 : i64} {
  func.func @_sppf_pool_kernel(%arg0: i32, %arg1: memref<1x13x13x128xbf16, #tpu.memory_space<vmem>>, %arg2: memref<1x1x1x512xbf16, #tpu.memory_space<vmem>>) attributes {dimension_semantics = [#tpu.dimension_semantics<parallel>], iteration_bounds = array<i64: 2>, scalar_prefetch = 0 : i64, scratch_operands = 0 : i64, tpu.core_type = #tpu.core_type<tc>, window_params = [{transform_indices = @transform_0, window_bounds = array<i64: 1, 13, 13, 128>}, {transform_indices = @transform_1, window_bounds = array<i64: 1, 1, 1, 512>}]} {
    %c0 = arith.constant 0 : index
    %c0_0 = arith.constant 0 : index
    %c0_1 = arith.constant 0 : index
    %c0_2 = arith.constant 0 : index
    %0 = vector.load %arg1[%c0, %c0_0, %c0_1, %c0_2] : memref<1x13x13x128xbf16, #tpu.memory_space<vmem>>, vector<1x13x13x128xbf16>
    %1 = vector.extract_strided_slice %0 {offsets = [0, 0, 0, 0], sizes = [1, 9, 13, 128], strides = [1, 1, 1, 1]} : vector<1x13x13x128xbf16> to vector<1x9x13x128xbf16>
    %2 = vector.extract_strided_slice %0 {offsets = [0, 1, 0, 0], sizes = [1, 9, 13, 128], strides = [1, 1, 1, 1]} : vector<1x13x13x128xbf16> to vector<1x9x13x128xbf16>
    %3 = arith.maximumf %1, %2 : vector<1x9x13x128xbf16>
    %4 = vector.extract_strided_slice %0 {offsets = [0, 2, 0, 0], sizes = [1, 9, 13, 128], strides = [1, 1, 1, 1]} : vector<1x13x13x128xbf16> to vector<1x9x13x128xbf16>
    %5 = arith.maximumf %3, %4 : vector<1x9x13x128xbf16>
    %6 = vector.extract_strided_slice %0 {offsets = [0, 3, 0, 0], sizes = [1, 9, 13, 128], strides = [1, 1, 1, 1]} : vector<1x13x13x128xbf16> to vector<1x9x13x128xbf16>
    %7 = arith.maximumf %5, %6 : vector<1x9x13x128xbf16>
    %8 = vector.extract_strided_slice %0 {offsets = [0, 4, 0, 0], sizes = [1, 9, 13, 128], strides = [1, 1, 1, 1]} : vector<1x13x13x128xbf16> to vector<1x9x13x128xbf16>
    %9 = arith.maximumf %7, %8 : vector<1x9x13x128xbf16>
    %10 = vector.extract_strided_slice %9 {offsets = [0, 0, 0, 0], sizes = [1, 9, 9, 128], strides = [1, 1, 1, 1]} : vector<1x9x13x128xbf16> to vector<1x9x9x128xbf16>
    %11 = vector.extract_strided_slice %9 {offsets = [0, 0, 1, 0], sizes = [1, 9, 9, 128], strides = [1, 1, 1, 1]} : vector<1x9x13x128xbf16> to vector<1x9x9x128xbf16>
    %12 = arith.maximumf %10, %11 : vector<1x9x9x128xbf16>
    %13 = vector.extract_strided_slice %9 {offsets = [0, 0, 2, 0], sizes = [1, 9, 9, 128], strides = [1, 1, 1, 1]} : vector<1x9x13x128xbf16> to vector<1x9x9x128xbf16>
    %14 = arith.maximumf %12, %13 : vector<1x9x9x128xbf16>
    %15 = vector.extract_strided_slice %9 {offsets = [0, 0, 3, 0], sizes = [1, 9, 9, 128], strides = [1, 1, 1, 1]} : vector<1x9x13x128xbf16> to vector<1x9x9x128xbf16>
    %16 = arith.maximumf %14, %15 : vector<1x9x9x128xbf16>
    %17 = vector.extract_strided_slice %9 {offsets = [0, 0, 4, 0], sizes = [1, 9, 9, 128], strides = [1, 1, 1, 1]} : vector<1x9x13x128xbf16> to vector<1x9x9x128xbf16>
    %18 = arith.maximumf %16, %17 : vector<1x9x9x128xbf16>
    %19 = vector.extract_strided_slice %18 {offsets = [0, 0, 0, 0], sizes = [1, 5, 9, 128], strides = [1, 1, 1, 1]} : vector<1x9x9x128xbf16> to vector<1x5x9x128xbf16>
    %20 = vector.extract_strided_slice %18 {offsets = [0, 1, 0, 0], sizes = [1, 5, 9, 128], strides = [1, 1, 1, 1]} : vector<1x9x9x128xbf16> to vector<1x5x9x128xbf16>
    %21 = arith.maximumf %19, %20 : vector<1x5x9x128xbf16>
    %22 = vector.extract_strided_slice %18 {offsets = [0, 2, 0, 0], sizes = [1, 5, 9, 128], strides = [1, 1, 1, 1]} : vector<1x9x9x128xbf16> to vector<1x5x9x128xbf16>
    %23 = arith.maximumf %21, %22 : vector<1x5x9x128xbf16>
    %24 = vector.extract_strided_slice %18 {offsets = [0, 3, 0, 0], sizes = [1, 5, 9, 128], strides = [1, 1, 1, 1]} : vector<1x9x9x128xbf16> to vector<1x5x9x128xbf16>
    %25 = arith.maximumf %23, %24 : vector<1x5x9x128xbf16>
    %26 = vector.extract_strided_slice %18 {offsets = [0, 4, 0, 0], sizes = [1, 5, 9, 128], strides = [1, 1, 1, 1]} : vector<1x9x9x128xbf16> to vector<1x5x9x128xbf16>
    %27 = arith.maximumf %25, %26 : vector<1x5x9x128xbf16>
    %28 = vector.extract_strided_slice %27 {offsets = [0, 0, 0, 0], sizes = [1, 5, 5, 128], strides = [1, 1, 1, 1]} : vector<1x5x9x128xbf16> to vector<1x5x5x128xbf16>
    %29 = vector.extract_strided_slice %27 {offsets = [0, 0, 1, 0], sizes = [1, 5, 5, 128], strides = [1, 1, 1, 1]} : vector<1x5x9x128xbf16> to vector<1x5x5x128xbf16>
    %30 = arith.maximumf %28, %29 : vector<1x5x5x128xbf16>
    %31 = vector.extract_strided_slice %27 {offsets = [0, 0, 2, 0], sizes = [1, 5, 5, 128], strides = [1, 1, 1, 1]} : vector<1x5x9x128xbf16> to vector<1x5x5x128xbf16>
    %32 = arith.maximumf %30, %31 : vector<1x5x5x128xbf16>
    %33 = vector.extract_strided_slice %27 {offsets = [0, 0, 3, 0], sizes = [1, 5, 5, 128], strides = [1, 1, 1, 1]} : vector<1x5x9x128xbf16> to vector<1x5x5x128xbf16>
    %34 = arith.maximumf %32, %33 : vector<1x5x5x128xbf16>
    %35 = vector.extract_strided_slice %27 {offsets = [0, 0, 4, 0], sizes = [1, 5, 5, 128], strides = [1, 1, 1, 1]} : vector<1x5x9x128xbf16> to vector<1x5x5x128xbf16>
    %36 = arith.maximumf %34, %35 : vector<1x5x5x128xbf16>
    %37 = vector.extract_strided_slice %36 {offsets = [0, 0, 0, 0], sizes = [1, 1, 5, 128], strides = [1, 1, 1, 1]} : vector<1x5x5x128xbf16> to vector<1x1x5x128xbf16>
    %38 = vector.extract_strided_slice %36 {offsets = [0, 1, 0, 0], sizes = [1, 1, 5, 128], strides = [1, 1, 1, 1]} : vector<1x5x5x128xbf16> to vector<1x1x5x128xbf16>
    %39 = arith.maximumf %37, %38 : vector<1x1x5x128xbf16>
    %40 = vector.extract_strided_slice %36 {offsets = [0, 2, 0, 0], sizes = [1, 1, 5, 128], strides = [1, 1, 1, 1]} : vector<1x5x5x128xbf16> to vector<1x1x5x128xbf16>
    %41 = arith.maximumf %39, %40 : vector<1x1x5x128xbf16>
    %42 = vector.extract_strided_slice %36 {offsets = [0, 3, 0, 0], sizes = [1, 1, 5, 128], strides = [1, 1, 1, 1]} : vector<1x5x5x128xbf16> to vector<1x1x5x128xbf16>
    %43 = arith.maximumf %41, %42 : vector<1x1x5x128xbf16>
    %44 = vector.extract_strided_slice %36 {offsets = [0, 4, 0, 0], sizes = [1, 1, 5, 128], strides = [1, 1, 1, 1]} : vector<1x5x5x128xbf16> to vector<1x1x5x128xbf16>
    %45 = arith.maximumf %43, %44 : vector<1x1x5x128xbf16>
    %46 = vector.extract_strided_slice %45 {offsets = [0, 0, 0, 0], sizes = [1, 1, 1, 128], strides = [1, 1, 1, 1]} : vector<1x1x5x128xbf16> to vector<1x1x1x128xbf16>
    %47 = vector.extract_strided_slice %45 {offsets = [0, 0, 1, 0], sizes = [1, 1, 1, 128], strides = [1, 1, 1, 1]} : vector<1x1x5x128xbf16> to vector<1x1x1x128xbf16>
    %48 = arith.maximumf %46, %47 : vector<1x1x1x128xbf16>
    %49 = vector.extract_strided_slice %45 {offsets = [0, 0, 2, 0], sizes = [1, 1, 1, 128], strides = [1, 1, 1, 1]} : vector<1x1x5x128xbf16> to vector<1x1x1x128xbf16>
    %50 = arith.maximumf %48, %49 : vector<1x1x1x128xbf16>
    %51 = vector.extract_strided_slice %45 {offsets = [0, 0, 3, 0], sizes = [1, 1, 1, 128], strides = [1, 1, 1, 1]} : vector<1x1x5x128xbf16> to vector<1x1x1x128xbf16>
    %52 = arith.maximumf %50, %51 : vector<1x1x1x128xbf16>
    %53 = vector.extract_strided_slice %45 {offsets = [0, 0, 4, 0], sizes = [1, 1, 1, 128], strides = [1, 1, 1, 1]} : vector<1x1x5x128xbf16> to vector<1x1x1x128xbf16>
    %54 = arith.maximumf %52, %53 : vector<1x1x1x128xbf16>
    %55 = vector.extract_strided_slice %0 {offsets = [0, 6, 6, 0], sizes = [1, 1, 1, 128], strides = [1, 1, 1, 1]} : vector<1x13x13x128xbf16> to vector<1x1x1x128xbf16>
    %c0_3 = arith.constant 0 : index
    %c0_4 = arith.constant 0 : index
    %c0_5 = arith.constant 0 : index
    %c0_6 = arith.constant 0 : index
    %56 = vector.load %arg2[%c0_3, %c0_4, %c0_5, %c0_6] : memref<1x1x1x512xbf16, #tpu.memory_space<vmem>>, vector<1x1x1x128xbf16>
    tpu.vector_store %arg2[%c0_3, %c0_4, %c0_5, %c0_6], %55 {strides = array<i32>} : memref<1x1x1x512xbf16, #tpu.memory_space<vmem>>, vector<1x1x1x128xbf16>,
    %57 = vector.extract_strided_slice %18 {offsets = [0, 4, 4, 0], sizes = [1, 1, 1, 128], strides = [1, 1, 1, 1]} : vector<1x9x9x128xbf16> to vector<1x1x1x128xbf16>
    %c0_7 = arith.constant 0 : index
    %c0_8 = arith.constant 0 : index
    %c0_9 = arith.constant 0 : index
    %c128 = arith.constant 128 : index
    %58 = vector.load %arg2[%c0_7, %c0_8, %c0_9, %c128] : memref<1x1x1x512xbf16, #tpu.memory_space<vmem>>, vector<1x1x1x128xbf16>
    tpu.vector_store %arg2[%c0_7, %c0_8, %c0_9, %c128], %57 {strides = array<i32>} : memref<1x1x1x512xbf16, #tpu.memory_space<vmem>>, vector<1x1x1x128xbf16>,
    %59 = vector.extract_strided_slice %36 {offsets = [0, 2, 2, 0], sizes = [1, 1, 1, 128], strides = [1, 1, 1, 1]} : vector<1x5x5x128xbf16> to vector<1x1x1x128xbf16>
    %c0_10 = arith.constant 0 : index
    %c0_11 = arith.constant 0 : index
    %c0_12 = arith.constant 0 : index
    %c256 = arith.constant 256 : index
    %60 = vector.load %arg2[%c0_10, %c0_11, %c0_12, %c256] : memref<1x1x1x512xbf16, #tpu.memory_space<vmem>>, vector<1x1x1x128xbf16>
    tpu.vector_store %arg2[%c0_10, %c0_11, %c0_12, %c256], %59 {strides = array<i32>} : memref<1x1x1x512xbf16, #tpu.memory_space<vmem>>, vector<1x1x1x128xbf16>,
    %c0_13 = arith.constant 0 : index
    %c0_14 = arith.constant 0 : index
    %c0_15 = arith.constant 0 : index
    %c384 = arith.constant 384 : index
    %61 = vector.load %arg2[%c0_13, %c0_14, %c0_15, %c384] : memref<1x1x1x512xbf16, #tpu.memory_space<vmem>>, vector<1x1x1x128xbf16>
    tpu.vector_store %arg2[%c0_13, %c0_14, %c0_15, %c384], %54 {strides = array<i32>} : memref<1x1x1x512xbf16, #tpu.memory_space<vmem>>, vector<1x1x1x128xbf16>,
    return
  }
  func.func @transform_0(%arg0: i32) -> (i32, i32, i32, i32) {
    %c0_i32 = arith.constant 0 : i32
    %c0_i32_0 = arith.constant 0 : i32
    %c0_i32_1 = arith.constant 0 : i32
    %c0_i32_2 = arith.constant 0 : i32
    return %arg0, %c0_i32, %c0_i32_0, %c0_i32_1 : i32, i32, i32, i32
  }
  func.func @transform_1(%arg0: i32) -> (i32, i32, i32, i32) {
    %c0_i32 = arith.constant 0 : i32
    %c0_i32_0 = arith.constant 0 : i32
    %c0_i32_1 = arith.constant 0 : i32
    %c0_i32_2 = arith.constant 0 : i32
    return %arg0, %c0_i32, %c0_i32_0, %c0_i32_1 : i32, i32, i32, i32
  }
}

module attributes {stable_mosaic.version = 11 : i64} {
  func.func @kernel(%arg0: i32, %arg1: memref<8x256xbf16, #tpu.memory_space<vmem>>, %arg2: memref<256x128xbf16, #tpu.memory_space<vmem>>, %arg3: memref<1x128xf32, #tpu.memory_space<vmem>>, %arg4: memref<8x128xbf16, #tpu.memory_space<vmem>>) attributes {dimension_semantics = [#tpu.dimension_semantics<parallel>], iteration_bounds = array<i64: 1>, scalar_prefetch = 0 : i64, scratch_operands = 0 : i64, tpu.core_type = #tpu.core_type<tc>, window_params = [{transform_indices = @transform_0, window_bounds = array<i64: 8, 256>}, {pipeline_mode = #tpu.pipeline_mode<synchronous>, transform_indices = @transform_1, window_bounds = array<i64: 256, 128>}, {pipeline_mode = #tpu.pipeline_mode<synchronous>, transform_indices = @transform_2, window_bounds = array<i64: 1, 128>}, {transform_indices = @transform_3, window_bounds = array<i64: 8, 128>}]} {
    %c0 = arith.constant 0 : index
    %c0_0 = arith.constant 0 : index
    %0 = vector.load %arg1[%c0, %c0_0] : memref<8x256xbf16, #tpu.memory_space<vmem>>, vector<8x256xbf16>
    %c0_1 = arith.constant 0 : index
    %c0_2 = arith.constant 0 : index
    %1 = vector.load %arg2[%c0_1, %c0_2] : memref<256x128xbf16, #tpu.memory_space<vmem>>, vector<256x128xbf16>
    %cst = arith.constant dense<0.000000e+00> : vector<8x128xf32>
    %2 = tpu.matmul %0, %1, %cst {dimension_numbers = #tpu.dot_dimension_numbers<[1], [0], [0], [1], [0, 0, 1, 1], [], []>} : vector<8x256xbf16>, vector<256x128xbf16>, vector<8x128xf32> -> vector<8x128xf32>
    %c0_3 = arith.constant 0 : index
    %c0_4 = arith.constant 0 : index
    %3 = vector.load %arg3[%c0_3, %c0_4] : memref<1x128xf32, #tpu.memory_space<vmem>>, vector<1x128xf32>
    %4 = vector.broadcast %3 : vector<1x128xf32> to vector<8x128xf32>
    %5 = arith.addf %2, %4 : vector<8x128xf32>
    %6 = arith.negf %5 : vector<8x128xf32>
    %7 = math.exp %6 : vector<8x128xf32>
    %cst_5 = arith.constant 1.000000e+00 : f32
    %8 = vector.broadcast %cst_5 : f32 to vector<8x128xf32>
    %9 = arith.addf %8, %7 : vector<8x128xf32>
    %10 = arith.divf %8, %9 : vector<8x128xf32>
    %11 = arith.mulf %5, %10 : vector<8x128xf32>
    %12 = arith.truncf %11 : vector<8x128xf32> to vector<8x128xbf16>
    %c0_6 = arith.constant 0 : index
    %c0_7 = arith.constant 0 : index
    %13 = vector.load %arg4[%c0_6, %c0_7] : memref<8x128xbf16, #tpu.memory_space<vmem>>, vector<8x128xbf16>
    tpu.vector_store %arg4[%c0_6, %c0_7], %12 {strides = array<i32>} : memref<8x128xbf16, #tpu.memory_space<vmem>>, vector<8x128xbf16>,
    return
  }
  func.func @transform_0(%arg0: i32) -> (i32, i32) {
    %c0_i32 = arith.constant 0 : i32
    %c0_i32_0 = arith.constant 0 : i32
    return %arg0, %c0_i32 : i32, i32
  }
  func.func @transform_1(%arg0: i32) -> (i32, i32) {
    %c0_i32 = arith.constant 0 : i32
    %c0_i32_0 = arith.constant 0 : i32
    %c0_i32_1 = arith.constant 0 : i32
    return %c0_i32, %c0_i32_0 : i32, i32
  }
  func.func @transform_2(%arg0: i32) -> (i32, i32) {
    %c0_i32 = arith.constant 0 : i32
    %c0_i32_0 = arith.constant 0 : i32
    %c0_i32_1 = arith.constant 0 : i32
    return %c0_i32, %c0_i32_0 : i32, i32
  }
  func.func @transform_3(%arg0: i32) -> (i32, i32) {
    %c0_i32 = arith.constant 0 : i32
    %c0_i32_0 = arith.constant 0 : i32
    return %arg0, %c0_i32 : i32, i32
  }
}

module attributes {stable_mosaic.version = 11 : i64} {
  func.func @kernel(%arg0: i32, %arg1: memref<8x512xbf16, #tpu.memory_space<vmem>>, %arg2: memref<512x256xbf16, #tpu.memory_space<vmem>>, %arg3: memref<1x256xf32, #tpu.memory_space<vmem>>, %arg4: memref<8x256xbf16, #tpu.memory_space<vmem>>) attributes {dimension_semantics = [#tpu.dimension_semantics<parallel>], iteration_bounds = array<i64: 1>, scalar_prefetch = 0 : i64, scratch_operands = 0 : i64, tpu.core_type = #tpu.core_type<tc>, window_params = [{transform_indices = @transform_0, window_bounds = array<i64: 8, 512>}, {pipeline_mode = #tpu.pipeline_mode<synchronous>, transform_indices = @transform_1, window_bounds = array<i64: 512, 256>}, {pipeline_mode = #tpu.pipeline_mode<synchronous>, transform_indices = @transform_2, window_bounds = array<i64: 1, 256>}, {transform_indices = @transform_3, window_bounds = array<i64: 8, 256>}]} {
    %c0 = arith.constant 0 : index
    %c0_0 = arith.constant 0 : index
    %0 = vector.load %arg1[%c0, %c0_0] : memref<8x512xbf16, #tpu.memory_space<vmem>>, vector<8x512xbf16>
    %c0_1 = arith.constant 0 : index
    %c0_2 = arith.constant 0 : index
    %1 = vector.load %arg2[%c0_1, %c0_2] : memref<512x256xbf16, #tpu.memory_space<vmem>>, vector<512x256xbf16>
    %cst = arith.constant dense<0.000000e+00> : vector<8x256xf32>
    %2 = tpu.matmul %0, %1, %cst {dimension_numbers = #tpu.dot_dimension_numbers<[1], [0], [0], [1], [0, 0, 1, 1], [], []>} : vector<8x512xbf16>, vector<512x256xbf16>, vector<8x256xf32> -> vector<8x256xf32>
    %c0_3 = arith.constant 0 : index
    %c0_4 = arith.constant 0 : index
    %3 = vector.load %arg3[%c0_3, %c0_4] : memref<1x256xf32, #tpu.memory_space<vmem>>, vector<1x256xf32>
    %4 = vector.broadcast %3 : vector<1x256xf32> to vector<8x256xf32>
    %5 = arith.addf %2, %4 : vector<8x256xf32>
    %6 = arith.negf %5 : vector<8x256xf32>
    %7 = math.exp %6 : vector<8x256xf32>
    %cst_5 = arith.constant 1.000000e+00 : f32
    %8 = vector.broadcast %cst_5 : f32 to vector<8x256xf32>
    %9 = arith.addf %8, %7 : vector<8x256xf32>
    %10 = arith.divf %8, %9 : vector<8x256xf32>
    %11 = arith.mulf %5, %10 : vector<8x256xf32>
    %12 = arith.truncf %11 : vector<8x256xf32> to vector<8x256xbf16>
    %c0_6 = arith.constant 0 : index
    %c0_7 = arith.constant 0 : index
    %13 = vector.load %arg4[%c0_6, %c0_7] : memref<8x256xbf16, #tpu.memory_space<vmem>>, vector<8x256xbf16>
    tpu.vector_store %arg4[%c0_6, %c0_7], %12 {strides = array<i32>} : memref<8x256xbf16, #tpu.memory_space<vmem>>, vector<8x256xbf16>,
    return
  }
  func.func @transform_0(%arg0: i32) -> (i32, i32) {
    %c0_i32 = arith.constant 0 : i32
    %c0_i32_0 = arith.constant 0 : i32
    return %arg0, %c0_i32 : i32, i32
  }
  func.func @transform_1(%arg0: i32) -> (i32, i32) {
    %c0_i32 = arith.constant 0 : i32
    %c0_i32_0 = arith.constant 0 : i32
    %c0_i32_1 = arith.constant 0 : i32
    return %c0_i32, %c0_i32_0 : i32, i32
  }
  func.func @transform_2(%arg0: i32) -> (i32, i32) {
    %c0_i32 = arith.constant 0 : i32
    %c0_i32_0 = arith.constant 0 : i32
    %c0_i32_1 = arith.constant 0 : i32
    return %c0_i32, %c0_i32_0 : i32, i32
  }
  func.func @transform_3(%arg0: i32) -> (i32, i32) {
    %c0_i32 = arith.constant 0 : i32
    %c0_i32_0 = arith.constant 0 : i32
    return %arg0, %c0_i32 : i32, i32
  }
}

module attributes {stable_mosaic.version = 11 : i64} {
  func.func @kernel(%arg0: i32, %arg1: memref<8x256xbf16, #tpu.memory_space<vmem>>, %arg2: memref<256x256xbf16, #tpu.memory_space<vmem>>, %arg3: memref<1x256xf32, #tpu.memory_space<vmem>>, %arg4: memref<8x256xbf16, #tpu.memory_space<vmem>>) attributes {dimension_semantics = [#tpu.dimension_semantics<parallel>], iteration_bounds = array<i64: 1>, scalar_prefetch = 0 : i64, scratch_operands = 0 : i64, tpu.core_type = #tpu.core_type<tc>, window_params = [{transform_indices = @transform_0, window_bounds = array<i64: 8, 256>}, {pipeline_mode = #tpu.pipeline_mode<synchronous>, transform_indices = @transform_1, window_bounds = array<i64: 256, 256>}, {pipeline_mode = #tpu.pipeline_mode<synchronous>, transform_indices = @transform_2, window_bounds = array<i64: 1, 256>}, {transform_indices = @transform_3, window_bounds = array<i64: 8, 256>}]} {
    %c0 = arith.constant 0 : index
    %c0_0 = arith.constant 0 : index
    %0 = vector.load %arg1[%c0, %c0_0] : memref<8x256xbf16, #tpu.memory_space<vmem>>, vector<8x256xbf16>
    %c0_1 = arith.constant 0 : index
    %c0_2 = arith.constant 0 : index
    %1 = vector.load %arg2[%c0_1, %c0_2] : memref<256x256xbf16, #tpu.memory_space<vmem>>, vector<256x256xbf16>
    %cst = arith.constant dense<0.000000e+00> : vector<8x256xf32>
    %2 = tpu.matmul %0, %1, %cst {dimension_numbers = #tpu.dot_dimension_numbers<[1], [0], [0], [1], [0, 0, 1, 1], [], []>} : vector<8x256xbf16>, vector<256x256xbf16>, vector<8x256xf32> -> vector<8x256xf32>
    %c0_3 = arith.constant 0 : index
    %c0_4 = arith.constant 0 : index
    %3 = vector.load %arg3[%c0_3, %c0_4] : memref<1x256xf32, #tpu.memory_space<vmem>>, vector<1x256xf32>
    %4 = vector.broadcast %3 : vector<1x256xf32> to vector<8x256xf32>
    %5 = arith.addf %2, %4 : vector<8x256xf32>
    %6 = arith.negf %5 : vector<8x256xf32>
    %7 = math.exp %6 : vector<8x256xf32>
    %cst_5 = arith.constant 1.000000e+00 : f32
    %8 = vector.broadcast %cst_5 : f32 to vector<8x256xf32>
    %9 = arith.addf %8, %7 : vector<8x256xf32>
    %10 = arith.divf %8, %9 : vector<8x256xf32>
    %11 = arith.mulf %5, %10 : vector<8x256xf32>
    %12 = arith.truncf %11 : vector<8x256xf32> to vector<8x256xbf16>
    %c0_6 = arith.constant 0 : index
    %c0_7 = arith.constant 0 : index
    %13 = vector.load %arg4[%c0_6, %c0_7] : memref<8x256xbf16, #tpu.memory_space<vmem>>, vector<8x256xbf16>
    tpu.vector_store %arg4[%c0_6, %c0_7], %12 {strides = array<i32>} : memref<8x256xbf16, #tpu.memory_space<vmem>>, vector<8x256xbf16>,
    return
  }
  func.func @transform_0(%arg0: i32) -> (i32, i32) {
    %c0_i32 = arith.constant 0 : i32
    %c0_i32_0 = arith.constant 0 : i32
    return %arg0, %c0_i32 : i32, i32
  }
  func.func @transform_1(%arg0: i32) -> (i32, i32) {
    %c0_i32 = arith.constant 0 : i32
    %c0_i32_0 = arith.constant 0 : i32
    %c0_i32_1 = arith.constant 0 : i32
    return %c0_i32, %c0_i32_0 : i32, i32
  }
  func.func @transform_2(%arg0: i32) -> (i32, i32) {
    %c0_i32 = arith.constant 0 : i32
    %c0_i32_0 = arith.constant 0 : i32
    %c0_i32_1 = arith.constant 0 : i32
    return %c0_i32, %c0_i32_0 : i32, i32
  }
  func.func @transform_3(%arg0: i32) -> (i32, i32) {
    %c0_i32 = arith.constant 0 : i32
    %c0_i32_0 = arith.constant 0 : i32
    return %arg0, %c0_i32 : i32, i32
  }
}

module attributes {stable_mosaic.version = 11 : i64} {
  func.func @kernel(%arg0: i32, %arg1: memref<8x128xbf16, #tpu.memory_space<vmem>>, %arg2: memref<8x128xbf16, #tpu.memory_space<vmem>>, %arg3: memref<128x256xbf16, #tpu.memory_space<vmem>>, %arg4: memref<128x256xbf16, #tpu.memory_space<vmem>>, %arg5: memref<1x256xf32, #tpu.memory_space<vmem>>, %arg6: memref<8x256xbf16, #tpu.memory_space<vmem>>) attributes {dimension_semantics = [#tpu.dimension_semantics<parallel>], iteration_bounds = array<i64: 1>, scalar_prefetch = 0 : i64, scratch_operands = 0 : i64, tpu.core_type = #tpu.core_type<tc>, window_params = [{transform_indices = @transform_0, window_bounds = array<i64: 8, 128>}, {transform_indices = @transform_1, window_bounds = array<i64: 8, 128>}, {pipeline_mode = #tpu.pipeline_mode<synchronous>, transform_indices = @transform_2, window_bounds = array<i64: 128, 256>}, {pipeline_mode = #tpu.pipeline_mode<synchronous>, transform_indices = @transform_3, window_bounds = array<i64: 128, 256>}, {pipeline_mode = #tpu.pipeline_mode<synchronous>, transform_indices = @transform_4, window_bounds = array<i64: 1, 256>}, {transform_indices = @transform_5, window_bounds = array<i64: 8, 256>}]} {
    %c0 = arith.constant 0 : index
    %c0_0 = arith.constant 0 : index
    %0 = vector.load %arg1[%c0, %c0_0] : memref<8x128xbf16, #tpu.memory_space<vmem>>, vector<8x128xbf16>
    %c0_1 = arith.constant 0 : index
    %c0_2 = arith.constant 0 : index
    %1 = vector.load %arg3[%c0_1, %c0_2] : memref<128x256xbf16, #tpu.memory_space<vmem>>, vector<128x256xbf16>
    %cst = arith.constant dense<0.000000e+00> : vector<8x256xf32>
    %2 = tpu.matmul %0, %1, %cst {dimension_numbers = #tpu.dot_dimension_numbers<[1], [0], [0], [1], [0, 0, 1, 1], [], []>} : vector<8x128xbf16>, vector<128x256xbf16>, vector<8x256xf32> -> vector<8x256xf32>
    %c0_3 = arith.constant 0 : index
    %c0_4 = arith.constant 0 : index
    %3 = vector.load %arg2[%c0_3, %c0_4] : memref<8x128xbf16, #tpu.memory_space<vmem>>, vector<8x128xbf16>
    %c0_5 = arith.constant 0 : index
    %c0_6 = arith.constant 0 : index
    %4 = vector.load %arg4[%c0_5, %c0_6] : memref<128x256xbf16, #tpu.memory_space<vmem>>, vector<128x256xbf16>
    %cst_7 = arith.constant dense<0.000000e+00> : vector<8x256xf32>
    %5 = tpu.matmul %3, %4, %cst_7 {dimension_numbers = #tpu.dot_dimension_numbers<[1], [0], [0], [1], [0, 0, 1, 1], [], []>} : vector<8x128xbf16>, vector<128x256xbf16>, vector<8x256xf32> -> vector<8x256xf32>
    %6 = arith.addf %2, %5 : vector<8x256xf32>
    %c0_8 = arith.constant 0 : index
    %c0_9 = arith.constant 0 : index
    %7 = vector.load %arg5[%c0_8, %c0_9] : memref<1x256xf32, #tpu.memory_space<vmem>>, vector<1x256xf32>
    %8 = vector.broadcast %7 : vector<1x256xf32> to vector<8x256xf32>
    %9 = arith.addf %6, %8 : vector<8x256xf32>
    %10 = arith.negf %9 : vector<8x256xf32>
    %11 = math.exp %10 : vector<8x256xf32>
    %cst_10 = arith.constant 1.000000e+00 : f32
    %12 = vector.broadcast %cst_10 : f32 to vector<8x256xf32>
    %13 = arith.addf %12, %11 : vector<8x256xf32>
    %14 = arith.divf %12, %13 : vector<8x256xf32>
    %15 = arith.mulf %9, %14 : vector<8x256xf32>
    %16 = arith.truncf %15 : vector<8x256xf32> to vector<8x256xbf16>
    %c0_11 = arith.constant 0 : index
    %c0_12 = arith.constant 0 : index
    %17 = vector.load %arg6[%c0_11, %c0_12] : memref<8x256xbf16, #tpu.memory_space<vmem>>, vector<8x256xbf16>
    tpu.vector_store %arg6[%c0_11, %c0_12], %16 {strides = array<i32>} : memref<8x256xbf16, #tpu.memory_space<vmem>>, vector<8x256xbf16>,
    return
  }
  func.func @transform_0(%arg0: i32) -> (i32, i32) {
    %c0_i32 = arith.constant 0 : i32
    %c0_i32_0 = arith.constant 0 : i32
    return %arg0, %c0_i32 : i32, i32
  }
  func.func @transform_1(%arg0: i32) -> (i32, i32) {
    %c0_i32 = arith.constant 0 : i32
    %c0_i32_0 = arith.constant 0 : i32
    return %arg0, %c0_i32 : i32, i32
  }
  func.func @transform_2(%arg0: i32) -> (i32, i32) {
    %c0_i32 = arith.constant 0 : i32
    %c0_i32_0 = arith.constant 0 : i32
    %c0_i32_1 = arith.constant 0 : i32
    return %c0_i32, %c0_i32_0 : i32, i32
  }
  func.func @transform_3(%arg0: i32) -> (i32, i32) {
    %c0_i32 = arith.constant 0 : i32
    %c0_i32_0 = arith.constant 0 : i32
    %c0_i32_1 = arith.constant 0 : i32
    return %c0_i32, %c0_i32_0 : i32, i32
  }
  func.func @transform_4(%arg0: i32) -> (i32, i32) {
    %c0_i32 = arith.constant 0 : i32
    %c0_i32_0 = arith.constant 0 : i32
    %c0_i32_1 = arith.constant 0 : i32
    return %c0_i32, %c0_i32_0 : i32, i32
  }
  func.func @transform_5(%arg0: i32) -> (i32, i32) {
    %c0_i32 = arith.constant 0 : i32
    %c0_i32_0 = arith.constant 0 : i32
    return %arg0, %c0_i32 : i32, i32
  }
}

module attributes {stable_mosaic.version = 11 : i64} {
  func.func @kernel(%arg0: i32, %arg1: memref<8x1152xbf16, #tpu.memory_space<vmem>>, %arg2: memref<1152x128xbf16, #tpu.memory_space<vmem>>, %arg3: memref<1x128xf32, #tpu.memory_space<vmem>>, %arg4: memref<8x128xbf16, #tpu.memory_space<vmem>>, %arg5: memref<8x128xbf16, #tpu.memory_space<vmem>>) attributes {dimension_semantics = [#tpu.dimension_semantics<parallel>], iteration_bounds = array<i64: 1>, scalar_prefetch = 0 : i64, scratch_operands = 0 : i64, tpu.core_type = #tpu.core_type<tc>, window_params = [{transform_indices = @transform_0, window_bounds = array<i64: 8, 1152>}, {pipeline_mode = #tpu.pipeline_mode<synchronous>, transform_indices = @transform_1, window_bounds = array<i64: 1152, 128>}, {pipeline_mode = #tpu.pipeline_mode<synchronous>, transform_indices = @transform_2, window_bounds = array<i64: 1, 128>}, {transform_indices = @transform_3, window_bounds = array<i64: 8, 128>}, {transform_indices = @transform_4, window_bounds = array<i64: 8, 128>}]} {
    %c0 = arith.constant 0 : index
    %c0_0 = arith.constant 0 : index
    %0 = vector.load %arg1[%c0, %c0_0] : memref<8x1152xbf16, #tpu.memory_space<vmem>>, vector<8x1152xbf16>
    %c0_1 = arith.constant 0 : index
    %c0_2 = arith.constant 0 : index
    %1 = vector.load %arg2[%c0_1, %c0_2] : memref<1152x128xbf16, #tpu.memory_space<vmem>>, vector<1152x128xbf16>
    %cst = arith.constant dense<0.000000e+00> : vector<8x128xf32>
    %2 = tpu.matmul %0, %1, %cst {dimension_numbers = #tpu.dot_dimension_numbers<[1], [0], [0], [1], [0, 0, 1, 1], [], []>} : vector<8x1152xbf16>, vector<1152x128xbf16>, vector<8x128xf32> -> vector<8x128xf32>
    %c0_3 = arith.constant 0 : index
    %c0_4 = arith.constant 0 : index
    %3 = vector.load %arg3[%c0_3, %c0_4] : memref<1x128xf32, #tpu.memory_space<vmem>>, vector<1x128xf32>
    %4 = vector.broadcast %3 : vector<1x128xf32> to vector<8x128xf32>
    %5 = arith.addf %2, %4 : vector<8x128xf32>
    %6 = arith.negf %5 : vector<8x128xf32>
    %7 = math.exp %6 : vector<8x128xf32>
    %cst_5 = arith.constant 1.000000e+00 : f32
    %8 = vector.broadcast %cst_5 : f32 to vector<8x128xf32>
    %9 = arith.addf %8, %7 : vector<8x128xf32>
    %10 = arith.divf %8, %9 : vector<8x128xf32>
    %11 = arith.mulf %5, %10 : vector<8x128xf32>
    %c0_6 = arith.constant 0 : index
    %c0_7 = arith.constant 0 : index
    %12 = vector.load %arg4[%c0_6, %c0_7] : memref<8x128xbf16, #tpu.memory_space<vmem>>, vector<8x128xbf16>
    %13 = arith.extf %12 : vector<8x128xbf16> to vector<8x128xf32>
    %14 = arith.addf %11, %13 : vector<8x128xf32>
    %15 = arith.truncf %14 : vector<8x128xf32> to vector<8x128xbf16>
    %c0_8 = arith.constant 0 : index
    %c0_9 = arith.constant 0 : index
    %16 = vector.load %arg5[%c0_8, %c0_9] : memref<8x128xbf16, #tpu.memory_space<vmem>>, vector<8x128xbf16>
    tpu.vector_store %arg5[%c0_8, %c0_9], %15 {strides = array<i32>} : memref<8x128xbf16, #tpu.memory_space<vmem>>, vector<8x128xbf16>,
    return
  }
  func.func @transform_0(%arg0: i32) -> (i32, i32) {
    %c0_i32 = arith.constant 0 : i32
    %c0_i32_0 = arith.constant 0 : i32
    return %arg0, %c0_i32 : i32, i32
  }
  func.func @transform_1(%arg0: i32) -> (i32, i32) {
    %c0_i32 = arith.constant 0 : i32
    %c0_i32_0 = arith.constant 0 : i32
    %c0_i32_1 = arith.constant 0 : i32
    return %c0_i32, %c0_i32_0 : i32, i32
  }
  func.func @transform_2(%arg0: i32) -> (i32, i32) {
    %c0_i32 = arith.constant 0 : i32
    %c0_i32_0 = arith.constant 0 : i32
    %c0_i32_1 = arith.constant 0 : i32
    return %c0_i32, %c0_i32_0 : i32, i32
  }
  func.func @transform_3(%arg0: i32) -> (i32, i32) {
    %c0_i32 = arith.constant 0 : i32
    %c0_i32_0 = arith.constant 0 : i32
    return %arg0, %c0_i32 : i32, i32
  }
  func.func @transform_4(%arg0: i32) -> (i32, i32) {
    %c0_i32 = arith.constant 0 : i32
    %c0_i32_0 = arith.constant 0 : i32
    return %arg0, %c0_i32 : i32, i32
  }
}

</mosaic_0001>

<bundles_post_ra>
// kernel: cspdarknet_forward.33
= control target key start
LH: loop header
LB: loop body
LE: loop exit
PB: predicated region body
PF: predicated region fallthrough
CT: control target
= control target key end

     0   :  { %s700_s12 = smov 0   ;;  %s797_s0 = inlined_call_operand.vmem [shape: bf16[128,144], index: 0, kind: input, shape index: {}]   ;;  %s798_s1 = inlined_call_operand.vmem [shape: bf16[144,32], index: 1, kind: input, shape index: {}]   ;;  %s799_s2 = inlined_call_operand.vmem [shape: f32[1,32], index: 2, kind: input, shape index: {}]   ;;  %s800_s3 = inlined_call_operand.vmem [shape: bf16[128,32], index: 3, kind: output, shape index: {}]  }
   0x1 LB: > { %s532_s13 = sadd.s32 4294967295, %s677_s12   ;;  %p536_p0 = scmp.ge.s32.totalorder %s677_s12, 1  ;;  %s677_s12 = sphi %s700_s12, %s13_s12  }
   0x2   : > { %p139_p1 = scmp.lt.s32.totalorder %s677_s12, 3 }
   0x4   : > { %p140_p2 = pnand %p536_p0, %p139_p1 }
   0x5   : > { %v618_v0 = vld [vmem:[%s798_s1] sm:$0xff] (!%p140_p2)   ;;  %v679_v1 = vmov (!%p140_p2), 0   ;;  %s537_s16 = sshll.u32 (!%p140_p2), %s532_s13, 3  ;;  %v619_v2 = vld [vmem:[%s798_s1 + $0x8] sm:$0xff] (!%p140_p2)   ;;  %v620_v3 = vld [vmem:[%s798_s1 + $0x10] sm:$0xff] (!%p140_p2)   ;;  %vm301_vm0 = vcmask (!%p140_p2), 130048  }
   0x6   : > { %143 = sbr.rel (%p140_p2) target bundleno = 298 (0x12a), region = 32  ;;  %314 = vmatprep.subr.bf16.mxu0 (!%p140_p2), %v679_v1  ;;  %591 = vmatprep.subr.bf16.mxu1 (!%p140_p2), %v679_v1  ;;  %p165_p3 = scmp.lt.s32.totalorder (!%p140_p2), %s537_s16, 15  ;;  %v621_v4 = vld [vmem:[%s798_s1 + $0x18] sm:$0xff] (!%p140_p2)   ;;  %v622_v7 = vld [vmem:[%s798_s1 + $0x20] sm:$0xff] (!%p140_p2)   ;;  %v623_v8 = vld [vmem:[%s798_s1 + $0x28] sm:$0xff] (!%p140_p2)   ;;  %vm467_vm1 = vcmask (!%p140_p2), 257024  }
   0x7   : > { %315 = vmatpush1.bf16.msra.mxu0 (!%p140_p2), %v618_v0  ;;  %600 = vmatpush1.bf16.msra.mxu1 (!%p140_p2), %v618_v0  ;;  %v624_v9 = vld [vmem:[%s798_s1 + $0x30] sm:$0xff] (!%p140_p2)   ;;  %v625_v10 = vld [vmem:[%s798_s1 + $0x38] sm:$0xff] (!%p140_p2)   ;;  %v626_v11 = vld [vmem:[%s798_s1 + $0x40] sm:$0xff] (!%p140_p2)  }
   0x8   : > { %316 = vmatprep.subr.bf16.mxu0 (!%p140_p2), %v679_v1  ;;  %592 = vmatprep.subr.bf16.mxu1 (!%p140_p2), %v679_v1  ;;  %v542_v18 = vld [vmem:[%s799_s2] ss:$0 sm:$0xff] (!%p140_p2) }
   0xb   : > { %317 = vmatpush1.bf16.msra.mxu0 (!%p140_p2), %v619_v2  ;;  %601 = vmatpush1.bf16.msra.mxu1 (!%p140_p2), %v619_v2 }
   0xc   : > { %318 = vmatprep.subr.bf16.mxu0 (!%p140_p2), %v679_v1  ;;  %593 = vmatprep.subr.bf16.mxu1 (!%p140_p2), %v679_v1 }
   0xd   : > { %s802_s16 = smov (!%p165_p3, %s537_s16), 15 }
   0xe   : > { %s582_s21 = sshll.u32 %s802_s16, 3  ;;  %s541_s13 = sshll.u32 %s802_s16, 2 }
   0xf   : > { %s723_s24 = scalar_lea.vmem %s797_s0, %s582_s21  ;;  %319 = vmatpush1.bf16.msra.mxu0 %v620_v3  ;;  %602 = vmatpush1.bf16.msra.mxu1 %v620_v3  ;;  %s175_s17 = scalar_lea.vmem %s800_s3, %s541_s13 }
  0x10   : > { %v629_v5 = vld [vmem:[%s723_s24 + $0x4] ss:$8 sps:$4 sm:$0xff]   ;;  %320 = vmatprep.subr.bf16.mxu0 %v679_v1  ;;  %594 = vmatprep.subr.bf16.mxu1 %v679_v1  ;;  %v627_v12 = vld [vmem:[%s723_s24] ss:$8 sps:$4 sm:$0xff]   ;;  %v633_v14 = vld [vmem:[%s723_s24 + $0x14] ss:$8 sps:$4 sm:$0xff]  }
  0x11   : > { %v632_v6 = vld [vmem:[%s723_s24 + $0x24] ss:$8 sps:$4 sm:$0xff]   ;;  %560 = vmatprep.mubr.msk.bf16.mxu0 %vm301_vm0, %v629_v5  ;;  %v630_v13 = vld [vmem:[%s723_s24 + $0x20] ss:$8 sps:$4 sm:$0xff]   ;;  %v635_v15 = vld [vmem:[%s723_s24 + $0x34] ss:$8 sps:$4 sm:$0xff]  }
  0x12   : > { %562 = vmatprep.mubr.msk.bf16.mxu1 %vm301_vm0, %v632_v6  ;;  %v637_v16 = vld [vmem:[%s723_s24 + $0x10] ss:$8 sps:$4 sm:$0xff]  }
  0x13   : > { %321 = vmatpush1.bf16.msra.mxu0 %v621_v4  ;;  %603 = vmatpush1.bf16.msra.mxu1 %v621_v4  ;;  %v638_v17 = vld [vmem:[%s723_s24 + $0x30] ss:$8 sps:$4 sm:$0xff]  }
  0x14   : > { %322 = vmatprep.subr.bf16.mxu0 %v679_v1  ;;  %595 = vmatprep.subr.bf16.mxu1 %v679_v1 }
  0x17   : > { %323 = vmatpush1.bf16.msra.mxu0 %v622_v7  ;;  %604 = vmatpush1.bf16.msra.mxu1 %v622_v7 }
  0x18   : > { %324 = vmatprep.subr.bf16.mxu0 %v679_v1  ;;  %596 = vmatprep.subr.bf16.mxu1 %v679_v1 }
  0x1b   : > { %325 = vmatpush1.bf16.msra.mxu0 %v623_v8  ;;  %605 = vmatpush1.bf16.msra.mxu1 %v623_v8 }
  0x1c   : > { %326 = vmatprep.subr.bf16.mxu0 %v679_v1  ;;  %597 = vmatprep.subr.bf16.mxu1 %v679_v1 }
  0x1f   : > { %327 = vmatpush1.bf16.msra.mxu0 %v624_v9  ;;  %606 = vmatpush1.bf16.msra.mxu1 %v624_v9 }
  0x20   : > { %328 = vmatprep.subr.bf16.mxu0 %v679_v1  ;;  %598 = vmatprep.subr.bf16.mxu1 %v679_v1 }
  0x23   : > { %329 = vmatpush1.bf16.msra.mxu0 %v625_v10  ;;  %607 = vmatpush1.bf16.msra.mxu1 %v625_v10 }
  0x24   : > { %330 = vmatprep.subr.bf16.mxu0 %v679_v1  ;;  %599 = vmatprep.subr.bf16.mxu1 %v679_v1 }
  0x27   : > { %331 = vmatpush1.bf16.msra.mxu0 %v626_v11  ;;  %608 = vmatpush1.bf16.msra.mxu1 %v626_v11 }
  0x2a   : > { %347 = vmatmul.mubr.bf16.vlgmr.msra.gmra.mrb[0].mxu0 %v627_v12  ;;  %363 = vmatmul.mubr.bf16.vlgmr.msra.gmra.mrb[0].mxu1 %v630_v13 }
  0x2b   : > { %561 = vmatprep.mubr.msk.bf16.mxu0 %vm301_vm0, %v633_v14  ;;  %563 = vmatprep.mubr.msk.bf16.mxu1 %vm301_vm0, %v635_v15 }
  0x32   : > { %355 = vmatmul.mubr.bf16.gmra.mrb[4].mxu0 %v637_v16  ;;  %371 = vmatmul.mubr.bf16.gmra.mrb[4].mxu1 %v638_v17 }
  0xfd   : > { %v348_v19 = vpop.f32.mrb[0].mxu0  ;;  %v364_v20 = vpop.f32.mrb[0].mxu1 }
  0xfe   : > { %v758_v21 = vadd.f32 %v542_v18, %v348_v19  ;;  %v760_v22 = vadd.f32 %v542_v18, %v364_v20  ;;  %v350_v23 = vpop.f32.mrb[1].mxu0  ;;  %v366_v24 = vpop.f32.mrb[1].mxu1 }
  0xff   : > { %v351_v25 = vpop.f32.mrb[2].mxu0  ;;  %v367_v26 = vpop.f32.mrb[2].mxu1 }
 0x100   : > { %v564_v27 = vmul.f32 -1.442695, %v758_v21  ;;  %v568_v28 = vmul.f32 -1.442695, %v760_v22  ;;  %v764_v29 = vadd.f32 %v542_v18, %v351_v25  ;;  %v766_v30 = vadd.f32 %v542_v18, %v367_v26  ;;  %v353_v31 = vpop.f32.mrb[3].mxu0  ;;  %v369_v32 = vpop.f32.mrb[3].mxu1 }
 0x102   : > { %639 = vpow2.f32 %v564_v27  ;;  %v565_v33 = vmul.f32 -1.442695, %v764_v29  ;;  %v569_v34 = vmul.f32 -1.442695, %v766_v30 }
 0x103   : > { %641 = vpow2.f32 %v568_v28 }
 0x104   : > { %643 = vpow2.f32 %v565_v33 }
 0x105   : > { %645 = vpow2.f32 %v569_v34  ;;  %v356_v35 = vpop.f32.mrb[4].mxu0  ;;  %v372_v36 = vpop.f32.mrb[4].mxu1 }
 0x106   : > { %v770_v37 = vadd.f32 %v542_v18, %v356_v35  ;;  %v772_v38 = vadd.f32 %v542_v18, %v372_v36  ;;  %v358_v39 = vpop.f32.mrb[5].mxu0  ;;  %v374_v40 = vpop.f32.mrb[5].mxu1 }
 0x107   : > { %v359_v41 = vpop.f32.mrb[6].mxu0  ;;  %v375_v42 = vpop.f32.mrb[6].mxu1 }
 0x108   : > { %v566_v43 = vmul.f32 -1.442695, %v770_v37  ;;  %v570_v44 = vmul.f32 -1.442695, %v772_v38  ;;  %v360_v45 = vadd.f32 %v542_v18, %v359_v41  ;;  %v376_v46 = vadd.f32 %v542_v18, %v375_v42  ;;  %v361_v47 = vpop.f32.mrb[7].mxu0  ;;  %v377_v48 = vpop.f32.mrb[7].mxu1 }
 0x10a   : > { %647 = vpow2.f32 %v566_v43  ;;  %v567_v49 = vmul.f32 -1.442695, %v360_v45  ;;  %v571_v50 = vmul.f32 -1.442695, %v376_v46 }
 0x10b   : > { %649 = vpow2.f32 %v570_v44 }
 0x10c   : > { %v640_v51 = vpop.eup %639  ;;  %651 = vpow2.f32 %v567_v49 }
 0x10d   : > { %v642_v52 = vpop.eup %641  ;;  %v403_v53 = vadd.f32 1.0, %v640_v51  ;;  %653 = vpow2.f32 %v571_v50 }
 0x10e   : > { %v644_v54 = vpop.eup %643  ;;  %v407_v55 = vadd.f32 1.0, %v642_v52 }
 0x10f   : > { %v646_v56 = vpop.eup %645  ;;  %655 = vrcp.f32 %v403_v53  ;;  %v404_v57 = vadd.f32 1.0, %v644_v54 }
 0x110   : > { %657 = vrcp.f32 %v407_v55  ;;  %v408_v58 = vadd.f32 1.0, %v646_v56 }
 0x111   : > { %659 = vrcp.f32 %v404_v57 }
 0x112   : > { %661 = vrcp.f32 %v408_v58 }
 0x114   : > { %v648_v59 = vpop.eup %647 }
 0x115   : > { %v650_v60 = vpop.eup %649  ;;  %v405_v61 = vadd.f32 1.0, %v648_v59 }
 0x116   : > { %v652_v62 = vpop.eup %651  ;;  %v409_v63 = vadd.f32 1.0, %v650_v60 }
 0x117   : > { %v654_v0 = vpop.eup %653  ;;  %663 = vrcp.f32 %v405_v61  ;;  %v406_v1 = vadd.f32 1.0, %v652_v62 }
 0x118   : > { %665 = vrcp.f32 %v409_v63  ;;  %v410_v2 = vadd.f32 1.0, %v654_v0 }
 0x119   : > { %v656_v3 = vpop.eup %655  ;;  %667 = vrcp.f32 %v406_v1 }
 0x11a   : > { %v658_v4 = vpop.eup %657  ;;  %v427_v5 = vmul.f32 %v656_v3, %v758_v21  ;;  %669 = vrcp.f32 %v410_v2 }
 0x11b   : > { %v660_v6 = vpop.eup %659  ;;  %v431_v7 = vmul.f32 %v658_v4, %v760_v22 }
 0x11c   : > { %v662_v8 = vpop.eup %661  ;;  %v583_v9 = vpack.c.bf16 %v427_v5, %v427_v5  ;;  %v428_v10 = vmul.f32 %v660_v6, %v764_v29 }
 0x11d   : > { %v587_v11 = vpack.c.bf16 %v431_v7, %v431_v7  ;;  %v432_v12 = vmul.f32 %v662_v8, %v766_v30 }
 0x11e   : > { %468 = vst.msk [vmem:[%s175_s17] sm:$0xf] %vm467_vm1, %v583_v9  ;;  %v584_v13 = vpack.c.bf16 %v428_v10, %v428_v10 }
 0x11f   : > { %472 = vst.msk [vmem:[%s175_s17 + $0x10] sm:$0xf] %vm467_vm1, %v587_v11  ;;  %v588_v14 = vpack.c.bf16 %v432_v12, %v432_v12 }
 0x120   : > { %469 = vst.msk [vmem:[%s175_s17 + $0x4] sm:$0xf] %vm467_vm1, %v584_v13 }
 0x121   : > { %v664_v15 = vpop.eup %663  ;;  %473 = vst.msk [vmem:[%s175_s17 + $0x14] sm:$0xf] %vm467_vm1, %v588_v14 }
 0x122   : > { %v666_v16 = vpop.eup %665  ;;  %v429_v17 = vmul.f32 %v664_v15, %v770_v37 }
 0x123   : > { %v668_v18 = vpop.eup %667  ;;  %v433_v19 = vmul.f32 %v666_v16, %v772_v38 }
 0x124   : > { %v670_v20 = vpop.eup %669  ;;  %v585_v21 = vpack.c.bf16 %v429_v17, %v429_v17  ;;  %v430_v22 = vmul.f32 %v668_v18, %v360_v45 }
 0x125   : > { %v589_v23 = vpack.c.bf16 %v433_v19, %v433_v19  ;;  %v434_v24 = vmul.f32 %v670_v20, %v376_v46 }
 0x126   : > { %470 = vst.msk [vmem:[%s175_s17 + $0x8] sm:$0xf] %vm467_vm1, %v585_v21  ;;  %v586_v25 = vpack.c.bf16 %v430_v22, %v430_v22 }
 0x127   : > { %474 = vst.msk [vmem:[%s175_s17 + $0x18] sm:$0xf] %vm467_vm1, %v589_v23  ;;  %v590_v26 = vpack.c.bf16 %v434_v24, %v434_v24 }
 0x128   : > { %471 = vst.msk [vmem:[%s175_s17 + $0xc] sm:$0xf] %vm467_vm1, %v586_v25 }
 0x129   : > { %475 = vst.msk [vmem:[%s175_s17 + $0x1c] sm:$0xf] %vm467_vm1, %v590_v26 }
 0x12a PF: > { %s13_s12 = sadd.s32 1, %s677_s12  }
 0x12b   : > { %p10_p4 = scmp.ge.s32.totalorder %s13_s12, 4  }
 0x12d   :  { %12 = sbr.rel (!%p10_p4) target bundleno = 1 (0x1), region = 62 }

// kernel: cspdarknet_forward.34
= control target key start
LH: loop header
LB: loop body
LE: loop exit
PB: predicated region body
PF: predicated region fallthrough
CT: control target
= control target key end

     0   :  { %s599_s12 = smov 0   ;;  %s644_s0 = inlined_call_operand.vmem [shape: bf16[128,32], index: 0, kind: input, shape index: {}]   ;;  %s645_s1 = inlined_call_operand.vmem [shape: bf16[32,32], index: 1, kind: input, shape index: {}]   ;;  %s646_s2 = inlined_call_operand.vmem [shape: f32[1,32], index: 2, kind: input, shape index: {}]   ;;  %s647_s3 = inlined_call_operand.vmem [shape: bf16[128,32], index: 3, kind: output, shape index: {}]  }
   0x1 LB: > { %s457_s13 = sadd.s32 4294967295, %s577_s12   ;;  %p461_p0 = scmp.ge.s32.totalorder %s577_s12, 1  ;;  %s577_s12 = sphi %s599_s12, %s13_s12  }
   0x2   : > { %p138_p1 = scmp.lt.s32.totalorder %s577_s12, 3 }
   0x4   : > { %p139_p2 = pnand %p461_p0, %p138_p1 }
   0x5   : > { %v533_v0 = vld [vmem:[%s645_s1] sm:$0xff] (!%p139_p2)   ;;  %s462_s16 = sshll.u32 (!%p139_p2), %s457_s13, 3  ;;  %v534_v1 = vld [vmem:[%s645_s1 + $0x8] sm:$0xff] (!%p139_p2)   ;;  %vm226_vm0 = vcmask (!%p139_p2), 261120   ;;  %vm392_vm1 = vcmask (!%p139_p2), 257024  }
   0x6   : > { %142 = sbr.rel (%p139_p2) target bundleno = 270 (0x10e), region = 32  ;;  %p163_p3 = scmp.lt.s32.totalorder (!%p139_p2), %s462_s16, 15  ;;  %509 = vmatprep.subr.bf16.mxu0 (!%p139_p2), %v533_v0  ;;  %521 = vmatprep.subr.bf16.mxu1 (!%p139_p2), %v533_v0  ;;  %v466_v6 = vld [vmem:[%s646_s2] ss:$0 sm:$0xff] (!%p139_p2) }
   0x7   : > { %510 = vmatpush3.bf16.msra.mxu0 (!%p139_p2), %v533_v0  ;;  %523 = vmatpush3.bf16.msra.mxu1 (!%p139_p2), %v533_v0 }
   0x8   : > { %511 = vmatprep.subr.bf16.mxu0 (!%p139_p2), %v534_v1  ;;  %522 = vmatprep.subr.bf16.mxu1 (!%p139_p2), %v534_v1 }
   0xb   : > { %512 = vmatpush3.bf16.msra.mxu0 (!%p139_p2), %v534_v1  ;;  %524 = vmatpush3.bf16.msra.mxu1 (!%p139_p2), %v534_v1 }
   0xd   : > { %s649_s16 = smov (!%p163_p3, %s462_s16), 15 }
   0xe   : > { %s463_s19 = sshll.u32 %s649_s16, 2 }
   0xf   : > { %s166_s22 = scalar_lea.vmem %s644_s0, %s463_s19  ;;  %s172_s27 = scalar_lea.vmem %s647_s3, %s463_s19 }
  0x10   : > { %v535_v2 = vld [vmem:[%s166_s22] sm:$0xff]   ;;  %v536_v3 = vld [vmem:[%s166_s22 + $0x10] sm:$0xff]   ;;  %v537_v4 = vld [vmem:[%s166_s22 + $0x8] sm:$0xff]  }
  0x11   : > { %513 = vmatprep.mubr.msk.bf16.mxu0 %vm226_vm0, %v535_v2  ;;  %517 = vmatprep.mubr.msk.bf16.mxu1 %vm226_vm0, %v536_v3  ;;  %v538_v5 = vld [vmem:[%s166_s22 + $0x18] sm:$0xff]  }
  0x12   : > { %514 = vmatmul.mubr.msk.bf16.vlgmr.msra.gmra.mrb[0].mxu0 %vm226_vm0, %v537_v4  ;;  %518 = vmatmul.mubr.msk.bf16.vlgmr.msra.gmra.mrb[0].mxu1 %vm226_vm0, %v538_v5 }
  0xe5   : > { %v515_v7 = vpop.f32.mrb[0].mxu0  ;;  %v519_v9 = vpop.f32.mrb[0].mxu1 }
  0xe6   : > { %v282_v8 = vadd.f32 %v515_v7, %v466_v6  ;;  %v273_v10 = vpop.f32.mrb[1].mxu0  ;;  %v298_v11 = vadd.f32 %v519_v9, %v466_v6  ;;  %v289_v13 = vpop.f32.mrb[1].mxu1 }
  0xe7   : > { %v274_v12 = vadd.f32 %v466_v6, %v273_v10  ;;  %v516_v14 = vpop.f32.mrb[2].mxu0  ;;  %v290_v16 = vadd.f32 %v466_v6, %v289_v13  ;;  %v520_v18 = vpop.f32.mrb[2].mxu1 }
  0xe8   : > { %v479_v15 = vmul.f32 -1.442695, %v282_v8  ;;  %v285_v17 = vadd.f32 %v516_v14, %v466_v6  ;;  %v276_v19 = vpop.f32.mrb[3].mxu0  ;;  %v483_v20 = vmul.f32 -1.442695, %v298_v11  ;;  %v301_v22 = vadd.f32 %v520_v18, %v466_v6  ;;  %v292_v24 = vpop.f32.mrb[3].mxu1 }
  0xe9   : > { %v477_v21 = vmul.f32 -1.442695, %v274_v12  ;;  %v624_v23 = vadd.f32 %v466_v6, %v276_v19  ;;  %v481_v25 = vmul.f32 -1.442695, %v290_v16  ;;  %v293_v27 = vadd.f32 %v466_v6, %v292_v24 }
  0xea   : > { %539 = vpow2.f32 %v479_v15  ;;  %v480_v26 = vmul.f32 -1.442695, %v285_v17  ;;  %v484_v28 = vmul.f32 -1.442695, %v301_v22 }
  0xeb   : > { %541 = vpow2.f32 %v483_v20  ;;  %v478_v29 = vmul.f32 -1.442695, %v624_v23  ;;  %v482_v30 = vmul.f32 -1.442695, %v293_v27 }
  0xec   : > { %543 = vpow2.f32 %v477_v21 }
  0xed   : > { %545 = vpow2.f32 %v481_v25 }
  0xee   : > { %547 = vpow2.f32 %v480_v26 }
  0xef   : > { %549 = vpow2.f32 %v484_v28 }
  0xf0   : > { %551 = vpow2.f32 %v478_v29 }
  0xf1   : > { %553 = vpow2.f32 %v482_v30 }
  0xf4   : > { %v540_v31 = vpop.eup %539 }
  0xf5   : > { %v542_v32 = vpop.eup %541  ;;  %v330_v33 = vadd.f32 1.0, %v540_v31 }
  0xf6   : > { %v544_v34 = vpop.eup %543  ;;  %v334_v35 = vadd.f32 1.0, %v542_v32 }
  0xf7   : > { %v546_v36 = vpop.eup %545  ;;  %555 = vrcp.f32 %v330_v33  ;;  %v328_v37 = vadd.f32 1.0, %v544_v34 }
  0xf8   : > { %v548_v38 = vpop.eup %547  ;;  %557 = vrcp.f32 %v334_v35  ;;  %v332_v39 = vadd.f32 1.0, %v546_v36 }
  0xf9   : > { %v550_v40 = vpop.eup %549  ;;  %559 = vrcp.f32 %v328_v37  ;;  %v331_v41 = vadd.f32 1.0, %v548_v38 }
  0xfa   : > { %v552_v42 = vpop.eup %551  ;;  %561 = vrcp.f32 %v332_v39  ;;  %v335_v43 = vadd.f32 1.0, %v550_v40 }
  0xfb   : > { %v554_v44 = vpop.eup %553  ;;  %563 = vrcp.f32 %v331_v41  ;;  %v329_v45 = vadd.f32 1.0, %v552_v42 }
  0xfc   : > { %565 = vrcp.f32 %v335_v43  ;;  %v333_v46 = vadd.f32 1.0, %v554_v44 }
  0xfd   : > { %567 = vrcp.f32 %v329_v45 }
  0xfe   : > { %569 = vrcp.f32 %v333_v46 }
 0x101   : > { %v556_v47 = vpop.eup %555 }
 0x102   : > { %v558_v48 = vpop.eup %557  ;;  %v354_v49 = vmul.f32 %v556_v47, %v282_v8 }
 0x103   : > { %v560_v50 = vpop.eup %559  ;;  %v358_v51 = vmul.f32 %v558_v48, %v298_v11 }
 0x104   : > { %v562_v52 = vpop.eup %561  ;;  %v497_v53 = vpack.c.bf16 %v354_v49, %v354_v49  ;;  %v352_v54 = vmul.f32 %v560_v50, %v274_v12 }
 0x105   : > { %v564_v55 = vpop.eup %563  ;;  %v501_v56 = vpack.c.bf16 %v358_v51, %v358_v51  ;;  %v356_v57 = vmul.f32 %v562_v52, %v290_v16 }
 0x106   : > { %v566_v58 = vpop.eup %565  ;;  %395 = vst.msk [vmem:[%s172_s27 + $0x8] sm:$0xf] %vm392_vm1, %v497_v53  ;;  %v495_v59 = vpack.c.bf16 %v352_v54, %v352_v54  ;;  %v355_v60 = vmul.f32 %v564_v55, %v285_v17 }
 0x107   : > { %v568_v61 = vpop.eup %567  ;;  %399 = vst.msk [vmem:[%s172_s27 + $0x18] sm:$0xf] %vm392_vm1, %v501_v56  ;;  %v499_v62 = vpack.c.bf16 %v356_v57, %v356_v57  ;;  %v359_v63 = vmul.f32 %v566_v58, %v301_v22 }
 0x108   : > { %v570_v0 = vpop.eup %569  ;;  %393 = vst.msk [vmem:[%s172_s27] sm:$0xf] %vm392_vm1, %v495_v59  ;;  %v498_v1 = vpack.c.bf16 %v355_v60, %v355_v60  ;;  %v353_v2 = vmul.f32 %v568_v61, %v624_v23 }
 0x109   : > { %397 = vst.msk [vmem:[%s172_s27 + $0x10] sm:$0xf] %vm392_vm1, %v499_v62  ;;  %v502_v3 = vpack.c.bf16 %v359_v63, %v359_v63  ;;  %v357_v4 = vmul.f32 %v570_v0, %v293_v27 }
 0x10a   : > { %396 = vst.msk [vmem:[%s172_s27 + $0xc] sm:$0xf] %vm392_vm1, %v498_v1  ;;  %v496_v5 = vpack.c.bf16 %v353_v2, %v353_v2 }
 0x10b   : > { %400 = vst.msk [vmem:[%s172_s27 + $0x1c] sm:$0xf] %vm392_vm1, %v502_v3  ;;  %v500_v6 = vpack.c.bf16 %v357_v4, %v357_v4 }
 0x10c   : > { %394 = vst.msk [vmem:[%s172_s27 + $0x4] sm:$0xf] %vm392_vm1, %v496_v5 }
 0x10d   : > { %398 = vst.msk [vmem:[%s172_s27 + $0x14] sm:$0xf] %vm392_vm1, %v500_v6 }
 0x10e PF: > { %s13_s12 = sadd.s32 1, %s577_s12  }
 0x10f   : > { %p10_p4 = scmp.ge.s32.totalorder %s13_s12, 4  }
 0x111   :  { %12 = sbr.rel (!%p10_p4) target bundleno = 1 (0x1), region = 62 }

// kernel: cspdarknet_forward.32
= control target key start
LH: loop header
LB: loop body
LE: loop exit
PB: predicated region body
PF: predicated region fallthrough
CT: control target
= control target key end

     0   :  { %s927_s12 = smov 0   ;;  %s1109_s0 = inlined_call_operand.vmem [shape: bf16[512,108], index: 0, kind: input, shape index: {}]   ;;  %s1110_s1 = inlined_call_operand.vmem [shape: bf16[108,16], index: 1, kind: input, shape index: {}]   ;;  %s1111_s2 = inlined_call_operand.vmem [shape: f32[1,16], index: 2, kind: input, shape index: {}]   ;;  %s1112_s3 = inlined_call_operand.vmem [shape: bf16[512,16], index: 3, kind: output, shape index: {}]  }
   0x1 LB: > { %s668_s13 = sadd.s32 4294967295, %s905_s12   ;;  %p672_p0 = scmp.ge.s32.totalorder %s905_s12, 1  ;;  %s905_s12 = sphi %s927_s12, %s13_s12  }
   0x2   : > { %p138_p1 = scmp.lt.s32.totalorder %s905_s12, 5 }
   0x4   : > { %p139_p2 = pnand %p672_p0, %p138_p1 }
   0x5   : > { %v820_v0 = vld [vmem:[%s1110_s1] sm:$0xff] (!%p139_p2)   ;;  %v821_v1 = vld [vmem:[%s1110_s1 + $0x8] sm:$0xff] (!%p139_p2)   ;;  %s673_s18 = sshll.u32 (!%p139_p2), %s668_s13, 4  ;;  %v822_v2 = vld [vmem:[%s1110_s1 + $0x10] sm:$0xff] (!%p139_p2)   ;;  %vm293_vm0 = vcmask (!%p139_p2), 883712   ;;  %vm318_vm1 = vcmask (!%p139_p2), 1045504  }
   0x6   : > { %142 = sbr.rel (%p139_p2) target bundleno = 307 (0x133), region = 32  ;;  %766 = vmatprep.subr.bf16.mxu0 (!%p139_p2), %v820_v0  ;;  %796 = vmatprep.subr.bf16.mxu1 (!%p139_p2), %v820_v0  ;;  %p163_p3 = scmp.lt.s32.totalorder (!%p139_p2), %s673_s18, 63  ;;  %v823_v3 = vld [vmem:[%s1110_s1 + $0x18] sm:$0xff] (!%p139_p2)   ;;  %v824_v6 = vld [vmem:[%s1110_s1 + $0x20] sm:$0xff] (!%p139_p2)   ;;  %v825_v7 = vld [vmem:[%s1110_s1 + $0x28] sm:$0xff] (!%p139_p2)   ;;  %vm595_vm2 = vcmask (!%p139_p2), 125952  }
   0x7   : > { %767 = vmatpush3.bf16.msra.mxu0 (!%p139_p2), %v820_v0  ;;  %803 = vmatpush3.bf16.msra.mxu1 (!%p139_p2), %v820_v0  ;;  %v826_v8 = vld [vmem:[%s1110_s1 + $0x30] sm:$0x3f] (!%p139_p2)   ;;  %v985_v16 = vld [vmem:[%s1111_s2] ss:$0 sm:$0xff] (!%p139_p2) }
   0x8   : > { %768 = vmatprep.subr.bf16.mxu0 (!%p139_p2), %v821_v1  ;;  %797 = vmatprep.subr.bf16.mxu1 (!%p139_p2), %v821_v1  ;;  %v320_v9 = vsel (!%p139_p2), %vm318_vm1, %v826_v8, 0 }
   0xb   : > { %769 = vmatpush3.bf16.msra.mxu0 (!%p139_p2), %v821_v1  ;;  %804 = vmatpush3.bf16.msra.mxu1 (!%p139_p2), %v821_v1 }
   0xc   : > { %770 = vmatprep.subr.bf16.mxu0 (!%p139_p2), %v822_v2  ;;  %798 = vmatprep.subr.bf16.mxu1 (!%p139_p2), %v822_v2 }
   0xd   : > { %s1114_s18 = smov (!%p163_p3, %s673_s18), 63 }
   0xe   : > { %s674_s21 = sshll.u32 %s1114_s18, 2 }
   0xf   : > { %s955_s26 = scalar_lea.vmem %s1109_s0, %s674_s21  ;;  %771 = vmatpush3.bf16.msra.mxu0 %v822_v2  ;;  %805 = vmatpush3.bf16.msra.mxu1 %v822_v2  ;;  %s1057_s10 = scalar_lea.vmem %s1112_s3, %s674_s21 }
  0x10   : > { %v827_v4 = vld [vmem:[%s955_s26] sm:$0xff]   ;;  %772 = vmatprep.subr.bf16.mxu0 %v823_v3  ;;  %799 = vmatprep.subr.bf16.mxu1 %v823_v3  ;;  %v829_v10 = vld [vmem:[%s955_s26 + $0x8] sm:$0xff]   ;;  %v831_v12 = vld [vmem:[%s955_s26 + $0x10] sm:$0xff]  }
  0x11   : > { %v828_v5 = vld [vmem:[%s955_s26 + $0x20] sm:$0xff]   ;;  %780 = vmatprep.mubr.msk.bf16.mxu0 %vm293_vm0, %v827_v4  ;;  %v830_v11 = vld [vmem:[%s955_s26 + $0x28] sm:$0xff]   ;;  %v832_v13 = vld [vmem:[%s955_s26 + $0x30] sm:$0xff]  }
  0x12   : > { %788 = vmatprep.mubr.msk.bf16.mxu1 %vm293_vm0, %v828_v5  ;;  %v833_v14 = vld [vmem:[%s955_s26 + $0x18] sm:$0xff]  }
  0x13   : > { %773 = vmatpush3.bf16.msra.mxu0 %v823_v3  ;;  %806 = vmatpush3.bf16.msra.mxu1 %v823_v3  ;;  %v834_v15 = vld [vmem:[%s955_s26 + $0x38] sm:$0xff]  }
  0x14   : > { %774 = vmatprep.subr.bf16.mxu0 %v824_v6  ;;  %800 = vmatprep.subr.bf16.mxu1 %v824_v6 }
  0x17   : > { %775 = vmatpush3.bf16.msra.mxu0 %v824_v6  ;;  %807 = vmatpush3.bf16.msra.mxu1 %v824_v6 }
  0x18   : > { %776 = vmatprep.subr.bf16.mxu0 %v825_v7  ;;  %801 = vmatprep.subr.bf16.mxu1 %v825_v7 }
  0x1b   : > { %777 = vmatpush3.bf16.msra.mxu0 %v825_v7  ;;  %808 = vmatpush3.bf16.msra.mxu1 %v825_v7 }
  0x1c   : > { %810 = vmatprep.subr.msk.bf16.mxu0 %vm318_vm1, %v826_v8  ;;  %811 = vmatprep.subr.msk.bf16.mxu1 %vm318_vm1, %v826_v8 }
  0x1f   : > { %779 = vmatpush3.bf16.msra.mxu0 %v320_v9  ;;  %809 = vmatpush3.bf16.msra.mxu1 %v320_v9 }
  0x22   : > { %781 = vmatmul.mubr.msk.bf16.vlgmr.msra.gmra.mrb[0].mxu0 %vm293_vm0, %v829_v10  ;;  %789 = vmatmul.mubr.msk.bf16.vlgmr.msra.gmra.mrb[0].mxu1 %vm293_vm0, %v830_v11 }
  0x23   : > { %784 = vmatprep.mubr.msk.bf16.mxu0 %vm293_vm0, %v831_v12  ;;  %792 = vmatprep.mubr.msk.bf16.mxu1 %vm293_vm0, %v832_v13 }
  0x2a   : > { %785 = vmatmul.mubr.msk.bf16.gmra.mrb[4].mxu0 %vm293_vm0, %v833_v14  ;;  %793 = vmatmul.mubr.msk.bf16.gmra.mrb[4].mxu1 %vm293_vm0, %v834_v15 }
  0xf5   : > { %v782_v17 = vpop.f32.mrb[0].mxu0  ;;  %v790_v18 = vpop.f32.mrb[0].mxu1 }
  0xf6   : > { %v988_v19 = vadd.f32 %v782_v17, %v985_v16  ;;  %v991_v20 = vadd.f32 %v790_v18, %v985_v16  ;;  %v356_v21 = vpop.f32.mrb[1].mxu0  ;;  %v388_v22 = vpop.f32.mrb[1].mxu1 }
  0xf7   : > { %v994_v23 = vadd.f32 %v985_v16, %v356_v21  ;;  %v997_v24 = vadd.f32 %v985_v16, %v388_v22  ;;  %v783_v25 = vpop.f32.mrb[2].mxu0  ;;  %v791_v26 = vpop.f32.mrb[2].mxu1 }
  0xf8   : > { %v703_v27 = vmul.f32 -1.442695, %v988_v19  ;;  %v711_v28 = vmul.f32 -1.442695, %v991_v20  ;;  %v1002_v29 = vadd.f32 %v783_v25, %v985_v16  ;;  %v1005_v30 = vadd.f32 %v791_v26, %v985_v16  ;;  %v359_v31 = vpop.f32.mrb[3].mxu0  ;;  %v391_v32 = vpop.f32.mrb[3].mxu1 }
  0xf9   : > { %v701_v33 = vmul.f32 -1.442695, %v994_v23  ;;  %v709_v34 = vmul.f32 -1.442695, %v997_v24  ;;  %v1010_v35 = vadd.f32 %v985_v16, %v359_v31  ;;  %v1013_v36 = vadd.f32 %v985_v16, %v391_v32 }
  0xfa   : > { %835 = vpow2.f32 %v703_v27  ;;  %v704_v37 = vmul.f32 -1.442695, %v1002_v29  ;;  %v712_v38 = vmul.f32 -1.442695, %v1005_v30 }
  0xfb   : > { %837 = vpow2.f32 %v711_v28  ;;  %v702_v39 = vmul.f32 -1.442695, %v1010_v35  ;;  %v710_v40 = vmul.f32 -1.442695, %v1013_v36 }
  0xfc   : > { %839 = vpow2.f32 %v701_v33 }
  0xfd   : > { %841 = vpow2.f32 %v709_v34  ;;  %v786_v41 = vpop.f32.mrb[4].mxu0  ;;  %v794_v42 = vpop.f32.mrb[4].mxu1 }
  0xfe   : > { %843 = vpow2.f32 %v704_v37  ;;  %v1020_v43 = vadd.f32 %v786_v41, %v985_v16  ;;  %v1023_v44 = vadd.f32 %v794_v42, %v985_v16  ;;  %v372_v45 = vpop.f32.mrb[5].mxu0  ;;  %v404_v46 = vpop.f32.mrb[5].mxu1 }
  0xff   : > { %845 = vpow2.f32 %v712_v38  ;;  %v1026_v47 = vadd.f32 %v985_v16, %v372_v45  ;;  %v1029_v48 = vadd.f32 %v985_v16, %v404_v46  ;;  %v787_v49 = vpop.f32.mrb[6].mxu0  ;;  %v795_v50 = vpop.f32.mrb[6].mxu1 }
 0x100   : > { %847 = vpow2.f32 %v702_v39  ;;  %v707_v51 = vmul.f32 -1.442695, %v1020_v43  ;;  %v715_v52 = vmul.f32 -1.442695, %v1023_v44  ;;  %v1034_v53 = vadd.f32 %v787_v49, %v985_v16  ;;  %v375_v54 = vpop.f32.mrb[7].mxu0  ;;  %v407_v55 = vpop.f32.mrb[7].mxu1 }
 0x101   : > { %849 = vpow2.f32 %v710_v40  ;;  %v705_v56 = vmul.f32 -1.442695, %v1026_v47  ;;  %v713_v57 = vmul.f32 -1.442695, %v1029_v48  ;;  %v1040_v12 = vadd.f32 %v795_v50, %v985_v16 }
 0x102   : > { %851 = vpow2.f32 %v707_v51  ;;  %v708_v58 = vmul.f32 -1.442695, %v1034_v53  ;;  %v1043_v15 = vadd.f32 %v985_v16, %v375_v54  ;;  %v1046_v21 = vadd.f32 %v985_v16, %v407_v55 }
 0x103   : > { %853 = vpow2.f32 %v715_v52  ;;  %v716_v28 = vmul.f32 -1.442695, %v1040_v12 }
 0x104   : > { %v836_v59 = vpop.eup %835  ;;  %855 = vpow2.f32 %v705_v56  ;;  %v706_v33 = vmul.f32 -1.442695, %v1043_v15  ;;  %v714_v16 = vmul.f32 -1.442695, %v1046_v21 }
 0x105   : > { %v838_v60 = vpop.eup %837  ;;  %v469_v61 = vadd.f32 1.0, %v836_v59  ;;  %857 = vpow2.f32 %v713_v57 }
 0x106   : > { %v840_v62 = vpop.eup %839  ;;  %v477_v63 = vadd.f32 1.0, %v838_v60  ;;  %859 = vpow2.f32 %v708_v58 }
 0x107   : > { %v842_v0 = vpop.eup %841  ;;  %861 = vrcp.f32 %v469_v61  ;;  %v467_v1 = vadd.f32 1.0, %v840_v62 }
 0x108   : > { %v844_v2 = vpop.eup %843  ;;  %863 = vrcp.f32 %v477_v63  ;;  %v475_v3 = vadd.f32 1.0, %v842_v0 }
 0x109   : > { %v846_v4 = vpop.eup %845  ;;  %865 = vrcp.f32 %v467_v1  ;;  %v470_v5 = vadd.f32 1.0, %v844_v2 }
 0x10a   : > { %v848_v6 = vpop.eup %847  ;;  %867 = vrcp.f32 %v475_v3  ;;  %v478_v7 = vadd.f32 1.0, %v846_v4 }
 0x10b   : > { %v850_v8 = vpop.eup %849  ;;  %869 = vrcp.f32 %v470_v5  ;;  %v468_v9 = vadd.f32 1.0, %v848_v6 }
 0x10c   : > { %v852_v10 = vpop.eup %851  ;;  %871 = vrcp.f32 %v478_v7  ;;  %v476_v11 = vadd.f32 1.0, %v850_v8 }
 0x10d   : > { %v854_v13 = vpop.eup %853  ;;  %873 = vrcp.f32 %v468_v9  ;;  %v473_v14 = vadd.f32 1.0, %v852_v10 }
 0x10e   : > { %v856_v17 = vpop.eup %855  ;;  %875 = vrcp.f32 %v476_v11  ;;  %v481_v18 = vadd.f32 1.0, %v854_v13 }
 0x10f   : > { %v858_v22 = vpop.eup %857  ;;  %877 = vrcp.f32 %v473_v14  ;;  %v471_v25 = vadd.f32 1.0, %v856_v17 }
 0x110   : > { %v860_v26 = vpop.eup %859  ;;  %879 = vrcp.f32 %v481_v18  ;;  %v479_v27 = vadd.f32 1.0, %v858_v22 }
 0x111   : > { %v862_v31 = vpop.eup %861  ;;  %881 = vrcp.f32 %v471_v25  ;;  %v474_v32 = vadd.f32 1.0, %v860_v26 }
 0x112   : > { %v864_v34 = vpop.eup %863  ;;  %v517_v37 = vmul.f32 %v862_v31, %v988_v19  ;;  %883 = vrcp.f32 %v479_v27 }
 0x113   : > { %v866_v38 = vpop.eup %865  ;;  %v525_v39 = vmul.f32 %v864_v34, %v991_v20  ;;  %885 = vrcp.f32 %v474_v32 }
 0x114   : > { %v868_v40 = vpop.eup %867  ;;  %v737_v41 = vpack.c.bf16 %v517_v37, %v517_v37  ;;  %v515_v19 = vmul.f32 %v866_v38, %v994_v23  ;;  %887 = vpow2.f32 %v716_v28 }
 0x115   : > { %v870_v42 = vpop.eup %869  ;;  %v745_v45 = vpack.c.bf16 %v525_v39, %v525_v39  ;;  %v523_v46 = vmul.f32 %v868_v40, %v997_v24  ;;  %889 = vpow2.f32 %v706_v33 }
 0x116   : > { %v872_v49 = vpop.eup %871  ;;  %598 = vst.msk [vmem:[%s1057_s10 + $0x8] sm:$0xf] %vm595_vm2, %v737_v41  ;;  %v735_v50 = vpack.c.bf16 %v515_v19, %v515_v19  ;;  %v518_v20 = vmul.f32 %v870_v42, %v1002_v29  ;;  %891 = vpow2.f32 %v714_v16 }
 0x117   : > { %v874_v51 = vpop.eup %873  ;;  %606 = vst.msk [vmem:[%s1057_s10 + $0x28] sm:$0xf] %vm595_vm2, %v745_v45  ;;  %v743_v23 = vpack.c.bf16 %v523_v46, %v523_v46  ;;  %v526_v52 = vmul.f32 %v872_v49, %v1005_v30 }
 0x118   : > { %v876_v54 = vpop.eup %875  ;;  %596 = vst.msk [vmem:[%s1057_s10] sm:$0xf] %vm595_vm2, %v735_v50  ;;  %v738_v24 = vpack.c.bf16 %v518_v20, %v518_v20  ;;  %v516_v55 = vmul.f32 %v874_v51, %v1010_v35 }
 0x119   : > { %v878_v56 = vpop.eup %877  ;;  %604 = vst.msk [vmem:[%s1057_s10 + $0x20] sm:$0xf] %vm595_vm2, %v743_v23  ;;  %v746_v29 = vpack.c.bf16 %v526_v52, %v526_v52  ;;  %v524_v57 = vmul.f32 %v876_v54, %v1013_v36 }
 0x11a   : > { %v880_v58 = vpop.eup %879  ;;  %599 = vst.msk [vmem:[%s1057_s10 + $0xc] sm:$0xf] %vm595_vm2, %v738_v24  ;;  %v736_v59 = vpack.c.bf16 %v516_v55, %v516_v55  ;;  %v521_v30 = vmul.f32 %v878_v56, %v1020_v43 }
 0x11b   : > { %v882_v60 = vpop.eup %881  ;;  %607 = vst.msk [vmem:[%s1057_s10 + $0x2c] sm:$0xf] %vm595_vm2, %v746_v29  ;;  %v744_v61 = vpack.c.bf16 %v524_v57, %v524_v57  ;;  %v529_v35 = vmul.f32 %v880_v58, %v1023_v44 }
 0x11c   : > { %v884_v62 = vpop.eup %883  ;;  %597 = vst.msk [vmem:[%s1057_s10 + $0x4] sm:$0xf] %vm595_vm2, %v736_v59  ;;  %v741_v63 = vpack.c.bf16 %v521_v30, %v521_v30  ;;  %v519_v36 = vmul.f32 %v882_v60, %v1026_v47 }
 0x11d   : > { %v886_v0 = vpop.eup %885  ;;  %605 = vst.msk [vmem:[%s1057_s10 + $0x24] sm:$0xf] %vm595_vm2, %v744_v61  ;;  %v749_v1 = vpack.c.bf16 %v529_v35, %v529_v35  ;;  %v527_v43 = vmul.f32 %v884_v62, %v1029_v48 }
 0x11e   : > { %v888_v2 = vpop.eup %887  ;;  %602 = vst.msk [vmem:[%s1057_s10 + $0x18] sm:$0xf] %vm595_vm2, %v741_v63  ;;  %v739_v3 = vpack.c.bf16 %v519_v36, %v519_v36  ;;  %v522_v44 = vmul.f32 %v886_v0, %v1034_v53 }
 0x11f   : > { %v890_v4 = vpop.eup %889  ;;  %610 = vst.msk [vmem:[%s1057_s10 + $0x38] sm:$0xf] %vm595_vm2, %v749_v1  ;;  %v747_v5 = vpack.c.bf16 %v527_v43, %v527_v43  ;;  %v482_v6 = vadd.f32 1.0, %v888_v2 }
 0x120   : > { %v892_v47 = vpop.eup %891  ;;  %600 = vst.msk [vmem:[%s1057_s10 + $0x10] sm:$0xf] %vm595_vm2, %v739_v3  ;;  %v742_v7 = vpack.c.bf16 %v522_v44, %v522_v44  ;;  %v472_v8 = vadd.f32 1.0, %v890_v4 }
 0x121   : > { %608 = vst.msk [vmem:[%s1057_s10 + $0x30] sm:$0xf] %vm595_vm2, %v747_v5  ;;  %893 = vrcp.f32 %v482_v6  ;;  %v480_v48 = vadd.f32 1.0, %v892_v47 }
 0x122   : > { %603 = vst.msk [vmem:[%s1057_s10 + $0x1c] sm:$0xf] %vm595_vm2, %v742_v7  ;;  %895 = vrcp.f32 %v472_v8 }
 0x123   : > { %897 = vrcp.f32 %v480_v48 }
 0x12b   : > { %v894_v53 = vpop.eup %893 }
 0x12c   : > { %v896_v9 = vpop.eup %895  ;;  %v530_v10 = vmul.f32 %v894_v53, %v1040_v12 }
 0x12d   : > { %v898_v11 = vpop.eup %897  ;;  %v520_v13 = vmul.f32 %v896_v9, %v1043_v15 }
 0x12e   : > { %v750_v14 = vpack.c.bf16 %v530_v10, %v530_v10  ;;  %v528_v17 = vmul.f32 %v898_v11, %v1046_v21 }
 0x12f   : > { %v740_v18 = vpack.c.bf16 %v520_v13, %v520_v13 }
 0x130   : > { %611 = vst.msk [vmem:[%s1057_s10 + $0x3c] sm:$0xf] %vm595_vm2, %v750_v14  ;;  %v748_v22 = vpack.c.bf16 %v528_v17, %v528_v17 }
 0x131   : > { %601 = vst.msk [vmem:[%s1057_s10 + $0x14] sm:$0xf] %vm595_vm2, %v740_v18 }
 0x132   : > { %609 = vst.msk [vmem:[%s1057_s10 + $0x34] sm:$0xf] %vm595_vm2, %v748_v22 }
 0x133 PF: > { %s13_s12 = sadd.s32 1, %s905_s12  }
 0x134   : > { %p10_p4 = scmp.ge.s32.totalorder %s13_s12, 6  }
 0x136   :  { %12 = sbr.rel (!%p10_p4) target bundleno = 1 (0x1), region = 62 }

// kernel: cspdarknet_forward.35
= control target key start
LH: loop header
LB: loop body
LE: loop exit
PB: predicated region body
PF: predicated region fallthrough
CT: control target
= control target key end

     0   :  { %s584_s12 = smov 0   ;;  %s626_s0 = inlined_call_operand.vmem [shape: bf16[128,16], index: 0, kind: input, shape index: {}]   ;;  %s627_s1 = inlined_call_operand.vmem [shape: bf16[16,16], index: 1, kind: input, shape index: {}]   ;;  %s628_s2 = inlined_call_operand.vmem [shape: f32[1,16], index: 2, kind: input, shape index: {}]   ;;  %s629_s3 = inlined_call_operand.vmem [shape: bf16[128,16], index: 3, kind: output, shape index: {}]  }
   0x1 LB: > { %s449_s13 = sadd.s32 4294967295, %s562_s12   ;;  %p453_p0 = scmp.ge.s32.totalorder %s562_s12, 1  ;;  %s562_s12 = sphi %s584_s12, %s13_s12  }
   0x2   : > { %p138_p1 = scmp.lt.s32.totalorder %s562_s12, 3 }
   0x4   : > { %p139_p2 = pnand %p453_p0, %p138_p1 }
   0x5   : > { %v519_v0 = vld [vmem:[%s627_s1] sm:$0xff] (!%p139_p2)   ;;  %s454_s16 = sshll.u32 (!%p139_p2), %s449_s13, 3  ;;  %vm218_vm0 = vcmask (!%p139_p2), 130048   ;;  %vm384_vm1 = vcmask (!%p139_p2), 125952  }
   0x6   : > { %142 = sbr.rel (%p139_p2) target bundleno = 270 (0x10e), region = 32  ;;  %p163_p3 = scmp.lt.s32.totalorder (!%p139_p2), %s454_s16, 15  ;;  %499 = vmatprep.subr.bf16.mxu0 (!%p139_p2), %v519_v0  ;;  %509 = vmatprep.subr.bf16.mxu1 (!%p139_p2), %v519_v0  ;;  %v458_v5 = vld [vmem:[%s628_s2] ss:$0 sm:$0xff] (!%p139_p2) }
   0x7   : > { %500 = vmatpush3.bf16.msra.mxu0 (!%p139_p2), %v519_v0  ;;  %510 = vmatpush3.bf16.msra.mxu1 (!%p139_p2), %v519_v0 }
   0xd   : > { %s631_s16 = smov (!%p163_p3, %s454_s16), 15 }
   0xe   : > { %s455_s17 = sshll.u32 %s631_s16, 2 }
   0xf   : > { %s166_s20 = scalar_lea.vmem %s626_s0, %s455_s17  ;;  %s172_s25 = scalar_lea.vmem %s629_s3, %s455_s17 }
  0x10   : > { %v520_v1 = vld [vmem:[%s166_s20] sm:$0xff]   ;;  %v521_v2 = vld [vmem:[%s166_s20 + $0x10] sm:$0xff]   ;;  %v522_v3 = vld [vmem:[%s166_s20 + $0x8] sm:$0xff]  }
  0x11   : > { %501 = vmatprep.mubr.msk.bf16.mxu0 %vm218_vm0, %v520_v1  ;;  %505 = vmatprep.mubr.msk.bf16.mxu1 %vm218_vm0, %v521_v2  ;;  %v523_v4 = vld [vmem:[%s166_s20 + $0x18] sm:$0xff]  }
  0x12   : > { %502 = vmatmul.mubr.msk.bf16.vlgmr.msra.gmra.mrb[0].mxu0 %vm218_vm0, %v522_v3  ;;  %506 = vmatmul.mubr.msk.bf16.vlgmr.msra.gmra.mrb[0].mxu1 %vm218_vm0, %v523_v4 }
  0xe5   : > { %v503_v6 = vpop.f32.mrb[0].mxu0  ;;  %v507_v8 = vpop.f32.mrb[0].mxu1 }
  0xe6   : > { %v274_v7 = vadd.f32 %v503_v6, %v458_v5  ;;  %v265_v9 = vpop.f32.mrb[1].mxu0  ;;  %v290_v10 = vadd.f32 %v507_v8, %v458_v5  ;;  %v281_v12 = vpop.f32.mrb[1].mxu1 }
  0xe7   : > { %v266_v11 = vadd.f32 %v458_v5, %v265_v9  ;;  %v504_v13 = vpop.f32.mrb[2].mxu0  ;;  %v282_v15 = vadd.f32 %v458_v5, %v281_v12  ;;  %v508_v17 = vpop.f32.mrb[2].mxu1 }
  0xe8   : > { %v470_v14 = vmul.f32 -1.442695, %v274_v7  ;;  %v277_v16 = vadd.f32 %v504_v13, %v458_v5  ;;  %v268_v18 = vpop.f32.mrb[3].mxu0  ;;  %v474_v19 = vmul.f32 -1.442695, %v290_v10  ;;  %v293_v21 = vadd.f32 %v508_v17, %v458_v5  ;;  %v284_v23 = vpop.f32.mrb[3].mxu1 }
  0xe9   : > { %v468_v20 = vmul.f32 -1.442695, %v266_v11  ;;  %v606_v22 = vadd.f32 %v458_v5, %v268_v18  ;;  %v472_v24 = vmul.f32 -1.442695, %v282_v15  ;;  %v285_v26 = vadd.f32 %v458_v5, %v284_v23 }
  0xea   : > { %524 = vpow2.f32 %v470_v14  ;;  %v471_v25 = vmul.f32 -1.442695, %v277_v16  ;;  %v475_v27 = vmul.f32 -1.442695, %v293_v21 }
  0xeb   : > { %526 = vpow2.f32 %v474_v19  ;;  %v469_v28 = vmul.f32 -1.442695, %v606_v22  ;;  %v473_v29 = vmul.f32 -1.442695, %v285_v26 }
  0xec   : > { %528 = vpow2.f32 %v468_v20 }
  0xed   : > { %530 = vpow2.f32 %v472_v24 }
  0xee   : > { %532 = vpow2.f32 %v471_v25 }
  0xef   : > { %534 = vpow2.f32 %v475_v27 }
  0xf0   : > { %536 = vpow2.f32 %v469_v28 }
  0xf1   : > { %538 = vpow2.f32 %v473_v29 }
  0xf4   : > { %v525_v30 = vpop.eup %524 }
  0xf5   : > { %v527_v31 = vpop.eup %526  ;;  %v322_v32 = vadd.f32 1.0, %v525_v30 }
  0xf6   : > { %v529_v33 = vpop.eup %528  ;;  %v326_v34 = vadd.f32 1.0, %v527_v31 }
  0xf7   : > { %v531_v35 = vpop.eup %530  ;;  %540 = vrcp.f32 %v322_v32  ;;  %v320_v36 = vadd.f32 1.0, %v529_v33 }
  0xf8   : > { %v533_v37 = vpop.eup %532  ;;  %542 = vrcp.f32 %v326_v34  ;;  %v324_v38 = vadd.f32 1.0, %v531_v35 }
  0xf9   : > { %v535_v39 = vpop.eup %534  ;;  %544 = vrcp.f32 %v320_v36  ;;  %v323_v40 = vadd.f32 1.0, %v533_v37 }
  0xfa   : > { %v537_v41 = vpop.eup %536  ;;  %546 = vrcp.f32 %v324_v38  ;;  %v327_v42 = vadd.f32 1.0, %v535_v39 }
  0xfb   : > { %v539_v43 = vpop.eup %538  ;;  %548 = vrcp.f32 %v323_v40  ;;  %v321_v44 = vadd.f32 1.0, %v537_v41 }
  0xfc   : > { %550 = vrcp.f32 %v327_v42  ;;  %v325_v45 = vadd.f32 1.0, %v539_v43 }
  0xfd   : > { %552 = vrcp.f32 %v321_v44 }
  0xfe   : > { %554 = vrcp.f32 %v325_v45 }
 0x101   : > { %v541_v46 = vpop.eup %540 }
 0x102   : > { %v543_v47 = vpop.eup %542  ;;  %v346_v48 = vmul.f32 %v541_v46, %v274_v7 }
 0x103   : > { %v545_v49 = vpop.eup %544  ;;  %v350_v50 = vmul.f32 %v543_v47, %v290_v10 }
 0x104   : > { %v547_v51 = vpop.eup %546  ;;  %v488_v52 = vpack.c.bf16 %v346_v48, %v346_v48  ;;  %v344_v53 = vmul.f32 %v545_v49, %v266_v11 }
 0x105   : > { %v549_v54 = vpop.eup %548  ;;  %v492_v55 = vpack.c.bf16 %v350_v50, %v350_v50  ;;  %v348_v56 = vmul.f32 %v547_v51, %v282_v15 }
 0x106   : > { %v551_v57 = vpop.eup %550  ;;  %387 = vst.msk [vmem:[%s172_s25 + $0x8] sm:$0xf] %vm384_vm1, %v488_v52  ;;  %v486_v58 = vpack.c.bf16 %v344_v53, %v344_v53  ;;  %v347_v59 = vmul.f32 %v549_v54, %v277_v16 }
 0x107   : > { %v553_v60 = vpop.eup %552  ;;  %391 = vst.msk [vmem:[%s172_s25 + $0x18] sm:$0xf] %vm384_vm1, %v492_v55  ;;  %v490_v61 = vpack.c.bf16 %v348_v56, %v348_v56  ;;  %v351_v62 = vmul.f32 %v551_v57, %v293_v21 }
 0x108   : > { %v555_v63 = vpop.eup %554  ;;  %385 = vst.msk [vmem:[%s172_s25] sm:$0xf] %vm384_vm1, %v486_v58  ;;  %v489_v0 = vpack.c.bf16 %v347_v59, %v347_v59  ;;  %v345_v1 = vmul.f32 %v553_v60, %v606_v22 }
 0x109   : > { %389 = vst.msk [vmem:[%s172_s25 + $0x10] sm:$0xf] %vm384_vm1, %v490_v61  ;;  %v493_v2 = vpack.c.bf16 %v351_v62, %v351_v62  ;;  %v349_v3 = vmul.f32 %v555_v63, %v285_v26 }
 0x10a   : > { %388 = vst.msk [vmem:[%s172_s25 + $0xc] sm:$0xf] %vm384_vm1, %v489_v0  ;;  %v487_v4 = vpack.c.bf16 %v345_v1, %v345_v1 }
 0x10b   : > { %392 = vst.msk [vmem:[%s172_s25 + $0x1c] sm:$0xf] %vm384_vm1, %v493_v2  ;;  %v491_v5 = vpack.c.bf16 %v349_v3, %v349_v3 }
 0x10c   : > { %386 = vst.msk [vmem:[%s172_s25 + $0x4] sm:$0xf] %vm384_vm1, %v487_v4 }
 0x10d   : > { %390 = vst.msk [vmem:[%s172_s25 + $0x14] sm:$0xf] %vm384_vm1, %v491_v5 }
 0x10e PF: > { %s13_s12 = sadd.s32 1, %s562_s12  }
 0x10f   : > { %p10_p4 = scmp.ge.s32.totalorder %s13_s12, 4  }
 0x111   :  { %12 = sbr.rel (!%p10_p4) target bundleno = 1 (0x1), region = 62 }

// kernel: cspdarknet_forward.36
= control target key start
LH: loop header
LB: loop body
LE: loop exit
PB: predicated region body
PF: predicated region fallthrough
CT: control target
= control target key end

     0   :  { %s811_s15 = smov 0   ;;  %s939_s0 = inlined_call_operand.vmem [shape: bf16[128,144], index: 0, kind: input, shape index: {}]   ;;  %s940_s1 = inlined_call_operand.vmem [shape: bf16[144,16], index: 1, kind: input, shape index: {}]   ;;  %s941_s2 = inlined_call_operand.vmem [shape: f32[1,16], index: 2, kind: input, shape index: {}]   ;;  %s942_s3 = inlined_call_operand.vmem [shape: bf16[128,16], index: 3, kind: input, shape index: {}]   ;;  %s943_s4 = inlined_call_operand.vmem [shape: bf16[128,16], index: 4, kind: output, shape index: {}]  }
   0x1 LB: > { %s617_s16 = sadd.s32 4294967295, %s783_s15   ;;  %p621_p0 = scmp.ge.s32.totalorder %s783_s15, 1  ;;  %s783_s15 = sphi %s811_s15, %s14_s15  }
   0x2   : > { %p175_p1 = scmp.lt.s32.totalorder %s783_s15, 3 }
   0x4   : > { %p176_p2 = pnand %p621_p0, %p175_p1 }
   0x5   : > { %v724_v0 = vld [vmem:[%s940_s1] sm:$0xff] (!%p176_p2)   ;;  %v785_v1 = vmov (!%p176_p2), 0   ;;  %s622_s19 = sshll.u32 (!%p176_p2), %s617_s16, 3  ;;  %v725_v2 = vld [vmem:[%s940_s1 + $0x8] sm:$0xff] (!%p176_p2)   ;;  %v726_v3 = vld [vmem:[%s940_s1 + $0x10] sm:$0xff] (!%p176_p2)   ;;  %vm350_vm0 = vcmask (!%p176_p2), 130048  }
   0x6   : > { %179 = sbr.rel (%p176_p2) target bundleno = 300 (0x12c), region = 36  ;;  %363 = vmatprep.subr.bf16.mxu0 (!%p176_p2), %v785_v1  ;;  %697 = vmatprep.subr.bf16.mxu1 (!%p176_p2), %v785_v1  ;;  %p208_p3 = scmp.lt.s32.totalorder (!%p176_p2), %s622_s19, 15  ;;  %v727_v4 = vld [vmem:[%s940_s1 + $0x18] sm:$0xff] (!%p176_p2)   ;;  %v728_v7 = vld [vmem:[%s940_s1 + $0x20] sm:$0xff] (!%p176_p2)   ;;  %v729_v8 = vld [vmem:[%s940_s1 + $0x28] sm:$0xff] (!%p176_p2)   ;;  %vm540_vm1 = vcmask (!%p176_p2), 125952  }
   0x7   : > { %364 = vmatpush1.bf16.msra.mxu0 (!%p176_p2), %v724_v0  ;;  %706 = vmatpush1.bf16.msra.mxu1 (!%p176_p2), %v724_v0  ;;  %v730_v9 = vld [vmem:[%s940_s1 + $0x30] sm:$0xff] (!%p176_p2)   ;;  %v731_v10 = vld [vmem:[%s940_s1 + $0x38] sm:$0xff] (!%p176_p2)   ;;  %v732_v11 = vld [vmem:[%s940_s1 + $0x40] sm:$0xff] (!%p176_p2)  }
   0x8   : > { %365 = vmatprep.subr.bf16.mxu0 (!%p176_p2), %v785_v1  ;;  %698 = vmatprep.subr.bf16.mxu1 (!%p176_p2), %v785_v1  ;;  %v629_v18 = vld [vmem:[%s941_s2] ss:$0 sm:$0xff] (!%p176_p2) }
   0xb   : > { %366 = vmatpush1.bf16.msra.mxu0 (!%p176_p2), %v725_v2  ;;  %707 = vmatpush1.bf16.msra.mxu1 (!%p176_p2), %v725_v2 }
   0xc   : > { %367 = vmatprep.subr.bf16.mxu0 (!%p176_p2), %v785_v1  ;;  %699 = vmatprep.subr.bf16.mxu1 (!%p176_p2), %v785_v1 }
   0xd   : > { %s945_s19 = smov (!%p208_p3, %s622_s19), 15 }
   0xe   : > { %s669_s24 = sshll.u32 %s945_s19, 3  ;;  %s626_s17 = sshll.u32 %s945_s19, 2 }
   0xf   : > { %s834_s27 = scalar_lea.vmem %s939_s0, %s669_s24  ;;  %368 = vmatpush1.bf16.msra.mxu0 %v726_v3  ;;  %708 = vmatpush1.bf16.msra.mxu1 %v726_v3  ;;  %s899_s21 = scalar_lea.vmem %s942_s3, %s626_s17 }
  0x10   : > { %v735_v5 = vld [vmem:[%s834_s27 + $0x4] ss:$8 sps:$4 sm:$0xff]   ;;  %369 = vmatprep.subr.bf16.mxu0 %v785_v1  ;;  %700 = vmatprep.subr.bf16.mxu1 %v785_v1  ;;  %v733_v12 = vld [vmem:[%s834_s27] ss:$8 sps:$4 sm:$0xff]   ;;  %v739_v14 = vld [vmem:[%s834_s27 + $0x14] ss:$8 sps:$4 sm:$0xff]   ;;  %s911_s24 = scalar_lea.vmem %s943_s4, %s626_s17 }
  0x11   : > { %v738_v6 = vld [vmem:[%s834_s27 + $0x24] ss:$8 sps:$4 sm:$0xff]   ;;  %647 = vmatprep.mubr.msk.bf16.mxu0 %vm350_vm0, %v735_v5  ;;  %v736_v13 = vld [vmem:[%s834_s27 + $0x20] ss:$8 sps:$4 sm:$0xff]   ;;  %v741_v15 = vld [vmem:[%s834_s27 + $0x34] ss:$8 sps:$4 sm:$0xff]  }
  0x12   : > { %649 = vmatprep.mubr.msk.bf16.mxu1 %vm350_vm0, %v738_v6  ;;  %v743_v16 = vld [vmem:[%s834_s27 + $0x10] ss:$8 sps:$4 sm:$0xff]   ;;  %v679_v61 = vld [vmem:[%s899_s21] sm:$0xff]  }
  0x13   : > { %370 = vmatpush1.bf16.msra.mxu0 %v727_v4  ;;  %709 = vmatpush1.bf16.msra.mxu1 %v727_v4  ;;  %v744_v17 = vld [vmem:[%s834_s27 + $0x30] ss:$8 sps:$4 sm:$0xff]   ;;  %v680_v4 = vunpack.c.l.bf16 %v679_v61 }
  0x14   : > { %371 = vmatprep.subr.bf16.mxu0 %v785_v1  ;;  %701 = vmatprep.subr.bf16.mxu1 %v785_v1  ;;  %v695_v0 = vld [vmem:[%s899_s21 + $0x10] sm:$0xff]  }
  0x17   : > { %372 = vmatpush1.bf16.msra.mxu0 %v728_v7  ;;  %710 = vmatpush1.bf16.msra.mxu1 %v728_v7  ;;  %v688_v7 = vunpack.c.l.bf16 %v695_v0 }
  0x18   : > { %373 = vmatprep.subr.bf16.mxu0 %v785_v1  ;;  %702 = vmatprep.subr.bf16.mxu1 %v785_v1 }
  0x1b   : > { %374 = vmatpush1.bf16.msra.mxu0 %v729_v8  ;;  %711 = vmatpush1.bf16.msra.mxu1 %v729_v8 }
  0x1c   : > { %375 = vmatprep.subr.bf16.mxu0 %v785_v1  ;;  %703 = vmatprep.subr.bf16.mxu1 %v785_v1 }
  0x1f   : > { %376 = vmatpush1.bf16.msra.mxu0 %v730_v9  ;;  %712 = vmatpush1.bf16.msra.mxu1 %v730_v9 }
  0x20   : > { %377 = vmatprep.subr.bf16.mxu0 %v785_v1  ;;  %704 = vmatprep.subr.bf16.mxu1 %v785_v1 }
  0x23   : > { %378 = vmatpush1.bf16.msra.mxu0 %v731_v10  ;;  %713 = vmatpush1.bf16.msra.mxu1 %v731_v10  ;;  %v681_v10 = vunpack.c.h.bf16 %v679_v61 }
  0x24   : > { %379 = vmatprep.subr.bf16.mxu0 %v785_v1  ;;  %705 = vmatprep.subr.bf16.mxu1 %v785_v1 }
  0x27   : > { %380 = vmatpush1.bf16.msra.mxu0 %v732_v11  ;;  %714 = vmatpush1.bf16.msra.mxu1 %v732_v11 }
  0x2a   : > { %396 = vmatmul.mubr.bf16.vlgmr.msra.gmra.mrb[0].mxu0 %v733_v12  ;;  %412 = vmatmul.mubr.bf16.vlgmr.msra.gmra.mrb[0].mxu1 %v736_v13  ;;  %v689_v13 = vunpack.c.h.bf16 %v695_v0 }
  0x2b   : > { %648 = vmatprep.mubr.msk.bf16.mxu0 %vm350_vm0, %v739_v14  ;;  %650 = vmatprep.mubr.msk.bf16.mxu1 %vm350_vm0, %v741_v15 }
  0x32   : > { %404 = vmatmul.mubr.bf16.gmra.mrb[4].mxu0 %v743_v16  ;;  %420 = vmatmul.mubr.bf16.gmra.mrb[4].mxu1 %v744_v17 }
  0xfd   : > { %v397_v19 = vpop.f32.mrb[0].mxu0  ;;  %v413_v20 = vpop.f32.mrb[0].mxu1 }
  0xfe   : > { %v869_v21 = vadd.f32 %v629_v18, %v397_v19  ;;  %v871_v22 = vadd.f32 %v629_v18, %v413_v20  ;;  %v399_v23 = vpop.f32.mrb[1].mxu0  ;;  %v415_v24 = vpop.f32.mrb[1].mxu1  ;;  %v694_v19 = vld [vmem:[%s899_s21 + $0x8] sm:$0xff]  }
  0xff   : > { %v400_v25 = vpop.f32.mrb[2].mxu0  ;;  %v416_v26 = vpop.f32.mrb[2].mxu1 }
 0x100   : > { %v651_v27 = vmul.f32 -1.442695, %v869_v21  ;;  %v655_v28 = vmul.f32 -1.442695, %v871_v22  ;;  %v875_v29 = vadd.f32 %v629_v18, %v400_v25  ;;  %v877_v30 = vadd.f32 %v629_v18, %v416_v26  ;;  %v402_v31 = vpop.f32.mrb[3].mxu0  ;;  %v418_v32 = vpop.f32.mrb[3].mxu1 }
 0x101   : > { %v684_v26 = vunpack.c.l.bf16 %v694_v19  ;;  %v685_v32 = vunpack.c.h.bf16 %v694_v19 }
 0x102   : > { %745 = vpow2.f32 %v651_v27  ;;  %v652_v33 = vmul.f32 -1.442695, %v875_v29  ;;  %v656_v34 = vmul.f32 -1.442695, %v877_v30 }
 0x103   : > { %747 = vpow2.f32 %v655_v28 }
 0x104   : > { %749 = vpow2.f32 %v652_v33 }
 0x105   : > { %751 = vpow2.f32 %v656_v34  ;;  %v405_v35 = vpop.f32.mrb[4].mxu0  ;;  %v421_v36 = vpop.f32.mrb[4].mxu1 }
 0x106   : > { %v881_v37 = vadd.f32 %v629_v18, %v405_v35  ;;  %v883_v38 = vadd.f32 %v629_v18, %v421_v36  ;;  %v407_v39 = vpop.f32.mrb[5].mxu0  ;;  %v423_v40 = vpop.f32.mrb[5].mxu1 }
 0x107   : > { %v408_v41 = vpop.f32.mrb[6].mxu0  ;;  %v424_v42 = vpop.f32.mrb[6].mxu1 }
 0x108   : > { %v653_v43 = vmul.f32 -1.442695, %v881_v37  ;;  %v657_v44 = vmul.f32 -1.442695, %v883_v38  ;;  %v887_v45 = vadd.f32 %v629_v18, %v408_v41  ;;  %v889_v46 = vadd.f32 %v629_v18, %v424_v42  ;;  %v410_v47 = vpop.f32.mrb[7].mxu0  ;;  %v426_v48 = vpop.f32.mrb[7].mxu1 }
 0x10a   : > { %753 = vpow2.f32 %v653_v43  ;;  %v654_v49 = vmul.f32 -1.442695, %v887_v45  ;;  %v658_v50 = vmul.f32 -1.442695, %v889_v46 }
 0x10b   : > { %755 = vpow2.f32 %v657_v44 }
 0x10c   : > { %v746_v51 = vpop.eup %745  ;;  %757 = vpow2.f32 %v654_v49 }
 0x10d   : > { %v748_v52 = vpop.eup %747  ;;  %v452_v53 = vadd.f32 1.0, %v746_v51  ;;  %759 = vpow2.f32 %v658_v50 }
 0x10e   : > { %v750_v54 = vpop.eup %749  ;;  %v456_v55 = vadd.f32 1.0, %v748_v52 }
 0x10f   : > { %v752_v56 = vpop.eup %751  ;;  %761 = vrcp.f32 %v452_v53  ;;  %v453_v57 = vadd.f32 1.0, %v750_v54 }
 0x110   : > { %763 = vrcp.f32 %v456_v55  ;;  %v457_v58 = vadd.f32 1.0, %v752_v56 }
 0x111   : > { %765 = vrcp.f32 %v453_v57 }
 0x112   : > { %767 = vrcp.f32 %v457_v58 }
 0x114   : > { %v754_v59 = vpop.eup %753 }
 0x115   : > { %v756_v60 = vpop.eup %755  ;;  %v454_v62 = vadd.f32 1.0, %v754_v59 }
 0x116   : > { %v758_v63 = vpop.eup %757  ;;  %v458_v1 = vadd.f32 1.0, %v756_v60 }
 0x117   : > { %v760_v2 = vpop.eup %759  ;;  %769 = vrcp.f32 %v454_v62  ;;  %v455_v3 = vadd.f32 1.0, %v758_v63 }
 0x118   : > { %771 = vrcp.f32 %v458_v1  ;;  %v459_v5 = vadd.f32 1.0, %v760_v2 }
 0x119   : > { %v762_v6 = vpop.eup %761  ;;  %773 = vrcp.f32 %v455_v3 }
 0x11a   : > { %v764_v8 = vpop.eup %763  ;;  %v476_v9 = vmul.f32 %v762_v6, %v869_v21  ;;  %775 = vrcp.f32 %v459_v5 }
 0x11b   : > { %v766_v11 = vpop.eup %765  ;;  %v480_v12 = vmul.f32 %v764_v8, %v871_v22  ;;  %v696_v22 = vld [vmem:[%s899_s21 + $0x18] sm:$0xff]  }
 0x11c   : > { %v768_v14 = vpop.eup %767  ;;  %v500_v15 = vadd.f32 %v680_v4, %v476_v9  ;;  %v477_v16 = vmul.f32 %v766_v11, %v875_v29  ;;  %v692_v29 = vunpack.c.l.bf16 %v696_v22  ;;  %v693_v35 = vunpack.c.h.bf16 %v696_v22 }
 0x11d   : > { %v504_v17 = vadd.f32 %v688_v7, %v480_v12  ;;  %v481_v18 = vmul.f32 %v768_v14, %v877_v30 }
 0x11e   : > { %v670_v20 = vpack.c.bf16 %v500_v15, %v500_v15  ;;  %v501_v21 = vadd.f32 %v681_v10, %v477_v16 }
 0x11f   : > { %v674_v23 = vpack.c.bf16 %v504_v17, %v504_v17  ;;  %v505_v24 = vadd.f32 %v689_v13, %v481_v18 }
 0x120   : > { %541 = vst.msk [vmem:[%s911_s24] sm:$0xf] %vm540_vm1, %v670_v20  ;;  %v671_v25 = vpack.c.bf16 %v501_v21, %v501_v21 }
 0x121   : > { %v770_v27 = vpop.eup %769  ;;  %545 = vst.msk [vmem:[%s911_s24 + $0x10] sm:$0xf] %vm540_vm1, %v674_v23  ;;  %v675_v28 = vpack.c.bf16 %v505_v24, %v505_v24 }
 0x122   : > { %v772_v31 = vpop.eup %771  ;;  %542 = vst.msk [vmem:[%s911_s24 + $0x4] sm:$0xf] %vm540_vm1, %v671_v25  ;;  %v478_v30 = vmul.f32 %v770_v27, %v881_v37 }
 0x123   : > { %v774_v33 = vpop.eup %773  ;;  %546 = vst.msk [vmem:[%s911_s24 + $0x14] sm:$0xf] %vm540_vm1, %v675_v28  ;;  %v482_v34 = vmul.f32 %v772_v31, %v883_v38 }
 0x124   : > { %v776_v36 = vpop.eup %775  ;;  %v502_v39 = vadd.f32 %v684_v26, %v478_v30  ;;  %v479_v40 = vmul.f32 %v774_v33, %v887_v45 }
 0x125   : > { %v506_v41 = vadd.f32 %v692_v29, %v482_v34  ;;  %v483_v42 = vmul.f32 %v776_v36, %v889_v46 }
 0x126   : > { %v672_v43 = vpack.c.bf16 %v502_v39, %v502_v39  ;;  %v503_v44 = vadd.f32 %v685_v32, %v479_v40 }
 0x127   : > { %v676_v37 = vpack.c.bf16 %v506_v41, %v506_v41  ;;  %v507_v47 = vadd.f32 %v693_v35, %v483_v42 }
 0x128   : > { %543 = vst.msk [vmem:[%s911_s24 + $0x8] sm:$0xf] %vm540_vm1, %v672_v43  ;;  %v673_v48 = vpack.c.bf16 %v503_v44, %v503_v44 }
 0x129   : > { %547 = vst.msk [vmem:[%s911_s24 + $0x18] sm:$0xf] %vm540_vm1, %v676_v37  ;;  %v677_v49 = vpack.c.bf16 %v507_v47, %v507_v47 }
 0x12a   : > { %544 = vst.msk [vmem:[%s911_s24 + $0xc] sm:$0xf] %vm540_vm1, %v673_v48 }
 0x12b   : > { %548 = vst.msk [vmem:[%s911_s24 + $0x1c] sm:$0xf] %vm540_vm1, %v677_v49 }
 0x12c PF: > { %s14_s15 = sadd.s32 1, %s783_s15  }
 0x12d   : > { %p11_p4 = scmp.ge.s32.totalorder %s14_s15, 4  }
 0x12f   :  { %13 = sbr.rel (!%p11_p4) target bundleno = 1 (0x1), region = 69 }

// kernel: cspdarknet_forward.37
= control target key start
LH: loop header
LB: loop body
LE: loop exit
PB: predicated region body
PF: predicated region fallthrough
CT: control target
= control target key end

     0   :  { %s840_s18 = smov 0   ;;  %s906_s0 = inlined_call_operand.vmem [shape: bf16[128,16], index: 0, kind: input, shape index: {}]   ;;  %s907_s1 = inlined_call_operand.vmem [shape: bf16[128,16], index: 1, kind: input, shape index: {}]   ;;  %s908_s2 = inlined_call_operand.vmem [shape: bf16[16,32], index: 2, kind: input, shape index: {}]   ;;  %s909_s3 = inlined_call_operand.vmem [shape: bf16[16,32], index: 3, kind: input, shape index: {}]   ;;  %s910_s4 = inlined_call_operand.vmem [shape: f32[1,32], index: 4, kind: input, shape index: {}]   ;;  %s911_s5 = inlined_call_operand.vmem [shape: bf16[128,32], index: 5, kind: output, shape index: {}]  }
   0x1 LB: > { %s658_s19 = sadd.s32 4294967295, %s808_s18   ;;  %p662_p0 = scmp.ge.s32.totalorder %s808_s18, 1  ;;  %s808_s18 = sphi %s840_s18, %s15_s18  }
   0x2   : > { %p199_p1 = scmp.lt.s32.totalorder %s808_s18, 3 }
   0x4   : > { %p200_p2 = pnand %p662_p0, %p199_p1 }
   0x5   : > { %v760_v0 = vld [vmem:[%s909_s3] sm:$0xff] (!%p200_p2)   ;;  %s663_s22 = sshll.u32 (!%p200_p2), %s658_s19, 3  ;;  %vm297_vm0 = vcmask (!%p200_p2), 130048   ;;  %vm581_vm1 = vcmask (!%p200_p2), 257024  }
   0x6   : > { %203 = sbr.rel (%p200_p2) target bundleno = 277 (0x115), region = 40  ;;  %v761_v1 = vld [vmem:[%s908_s2] sm:$0xff] (!%p200_p2)   ;;  %p233_p3 = scmp.lt.s32.totalorder (!%p200_p2), %s663_s22, 15  ;;  %724 = vmatprep.subr.bf16.mxu1 (!%p200_p2), %v760_v0 }
   0x7   : > { %734 = vmatprep.subr.bf16.mxu0 (!%p200_p2), %v761_v1  ;;  %725 = vmatpush3.bf16.msra.mxu1 (!%p200_p2), %v760_v0  ;;  %v687_v12 = vld [vmem:[%s910_s4] ss:$0 sm:$0xff] (!%p200_p2) }
   0x8   : > { %735 = vmatpush3.bf16.msra.mxu0 (!%p200_p2), %v761_v1 }
   0xd   : > { %s913_s22 = smov (!%p233_p3, %s663_s22), 15 }
   0xe   : > { %s854_s25 = sshll.u32 %s913_s22, 2 }
   0xf   : > { %s242_s28 = scalar_lea.vmem %s907_s1, %s854_s25  ;;  %s236_s6 = scalar_lea.vmem %s906_s0, %s854_s25 }
  0x10   : > { %v762_v2 = vld [vmem:[%s242_s28] sm:$0xff]   ;;  %v764_v4 = vld [vmem:[%s242_s28 + $0x8] sm:$0xff]   ;;  %v766_v6 = vld [vmem:[%s242_s28 + $0x10] sm:$0xff]   ;;  %s248_s11 = scalar_lea.vmem %s911_s5, %s854_s25 }
  0x11   : > { %v763_v3 = vld [vmem:[%s236_s6] sm:$0xff]   ;;  %726 = vmatprep.mubr.msk.bf16.mxu1 %vm297_vm0, %v762_v2  ;;  %v765_v5 = vld [vmem:[%s236_s6 + $0x8] sm:$0xff]   ;;  %v767_v7 = vld [vmem:[%s236_s6 + $0x10] sm:$0xff]  }
  0x12   : > { %736 = vmatprep.mubr.msk.bf16.mxu0 %vm297_vm0, %v763_v3  ;;  %727 = vmatmul.mubr.msk.bf16.vlgmr.msra.gmra.mrb[0].mxu1 %vm297_vm0, %v764_v4  ;;  %v768_v8 = vld [vmem:[%s242_s28 + $0x18] sm:$0xff]  }
  0x13   : > { %737 = vmatmul.mubr.msk.bf16.vlgmr.msra.gmra.mrb[0].mxu0 %vm297_vm0, %v765_v5  ;;  %730 = vmatprep.mubr.msk.bf16.mxu1 %vm297_vm0, %v766_v6  ;;  %v769_v9 = vld [vmem:[%s236_s6 + $0x18] sm:$0xff]  }
  0x14   : > { %740 = vmatprep.mubr.msk.bf16.mxu0 %vm297_vm0, %v767_v7 }
  0x1a   : > { %731 = vmatmul.mubr.msk.bf16.gmra.mrb[4].mxu1 %vm297_vm0, %v768_v8 }
  0x1b   : > { %741 = vmatmul.mubr.msk.bf16.gmra.mrb[4].mxu0 %vm297_vm0, %v769_v9 }
  0xe5   : > { %v728_v10 = vpop.f32.mrb[0].mxu1 }
  0xe6   : > { %v738_v11 = vpop.f32.mrb[0].mxu0  ;;  %v344_v13 = vpop.f32.mrb[1].mxu1 }
  0xe7   : > { %v456_v14 = vadd.f32 %v738_v11, %v728_v10  ;;  %v447_v15 = vpop.f32.mrb[1].mxu0  ;;  %v729_v16 = vpop.f32.mrb[2].mxu1 }
  0xe8   : > { %v448_v17 = vadd.f32 %v447_v15, %v344_v13  ;;  %v739_v18 = vpop.f32.mrb[2].mxu0  ;;  %v347_v19 = vpop.f32.mrb[3].mxu1 }
  0xe9   : > { %v875_v20 = vadd.f32 %v687_v12, %v456_v14  ;;  %v459_v21 = vadd.f32 %v739_v18, %v729_v16  ;;  %v450_v22 = vpop.f32.mrb[3].mxu0 }
  0xea   : > { %v877_v23 = vadd.f32 %v687_v12, %v448_v17  ;;  %v451_v24 = vadd.f32 %v450_v22, %v347_v19 }
  0xeb   : > { %v690_v25 = vmul.f32 -1.442695, %v875_v20  ;;  %v880_v26 = vadd.f32 %v687_v12, %v459_v21 }
  0xec   : > { %v688_v27 = vmul.f32 -1.442695, %v877_v23  ;;  %v883_v28 = vadd.f32 %v687_v12, %v451_v24 }
  0xed   : > { %770 = vpow2.f32 %v690_v25  ;;  %v691_v29 = vmul.f32 -1.442695, %v880_v26  ;;  %v732_v30 = vpop.f32.mrb[4].mxu1 }
  0xee   : > { %772 = vpow2.f32 %v688_v27  ;;  %v689_v31 = vmul.f32 -1.442695, %v883_v28  ;;  %v742_v32 = vpop.f32.mrb[4].mxu0  ;;  %v360_v33 = vpop.f32.mrb[5].mxu1 }
  0xef   : > { %774 = vpow2.f32 %v691_v29  ;;  %v472_v34 = vadd.f32 %v742_v32, %v732_v30  ;;  %v463_v35 = vpop.f32.mrb[5].mxu0  ;;  %v733_v36 = vpop.f32.mrb[6].mxu1 }
  0xf0   : > { %776 = vpow2.f32 %v689_v31  ;;  %v464_v37 = vadd.f32 %v463_v35, %v360_v33  ;;  %v743_v38 = vpop.f32.mrb[6].mxu0  ;;  %v363_v39 = vpop.f32.mrb[7].mxu1 }
  0xf1   : > { %v491_v40 = vadd.f32 %v687_v12, %v472_v34  ;;  %v475_v41 = vadd.f32 %v743_v38, %v733_v36  ;;  %v466_v42 = vpop.f32.mrb[7].mxu0 }
  0xf2   : > { %v489_v43 = vadd.f32 %v687_v12, %v464_v37  ;;  %v467_v44 = vadd.f32 %v466_v42, %v363_v39 }
  0xf3   : > { %v694_v45 = vmul.f32 -1.442695, %v491_v40  ;;  %v492_v46 = vadd.f32 %v687_v12, %v475_v41 }
  0xf4   : > { %v692_v47 = vmul.f32 -1.442695, %v489_v43  ;;  %v490_v48 = vadd.f32 %v687_v12, %v467_v44 }
  0xf5   : > { %778 = vpow2.f32 %v694_v45  ;;  %v695_v49 = vmul.f32 -1.442695, %v492_v46 }
  0xf6   : > { %780 = vpow2.f32 %v692_v47  ;;  %v693_v50 = vmul.f32 -1.442695, %v490_v48 }
  0xf7   : > { %v771_v51 = vpop.eup %770  ;;  %782 = vpow2.f32 %v695_v49 }
  0xf8   : > { %v773_v52 = vpop.eup %772  ;;  %v519_v53 = vadd.f32 1.0, %v771_v51  ;;  %784 = vpow2.f32 %v693_v50 }
  0xf9   : > { %v775_v54 = vpop.eup %774  ;;  %v517_v55 = vadd.f32 1.0, %v773_v52 }
  0xfa   : > { %v777_v56 = vpop.eup %776  ;;  %786 = vrcp.f32 %v519_v53  ;;  %v520_v57 = vadd.f32 1.0, %v775_v54 }
  0xfb   : > { %788 = vrcp.f32 %v517_v55  ;;  %v518_v58 = vadd.f32 1.0, %v777_v56 }
  0xfc   : > { %790 = vrcp.f32 %v520_v57 }
  0xfd   : > { %792 = vrcp.f32 %v518_v58 }
  0xff   : > { %v779_v59 = vpop.eup %778 }
 0x100   : > { %v781_v60 = vpop.eup %780  ;;  %v523_v61 = vadd.f32 1.0, %v779_v59 }
 0x101   : > { %v783_v62 = vpop.eup %782  ;;  %v521_v63 = vadd.f32 1.0, %v781_v60 }
 0x102   : > { %v785_v0 = vpop.eup %784  ;;  %794 = vrcp.f32 %v523_v61  ;;  %v524_v1 = vadd.f32 1.0, %v783_v62 }
 0x103   : > { %796 = vrcp.f32 %v521_v63  ;;  %v522_v2 = vadd.f32 1.0, %v785_v0 }
 0x104   : > { %v787_v3 = vpop.eup %786  ;;  %798 = vrcp.f32 %v524_v1 }
 0x105   : > { %v789_v4 = vpop.eup %788  ;;  %v543_v5 = vmul.f32 %v787_v3, %v875_v20  ;;  %800 = vrcp.f32 %v522_v2 }
 0x106   : > { %v791_v6 = vpop.eup %790  ;;  %v541_v7 = vmul.f32 %v789_v4, %v877_v23 }
 0x107   : > { %v793_v8 = vpop.eup %792  ;;  %v708_v9 = vpack.c.bf16 %v543_v5, %v543_v5  ;;  %v544_v10 = vmul.f32 %v791_v6, %v880_v26 }
 0x108   : > { %v706_v11 = vpack.c.bf16 %v541_v7, %v541_v7  ;;  %v542_v12 = vmul.f32 %v793_v8, %v883_v28 }
 0x109   : > { %584 = vst.msk [vmem:[%s248_s11 + $0x8] sm:$0xf] %vm581_vm1, %v708_v9  ;;  %v709_v13 = vpack.c.bf16 %v544_v10, %v544_v10 }
 0x10a   : > { %582 = vst.msk [vmem:[%s248_s11] sm:$0xf] %vm581_vm1, %v706_v11  ;;  %v707_v14 = vpack.c.bf16 %v542_v12, %v542_v12 }
 0x10b   : > { %585 = vst.msk [vmem:[%s248_s11 + $0xc] sm:$0xf] %vm581_vm1, %v709_v13 }
 0x10c   : > { %v795_v15 = vpop.eup %794  ;;  %583 = vst.msk [vmem:[%s248_s11 + $0x4] sm:$0xf] %vm581_vm1, %v707_v14 }
 0x10d   : > { %v797_v16 = vpop.eup %796  ;;  %v547_v17 = vmul.f32 %v795_v15, %v491_v40 }
 0x10e   : > { %v799_v18 = vpop.eup %798  ;;  %v545_v19 = vmul.f32 %v797_v16, %v489_v43 }
 0x10f   : > { %v801_v20 = vpop.eup %800  ;;  %v712_v21 = vpack.c.bf16 %v547_v17, %v547_v17  ;;  %v548_v22 = vmul.f32 %v799_v18, %v492_v46 }
 0x110   : > { %v710_v23 = vpack.c.bf16 %v545_v19, %v545_v19  ;;  %v546_v24 = vmul.f32 %v801_v20, %v490_v48 }
 0x111   : > { %588 = vst.msk [vmem:[%s248_s11 + $0x18] sm:$0xf] %vm581_vm1, %v712_v21  ;;  %v713_v25 = vpack.c.bf16 %v548_v22, %v548_v22 }
 0x112   : > { %586 = vst.msk [vmem:[%s248_s11 + $0x10] sm:$0xf] %vm581_vm1, %v710_v23  ;;  %v711_v26 = vpack.c.bf16 %v546_v24, %v546_v24 }
 0x113   : > { %589 = vst.msk [vmem:[%s248_s11 + $0x1c] sm:$0xf] %vm581_vm1, %v713_v25 }
 0x114   : > { %587 = vst.msk [vmem:[%s248_s11 + $0x14] sm:$0xf] %vm581_vm1, %v711_v26 }
 0x115 PF: > { %s15_s18 = sadd.s32 1, %s808_s18  }
 0x116   : > { %p12_p4 = scmp.ge.s32.totalorder %s15_s18, 4  }
 0x118   :  { %14 = sbr.rel (!%p12_p4) target bundleno = 1 (0x1), region = 73 }

// kernel: cspdarknet_forward.39
= control target key start
LH: loop header
LB: loop body
LE: loop exit
PB: predicated region body
PF: predicated region fallthrough
CT: control target
= control target key end

     0   :  { %s441_s12 = smov 0   ;;  %s480_s0 = inlined_call_operand.vmem [shape: bf16[32,64], index: 0, kind: input, shape index: {}]   ;;  %s481_s1 = inlined_call_operand.vmem [shape: bf16[64,64], index: 1, kind: input, shape index: {}]   ;;  %s482_s2 = inlined_call_operand.vmem [shape: f32[1,64], index: 2, kind: input, shape index: {}]   ;;  %s483_s3 = inlined_call_operand.vmem [shape: bf16[32,64], index: 3, kind: output, shape index: {}]  }
   0x1 LB: > { %s347_s13 = sadd.s32 4294967295, %s417_s12   ;;  %p351_p0 = scmp.ge.s32.totalorder %s417_s12, 1  ;;  %s417_s12 = sphi %s441_s12, %s13_s12  }
   0x2   : > { %p138_p1 = scmp.lt.s32.totalorder %s417_s12, 3 }
   0x4   : > { %p139_p2 = pnand %p351_p0, %p138_p1 }
   0x5   : > { %v398_v0 = vld [vmem:[%s481_s1] sm:$0xff] (!%p139_p2)   ;;  %v419_v1 = vmov (!%p139_p2), 0.0   ;;  %v399_v2 = vld [vmem:[%s481_s1 + $0x8] sm:$0xff] (!%p139_p2)   ;;  %vm420_vm0 = vmmov (!%p139_p2), 0   ;;  %s352_s18 = sshll.u32 (!%p139_p2), %s347_s13, 1  ;;  %v400_v3 = vld [vmem:[%s481_s1 + $0x10] sm:$0xff] (!%p139_p2)  }
   0x6   : > { %142 = sbr.rel (%p139_p2) target bundleno = 269 (0x10d), region = 32  ;;  %376 = vmatprep.subr.bf16.mxu0 (!%p139_p2), %v419_v1  ;;  %384 = vmatprep.mubr.msk.bf16.mxu0 (!%p139_p2), %vm420_vm0, %v419_v1  ;;  %p163_p3 = scmp.lt.s32.totalorder (!%p139_p2), %s352_s18, 3  ;;  %v401_v4 = vld [vmem:[%s481_s1 + $0x18] sm:$0xff] (!%p139_p2)   ;;  %vm221_vm1 = vcmask (!%p139_p2), 523264   ;;  %v356_v6 = vld [vmem:[%s482_s2] ss:$0 sm:$0xff] (!%p139_p2) }
   0x7   : > { %377 = vmatpush3.bf16.msra.mxu0 (!%p139_p2), %v398_v0  ;;  %vm288_vm2 = vcmask (!%p139_p2), 519168  }
   0x8   : > { %378 = vmatprep.subr.bf16.mxu0 (!%p139_p2), %v419_v1 }
   0xb   : > { %379 = vmatpush3.bf16.msra.mxu0 (!%p139_p2), %v399_v2 }
   0xc   : > { %380 = vmatprep.subr.bf16.mxu0 (!%p139_p2), %v419_v1 }
   0xd   : > { %s485_s18 = smov (!%p163_p3, %s352_s18), 3 }
   0xe   : > { %s353_s21 = sshll.u32 %s485_s18, 2 }
   0xf   : > { %s166_s24 = scalar_lea.vmem %s480_s0, %s353_s21  ;;  %381 = vmatpush3.bf16.msra.mxu0 %v400_v3  ;;  %s172_s4 = scalar_lea.vmem %s483_s3, %s353_s21 }
  0x10   : > { %382 = vmatprep.subr.bf16.mxu0 %v419_v1  ;;  %v402_v5 = vld [vmem:[%s166_s24] sm:$0xff]  }
  0x13   : > { %383 = vmatpush3.bf16.msra.mxu0 %v401_v4 }
  0x16   : > { %385 = vmatmul.mubr.msk.bf16.vlgmr.msra.gmra.mrb[0].mxu0 %vm221_vm1, %v402_v5 }
  0xe9   : > { %v259_v7 = vpop.f32.mrb[0].mxu0 }
  0xea   : > { %v260_v8 = vadd.f32 %v356_v6, %v259_v7  ;;  %v386_v9 = vpop.f32.mrb[1].mxu0 }
  0xeb   : > { %v262_v10 = vpop.f32.mrb[2].mxu0 }
  0xec   : > { %v363_v11 = vmul.f32 -1.442695, %v260_v8  ;;  %v263_v12 = vadd.f32 %v356_v6, %v262_v10  ;;  %v387_v13 = vpop.f32.mrb[3].mxu0 }
  0xee   : > { %403 = vpow2.f32 %v363_v11  ;;  %v364_v14 = vmul.f32 -1.442695, %v263_v12 }
  0xf0   : > { %405 = vpow2.f32 %v364_v14 }
  0xf8   : > { %v404_v15 = vpop.eup %403 }
  0xf9   : > { %v272_v16 = vadd.f32 1.0, %v404_v15 }
  0xfa   : > { %v406_v17 = vpop.eup %405 }
  0xfb   : > { %407 = vrcp.f32 %v272_v16  ;;  %v273_v18 = vadd.f32 1.0, %v406_v17 }
  0xfd   : > { %409 = vrcp.f32 %v273_v18 }
 0x105   : > { %v408_v19 = vpop.eup %407 }
 0x106   : > { %v278_v20 = vmul.f32 %v408_v19, %v260_v8 }
 0x107   : > { %v410_v21 = vpop.eup %409 }
 0x108   : > { %v369_v22 = vpack.c.bf16 %v278_v20, %v278_v20  ;;  %v279_v23 = vmul.f32 %v410_v21, %v263_v12 }
 0x10a   : > { %289 = vst.msk [vmem:[%s172_s4] sm:$0xf] %vm288_vm2, %v369_v22  ;;  %v370_v24 = vpack.c.bf16 %v279_v23, %v279_v23 }
 0x10c   : > { %290 = vst.msk [vmem:[%s172_s4 + $0x4] sm:$0xf] %vm288_vm2, %v370_v24 }
 0x10d PF: > { %s13_s12 = sadd.s32 1, %s417_s12  }
 0x10e   : > { %p10_p4 = scmp.ge.s32.totalorder %s13_s12, 4  }
 0x110   :  { %12 = sbr.rel (!%p10_p4) target bundleno = 1 (0x1), region = 62 }

// kernel: cspdarknet_forward.38
= control target key start
LH: loop header
LB: loop body
LE: loop exit
PB: predicated region body
PF: predicated region fallthrough
CT: control target
= control target key end

     0   :  { %s659_s12 = smov 0   ;;  %s737_s0 = inlined_call_operand.vmem [shape: bf16[32,288], index: 0, kind: input, shape index: {}]   ;;  %s738_s1 = inlined_call_operand.vmem [shape: bf16[288,64], index: 1, kind: input, shape index: {}]   ;;  %s739_s2 = inlined_call_operand.vmem [shape: f32[1,64], index: 2, kind: input, shape index: {}]   ;;  %s740_s3 = inlined_call_operand.vmem [shape: bf16[32,64], index: 3, kind: output, shape index: {}]  }
   0x1 LB: > { %s515_s13 = sadd.s32 4294967295, %s635_s12   ;;  %p519_p0 = scmp.ge.s32.totalorder %s635_s12, 1  ;;  %s635_s12 = sphi %s659_s12, %s13_s12  }
   0x2   : > { %p139_p1 = scmp.lt.s32.totalorder %s635_s12, 3 }
   0x4   : > { %p140_p2 = pnand %p519_p0, %p139_p1 }
   0x5   : > { %v599_v0 = vld [vmem:[%s738_s1 + $0x40] sm:$0xff] (!%p140_p2)   ;;  %v637_v2 = vmov (!%p140_p2), 0.0   ;;  %s520_s18 = sshll.u32 (!%p140_p2), %s515_s13, 1  ;;  %v601_v3 = vld [vmem:[%s738_s1 + $0x48] sm:$0xff] (!%p140_p2)   ;;  %v603_v5 = vld [vmem:[%s738_s1 + $0x50] sm:$0xff] (!%p140_p2)   ;;  %vm638_vm0 = vmmov (!%p140_p2), 0  }
   0x6   : > { %143 = sbr.rel (%p140_p2) target bundleno = 290 (0x122), region = 32  ;;  %v600_v1 = vld [vmem:[%s738_s1] sm:$0xff] (!%p140_p2)   ;;  %580 = vmatprep.subr.bf16.mxu1 (!%p140_p2), %v637_v2  ;;  %555 = vmatprep.subr.bf16.mxu0 (!%p140_p2), %v599_v0  ;;  %p165_p3 = scmp.lt.s32.totalorder (!%p140_p2), %s520_s18, 3  ;;  %v602_v4 = vld [vmem:[%s738_s1 + $0x8] sm:$0xff] (!%p140_p2)   ;;  %v604_v6 = vld [vmem:[%s738_s1 + $0x10] sm:$0xff] (!%p140_p2)   ;;  %vm348_vm1 = vcmask (!%p140_p2), 261120  }
   0x7   : > { %556 = vmatpush3.bf16.msra.mxu0 (!%p140_p2), %v600_v1  ;;  %584 = vmatprep.mubr.msk.bf16.mxu1 (!%p140_p2), %vm638_vm0, %v637_v2  ;;  %v605_v7 = vld [vmem:[%s738_s1 + $0x58] sm:$0xff] (!%p140_p2)   ;;  %v607_v9 = vld [vmem:[%s738_s1 + $0x60] sm:$0xff] (!%p140_p2)   ;;  %v609_v12 = vld [vmem:[%s738_s1 + $0x68] sm:$0xff] (!%p140_p2)   ;;  %vm456_vm2 = vcmask (!%p140_p2), 519168  }
   0x8   : > { %557 = vmatprep.subr.bf16.mxu0 (!%p140_p2), %v601_v3  ;;  %v606_v8 = vld [vmem:[%s738_s1 + $0x18] sm:$0xff] (!%p140_p2)   ;;  %v613_v10 = vld [vmem:[%s738_s1 + $0x80] sm:$0xff] (!%p140_p2)   ;;  %v610_v13 = vld [vmem:[%s738_s1 + $0x28] sm:$0xff] (!%p140_p2)  }
   0x9   : > { %v608_v11 = vld [vmem:[%s738_s1 + $0x20] sm:$0xff] (!%p140_p2)   ;;  %581 = vmatpush3.bf16.msra.mxu1 (!%p140_p2), %v613_v10  ;;  %v619_v15 = vld [vmem:[%s738_s1 + $0x88] sm:$0xff] (!%p140_p2)   ;;  %v611_v16 = vld [vmem:[%s738_s1 + $0x70] sm:$0xff] (!%p140_p2)  }
   0xa   : > { %582 = vmatprep.subr.bf16.mxu1 (!%p140_p2), %v637_v2  ;;  %v612_v18 = vld [vmem:[%s738_s1 + $0x30] sm:$0xff] (!%p140_p2)   ;;  %v614_v19 = vld [vmem:[%s738_s1 + $0x78] sm:$0xff] (!%p140_p2)   ;;  %v524_v28 = vld [vmem:[%s739_s2] ss:$0 sm:$0xff] (!%p140_p2) }
   0xb   : > { %558 = vmatpush3.bf16.msra.mxu0 (!%p140_p2), %v602_v4  ;;  %v615_v20 = vld [vmem:[%s738_s1 + $0x38] sm:$0xff] (!%p140_p2)  }
   0xc   : > { %559 = vmatprep.subr.bf16.mxu0 (!%p140_p2), %v603_v5 }
   0xd   : > { %s742_s18 = smov (!%p165_p3, %s520_s18), 3  ;;  %583 = vmatpush3.bf16.msra.mxu1 %v619_v15 }
   0xe   : > { %s588_s4 = smul.u32 12, %s742_s18  ;;  %s523_s5 = sshll.u32 %s742_s18, 2 }
   0xf   : > { %560 = vmatpush3.bf16.msra.mxu0 %v604_v6  ;;  %s175_s8 = scalar_lea.vmem %s740_s3, %s523_s5 }
  0x10   : > { %561 = vmatprep.subr.bf16.mxu0 %v605_v7  ;;  %s169_s14 = scalar_lea.vmem %s737_s0, %s588_s4 }
  0x11   : > { %v618_v14 = vld [vmem:[%s169_s14 + $0x4] ss:$12 sps:$4 sm:$0xff]   ;;  %v620_v17 = vld [vmem:[%s169_s14 + $0x8] ss:$12 sps:$4 sm:$0xff]   ;;  %v616_v21 = vld [vmem:[%s169_s14] ss:$12 sps:$4 sm:$0xff]  }
  0x12   : > { %384 = vmatprep.mubr.bf16.mxu0 %v618_v14  ;;  %585 = vmatmul.mubr.msk.bf16.vlgmr.msra.gmra.mrb[0].mxu1 %vm348_vm1, %v620_v17 }
  0x13   : > { %562 = vmatpush3.bf16.msra.mxu0 %v606_v8 }
  0x14   : > { %563 = vmatprep.subr.bf16.mxu0 %v607_v9 }
  0x17   : > { %564 = vmatpush3.bf16.msra.mxu0 %v608_v11 }
  0x18   : > { %565 = vmatprep.subr.bf16.mxu0 %v609_v12 }
  0x1b   : > { %566 = vmatpush3.bf16.msra.mxu0 %v610_v13 }
  0x1c   : > { %567 = vmatprep.subr.bf16.mxu0 %v611_v16 }
  0x1f   : > { %568 = vmatpush3.bf16.msra.mxu0 %v612_v18 }
  0x20   : > { %569 = vmatprep.subr.bf16.mxu0 %v614_v19 }
  0x23   : > { %570 = vmatpush3.bf16.msra.mxu0 %v615_v20 }
  0x26   : > { %385 = vmatmul.mubr.bf16.vlgmr.msra.gmra.mrb[0].mxu0 %v616_v21 }
  0xe5   : > { %v427_v22 = vpop.f32.mrb[0].mxu1 }
  0xe6   : > { %v586_v23 = vpop.f32.mrb[1].mxu1 }
  0xe7   : > { %v430_v24 = vpop.f32.mrb[2].mxu1 }
  0xe8   : > { %v587_v25 = vpop.f32.mrb[3].mxu1 }
  0xf9   : > { %v571_v26 = vpop.f32.mrb[0].mxu0 }
  0xfa   : > { %v572_v27 = vpop.f32.mrb[1].mxu0 }
  0xfb   : > { %v573_v29 = vadd.f32 %v572_v27, %v571_v26  ;;  %v574_v30 = vpop.f32.mrb[2].mxu0 }
  0xfc   : > { %v575_v31 = vpop.f32.mrb[3].mxu0 }
  0xfd   : > { %v387_v32 = vadd.f32 %v573_v29, %v524_v28  ;;  %v576_v33 = vadd.f32 %v575_v31, %v574_v30 }
  0xff   : > { %v428_v34 = vadd.f32 %v427_v22, %v387_v32  ;;  %v390_v35 = vadd.f32 %v576_v33, %v524_v28 }
 0x101   : > { %v547_v36 = vmul.f32 -1.442695, %v428_v34  ;;  %v431_v37 = vadd.f32 %v430_v24, %v390_v35 }
 0x103   : > { %621 = vpow2.f32 %v547_v36  ;;  %v548_v38 = vmul.f32 -1.442695, %v431_v37 }
 0x105   : > { %623 = vpow2.f32 %v548_v38 }
 0x10d   : > { %v622_v39 = vpop.eup %621 }
 0x10e   : > { %v440_v40 = vadd.f32 1.0, %v622_v39 }
 0x10f   : > { %v624_v41 = vpop.eup %623 }
 0x110   : > { %625 = vrcp.f32 %v440_v40  ;;  %v441_v42 = vadd.f32 1.0, %v624_v41 }
 0x112   : > { %627 = vrcp.f32 %v441_v42 }
 0x11a   : > { %v626_v43 = vpop.eup %625 }
 0x11b   : > { %v446_v44 = vmul.f32 %v626_v43, %v428_v34 }
 0x11c   : > { %v628_v45 = vpop.eup %627 }
 0x11d   : > { %v553_v46 = vpack.c.bf16 %v446_v44, %v446_v44  ;;  %v447_v47 = vmul.f32 %v628_v45, %v431_v37 }
 0x11f   : > { %457 = vst.msk [vmem:[%s175_s8] sm:$0xf] %vm456_vm2, %v553_v46  ;;  %v554_v48 = vpack.c.bf16 %v447_v47, %v447_v47 }
 0x121   : > { %458 = vst.msk [vmem:[%s175_s8 + $0x4] sm:$0xf] %vm456_vm2, %v554_v48 }
 0x122 PF: > { %s13_s12 = sadd.s32 1, %s635_s12  }
 0x123   : > { %p10_p4 = scmp.ge.s32.totalorder %s13_s12, 4  }
 0x125   :  { %12 = sbr.rel (!%p10_p4) target bundleno = 1 (0x1), region = 62 }

// kernel: cspdarknet_forward.40
= control target key start
LH: loop header
LB: loop body
LE: loop exit
PB: predicated region body
PF: predicated region fallthrough
CT: control target
= control target key end

     0   :  { %s415_s12 = smov 0   ;;  %s441_s0 = inlined_call_operand.vmem [shape: bf16[32,32], index: 0, kind: input, shape index: {}]   ;;  %s442_s1 = inlined_call_operand.vmem [shape: bf16[32,32], index: 1, kind: input, shape index: {}]   ;;  %s443_s2 = inlined_call_operand.vmem [shape: f32[1,32], index: 2, kind: input, shape index: {}]   ;;  %s444_s3 = inlined_call_operand.vmem [shape: bf16[32,32], index: 3, kind: output, shape index: {}]  }
   0x1 LB: > { %s331_s13 = sadd.s32 4294967295, %s391_s12   ;;  %p335_p0 = scmp.ge.s32.totalorder %s391_s12, 1  ;;  %s391_s12 = sphi %s415_s12, %s13_s12  }
   0x2   : > { %p138_p1 = scmp.lt.s32.totalorder %s391_s12, 3 }
   0x4   : > { %p139_p2 = pnand %p335_p0, %p138_p1 }
   0x5   : > { %v374_v0 = vld [vmem:[%s442_s1] sm:$0xff] (!%p139_p2)   ;;  %v393_v1 = vmov (!%p139_p2), 0.0   ;;  %v375_v2 = vld [vmem:[%s442_s1 + $0x8] sm:$0xff] (!%p139_p2)   ;;  %vm394_vm0 = vmmov (!%p139_p2), 0   ;;  %s336_s18 = sshll.u32 (!%p139_p2), %s331_s13, 1  ;;  %vm205_vm1 = vcmask (!%p139_p2), 261120  }
   0x6   : > { %142 = sbr.rel (%p139_p2) target bundleno = 264 (0x108), region = 32  ;;  %356 = vmatprep.subr.bf16.mxu0 (!%p139_p2), %v393_v1  ;;  %360 = vmatprep.mubr.msk.bf16.mxu0 (!%p139_p2), %vm394_vm0, %v393_v1  ;;  %p163_p3 = scmp.lt.s32.totalorder (!%p139_p2), %s336_s18, 3  ;;  %v340_v4 = vld [vmem:[%s443_s2] ss:$0 sm:$0xff] (!%p139_p2)  ;;  %vm272_vm2 = vcmask (!%p139_p2), 257024  }
   0x7   : > { %357 = vmatpush3.bf16.msra.mxu0 (!%p139_p2), %v374_v0 }
   0x8   : > { %358 = vmatprep.subr.bf16.mxu0 (!%p139_p2), %v393_v1 }
   0xb   : > { %359 = vmatpush3.bf16.msra.mxu0 (!%p139_p2), %v375_v2 }
   0xd   : > { %s446_s18 = smov (!%p163_p3, %s336_s18), 3 }
   0xe   : > { %s337_s19 = sshll.u32 %s446_s18, 2 }
   0xf   : > { %s166_s22 = scalar_lea.vmem %s441_s0, %s337_s19  ;;  %s172_s27 = scalar_lea.vmem %s444_s3, %s337_s19 }
  0x10   : > { %v376_v3 = vld [vmem:[%s166_s22] sm:$0xff]  }
  0x11   : > { %361 = vmatmul.mubr.msk.bf16.vlgmr.msra.gmra.mrb[0].mxu0 %vm205_vm1, %v376_v3 }
  0xe4   : > { %v243_v5 = vpop.f32.mrb[0].mxu0 }
  0xe5   : > { %v244_v6 = vadd.f32 %v340_v4, %v243_v5  ;;  %v362_v7 = vpop.f32.mrb[1].mxu0 }
  0xe6   : > { %v246_v8 = vpop.f32.mrb[2].mxu0 }
  0xe7   : > { %v345_v9 = vmul.f32 -1.442695, %v244_v6  ;;  %v247_v10 = vadd.f32 %v340_v4, %v246_v8  ;;  %v363_v11 = vpop.f32.mrb[3].mxu0 }
  0xe9   : > { %377 = vpow2.f32 %v345_v9  ;;  %v346_v12 = vmul.f32 -1.442695, %v247_v10 }
  0xeb   : > { %379 = vpow2.f32 %v346_v12 }
  0xf3   : > { %v378_v13 = vpop.eup %377 }
  0xf4   : > { %v256_v14 = vadd.f32 1.0, %v378_v13 }
  0xf5   : > { %v380_v15 = vpop.eup %379 }
  0xf6   : > { %381 = vrcp.f32 %v256_v14  ;;  %v257_v16 = vadd.f32 1.0, %v380_v15 }
  0xf8   : > { %383 = vrcp.f32 %v257_v16 }
 0x100   : > { %v382_v17 = vpop.eup %381 }
 0x101   : > { %v262_v18 = vmul.f32 %v382_v17, %v244_v6 }
 0x102   : > { %v384_v19 = vpop.eup %383 }
 0x103   : > { %v351_v20 = vpack.c.bf16 %v262_v18, %v262_v18  ;;  %v263_v21 = vmul.f32 %v384_v19, %v247_v10 }
 0x105   : > { %273 = vst.msk [vmem:[%s172_s27] sm:$0xf] %vm272_vm2, %v351_v20  ;;  %v352_v22 = vpack.c.bf16 %v263_v21, %v263_v21 }
 0x107   : > { %274 = vst.msk [vmem:[%s172_s27 + $0x4] sm:$0xf] %vm272_vm2, %v352_v22 }
 0x108 PF: > { %s13_s12 = sadd.s32 1, %s391_s12  }
 0x109   : > { %p10_p4 = scmp.ge.s32.totalorder %s13_s12, 4  }
 0x10b   :  { %12 = sbr.rel (!%p10_p4) target bundleno = 1 (0x1), region = 62 }

// kernel: cspdarknet_forward.41
= control target key start
LH: loop header
LB: loop body
LE: loop exit
PB: predicated region body
PF: predicated region fallthrough
CT: control target
= control target key end

     0   :  { %s737_s15 = smov 0   ;;  %s818_s0 = inlined_call_operand.vmem [shape: bf16[32,288], index: 0, kind: input, shape index: {}]   ;;  %s819_s1 = inlined_call_operand.vmem [shape: bf16[288,32], index: 1, kind: input, shape index: {}]   ;;  %s820_s2 = inlined_call_operand.vmem [shape: f32[1,32], index: 2, kind: input, shape index: {}]   ;;  %s821_s3 = inlined_call_operand.vmem [shape: bf16[32,32], index: 3, kind: input, shape index: {}]   ;;  %s822_s4 = inlined_call_operand.vmem [shape: bf16[32,32], index: 4, kind: output, shape index: {}]  }
   0x1 LB: > { %s582_s16 = sadd.s32 4294967295, %s708_s15   ;;  %p586_p0 = scmp.ge.s32.totalorder %s708_s15, 1  ;;  %s708_s15 = sphi %s737_s15, %s14_s15  }
   0x2   : > { %p175_p1 = scmp.lt.s32.totalorder %s708_s15, 3 }
   0x4   : > { %p176_p2 = pnand %p586_p0, %p175_p1 }
   0x5   : > { %v672_v0 = vld [vmem:[%s819_s1 + $0x40] sm:$0xff] (!%p176_p2)   ;;  %v710_v2 = vmov (!%p176_p2), 0.0   ;;  %s587_s21 = sshll.u32 (!%p176_p2), %s582_s16, 1  ;;  %v674_v3 = vld [vmem:[%s819_s1 + $0x48] sm:$0xff] (!%p176_p2)   ;;  %v676_v5 = vld [vmem:[%s819_s1 + $0x50] sm:$0xff] (!%p176_p2)   ;;  %vm711_vm0 = vmmov (!%p176_p2), 0  }
   0x6   : > { %179 = sbr.rel (%p176_p2) target bundleno = 292 (0x124), region = 36  ;;  %v673_v1 = vld [vmem:[%s819_s1] sm:$0xff] (!%p176_p2)   ;;  %653 = vmatprep.subr.bf16.mxu1 (!%p176_p2), %v710_v2  ;;  %628 = vmatprep.subr.bf16.mxu0 (!%p176_p2), %v672_v0  ;;  %p208_p3 = scmp.lt.s32.totalorder (!%p176_p2), %s587_s21, 3  ;;  %v675_v4 = vld [vmem:[%s819_s1 + $0x8] sm:$0xff] (!%p176_p2)   ;;  %v677_v6 = vld [vmem:[%s819_s1 + $0x10] sm:$0xff] (!%p176_p2)   ;;  %vm397_vm1 = vcmask (!%p176_p2), 261120  }
   0x7   : > { %629 = vmatpush3.bf16.msra.mxu0 (!%p176_p2), %v673_v1  ;;  %657 = vmatprep.mubr.msk.bf16.mxu1 (!%p176_p2), %vm711_vm0, %v710_v2  ;;  %v678_v7 = vld [vmem:[%s819_s1 + $0x58] sm:$0xff] (!%p176_p2)   ;;  %v680_v9 = vld [vmem:[%s819_s1 + $0x60] sm:$0xff] (!%p176_p2)   ;;  %v682_v12 = vld [vmem:[%s819_s1 + $0x68] sm:$0xff] (!%p176_p2)   ;;  %vm511_vm2 = vcmask (!%p176_p2), 257024  }
   0x8   : > { %630 = vmatprep.subr.bf16.mxu0 (!%p176_p2), %v674_v3  ;;  %v679_v8 = vld [vmem:[%s819_s1 + $0x18] sm:$0xff] (!%p176_p2)   ;;  %v686_v10 = vld [vmem:[%s819_s1 + $0x80] sm:$0xff] (!%p176_p2)   ;;  %v683_v13 = vld [vmem:[%s819_s1 + $0x28] sm:$0xff] (!%p176_p2)  }
   0x9   : > { %v681_v11 = vld [vmem:[%s819_s1 + $0x20] sm:$0xff] (!%p176_p2)   ;;  %654 = vmatpush3.bf16.msra.mxu1 (!%p176_p2), %v686_v10  ;;  %v692_v15 = vld [vmem:[%s819_s1 + $0x88] sm:$0xff] (!%p176_p2)   ;;  %v684_v16 = vld [vmem:[%s819_s1 + $0x70] sm:$0xff] (!%p176_p2)  }
   0xa   : > { %655 = vmatprep.subr.bf16.mxu1 (!%p176_p2), %v710_v2  ;;  %v685_v18 = vld [vmem:[%s819_s1 + $0x30] sm:$0xff] (!%p176_p2)   ;;  %v687_v19 = vld [vmem:[%s819_s1 + $0x78] sm:$0xff] (!%p176_p2)   ;;  %v593_v28 = vld [vmem:[%s820_s2] ss:$0 sm:$0xff] (!%p176_p2) }
   0xb   : > { %631 = vmatpush3.bf16.msra.mxu0 (!%p176_p2), %v675_v4  ;;  %v688_v20 = vld [vmem:[%s819_s1 + $0x38] sm:$0xff] (!%p176_p2)  }
   0xc   : > { %632 = vmatprep.subr.bf16.mxu0 (!%p176_p2), %v676_v5 }
   0xd   : > { %s824_s21 = smov (!%p208_p3, %s587_s21), 3  ;;  %656 = vmatpush3.bf16.msra.mxu1 %v692_v15 }
   0xe   : > { %s661_s8 = smul.u32 12, %s824_s21  ;;  %s590_s10 = sshll.u32 %s824_s21, 2 }
   0xf   : > { %633 = vmatpush3.bf16.msra.mxu0 %v677_v6  ;;  %s218_s13 = scalar_lea.vmem %s821_s3, %s590_s10  ;;  %s224_s17 = scalar_lea.vmem %s822_s4, %s590_s10 }
  0x10   : > { %634 = vmatprep.subr.bf16.mxu0 %v678_v7  ;;  %s212_s18 = scalar_lea.vmem %s818_s0, %s661_s8  ;;  %v625_v43 = vld [vmem:[%s218_s13] sm:$0xff]  }
  0x11   : > { %v691_v14 = vld [vmem:[%s212_s18 + $0x4] ss:$12 sps:$4 sm:$0xff]   ;;  %v693_v17 = vld [vmem:[%s212_s18 + $0x8] ss:$12 sps:$4 sm:$0xff]   ;;  %v689_v21 = vld [vmem:[%s212_s18] ss:$12 sps:$4 sm:$0xff]   ;;  %v626_v44 = vunpack.c.l.bf16 %v625_v43  ;;  %v627_v47 = vunpack.c.h.bf16 %v625_v43 }
  0x12   : > { %433 = vmatprep.mubr.bf16.mxu0 %v691_v14  ;;  %658 = vmatmul.mubr.msk.bf16.vlgmr.msra.gmra.mrb[0].mxu1 %vm397_vm1, %v693_v17 }
  0x13   : > { %635 = vmatpush3.bf16.msra.mxu0 %v679_v8 }
  0x14   : > { %636 = vmatprep.subr.bf16.mxu0 %v680_v9 }
  0x17   : > { %637 = vmatpush3.bf16.msra.mxu0 %v681_v11 }
  0x18   : > { %638 = vmatprep.subr.bf16.mxu0 %v682_v12 }
  0x1b   : > { %639 = vmatpush3.bf16.msra.mxu0 %v683_v13 }
  0x1c   : > { %640 = vmatprep.subr.bf16.mxu0 %v684_v16 }
  0x1f   : > { %641 = vmatpush3.bf16.msra.mxu0 %v685_v18 }
  0x20   : > { %642 = vmatprep.subr.bf16.mxu0 %v687_v19 }
  0x23   : > { %643 = vmatpush3.bf16.msra.mxu0 %v688_v20 }
  0x26   : > { %434 = vmatmul.mubr.bf16.vlgmr.msra.gmra.mrb[0].mxu0 %v689_v21 }
  0xe5   : > { %v476_v22 = vpop.f32.mrb[0].mxu1 }
  0xe6   : > { %v659_v23 = vpop.f32.mrb[1].mxu1 }
  0xe7   : > { %v479_v24 = vpop.f32.mrb[2].mxu1 }
  0xe8   : > { %v660_v25 = vpop.f32.mrb[3].mxu1 }
  0xf9   : > { %v644_v26 = vpop.f32.mrb[0].mxu0 }
  0xfa   : > { %v645_v27 = vpop.f32.mrb[1].mxu0 }
  0xfb   : > { %v646_v29 = vadd.f32 %v645_v27, %v644_v26  ;;  %v647_v30 = vpop.f32.mrb[2].mxu0 }
  0xfc   : > { %v648_v31 = vpop.f32.mrb[3].mxu0 }
  0xfd   : > { %v436_v32 = vadd.f32 %v646_v29, %v593_v28  ;;  %v649_v33 = vadd.f32 %v648_v31, %v647_v30 }
  0xff   : > { %v477_v34 = vadd.f32 %v476_v22, %v436_v32  ;;  %v439_v35 = vadd.f32 %v649_v33, %v593_v28 }
 0x101   : > { %v616_v36 = vmul.f32 -1.442695, %v477_v34  ;;  %v480_v37 = vadd.f32 %v479_v24, %v439_v35 }
 0x103   : > { %694 = vpow2.f32 %v616_v36  ;;  %v617_v38 = vmul.f32 -1.442695, %v480_v37 }
 0x105   : > { %696 = vpow2.f32 %v617_v38 }
 0x10d   : > { %v695_v39 = vpop.eup %694 }
 0x10e   : > { %v489_v40 = vadd.f32 1.0, %v695_v39 }
 0x10f   : > { %v697_v41 = vpop.eup %696 }
 0x110   : > { %698 = vrcp.f32 %v489_v40  ;;  %v490_v42 = vadd.f32 1.0, %v697_v41 }
 0x112   : > { %700 = vrcp.f32 %v490_v42 }
 0x11a   : > { %v699_v45 = vpop.eup %698 }
 0x11b   : > { %v495_v46 = vmul.f32 %v699_v45, %v477_v34 }
 0x11c   : > { %v701_v48 = vpop.eup %700 }
 0x11d   : > { %v501_v49 = vadd.f32 %v626_v44, %v495_v46  ;;  %v496_v50 = vmul.f32 %v701_v48, %v480_v37 }
 0x11f   : > { %v622_v51 = vpack.c.bf16 %v501_v49, %v501_v49  ;;  %v502_v52 = vadd.f32 %v627_v47, %v496_v50 }
 0x121   : > { %512 = vst.msk [vmem:[%s224_s17] sm:$0xf] %vm511_vm2, %v622_v51  ;;  %v623_v53 = vpack.c.bf16 %v502_v52, %v502_v52 }
 0x123   : > { %513 = vst.msk [vmem:[%s224_s17 + $0x4] sm:$0xf] %vm511_vm2, %v623_v53 }
 0x124 PF: > { %s14_s15 = sadd.s32 1, %s708_s15  }
 0x125   : > { %p11_p4 = scmp.ge.s32.totalorder %s14_s15, 4  }
 0x127   :  { %13 = sbr.rel (!%p11_p4) target bundleno = 1 (0x1), region = 69 }

// kernel: cspdarknet_forward.46
= control target key start
LH: loop header
LB: loop body
LE: loop exit
PB: predicated region body
PF: predicated region fallthrough
CT: control target
= control target key end

     0   :  { %s602_s18 = smov 0   ;;  %s642_s0 = inlined_call_operand.vmem [shape: bf16[32,32], index: 0, kind: input, shape index: {}]   ;;  %s643_s1 = inlined_call_operand.vmem [shape: bf16[32,32], index: 1, kind: input, shape index: {}]   ;;  %s644_s2 = inlined_call_operand.vmem [shape: bf16[32,64], index: 2, kind: input, shape index: {}]   ;;  %s645_s3 = inlined_call_operand.vmem [shape: bf16[32,64], index: 3, kind: input, shape index: {}]   ;;  %s646_s4 = inlined_call_operand.vmem [shape: f32[1,64], index: 4, kind: input, shape index: {}]   ;;  %s647_s5 = inlined_call_operand.vmem [shape: bf16[32,64], index: 5, kind: output, shape index: {}]  }
   0x1 LB: > { %s488_s19 = sadd.s32 4294967295, %s568_s18   ;;  %p492_p0 = scmp.ge.s32.totalorder %s568_s18, 1  ;;  %s568_s18 = sphi %s602_s18, %s15_s18  }
   0x2   : > { %p199_p1 = scmp.lt.s32.totalorder %s568_s18, 3 }
   0x4   : > { %p200_p2 = pnand %p492_p0, %p199_p1 }
   0x5   : > { %v548_v0 = vld [vmem:[%s645_s3] sm:$0xff] (!%p200_p2)   ;;  %v570_v1 = vmov (!%p200_p2), 0.0   ;;  %v550_v3 = vld [vmem:[%s645_s3 + $0x8] sm:$0xff] (!%p200_p2)   ;;  %vm571_vm0 = vmmov (!%p200_p2), 0   ;;  %s493_s26 = sshll.u32 (!%p200_p2), %s488_s19, 1  ;;  %vm280_vm1 = vcmask (!%p200_p2), 261120  }
   0x6   : > { %203 = sbr.rel (%p200_p2) target bundleno = 267 (0x10b), region = 40  ;;  %522 = vmatprep.subr.bf16.mxu0 (!%p200_p2), %v570_v1  ;;  %530 = vmatprep.subr.bf16.mxu1 (!%p200_p2), %v570_v1  ;;  %v549_v2 = vld [vmem:[%s644_s2] sm:$0xff] (!%p200_p2)   ;;  %v551_v4 = vld [vmem:[%s644_s2 + $0x8] sm:$0xff] (!%p200_p2)   ;;  %p233_p3 = scmp.lt.s32.totalorder (!%p200_p2), %s493_s26, 3  ;;  %vm417_vm2 = vcmask (!%p200_p2), 519168  }
   0x7   : > { %523 = vmatpush3.bf16.msra.mxu0 (!%p200_p2), %v548_v0  ;;  %526 = vmatprep.mubr.msk.bf16.mxu0 (!%p200_p2), %vm571_vm0, %v570_v1  ;;  %v507_v9 = vld [vmem:[%s646_s4] ss:$0 sm:$0xff] (!%p200_p2) }
   0x8   : > { %531 = vmatpush3.bf16.msra.mxu1 (!%p200_p2), %v549_v2  ;;  %524 = vmatprep.subr.bf16.mxu0 (!%p200_p2), %v570_v1 }
   0x9   : > { %532 = vmatprep.subr.bf16.mxu1 (!%p200_p2), %v570_v1  ;;  %534 = vmatprep.mubr.msk.bf16.mxu1 (!%p200_p2), %vm571_vm0, %v570_v1 }
   0xb   : > { %525 = vmatpush3.bf16.msra.mxu0 (!%p200_p2), %v550_v3 }
   0xc   : > { %533 = vmatpush3.bf16.msra.mxu1 (!%p200_p2), %v551_v4 }
   0xd   : > { %s649_s26 = smov (!%p233_p3, %s493_s26), 3 }
   0xe   : > { %s622_s29 = sshll.u32 %s649_s26, 2 }
   0xf   : > { %s242_s7 = scalar_lea.vmem %s643_s1, %s622_s29  ;;  %s236_s10 = scalar_lea.vmem %s642_s0, %s622_s29 }
  0x10   : > { %v552_v5 = vld [vmem:[%s242_s7] sm:$0xff]   ;;  %s248_s15 = scalar_lea.vmem %s647_s5, %s622_s29 }
  0x11   : > { %v553_v6 = vld [vmem:[%s236_s10] sm:$0xff]   ;;  %527 = vmatmul.mubr.msk.bf16.vlgmr.msra.gmra.mrb[0].mxu0 %vm280_vm1, %v552_v5 }
  0x12   : > { %535 = vmatmul.mubr.msk.bf16.vlgmr.msra.gmra.mrb[0].mxu1 %vm280_vm1, %v553_v6 }
  0xe4   : > { %v318_v7 = vpop.f32.mrb[0].mxu0 }
  0xe5   : > { %v379_v8 = vpop.f32.mrb[0].mxu1  ;;  %v528_v10 = vpop.f32.mrb[1].mxu0 }
  0xe6   : > { %v380_v11 = vadd.f32 %v379_v8, %v318_v7  ;;  %v536_v12 = vpop.f32.mrb[1].mxu1  ;;  %v321_v13 = vpop.f32.mrb[2].mxu0 }
  0xe7   : > { %v382_v14 = vpop.f32.mrb[2].mxu1  ;;  %v529_v15 = vpop.f32.mrb[3].mxu0 }
  0xe8   : > { %v393_v16 = vadd.f32 %v507_v9, %v380_v11  ;;  %v383_v17 = vadd.f32 %v382_v14, %v321_v13  ;;  %v537_v18 = vpop.f32.mrb[3].mxu1 }
  0xea   : > { %v508_v19 = vmul.f32 -1.442695, %v393_v16  ;;  %v394_v20 = vadd.f32 %v507_v9, %v383_v17 }
  0xec   : > { %554 = vpow2.f32 %v508_v19  ;;  %v509_v21 = vmul.f32 -1.442695, %v394_v20 }
  0xee   : > { %556 = vpow2.f32 %v509_v21 }
  0xf6   : > { %v555_v22 = vpop.eup %554 }
  0xf7   : > { %v401_v23 = vadd.f32 1.0, %v555_v22 }
  0xf8   : > { %v557_v24 = vpop.eup %556 }
  0xf9   : > { %558 = vrcp.f32 %v401_v23  ;;  %v402_v25 = vadd.f32 1.0, %v557_v24 }
  0xfb   : > { %560 = vrcp.f32 %v402_v25 }
 0x103   : > { %v559_v26 = vpop.eup %558 }
 0x104   : > { %v407_v27 = vmul.f32 %v559_v26, %v393_v16 }
 0x105   : > { %v561_v28 = vpop.eup %560 }
 0x106   : > { %v514_v29 = vpack.c.bf16 %v407_v27, %v407_v27  ;;  %v408_v30 = vmul.f32 %v561_v28, %v394_v20 }
 0x108   : > { %418 = vst.msk [vmem:[%s248_s15] sm:$0xf] %vm417_vm2, %v514_v29  ;;  %v515_v31 = vpack.c.bf16 %v408_v30, %v408_v30 }
 0x10a   : > { %419 = vst.msk [vmem:[%s248_s15 + $0x4] sm:$0xf] %vm417_vm2, %v515_v31 }
 0x10b PF: > { %s15_s18 = sadd.s32 1, %s568_s18  }
 0x10c   : > { %p12_p4 = scmp.ge.s32.totalorder %s15_s18, 4  }
 0x10e   :  { %14 = sbr.rel (!%p12_p4) target bundleno = 1 (0x1), region = 73 }

// kernel: cspdarknet_forward.48
= control target key start
LH: loop header
LB: loop body
LE: loop exit
PB: predicated region body
PF: predicated region fallthrough
CT: control target
= control target key end

     0   :  { %v193_v0 = vmov 0.0   ;;  %vm194_vm0 = vmmov 0   ;;  %s248_s1 = inlined_call_operand.vmem [shape: bf16[128,128], index: 1, kind: input, shape index: {}]   ;;  %s249_s0 = inlined_call_operand.vmem [shape: bf16[8,128], index: 0, kind: input, shape index: {}]   ;;  %s250_s2 = inlined_call_operand.vmem [shape: f32[1,128], index: 2, kind: input, shape index: {}]   ;;  %s251_s3 = inlined_call_operand.vmem [shape: bf16[8,128], index: 3, kind: output, shape index: {}]  }
   0x1   :  { %159 = vmatprep.subr.bf16.mxu0 %v193_v0  ;;  %v181_v1 = vld [vmem:[%s248_s1] sm:$0xff]   ;;  %175 = vmatprep.mubr.msk.bf16.mxu0 %vm194_vm0, %v193_v0  ;;  %v182_v2 = vld [vmem:[%s248_s1 + $0x8] sm:$0xff]   ;;  %v183_v3 = vld [vmem:[%s248_s1 + $0x10] sm:$0xff]  }
   0x2   :  { %160 = vmatpush3.bf16.msra.mxu0 %v181_v1  ;;  %v184_v4 = vld [vmem:[%s248_s1 + $0x18] sm:$0xff]   ;;  %v185_v5 = vld [vmem:[%s248_s1 + $0x20] sm:$0xff]   ;;  %v186_v6 = vld [vmem:[%s248_s1 + $0x28] sm:$0xff]  }
   0x3   :  { %161 = vmatprep.subr.bf16.mxu0 %v193_v0  ;;  %v187_v7 = vld [vmem:[%s248_s1 + $0x30] sm:$0xff]   ;;  %v188_v8 = vld [vmem:[%s248_s1 + $0x38] sm:$0xff]   ;;  %v15_v9 = vld [vmem:[%s249_s0] sm:$0xf] }
   0x4   :  { %v140_v10 = vld [vmem:[%s250_s2] ss:$0 sm:$0xff] }
   0x6   :  { %162 = vmatpush3.bf16.msra.mxu0 %v182_v2 }
   0x7   :  { %163 = vmatprep.subr.bf16.mxu0 %v193_v0 }
   0xa   :  { %164 = vmatpush3.bf16.msra.mxu0 %v183_v3 }
   0xb   :  { %165 = vmatprep.subr.bf16.mxu0 %v193_v0 }
   0xe   :  { %166 = vmatpush3.bf16.msra.mxu0 %v184_v4 }
   0xf   :  { %167 = vmatprep.subr.bf16.mxu0 %v193_v0 }
  0x12   :  { %168 = vmatpush3.bf16.msra.mxu0 %v185_v5 }
  0x13   :  { %169 = vmatprep.subr.bf16.mxu0 %v193_v0 }
  0x16   :  { %170 = vmatpush3.bf16.msra.mxu0 %v186_v6 }
  0x17   :  { %171 = vmatprep.subr.bf16.mxu0 %v193_v0 }
  0x1a   :  { %172 = vmatpush3.bf16.msra.mxu0 %v187_v7 }
  0x1b   :  { %173 = vmatprep.subr.bf16.mxu0 %v193_v0 }
  0x1e   :  { %174 = vmatpush3.bf16.msra.mxu0 %v188_v8 }
  0x21   :  { %176 = vmatmul.mubr.bf16.vlgmr.msra.gmra.mrb[0].mxu0 %v15_v9 }
  0xf4   :  { %v121_v11 = vpop.f32.mrb[0].mxu0 }
  0xf5   :  { %v122_v12 = vadd.f32 %v140_v10, %v121_v11  ;;  %v177_v13 = vpop.f32.mrb[1].mxu0 }
  0xf6   :  { %v124_v14 = vpop.f32.mrb[2].mxu0 }
  0xf7   :  { %v149_v15 = vmul.f32 -1.442695, %v122_v12  ;;  %v178_v16 = vpop.f32.mrb[3].mxu0 }
  0xf9   :  { %189 = vpow2.f32 %v149_v15 }
 0x103   :  { %v190_v17 = vpop.eup %189 }
 0x104   :  { %v130_v18 = vadd.f32 1.0, %v190_v17 }
 0x106   :  { %191 = vrcp.f32 %v130_v18 }
 0x110   :  { %v192_v19 = vpop.eup %191 }
 0x111   :  { %v133_v20 = vmul.f32 %v192_v19, %v122_v12 }
 0x113   :  { %v134_v21 = vpack.c.bf16 %v133_v20, %v133_v20 }
 0x115   :  { %135 = vst [vmem:[%s251_s3] sm:$0xf] %v134_v21 }

// kernel: cspdarknet_forward.49
= control target key start
LH: loop header
LB: loop body
LE: loop exit
PB: predicated region body
PF: predicated region fallthrough
CT: control target
= control target key end

     0   :  { %v147_v0 = vmov 0.0   ;;  %vm148_vm0 = vmmov 0   ;;  %vm55_vm1 = vcmask 523264   ;;  %vm107_vm2 = vcmask 519168   ;;  %s190_s1 = inlined_call_operand.vmem [shape: bf16[64,64], index: 1, kind: input, shape index: {}]   ;;  %s191_s0 = inlined_call_operand.vmem [shape: bf16[8,64], index: 0, kind: input, shape index: {}]   ;;  %s192_s2 = inlined_call_operand.vmem [shape: f32[1,64], index: 2, kind: input, shape index: {}]   ;;  %s193_s3 = inlined_call_operand.vmem [shape: bf16[8,64], index: 3, kind: output, shape index: {}]  }
   0x1   :  { %125 = vmatprep.subr.bf16.mxu0 %v147_v0  ;;  %v139_v1 = vld [vmem:[%s190_s1] sm:$0xff]   ;;  %133 = vmatprep.mubr.msk.bf16.mxu0 %vm148_vm0, %v147_v0  ;;  %v140_v2 = vld [vmem:[%s190_s1 + $0x8] sm:$0xff]   ;;  %v141_v3 = vld [vmem:[%s190_s1 + $0x10] sm:$0xff]  }
   0x2   :  { %126 = vmatpush3.bf16.msra.mxu0 %v139_v1  ;;  %v142_v4 = vld [vmem:[%s190_s1 + $0x18] sm:$0xff]   ;;  %v15_v5 = vld [vmem:[%s191_s0] sm:$0xf] }
   0x3   :  { %127 = vmatprep.subr.bf16.mxu0 %v147_v0  ;;  %v113_v6 = vld [vmem:[%s192_s2] ss:$0 sm:$0xff] }
   0x6   :  { %128 = vmatpush3.bf16.msra.mxu0 %v140_v2 }
   0x7   :  { %129 = vmatprep.subr.bf16.mxu0 %v147_v0 }
   0xa   :  { %130 = vmatpush3.bf16.msra.mxu0 %v141_v3 }
   0xb   :  { %131 = vmatprep.subr.bf16.mxu0 %v147_v0 }
   0xe   :  { %132 = vmatpush3.bf16.msra.mxu0 %v142_v4 }
  0x11   :  { %134 = vmatmul.mubr.msk.bf16.vlgmr.msra.gmra.mrb[0].mxu0 %vm55_vm1, %v15_v5 }
  0xe4   :  { %v93_v7 = vpop.f32.mrb[0].mxu0 }
  0xe5   :  { %v94_v8 = vadd.f32 %v113_v6, %v93_v7  ;;  %v135_v9 = vpop.f32.mrb[1].mxu0 }
  0xe6   :  { %v96_v10 = vpop.f32.mrb[2].mxu0 }
  0xe7   :  { %v119_v11 = vmul.f32 -1.442695, %v94_v8  ;;  %v136_v12 = vpop.f32.mrb[3].mxu0 }
  0xe9   :  { %143 = vpow2.f32 %v119_v11 }
  0xf3   :  { %v144_v13 = vpop.eup %143 }
  0xf4   :  { %v102_v14 = vadd.f32 1.0, %v144_v13 }
  0xf6   :  { %145 = vrcp.f32 %v102_v14 }
 0x100   :  { %v146_v15 = vpop.eup %145 }
 0x101   :  { %v105_v16 = vmul.f32 %v146_v15, %v94_v8 }
 0x103   :  { %v106_v17 = vpack.c.bf16 %v105_v16, %v105_v16 }
 0x105   :  { %108 = vst.msk [vmem:[%s193_s3] sm:$0xf] %vm107_vm2, %v106_v17 }

// kernel: cspdarknet_forward.47
= control target key start
LH: loop header
LB: loop body
LE: loop exit
PB: predicated region body
PF: predicated region fallthrough
CT: control target
= control target key end

     0   :  { %v619_v35 = vmov 0.0   ;;  %vm620_vm0 = vmmov 0   ;;  %vm330_vm1 = vcmask 523264   ;;  %s764_s1 = inlined_call_operand.vmem [shape: bf16[576,128], index: 1, kind: input, shape index: {}]   ;;  %s765_s0 = inlined_call_operand.vmem [shape: bf16[8,576], index: 0, kind: input, shape index: {}]   ;;  %s766_s2 = inlined_call_operand.vmem [shape: f32[1,128], index: 2, kind: input, shape index: {}]   ;;  %s767_s3 = inlined_call_operand.vmem [shape: bf16[8,128], index: 3, kind: output, shape index: {}]  }
   0x1   :  { %v574_v0 = vld [vmem:[%s764_s1 + $0x40] sm:$0xff]   ;;  %v578_v4 = vld [vmem:[%s764_s1 + $0x48] sm:$0xff]   ;;  %v582_v8 = vld [vmem:[%s764_s1 + $0x50] sm:$0xff]  }
   0x2   :  { %v575_v1 = vld [vmem:[%s764_s1] sm:$0xff]   ;;  %511 = vmatprep.subr.bf16.mxu0 %v574_v0  ;;  %v579_v5 = vld [vmem:[%s764_s1 + $0x8] sm:$0xff]   ;;  %v583_v9 = vld [vmem:[%s764_s1 + $0x10] sm:$0xff]  }
   0x3   :  { %v576_v2 = vld [vmem:[%s764_s1 + $0xc0] sm:$0xff]   ;;  %512 = vmatpush3.bf16.msra.mxu0 %v575_v1  ;;  %v580_v6 = vld [vmem:[%s764_s1 + $0xc8] sm:$0xff]   ;;  %v584_v10 = vld [vmem:[%s764_s1 + $0xd0] sm:$0xff]  }
   0x4   :  { %v577_v3 = vld [vmem:[%s764_s1 + $0x80] sm:$0xff]   ;;  %533 = vmatprep.subr.bf16.mxu1 %v576_v2  ;;  %513 = vmatprep.subr.bf16.mxu0 %v578_v4  ;;  %v581_v7 = vld [vmem:[%s764_s1 + $0x88] sm:$0xff]   ;;  %v585_v11 = vld [vmem:[%s764_s1 + $0x90] sm:$0xff]  }
   0x5   :  { %534 = vmatpush3.bf16.msra.mxu1 %v577_v3  ;;  %v586_v12 = vld [vmem:[%s764_s1 + $0x58] sm:$0xff]   ;;  %v590_v16 = vld [vmem:[%s764_s1 + $0x60] sm:$0xff]   ;;  %v594_v20 = vld [vmem:[%s764_s1 + $0x68] sm:$0xff]  }
   0x6   :  { %535 = vmatprep.subr.bf16.mxu1 %v580_v6  ;;  %v587_v13 = vld [vmem:[%s764_s1 + $0x18] sm:$0xff]   ;;  %v591_v17 = vld [vmem:[%s764_s1 + $0x20] sm:$0xff]   ;;  %v595_v21 = vld [vmem:[%s764_s1 + $0x28] sm:$0xff]  }
   0x7   :  { %514 = vmatpush3.bf16.msra.mxu0 %v579_v5  ;;  %v588_v14 = vld [vmem:[%s764_s1 + $0xd8] sm:$0xff]   ;;  %v592_v18 = vld [vmem:[%s764_s1 + $0xe0] sm:$0xff]   ;;  %v596_v22 = vld [vmem:[%s764_s1 + $0xe8] sm:$0xff]  }
   0x8   :  { %515 = vmatprep.subr.bf16.mxu0 %v582_v8  ;;  %v589_v15 = vld [vmem:[%s764_s1 + $0x98] sm:$0xff]   ;;  %v593_v19 = vld [vmem:[%s764_s1 + $0xa0] sm:$0xff]   ;;  %v597_v23 = vld [vmem:[%s764_s1 + $0xa8] sm:$0xff]  }
   0x9   :  { %536 = vmatpush3.bf16.msra.mxu1 %v581_v7  ;;  %v598_v24 = vld [vmem:[%s764_s1 + $0x70] sm:$0xff]   ;;  %v602_v28 = vld [vmem:[%s764_s1 + $0x78] sm:$0xff]   ;;  %v15_v31 = vld [vmem:[%s765_s0] sm:$0xff] }
   0xa   :  { %537 = vmatprep.subr.bf16.mxu1 %v584_v10  ;;  %v599_v25 = vld [vmem:[%s764_s1 + $0x30] sm:$0xff]   ;;  %v603_v29 = vld [vmem:[%s764_s1 + $0x38] sm:$0xff]   ;;  %v468_v32 = vcombine.low %v15_v31, %v15_v31  ;;  %v469_v33 = vcombine.high %v15_v31, %v15_v31  ;;  %v16_v36 = vld [vmem:[%s765_s0 + $0x8] sm:$0xff] }
   0xb   :  { %516 = vmatpush3.bf16.msra.mxu0 %v583_v9  ;;  %v600_v26 = vld [vmem:[%s764_s1 + $0xf0] sm:$0xff]   ;;  %v604_v30 = vld [vmem:[%s764_s1 + $0xf8] sm:$0xff]   ;;  %v470_v37 = vcombine.low %v16_v36, %v16_v36  ;;  %v471_v38 = vcombine.high %v16_v36, %v16_v36  ;;  %v611_v39 = vld [vmem:[%s764_s1 + $0x100] sm:$0xff]  }
   0xc   :  { %517 = vmatprep.subr.bf16.mxu0 %v586_v12  ;;  %v601_v27 = vld [vmem:[%s764_s1 + $0xb0] sm:$0xff]   ;;  %v608_v34 = vld [vmem:[%s764_s1 + $0xb8] sm:$0xff]   ;;  %366 = vmatprep.mubr.bf16.mxu0 %v469_v33  ;;  %v612_v40 = vld [vmem:[%s764_s1 + $0x108] sm:$0xff]  }
   0xd   :  { %538 = vmatpush3.bf16.msra.mxu1 %v585_v11  ;;  %406 = vmatprep.mubr.bf16.mxu1 %v471_v38  ;;  %v613_v41 = vld [vmem:[%s764_s1 + $0x110] sm:$0xff]   ;;  %v614_v42 = vld [vmem:[%s764_s1 + $0x118] sm:$0xff]   ;;  %v467_v45 = vld [vmem:[%s766_s2] ss:$0 sm:$0xff] }
   0xe   :  { %539 = vmatprep.subr.bf16.mxu1 %v588_v14  ;;  %v607_v43 = vld [vmem:[%s765_s0 + $0x10] ss:$0 sps:$4 sm:$0xff]  }
   0xf   :  { %518 = vmatpush3.bf16.msra.mxu0 %v587_v13 }
  0x10   :  { %519 = vmatprep.subr.bf16.mxu0 %v590_v16 }
  0x11   :  { %540 = vmatpush3.bf16.msra.mxu1 %v589_v15 }
  0x12   :  { %541 = vmatprep.subr.bf16.mxu1 %v592_v18 }
  0x13   :  { %520 = vmatpush3.bf16.msra.mxu0 %v591_v17 }
  0x14   :  { %521 = vmatprep.subr.bf16.mxu0 %v594_v20 }
  0x15   :  { %542 = vmatpush3.bf16.msra.mxu1 %v593_v19 }
  0x16   :  { %543 = vmatprep.subr.bf16.mxu1 %v596_v22 }
  0x17   :  { %522 = vmatpush3.bf16.msra.mxu0 %v595_v21 }
  0x18   :  { %523 = vmatprep.subr.bf16.mxu0 %v598_v24 }
  0x19   :  { %544 = vmatpush3.bf16.msra.mxu1 %v597_v23 }
  0x1a   :  { %545 = vmatprep.subr.bf16.mxu1 %v600_v26 }
  0x1b   :  { %524 = vmatpush3.bf16.msra.mxu0 %v599_v25 }
  0x1c   :  { %525 = vmatprep.subr.bf16.mxu0 %v602_v28 }
  0x1d   :  { %546 = vmatpush3.bf16.msra.mxu1 %v601_v27 }
  0x1e   :  { %547 = vmatprep.subr.bf16.mxu1 %v604_v30 }
  0x1f   :  { %526 = vmatpush3.bf16.msra.mxu0 %v603_v29 }
  0x20   :  { %560 = vmatprep.subr.bf16.mxu0 %v619_v35 }
  0x21   :  { %548 = vmatpush3.bf16.msra.mxu1 %v608_v34 }
  0x22   :  { %367 = vmatmul.mubr.bf16.vlgmr.msra.gmra.mrb[0].mxu0 %v468_v32 }
  0x23   :  { %561 = vmatpush3.bf16.msra.mxu0 %v611_v39  ;;  %568 = vmatprep.mubr.msk.bf16.mxu0 %vm620_vm0, %v619_v35 }
  0x24   :  { %407 = vmatmul.mubr.bf16.vlgmr.msra.gmra.mrb[0].mxu1 %v470_v37  ;;  %562 = vmatprep.subr.bf16.mxu0 %v619_v35 }
  0x27   :  { %563 = vmatpush3.bf16.msra.mxu0 %v612_v40 }
  0x28   :  { %564 = vmatprep.subr.bf16.mxu0 %v619_v35 }
  0x2b   :  { %565 = vmatpush3.bf16.msra.mxu0 %v613_v41 }
  0x2c   :  { %566 = vmatprep.subr.bf16.mxu0 %v619_v35 }
  0x2f   :  { %567 = vmatpush3.bf16.msra.mxu0 %v614_v42 }
  0x32   :  { %569 = vmatmul.mubr.msk.bf16.vlgmr.msra.gmra.mrb[4].mxu0 %vm330_vm1, %v607_v43 }
  0xf5   :  { %v527_v44 = vpop.f32.mrb[0].mxu0 }
  0xf6   :  { %v528_v46 = vpop.f32.mrb[1].mxu0 }
  0xf7   :  { %v529_v47 = vadd.f32 %v528_v46, %v527_v44  ;;  %v530_v48 = vpop.f32.mrb[2].mxu0  ;;  %v549_v49 = vpop.f32.mrb[0].mxu1 }
  0xf8   :  { %v531_v50 = vpop.f32.mrb[3].mxu0  ;;  %v550_v51 = vpop.f32.mrb[1].mxu1 }
  0xf9   :  { %v369_v52 = vadd.f32 %v529_v47, %v467_v45  ;;  %v551_v53 = vadd.f32 %v550_v51, %v549_v49  ;;  %v552_v54 = vpop.f32.mrb[2].mxu1 }
  0xfa   :  { %v553_v55 = vpop.f32.mrb[3].mxu1 }
  0xfb   :  { %v409_v56 = vadd.f32 %v551_v53, %v369_v52 }
 0x105   :  { %v448_v57 = vpop.f32.mrb[4].mxu0 }
 0x106   :  { %v449_v58 = vadd.f32 %v448_v57, %v409_v56  ;;  %v570_v59 = vpop.f32.mrb[5].mxu0 }
 0x107   :  { %v451_v60 = vpop.f32.mrb[6].mxu0 }
 0x108   :  { %v510_v61 = vmul.f32 -1.442695, %v449_v58  ;;  %v571_v62 = vpop.f32.mrb[7].mxu0 }
 0x10a   :  { %615 = vpow2.f32 %v510_v61 }
 0x114   :  { %v616_v63 = vpop.eup %615 }
 0x115   :  { %v457_v0 = vadd.f32 1.0, %v616_v63 }
 0x117   :  { %617 = vrcp.f32 %v457_v0 }
 0x121   :  { %v618_v1 = vpop.eup %617 }
 0x122   :  { %v460_v2 = vmul.f32 %v618_v1, %v449_v58 }
 0x124   :  { %v461_v3 = vpack.c.bf16 %v460_v2, %v460_v2 }
 0x126   :  { %462 = vst [vmem:[%s767_s3] sm:$0xf] %v461_v3 }

// kernel: cspdarknet_forward.50
= control target key start
LH: loop header
LB: loop body
LE: loop exit
PB: predicated region body
PF: predicated region fallthrough
CT: control target
= control target key end

     0   :  { %v626_v35 = vmov 0.0   ;;  %vm627_vm0 = vmmov 0   ;;  %vm333_vm1 = vcmask 523264   ;;  %vm468_vm2 = vcmask 519168   ;;  %s779_s1 = inlined_call_operand.vmem [shape: bf16[576,64], index: 1, kind: input, shape index: {}]   ;;  %s780_s0 = inlined_call_operand.vmem [shape: bf16[8,576], index: 0, kind: input, shape index: {}]   ;;  %s781_s2 = inlined_call_operand.vmem [shape: f32[1,64], index: 2, kind: input, shape index: {}]   ;;  %s782_s3 = inlined_call_operand.vmem [shape: bf16[8,64], index: 3, kind: input, shape index: {}]   ;;  %s783_s4 = inlined_call_operand.vmem [shape: bf16[8,64], index: 4, kind: output, shape index: {}]  }
   0x1   :  { %v581_v0 = vld [vmem:[%s779_s1 + $0x40] sm:$0xff]   ;;  %v585_v4 = vld [vmem:[%s779_s1 + $0x48] sm:$0xff]   ;;  %v589_v8 = vld [vmem:[%s779_s1 + $0x50] sm:$0xff]  }
   0x2   :  { %v582_v1 = vld [vmem:[%s779_s1] sm:$0xff]   ;;  %518 = vmatprep.subr.bf16.mxu0 %v581_v0  ;;  %v586_v5 = vld [vmem:[%s779_s1 + $0x8] sm:$0xff]   ;;  %v590_v9 = vld [vmem:[%s779_s1 + $0x10] sm:$0xff]  }
   0x3   :  { %v583_v2 = vld [vmem:[%s779_s1 + $0xc0] sm:$0xff]   ;;  %519 = vmatpush3.bf16.msra.mxu0 %v582_v1  ;;  %v587_v6 = vld [vmem:[%s779_s1 + $0xc8] sm:$0xff]   ;;  %v591_v10 = vld [vmem:[%s779_s1 + $0xd0] sm:$0xff]  }
   0x4   :  { %v584_v3 = vld [vmem:[%s779_s1 + $0x80] sm:$0xff]   ;;  %540 = vmatprep.subr.bf16.mxu1 %v583_v2  ;;  %520 = vmatprep.subr.bf16.mxu0 %v585_v4  ;;  %v588_v7 = vld [vmem:[%s779_s1 + $0x88] sm:$0xff]   ;;  %v592_v11 = vld [vmem:[%s779_s1 + $0x90] sm:$0xff]  }
   0x5   :  { %541 = vmatpush3.bf16.msra.mxu1 %v584_v3  ;;  %v593_v12 = vld [vmem:[%s779_s1 + $0x58] sm:$0xff]   ;;  %v597_v16 = vld [vmem:[%s779_s1 + $0x60] sm:$0xff]   ;;  %v601_v20 = vld [vmem:[%s779_s1 + $0x68] sm:$0xff]  }
   0x6   :  { %542 = vmatprep.subr.bf16.mxu1 %v587_v6  ;;  %v594_v13 = vld [vmem:[%s779_s1 + $0x18] sm:$0xff]   ;;  %v598_v17 = vld [vmem:[%s779_s1 + $0x20] sm:$0xff]   ;;  %v602_v21 = vld [vmem:[%s779_s1 + $0x28] sm:$0xff]  }
   0x7   :  { %521 = vmatpush3.bf16.msra.mxu0 %v586_v5  ;;  %v595_v14 = vld [vmem:[%s779_s1 + $0xd8] sm:$0xff]   ;;  %v599_v18 = vld [vmem:[%s779_s1 + $0xe0] sm:$0xff]   ;;  %v603_v22 = vld [vmem:[%s779_s1 + $0xe8] sm:$0xff]  }
   0x8   :  { %522 = vmatprep.subr.bf16.mxu0 %v589_v8  ;;  %v596_v15 = vld [vmem:[%s779_s1 + $0x98] sm:$0xff]   ;;  %v600_v19 = vld [vmem:[%s779_s1 + $0xa0] sm:$0xff]   ;;  %v604_v23 = vld [vmem:[%s779_s1 + $0xa8] sm:$0xff]  }
   0x9   :  { %543 = vmatpush3.bf16.msra.mxu1 %v588_v7  ;;  %v605_v24 = vld [vmem:[%s779_s1 + $0x70] sm:$0xff]   ;;  %v609_v28 = vld [vmem:[%s779_s1 + $0x78] sm:$0xff]   ;;  %v18_v31 = vld [vmem:[%s780_s0] sm:$0xff] }
   0xa   :  { %544 = vmatprep.subr.bf16.mxu1 %v591_v10  ;;  %v606_v25 = vld [vmem:[%s779_s1 + $0x30] sm:$0xff]   ;;  %v610_v29 = vld [vmem:[%s779_s1 + $0x38] sm:$0xff]   ;;  %v475_v32 = vcombine.low %v18_v31, %v18_v31  ;;  %v476_v33 = vcombine.high %v18_v31, %v18_v31  ;;  %v19_v36 = vld [vmem:[%s780_s0 + $0x8] sm:$0xff] }
   0xb   :  { %523 = vmatpush3.bf16.msra.mxu0 %v590_v9  ;;  %v607_v26 = vld [vmem:[%s779_s1 + $0xf0] sm:$0xff]   ;;  %v611_v30 = vld [vmem:[%s779_s1 + $0xf8] sm:$0xff]   ;;  %v477_v37 = vcombine.low %v19_v36, %v19_v36  ;;  %v478_v38 = vcombine.high %v19_v36, %v19_v36  ;;  %v618_v39 = vld [vmem:[%s779_s1 + $0x100] sm:$0xff]  }
   0xc   :  { %524 = vmatprep.subr.bf16.mxu0 %v593_v12  ;;  %v608_v27 = vld [vmem:[%s779_s1 + $0xb0] sm:$0xff]   ;;  %v615_v34 = vld [vmem:[%s779_s1 + $0xb8] sm:$0xff]   ;;  %369 = vmatprep.mubr.bf16.mxu0 %v476_v33  ;;  %v619_v40 = vld [vmem:[%s779_s1 + $0x108] sm:$0xff]  }
   0xd   :  { %545 = vmatpush3.bf16.msra.mxu1 %v592_v11  ;;  %409 = vmatprep.mubr.bf16.mxu1 %v478_v38  ;;  %v620_v41 = vld [vmem:[%s779_s1 + $0x110] sm:$0xff]   ;;  %v621_v42 = vld [vmem:[%s779_s1 + $0x118] sm:$0xff]   ;;  %v474_v45 = vld [vmem:[%s781_s2] ss:$0 sm:$0xff] }
   0xe   :  { %546 = vmatprep.subr.bf16.mxu1 %v595_v14  ;;  %v614_v43 = vld [vmem:[%s780_s0 + $0x10] ss:$0 sps:$4 sm:$0xff]   ;;  %v464_v1 = vld [vmem:[%s782_s3] sm:$0xf] }
   0xf   :  { %525 = vmatpush3.bf16.msra.mxu0 %v594_v13  ;;  %v465_v2 = vunpack.c.l.bf16 %v464_v1 }
  0x10   :  { %526 = vmatprep.subr.bf16.mxu0 %v597_v16 }
  0x11   :  { %547 = vmatpush3.bf16.msra.mxu1 %v596_v15 }
  0x12   :  { %548 = vmatprep.subr.bf16.mxu1 %v599_v18 }
  0x13   :  { %527 = vmatpush3.bf16.msra.mxu0 %v598_v17 }
  0x14   :  { %528 = vmatprep.subr.bf16.mxu0 %v601_v20 }
  0x15   :  { %549 = vmatpush3.bf16.msra.mxu1 %v600_v19 }
  0x16   :  { %550 = vmatprep.subr.bf16.mxu1 %v603_v22 }
  0x17   :  { %529 = vmatpush3.bf16.msra.mxu0 %v602_v21 }
  0x18   :  { %530 = vmatprep.subr.bf16.mxu0 %v605_v24 }
  0x19   :  { %551 = vmatpush3.bf16.msra.mxu1 %v604_v23 }
  0x1a   :  { %552 = vmatprep.subr.bf16.mxu1 %v607_v26 }
  0x1b   :  { %531 = vmatpush3.bf16.msra.mxu0 %v606_v25 }
  0x1c   :  { %532 = vmatprep.subr.bf16.mxu0 %v609_v28 }
  0x1d   :  { %553 = vmatpush3.bf16.msra.mxu1 %v608_v27 }
  0x1e   :  { %554 = vmatprep.subr.bf16.mxu1 %v611_v30 }
  0x1f   :  { %533 = vmatpush3.bf16.msra.mxu0 %v610_v29 }
  0x20   :  { %567 = vmatprep.subr.bf16.mxu0 %v626_v35 }
  0x21   :  { %555 = vmatpush3.bf16.msra.mxu1 %v615_v34 }
  0x22   :  { %370 = vmatmul.mubr.bf16.vlgmr.msra.gmra.mrb[0].mxu0 %v475_v32 }
  0x23   :  { %568 = vmatpush3.bf16.msra.mxu0 %v618_v39  ;;  %575 = vmatprep.mubr.msk.bf16.mxu0 %vm627_vm0, %v626_v35 }
  0x24   :  { %410 = vmatmul.mubr.bf16.vlgmr.msra.gmra.mrb[0].mxu1 %v477_v37  ;;  %569 = vmatprep.subr.bf16.mxu0 %v626_v35 }
  0x27   :  { %570 = vmatpush3.bf16.msra.mxu0 %v619_v40 }
  0x28   :  { %571 = vmatprep.subr.bf16.mxu0 %v626_v35 }
  0x2b   :  { %572 = vmatpush3.bf16.msra.mxu0 %v620_v41 }
  0x2c   :  { %573 = vmatprep.subr.bf16.mxu0 %v626_v35 }
  0x2f   :  { %574 = vmatpush3.bf16.msra.mxu0 %v621_v42 }
  0x32   :  { %576 = vmatmul.mubr.msk.bf16.vlgmr.msra.gmra.mrb[4].mxu0 %vm333_vm1, %v614_v43 }
  0xf5   :  { %v534_v44 = vpop.f32.mrb[0].mxu0 }
  0xf6   :  { %v535_v46 = vpop.f32.mrb[1].mxu0 }
  0xf7   :  { %v536_v47 = vadd.f32 %v535_v46, %v534_v44  ;;  %v537_v48 = vpop.f32.mrb[2].mxu0  ;;  %v556_v49 = vpop.f32.mrb[0].mxu1 }
  0xf8   :  { %v538_v50 = vpop.f32.mrb[3].mxu0  ;;  %v557_v51 = vpop.f32.mrb[1].mxu1 }
  0xf9   :  { %v372_v52 = vadd.f32 %v536_v47, %v474_v45  ;;  %v558_v53 = vadd.f32 %v557_v51, %v556_v49  ;;  %v559_v54 = vpop.f32.mrb[2].mxu1 }
  0xfa   :  { %v560_v55 = vpop.f32.mrb[3].mxu1 }
  0xfb   :  { %v412_v56 = vadd.f32 %v558_v53, %v372_v52 }
 0x105   :  { %v451_v57 = vpop.f32.mrb[4].mxu0 }
 0x106   :  { %v452_v58 = vadd.f32 %v451_v57, %v412_v56  ;;  %v577_v59 = vpop.f32.mrb[5].mxu0 }
 0x107   :  { %v454_v60 = vpop.f32.mrb[6].mxu0 }
 0x108   :  { %v517_v61 = vmul.f32 -1.442695, %v452_v58  ;;  %v578_v62 = vpop.f32.mrb[7].mxu0 }
 0x10a   :  { %622 = vpow2.f32 %v517_v61 }
 0x114   :  { %v623_v63 = vpop.eup %622 }
 0x115   :  { %v460_v0 = vadd.f32 1.0, %v623_v63 }
 0x117   :  { %624 = vrcp.f32 %v460_v0 }
 0x121   :  { %v625_v3 = vpop.eup %624 }
 0x122   :  { %v463_v4 = vmul.f32 %v625_v3, %v452_v58 }
 0x124   :  { %v466_v5 = vadd.f32 %v465_v2, %v463_v4 }
 0x126   :  { %v467_v6 = vpack.c.bf16 %v466_v5, %v466_v5 }
 0x128   :  { %469 = vst.msk [vmem:[%s783_s4] sm:$0xf] %vm468_vm2, %v467_v6 }

// kernel: cspdarknet_forward.55
= control target key start
LH: loop header
LB: loop body
LE: loop exit
PB: predicated region body
PF: predicated region fallthrough
CT: control target
= control target key end

     0   :  { %v255_v0 = vmov 0.0   ;;  %vm256_vm0 = vmmov 0   ;;  %vm63_vm1 = vcmask 523264   ;;  %s323_s3 = inlined_call_operand.vmem [shape: bf16[64,128], index: 3, kind: input, shape index: {}]   ;;  %s324_s2 = inlined_call_operand.vmem [shape: bf16[64,128], index: 2, kind: input, shape index: {}]   ;;  %s325_s1 = inlined_call_operand.vmem [shape: bf16[8,64], index: 1, kind: input, shape index: {}]   ;;  %s326_s0 = inlined_call_operand.vmem [shape: bf16[8,64], index: 0, kind: input, shape index: {}]   ;;  %s327_s4 = inlined_call_operand.vmem [shape: f32[1,128], index: 4, kind: input, shape index: {}]   ;;  %s328_s5 = inlined_call_operand.vmem [shape: bf16[8,128], index: 5, kind: output, shape index: {}]  }
   0x1   :  { %217 = vmatprep.subr.bf16.mxu0 %v255_v0  ;;  %229 = vmatprep.subr.bf16.mxu1 %v255_v0  ;;  %v243_v1 = vld [vmem:[%s323_s3] sm:$0xff]   ;;  %v245_v3 = vld [vmem:[%s323_s3 + $0x8] sm:$0xff]   ;;  %v247_v5 = vld [vmem:[%s323_s3 + $0x10] sm:$0xff]  }
   0x2   :  { %v244_v2 = vld [vmem:[%s324_s2] sm:$0xff]   ;;  %225 = vmatprep.mubr.msk.bf16.mxu0 %vm256_vm0, %v255_v0  ;;  %237 = vmatprep.mubr.msk.bf16.mxu1 %vm256_vm0, %v255_v0  ;;  %v246_v4 = vld [vmem:[%s324_s2 + $0x8] sm:$0xff]   ;;  %v248_v6 = vld [vmem:[%s324_s2 + $0x10] sm:$0xff]  }
   0x3   :  { %218 = vmatpush3.bf16.msra.mxu0 %v243_v1  ;;  %230 = vmatpush3.bf16.msra.mxu1 %v244_v2  ;;  %v249_v7 = vld [vmem:[%s323_s3 + $0x18] sm:$0xff]   ;;  %v30_v9 = vld [vmem:[%s325_s1] sm:$0xf] }
   0x4   :  { %219 = vmatprep.subr.bf16.mxu0 %v255_v0  ;;  %231 = vmatprep.subr.bf16.mxu1 %v255_v0  ;;  %v250_v8 = vld [vmem:[%s324_s2 + $0x18] sm:$0xff]   ;;  %v21_v10 = vld [vmem:[%s326_s0] sm:$0xf] }
   0x5   :  { %v205_v13 = vld [vmem:[%s327_s4] ss:$0 sm:$0xff] }
   0x7   :  { %220 = vmatpush3.bf16.msra.mxu0 %v245_v3  ;;  %232 = vmatpush3.bf16.msra.mxu1 %v246_v4 }
   0x8   :  { %221 = vmatprep.subr.bf16.mxu0 %v255_v0  ;;  %233 = vmatprep.subr.bf16.mxu1 %v255_v0 }
   0xb   :  { %222 = vmatpush3.bf16.msra.mxu0 %v247_v5  ;;  %234 = vmatpush3.bf16.msra.mxu1 %v248_v6 }
   0xc   :  { %223 = vmatprep.subr.bf16.mxu0 %v255_v0  ;;  %235 = vmatprep.subr.bf16.mxu1 %v255_v0 }
   0xf   :  { %224 = vmatpush3.bf16.msra.mxu0 %v249_v7  ;;  %236 = vmatpush3.bf16.msra.mxu1 %v250_v8 }
  0x12   :  { %226 = vmatmul.mubr.msk.bf16.vlgmr.msra.gmra.mrb[0].mxu0 %vm63_vm1, %v30_v9  ;;  %238 = vmatmul.mubr.msk.bf16.vlgmr.msra.gmra.mrb[0].mxu1 %vm63_vm1, %v21_v10 }
  0xe5   :  { %v101_v11 = vpop.f32.mrb[0].mxu0  ;;  %v168_v12 = vpop.f32.mrb[0].mxu1 }
  0xe6   :  { %v227_v14 = vpop.f32.mrb[1].mxu0  ;;  %v169_v15 = vadd.f32 %v168_v12, %v101_v11  ;;  %v239_v16 = vpop.f32.mrb[1].mxu1 }
  0xe7   :  { %v104_v17 = vpop.f32.mrb[2].mxu0  ;;  %v171_v18 = vpop.f32.mrb[2].mxu1 }
  0xe8   :  { %v228_v19 = vpop.f32.mrb[3].mxu0  ;;  %v181_v20 = vadd.f32 %v205_v13, %v169_v15  ;;  %v240_v21 = vpop.f32.mrb[3].mxu1 }
  0xea   :  { %v206_v22 = vmul.f32 -1.442695, %v181_v20 }
  0xec   :  { %251 = vpow2.f32 %v206_v22 }
  0xf6   :  { %v252_v23 = vpop.eup %251 }
  0xf7   :  { %v185_v24 = vadd.f32 1.0, %v252_v23 }
  0xf9   :  { %253 = vrcp.f32 %v185_v24 }
 0x103   :  { %v254_v25 = vpop.eup %253 }
 0x104   :  { %v188_v26 = vmul.f32 %v254_v25, %v181_v20 }
 0x106   :  { %v189_v27 = vpack.c.bf16 %v188_v26, %v188_v26 }
 0x108   :  { %190 = vst [vmem:[%s328_s5] sm:$0xf] %v189_v27 }

// kernel: cspdarknet_forward.57
= control target key start
LH: loop header
LB: loop body
LE: loop exit
PB: predicated region body
PF: predicated region fallthrough
CT: control target
= control target key end

     0   :  { %s352_s1 = inlined_call_operand.vmem [shape: bf16[256,128], index: 1, kind: input, shape index: {}]   ;;  %s353_s0 = inlined_call_operand.vmem [shape: bf16[8,256], index: 0, kind: input, shape index: {}]   ;;  %s354_s2 = inlined_call_operand.vmem [shape: f32[1,128], index: 2, kind: input, shape index: {}]   ;;  %s355_s3 = inlined_call_operand.vmem [shape: bf16[8,128], index: 3, kind: output, shape index: {}]  }
   0x1   :  { %v253_v0 = vld [vmem:[%s352_s1 + $0x40] sm:$0xff]   ;;  %v255_v2 = vld [vmem:[%s352_s1 + $0x48] sm:$0xff]   ;;  %v257_v4 = vld [vmem:[%s352_s1 + $0x50] sm:$0xff]  }
   0x2   :  { %v254_v1 = vld [vmem:[%s352_s1] sm:$0xff]   ;;  %231 = vmatprep.subr.bf16.mxu0 %v253_v0  ;;  %v256_v3 = vld [vmem:[%s352_s1 + $0x8] sm:$0xff]   ;;  %v258_v5 = vld [vmem:[%s352_s1 + $0x10] sm:$0xff]  }
   0x3   :  { %232 = vmatpush3.bf16.msra.mxu0 %v254_v1  ;;  %v259_v6 = vld [vmem:[%s352_s1 + $0x58] sm:$0xff]   ;;  %v261_v8 = vld [vmem:[%s352_s1 + $0x60] sm:$0xff]   ;;  %v263_v10 = vld [vmem:[%s352_s1 + $0x68] sm:$0xff]  }
   0x4   :  { %233 = vmatprep.subr.bf16.mxu0 %v255_v2  ;;  %v260_v7 = vld [vmem:[%s352_s1 + $0x18] sm:$0xff]   ;;  %v262_v9 = vld [vmem:[%s352_s1 + $0x20] sm:$0xff]   ;;  %v264_v13 = vld [vmem:[%s352_s1 + $0x28] sm:$0xff]  }
   0x5   :  { %v15_v11 = vld [vmem:[%s353_s0] sm:$0xff]  ;;  %v265_v14 = vld [vmem:[%s352_s1 + $0x70] sm:$0xff]   ;;  %v267_v16 = vld [vmem:[%s352_s1 + $0x78] sm:$0xff]  }
   0x6   :  { %v213_v12 = vcombine.high %v15_v11, %v15_v11  ;;  %v266_v15 = vld [vmem:[%s352_s1 + $0x30] sm:$0xff]   ;;  %v268_v17 = vld [vmem:[%s352_s1 + $0x38] sm:$0xff]   ;;  %v212_v18 = vcombine.low %v15_v11, %v15_v11  ;;  %v211_v20 = vld [vmem:[%s354_s2] ss:$0 sm:$0xff] }
   0x7   :  { %234 = vmatpush3.bf16.msra.mxu0 %v256_v3 }
   0x8   :  { %235 = vmatprep.subr.bf16.mxu0 %v257_v4  ;;  %190 = vmatprep.mubr.bf16.mxu0 %v213_v12 }
   0xb   :  { %236 = vmatpush3.bf16.msra.mxu0 %v258_v5 }
   0xc   :  { %237 = vmatprep.subr.bf16.mxu0 %v259_v6 }
   0xf   :  { %238 = vmatpush3.bf16.msra.mxu0 %v260_v7 }
  0x10   :  { %239 = vmatprep.subr.bf16.mxu0 %v261_v8 }
  0x13   :  { %240 = vmatpush3.bf16.msra.mxu0 %v262_v9 }
  0x14   :  { %241 = vmatprep.subr.bf16.mxu0 %v263_v10 }
  0x17   :  { %242 = vmatpush3.bf16.msra.mxu0 %v264_v13 }
  0x18   :  { %243 = vmatprep.subr.bf16.mxu0 %v265_v14 }
  0x1b   :  { %244 = vmatpush3.bf16.msra.mxu0 %v266_v15 }
  0x1c   :  { %245 = vmatprep.subr.bf16.mxu0 %v267_v16 }
  0x1f   :  { %246 = vmatpush3.bf16.msra.mxu0 %v268_v17 }
  0x22   :  { %191 = vmatmul.mubr.bf16.vlgmr.msra.gmra.mrb[0].mxu0 %v212_v18 }
  0xf5   :  { %v247_v19 = vpop.f32.mrb[0].mxu0 }
  0xf6   :  { %v248_v21 = vpop.f32.mrb[1].mxu0 }
  0xf7   :  { %v249_v22 = vadd.f32 %v248_v21, %v247_v19  ;;  %v250_v23 = vpop.f32.mrb[2].mxu0 }
  0xf8   :  { %v251_v24 = vpop.f32.mrb[3].mxu0 }
  0xf9   :  { %v193_v25 = vadd.f32 %v249_v22, %v211_v20 }
  0xfb   :  { %v230_v26 = vmul.f32 -1.442695, %v193_v25 }
  0xfd   :  { %271 = vpow2.f32 %v230_v26 }
 0x107   :  { %v272_v27 = vpop.eup %271 }
 0x108   :  { %v201_v28 = vadd.f32 1.0, %v272_v27 }
 0x10a   :  { %273 = vrcp.f32 %v201_v28 }
 0x114   :  { %v274_v29 = vpop.eup %273 }
 0x115   :  { %v204_v30 = vmul.f32 %v274_v29, %v193_v25 }
 0x117   :  { %v205_v31 = vpack.c.bf16 %v204_v30, %v204_v30 }
 0x119   :  { %206 = vst [vmem:[%s355_s3] sm:$0xf] %v205_v31 }

// kernel: cspdarknet_forward.56
= control target key start
LH: loop header
LB: loop body
LE: loop exit
PB: predicated region body
PF: predicated region fallthrough
CT: control target
= control target key end

     0   :  { %s2053_s1 = inlined_call_operand.vmem [shape: bf16[1152,256], index: 1, kind: input, shape index: {}]   ;;  %s2054_s0 = inlined_call_operand.vmem [shape: bf16[8,1152], index: 0, kind: input, shape index: {}]   ;;  %s2055_s2 = inlined_call_operand.vmem [shape: f32[1,256], index: 2, kind: input, shape index: {}]   ;;  %s2056_s3 = inlined_call_operand.vmem [shape: bf16[8,256], index: 3, kind: output, shape index: {}]  }
   0x1   :  { %v1334_v0 = vld [vmem:[%s2053_s1 + $0x4] ss:$8 sps:$4 sm:$0xff]   ;;  %v1338_v2 = vld [vmem:[%s2053_s1] ss:$8 sps:$4 sm:$0xff]   ;;  %v1340_v4 = vld [vmem:[%s2053_s1 + $0x14] ss:$8 sps:$4 sm:$0xff]  }
   0x2   :  { %v1336_v1 = vld [vmem:[%s2053_s1 + $0x204] ss:$8 sps:$4 sm:$0xff]   ;;  %928 = vmatprep.subr.bf16.mxu1 %v1334_v0  ;;  %v1339_v3 = vld [vmem:[%s2053_s1 + $0x200] ss:$8 sps:$4 sm:$0xff]   ;;  %v1342_v5 = vld [vmem:[%s2053_s1 + $0x214] ss:$8 sps:$4 sm:$0xff]  }
   0x3   :  { %1010 = vmatprep.subr.bf16.mxu0 %v1336_v1  ;;  %929 = vmatpush1.bf16.msra.mxu1 %v1338_v2  ;;  %v1344_v6 = vld [vmem:[%s2053_s1 + $0x10] ss:$8 sps:$4 sm:$0xff]   ;;  %v1346_v8 = vld [vmem:[%s2053_s1 + $0x24] ss:$8 sps:$4 sm:$0xff]   ;;  %v1350_v10 = vld [vmem:[%s2053_s1 + $0x20] ss:$8 sps:$4 sm:$0xff]  }
   0x4   :  { %1011 = vmatpush1.bf16.msra.mxu0 %v1339_v3  ;;  %930 = vmatprep.subr.bf16.mxu1 %v1340_v4  ;;  %v1345_v7 = vld [vmem:[%s2053_s1 + $0x210] ss:$8 sps:$4 sm:$0xff]   ;;  %v1348_v9 = vld [vmem:[%s2053_s1 + $0x224] ss:$8 sps:$4 sm:$0xff]   ;;  %v1351_v11 = vld [vmem:[%s2053_s1 + $0x220] ss:$8 sps:$4 sm:$0xff]  }
   0x5   :  { %1012 = vmatprep.subr.bf16.mxu0 %v1342_v5  ;;  %v1352_v12 = vld [vmem:[%s2053_s1 + $0x34] ss:$8 sps:$4 sm:$0xff]   ;;  %v1356_v14 = vld [vmem:[%s2053_s1 + $0x30] ss:$8 sps:$4 sm:$0xff]   ;;  %v1358_v16 = vld [vmem:[%s2053_s1 + $0x44] ss:$8 sps:$4 sm:$0xff]  }
   0x6   :  { %v1354_v13 = vld [vmem:[%s2053_s1 + $0x234] ss:$8 sps:$4 sm:$0xff]   ;;  %v1357_v15 = vld [vmem:[%s2053_s1 + $0x230] ss:$8 sps:$4 sm:$0xff]   ;;  %v1360_v17 = vld [vmem:[%s2053_s1 + $0x244] ss:$8 sps:$4 sm:$0xff]  }
   0x7   :  { %931 = vmatpush1.bf16.msra.mxu1 %v1344_v6  ;;  %v1362_v18 = vld [vmem:[%s2053_s1 + $0x40] ss:$8 sps:$4 sm:$0xff]   ;;  %v1364_v20 = vld [vmem:[%s2053_s1 + $0x54] ss:$8 sps:$4 sm:$0xff]   ;;  %v1368_v22 = vld [vmem:[%s2053_s1 + $0x50] ss:$8 sps:$4 sm:$0xff]  }
   0x8   :  { %1013 = vmatpush1.bf16.msra.mxu0 %v1345_v7  ;;  %932 = vmatprep.subr.bf16.mxu1 %v1346_v8  ;;  %v1363_v19 = vld [vmem:[%s2053_s1 + $0x240] ss:$8 sps:$4 sm:$0xff]   ;;  %v1366_v21 = vld [vmem:[%s2053_s1 + $0x254] ss:$8 sps:$4 sm:$0xff]   ;;  %v1369_v23 = vld [vmem:[%s2053_s1 + $0x250] ss:$8 sps:$4 sm:$0xff]  }
   0x9   :  { %1014 = vmatprep.subr.bf16.mxu0 %v1348_v9  ;;  %v1370_v24 = vld [vmem:[%s2053_s1 + $0x64] ss:$8 sps:$4 sm:$0xff]   ;;  %v1374_v26 = vld [vmem:[%s2053_s1 + $0x60] ss:$8 sps:$4 sm:$0xff]   ;;  %v1376_v28 = vld [vmem:[%s2053_s1 + $0x74] ss:$8 sps:$4 sm:$0xff]  }
   0xa   :  { %v1372_v25 = vld [vmem:[%s2053_s1 + $0x264] ss:$8 sps:$4 sm:$0xff]   ;;  %v1375_v27 = vld [vmem:[%s2053_s1 + $0x260] ss:$8 sps:$4 sm:$0xff]   ;;  %v1378_v29 = vld [vmem:[%s2053_s1 + $0x274] ss:$8 sps:$4 sm:$0xff]  }
   0xb   :  { %933 = vmatpush1.bf16.msra.mxu1 %v1350_v10  ;;  %v1380_v30 = vld [vmem:[%s2053_s1 + $0x70] ss:$8 sps:$4 sm:$0xff]   ;;  %v1382_v32 = vld [vmem:[%s2053_s1 + $0x84] ss:$8 sps:$4 sm:$0xff]   ;;  %v1386_v34 = vld [vmem:[%s2053_s1 + $0x80] ss:$8 sps:$4 sm:$0xff]  }
   0xc   :  { %1015 = vmatpush1.bf16.msra.mxu0 %v1351_v11  ;;  %934 = vmatprep.subr.bf16.mxu1 %v1352_v12  ;;  %v1381_v31 = vld [vmem:[%s2053_s1 + $0x270] ss:$8 sps:$4 sm:$0xff]   ;;  %v1384_v33 = vld [vmem:[%s2053_s1 + $0x284] ss:$8 sps:$4 sm:$0xff]   ;;  %v1387_v35 = vld [vmem:[%s2053_s1 + $0x280] ss:$8 sps:$4 sm:$0xff]  }
   0xd   :  { %1016 = vmatprep.subr.bf16.mxu0 %v1354_v13  ;;  %v1388_v36 = vld [vmem:[%s2053_s1 + $0x94] ss:$8 sps:$4 sm:$0xff]   ;;  %v1392_v38 = vld [vmem:[%s2053_s1 + $0x90] ss:$8 sps:$4 sm:$0xff]   ;;  %v1394_v40 = vld [vmem:[%s2053_s1 + $0xa4] ss:$8 sps:$4 sm:$0xff]  }
   0xe   :  { %v1390_v37 = vld [vmem:[%s2053_s1 + $0x294] ss:$8 sps:$4 sm:$0xff]   ;;  %v1393_v39 = vld [vmem:[%s2053_s1 + $0x290] ss:$8 sps:$4 sm:$0xff]   ;;  %v1396_v41 = vld [vmem:[%s2053_s1 + $0x2a4] ss:$8 sps:$4 sm:$0xff]  }
   0xf   :  { %935 = vmatpush1.bf16.msra.mxu1 %v1356_v14  ;;  %v1398_v42 = vld [vmem:[%s2053_s1 + $0xa0] ss:$8 sps:$4 sm:$0xff]   ;;  %v1400_v44 = vld [vmem:[%s2053_s1 + $0xb4] ss:$8 sps:$4 sm:$0xff]   ;;  %v1404_v47 = vld [vmem:[%s2053_s1 + $0xb0] ss:$8 sps:$4 sm:$0xff]  }
  0x10   :  { %1017 = vmatpush1.bf16.msra.mxu0 %v1357_v15  ;;  %936 = vmatprep.subr.bf16.mxu1 %v1358_v16  ;;  %v1399_v43 = vld [vmem:[%s2053_s1 + $0x2a0] ss:$8 sps:$4 sm:$0xff]   ;;  %v1402_v45 = vld [vmem:[%s2053_s1 + $0x2b4] ss:$8 sps:$4 sm:$0xff]   ;;  %v1405_v49 = vld [vmem:[%s2053_s1 + $0x2b0] ss:$8 sps:$4 sm:$0xff]  }
  0x11   :  { %1018 = vmatprep.subr.bf16.mxu0 %v1360_v17  ;;  %v15_v46 = vld [vmem:[%s2054_s0] sm:$0xff]  ;;  %v17_v50 = vld [vmem:[%s2054_s0 + $0x10] sm:$0xff] }
  0x12   :  { %v1161_v48 = vcombine.high %v15_v46, %v15_v46  ;;  %v1406_v51 = vld [vmem:[%s2053_s1 + $0xc4] ss:$8 sps:$4 sm:$0xff]   ;;  %v1165_v53 = vcombine.high %v17_v50, %v17_v50  ;;  %v1410_v54 = vld [vmem:[%s2053_s1 + $0xc0] ss:$8 sps:$4 sm:$0xff]   ;;  %v1412_v56 = vld [vmem:[%s2053_s1 + $0xd4] ss:$8 sps:$4 sm:$0xff]   ;;  %v1160_v6 = vcombine.low %v15_v46, %v15_v46  ;;  %v1164_v7 = vcombine.low %v17_v50, %v17_v50 }
  0x13   :  { %937 = vmatpush1.bf16.msra.mxu1 %v1362_v18  ;;  %v1408_v52 = vld [vmem:[%s2053_s1 + $0x2c4] ss:$8 sps:$4 sm:$0xff]   ;;  %v1411_v55 = vld [vmem:[%s2053_s1 + $0x2c0] ss:$8 sps:$4 sm:$0xff]   ;;  %v1414_v57 = vld [vmem:[%s2053_s1 + $0x2d4] ss:$8 sps:$4 sm:$0xff]  }
  0x14   :  { %1019 = vmatpush1.bf16.msra.mxu0 %v1363_v19  ;;  %938 = vmatprep.subr.bf16.mxu1 %v1364_v20  ;;  %v1416_v58 = vld [vmem:[%s2053_s1 + $0xd0] ss:$8 sps:$4 sm:$0xff]   ;;  %v1418_v60 = vld [vmem:[%s2053_s1 + $0xe4] ss:$8 sps:$4 sm:$0xff]   ;;  %v1422_v62 = vld [vmem:[%s2053_s1 + $0xe0] ss:$8 sps:$4 sm:$0xff]  }
  0x15   :  { %1020 = vmatprep.subr.bf16.mxu0 %v1366_v21  ;;  %960 = vmatprep.mubr.bf16.mxu1 %v1161_v48  ;;  %v1417_v59 = vld [vmem:[%s2053_s1 + $0x2d0] ss:$8 sps:$4 sm:$0xff]   ;;  %v1420_v61 = vld [vmem:[%s2053_s1 + $0x2e4] ss:$8 sps:$4 sm:$0xff]   ;;  %v1423_v63 = vld [vmem:[%s2053_s1 + $0x2e0] ss:$8 sps:$4 sm:$0xff]  }
  0x16   :  { %1042 = vmatprep.mubr.bf16.mxu0 %v1165_v53  ;;  %v1424_v0 = vld [vmem:[%s2053_s1 + $0xf4] ss:$8 sps:$4 sm:$0xff]   ;;  %v1428_v2 = vld [vmem:[%s2053_s1 + $0xf0] ss:$8 sps:$4 sm:$0xff]   ;;  %v1434_v4 = vld [vmem:[%s2053_s1 + $0x104] ss:$8 sps:$4 sm:$0xff]  }
  0x17   :  { %939 = vmatpush1.bf16.msra.mxu1 %v1368_v22  ;;  %v1426_v1 = vld [vmem:[%s2053_s1 + $0x2f4] ss:$8 sps:$4 sm:$0xff]   ;;  %v1429_v3 = vld [vmem:[%s2053_s1 + $0x2f0] ss:$8 sps:$4 sm:$0xff]   ;;  %v1439_v5 = vld [vmem:[%s2053_s1 + $0x304] ss:$8 sps:$4 sm:$0xff]  }
  0x18   :  { %1021 = vmatpush1.bf16.msra.mxu0 %v1369_v23  ;;  %940 = vmatprep.subr.bf16.mxu1 %v1370_v24  ;;  %v1432_v8 = vld [vmem:[%s2053_s1 + $0x100] ss:$8 sps:$4 sm:$0xff]   ;;  %v1442_v10 = vld [vmem:[%s2053_s1 + $0x114] ss:$8 sps:$4 sm:$0xff]   ;;  %v1440_v12 = vld [vmem:[%s2053_s1 + $0x110] ss:$8 sps:$4 sm:$0xff]  }
  0x19   :  { %1022 = vmatprep.subr.bf16.mxu0 %v1372_v25  ;;  %v1437_v9 = vld [vmem:[%s2053_s1 + $0x300] ss:$8 sps:$4 sm:$0xff]   ;;  %v1445_v11 = vld [vmem:[%s2053_s1 + $0x314] ss:$8 sps:$4 sm:$0xff]   ;;  %v1443_v13 = vld [vmem:[%s2053_s1 + $0x310] ss:$8 sps:$4 sm:$0xff]  }
  0x1a   :  { %v1448_v14 = vld [vmem:[%s2053_s1 + $0x124] ss:$8 sps:$4 sm:$0xff]   ;;  %v1446_v16 = vld [vmem:[%s2053_s1 + $0x120] ss:$8 sps:$4 sm:$0xff]   ;;  %v1454_v18 = vld [vmem:[%s2053_s1 + $0x134] ss:$8 sps:$4 sm:$0xff]  }
  0x1b   :  { %941 = vmatpush1.bf16.msra.mxu1 %v1374_v26  ;;  %v1451_v15 = vld [vmem:[%s2053_s1 + $0x324] ss:$8 sps:$4 sm:$0xff]   ;;  %v1449_v17 = vld [vmem:[%s2053_s1 + $0x320] ss:$8 sps:$4 sm:$0xff]   ;;  %v1457_v19 = vld [vmem:[%s2053_s1 + $0x334] ss:$8 sps:$4 sm:$0xff]  }
  0x1c   :  { %1023 = vmatpush1.bf16.msra.mxu0 %v1375_v27  ;;  %942 = vmatprep.subr.bf16.mxu1 %v1376_v28  ;;  %v1452_v20 = vld [vmem:[%s2053_s1 + $0x130] ss:$8 sps:$4 sm:$0xff]   ;;  %v1460_v22 = vld [vmem:[%s2053_s1 + $0x144] ss:$8 sps:$4 sm:$0xff]   ;;  %v1458_v24 = vld [vmem:[%s2053_s1 + $0x140] ss:$8 sps:$4 sm:$0xff]  }
  0x1d   :  { %1024 = vmatprep.subr.bf16.mxu0 %v1378_v29  ;;  %v1455_v21 = vld [vmem:[%s2053_s1 + $0x330] ss:$8 sps:$4 sm:$0xff]   ;;  %v1463_v23 = vld [vmem:[%s2053_s1 + $0x344] ss:$8 sps:$4 sm:$0xff]   ;;  %v1461_v25 = vld [vmem:[%s2053_s1 + $0x340] ss:$8 sps:$4 sm:$0xff]  }
  0x1e   :  { %v1466_v26 = vld [vmem:[%s2053_s1 + $0x154] ss:$8 sps:$4 sm:$0xff]   ;;  %v1464_v28 = vld [vmem:[%s2053_s1 + $0x150] ss:$8 sps:$4 sm:$0xff]   ;;  %v1496_v50 = vld [vmem:[%s2053_s1 + $0x1a4] ss:$8 sps:$4 sm:$0xff]  }
  0x1f   :  { %943 = vmatpush1.bf16.msra.mxu1 %v1380_v30  ;;  %v1469_v27 = vld [vmem:[%s2053_s1 + $0x354] ss:$8 sps:$4 sm:$0xff]   ;;  %v1467_v29 = vld [vmem:[%s2053_s1 + $0x350] ss:$8 sps:$4 sm:$0xff]   ;;  %v1472_v30 = vld [vmem:[%s2053_s1 + $0x164] ss:$8 sps:$4 sm:$0xff]  }
  0x20   :  { %1025 = vmatpush1.bf16.msra.mxu0 %v1381_v31  ;;  %944 = vmatprep.subr.bf16.mxu1 %v1382_v32  ;;  %v1475_v31 = vld [vmem:[%s2053_s1 + $0x364] ss:$8 sps:$4 sm:$0xff]   ;;  %v1490_v46 = vld [vmem:[%s2053_s1 + $0x194] ss:$8 sps:$4 sm:$0xff]   ;;  %v1488_v48 = vld [vmem:[%s2053_s1 + $0x190] ss:$8 sps:$4 sm:$0xff]  }
  0x21   :  { %1026 = vmatprep.subr.bf16.mxu0 %v1384_v33  ;;  %v1867_v32 = vld [vmem:[%s2054_s0 + $0x8] sm:$0xff]  ;;  %v1872_v33 = vld [vmem:[%s2054_s0 + $0x18] sm:$0xff] }
  0x22   :  { %v1497_v53 = vld [vmem:[%s2053_s1 + $0x3a0] ss:$8 sps:$4 sm:$0xff]  }
  0x23   :  { %945 = vmatpush1.bf16.msra.mxu1 %v1386_v34  ;;  %v1470_v34 = vld [vmem:[%s2053_s1 + $0x160] ss:$8 sps:$4 sm:$0xff]  }
  0x24   :  { %1027 = vmatpush1.bf16.msra.mxu0 %v1387_v35  ;;  %946 = vmatprep.subr.bf16.mxu1 %v1388_v36  ;;  %v1473_v35 = vld [vmem:[%s2053_s1 + $0x360] ss:$8 sps:$4 sm:$0xff]   ;;  %v1163_v36 = vcombine.high %v1867_v32, %v1867_v32 }
  0x25   :  { %1028 = vmatprep.subr.bf16.mxu0 %v1390_v37  ;;  %v1167_v37 = vcombine.high %v1872_v33, %v1872_v33 }
  0x27   :  { %947 = vmatpush1.bf16.msra.mxu1 %v1392_v38  ;;  %v1478_v38 = vld [vmem:[%s2053_s1 + $0x174] ss:$8 sps:$4 sm:$0xff]  }
  0x28   :  { %1029 = vmatpush1.bf16.msra.mxu0 %v1393_v39  ;;  %948 = vmatprep.subr.bf16.mxu1 %v1394_v40  ;;  %v1481_v39 = vld [vmem:[%s2053_s1 + $0x374] ss:$8 sps:$4 sm:$0xff]   ;;  %v1476_v40 = vld [vmem:[%s2053_s1 + $0x170] ss:$8 sps:$4 sm:$0xff]  }
  0x29   :  { %1030 = vmatprep.subr.bf16.mxu0 %v1396_v41  ;;  %v1479_v41 = vld [vmem:[%s2053_s1 + $0x370] ss:$8 sps:$4 sm:$0xff]  }
  0x2b   :  { %949 = vmatpush1.bf16.msra.mxu1 %v1398_v42  ;;  %v1484_v42 = vld [vmem:[%s2053_s1 + $0x184] ss:$8 sps:$4 sm:$0xff]  }
  0x2c   :  { %1031 = vmatpush1.bf16.msra.mxu0 %v1399_v43  ;;  %950 = vmatprep.subr.bf16.mxu1 %v1400_v44  ;;  %v1487_v43 = vld [vmem:[%s2053_s1 + $0x384] ss:$8 sps:$4 sm:$0xff]   ;;  %v1482_v44 = vld [vmem:[%s2053_s1 + $0x180] ss:$8 sps:$4 sm:$0xff]  }
  0x2d   :  { %1032 = vmatprep.subr.bf16.mxu0 %v1402_v45  ;;  %v1485_v45 = vld [vmem:[%s2053_s1 + $0x380] ss:$8 sps:$4 sm:$0xff]  }
  0x2f   :  { %951 = vmatpush1.bf16.msra.mxu1 %v1404_v47  ;;  %v1493_v47 = vld [vmem:[%s2053_s1 + $0x394] ss:$8 sps:$4 sm:$0xff]  }
  0x30   :  { %1033 = vmatpush1.bf16.msra.mxu0 %v1405_v49  ;;  %952 = vmatprep.subr.bf16.mxu1 %v1406_v51  ;;  %v1491_v49 = vld [vmem:[%s2053_s1 + $0x390] ss:$8 sps:$4 sm:$0xff]   ;;  %v1499_v51 = vld [vmem:[%s2053_s1 + $0x3a4] ss:$8 sps:$4 sm:$0xff]  }
  0x31   :  { %1034 = vmatprep.subr.bf16.mxu0 %v1408_v52  ;;  %v1494_v52 = vld [vmem:[%s2053_s1 + $0x1a0] ss:$8 sps:$4 sm:$0xff]  }
  0x33   :  { %953 = vmatpush1.bf16.msra.mxu1 %v1410_v54  ;;  %v1502_v54 = vld [vmem:[%s2053_s1 + $0x1b4] ss:$8 sps:$4 sm:$0xff]  }
  0x34   :  { %1035 = vmatpush1.bf16.msra.mxu0 %v1411_v55  ;;  %954 = vmatprep.subr.bf16.mxu1 %v1412_v56  ;;  %v1505_v55 = vld [vmem:[%s2053_s1 + $0x3b4] ss:$8 sps:$4 sm:$0xff]   ;;  %v1500_v56 = vld [vmem:[%s2053_s1 + $0x1b0] ss:$8 sps:$4 sm:$0xff]  }
  0x35   :  { %1036 = vmatprep.subr.bf16.mxu0 %v1414_v57  ;;  %v1503_v57 = vld [vmem:[%s2053_s1 + $0x3b0] ss:$8 sps:$4 sm:$0xff]  }
  0x37   :  { %955 = vmatpush1.bf16.msra.mxu1 %v1416_v58  ;;  %v1508_v58 = vld [vmem:[%s2053_s1 + $0x1c4] ss:$8 sps:$4 sm:$0xff]  }
  0x38   :  { %1037 = vmatpush1.bf16.msra.mxu0 %v1417_v59  ;;  %956 = vmatprep.subr.bf16.mxu1 %v1418_v60  ;;  %v1511_v59 = vld [vmem:[%s2053_s1 + $0x3c4] ss:$8 sps:$4 sm:$0xff]   ;;  %v1506_v60 = vld [vmem:[%s2053_s1 + $0x1c0] ss:$8 sps:$4 sm:$0xff]  }
  0x39   :  { %1038 = vmatprep.subr.bf16.mxu0 %v1420_v61  ;;  %v1509_v61 = vld [vmem:[%s2053_s1 + $0x3c0] ss:$8 sps:$4 sm:$0xff]  }
  0x3b   :  { %957 = vmatpush1.bf16.msra.mxu1 %v1422_v62  ;;  %v1514_v62 = vld [vmem:[%s2053_s1 + $0x1d4] ss:$8 sps:$4 sm:$0xff]  }
  0x3c   :  { %1039 = vmatpush1.bf16.msra.mxu0 %v1423_v63  ;;  %958 = vmatprep.subr.bf16.mxu1 %v1424_v0  ;;  %v1517_v63 = vld [vmem:[%s2053_s1 + $0x3d4] ss:$8 sps:$4 sm:$0xff]   ;;  %v1512_v0 = vld [vmem:[%s2053_s1 + $0x1d0] ss:$8 sps:$4 sm:$0xff]  }
  0x3d   :  { %1040 = vmatprep.subr.bf16.mxu0 %v1426_v1  ;;  %v1515_v1 = vld [vmem:[%s2053_s1 + $0x3d0] ss:$8 sps:$4 sm:$0xff]  }
  0x3f   :  { %959 = vmatpush1.bf16.msra.mxu1 %v1428_v2  ;;  %v1520_v2 = vld [vmem:[%s2053_s1 + $0x1e4] ss:$8 sps:$4 sm:$0xff]  }
  0x40   :  { %1041 = vmatpush1.bf16.msra.mxu0 %v1429_v3  ;;  %969 = vmatprep.subr.bf16.mxu1 %v1434_v4  ;;  %v1523_v3 = vld [vmem:[%s2053_s1 + $0x3e4] ss:$8 sps:$4 sm:$0xff]   ;;  %v1518_v4 = vld [vmem:[%s2053_s1 + $0x1e0] ss:$8 sps:$4 sm:$0xff]  }
  0x41   :  { %1051 = vmatprep.subr.bf16.mxu0 %v1439_v5  ;;  %v1521_v5 = vld [vmem:[%s2053_s1 + $0x3e0] ss:$8 sps:$4 sm:$0xff]  }
  0x42   :  { %961 = vmatmul.mubr.bf16.vlgmr.msra.gmra.mrb[0].mxu1 %v1160_v6  ;;  %v1526_v6 = vld [vmem:[%s2053_s1 + $0x1f4] ss:$8 sps:$4 sm:$0xff]  }
  0x43   :  { %1043 = vmatmul.mubr.bf16.vlgmr.msra.gmra.mrb[0].mxu0 %v1164_v7  ;;  %970 = vmatpush1.bf16.msra.mxu1 %v1432_v8  ;;  %v1529_v7 = vld [vmem:[%s2053_s1 + $0x3f4] ss:$8 sps:$4 sm:$0xff]   ;;  %v1524_v8 = vld [vmem:[%s2053_s1 + $0x1f0] ss:$8 sps:$4 sm:$0xff]  }
  0x44   :  { %1052 = vmatpush1.bf16.msra.mxu0 %v1437_v9  ;;  %971 = vmatprep.subr.bf16.mxu1 %v1442_v10  ;;  %v1527_v9 = vld [vmem:[%s2053_s1 + $0x3f0] ss:$8 sps:$4 sm:$0xff]   ;;  %v1536_v10 = vld [vmem:[%s2053_s1 + $0x404] ss:$8 sps:$4 sm:$0xff]  }
  0x45   :  { %1053 = vmatprep.subr.bf16.mxu0 %v1445_v11  ;;  %1001 = vmatprep.mubr.bf16.mxu1 %v1163_v36  ;;  %v1162_v11 = vcombine.low %v1867_v32, %v1867_v32 }
  0x46   :  { %1083 = vmatprep.mubr.bf16.mxu0 %v1167_v37  ;;  %v164_v37 = vld [vmem:[%s2055_s2] sm:$0x3] }
  0x47   :  { %972 = vmatpush1.bf16.msra.mxu1 %v1440_v12  ;;  %v1166_v12 = vcombine.low %v1872_v33, %v1872_v33 }
  0x48   :  { %1054 = vmatpush1.bf16.msra.mxu0 %v1443_v13  ;;  %973 = vmatprep.subr.bf16.mxu1 %v1448_v14  ;;  %v1534_v13 = vld [vmem:[%s2053_s1 + $0x400] ss:$8 sps:$4 sm:$0xff]   ;;  %v1539_v14 = vld [vmem:[%s2053_s1 + $0x414] ss:$8 sps:$4 sm:$0xff]  }
  0x49   :  { %1055 = vmatprep.subr.bf16.mxu0 %v1451_v15  ;;  %v1537_v15 = vld [vmem:[%s2053_s1 + $0x410] ss:$8 sps:$4 sm:$0xff]  }
  0x4b   :  { %974 = vmatpush1.bf16.msra.mxu1 %v1446_v16  ;;  %v1567_v16 = vmov 0  }
  0x4c   :  { %1056 = vmatpush1.bf16.msra.mxu0 %v1449_v17  ;;  %975 = vmatprep.subr.bf16.mxu1 %v1454_v18  ;;  %v1542_v17 = vld [vmem:[%s2053_s1 + $0x424] ss:$8 sps:$4 sm:$0xff]   ;;  %v1540_v18 = vld [vmem:[%s2053_s1 + $0x420] ss:$8 sps:$4 sm:$0xff]  }
  0x4d   :  { %1057 = vmatprep.subr.bf16.mxu0 %v1457_v19  ;;  %v1545_v19 = vld [vmem:[%s2053_s1 + $0x434] ss:$8 sps:$4 sm:$0xff]  }
  0x4f   :  { %976 = vmatpush1.bf16.msra.mxu1 %v1452_v20  ;;  %v1543_v20 = vld [vmem:[%s2053_s1 + $0x430] ss:$8 sps:$4 sm:$0xff]  }
  0x50   :  { %1058 = vmatpush1.bf16.msra.mxu0 %v1455_v21  ;;  %977 = vmatprep.subr.bf16.mxu1 %v1460_v22  ;;  %v1548_v21 = vld [vmem:[%s2053_s1 + $0x444] ss:$8 sps:$4 sm:$0xff]   ;;  %v1546_v22 = vld [vmem:[%s2053_s1 + $0x440] ss:$8 sps:$4 sm:$0xff]  }
  0x51   :  { %1059 = vmatprep.subr.bf16.mxu0 %v1463_v23  ;;  %v1551_v23 = vld [vmem:[%s2053_s1 + $0x454] ss:$8 sps:$4 sm:$0xff]  }
  0x53   :  { %978 = vmatpush1.bf16.msra.mxu1 %v1458_v24  ;;  %v1549_v24 = vld [vmem:[%s2053_s1 + $0x450] ss:$8 sps:$4 sm:$0xff]  }
  0x54   :  { %1060 = vmatpush1.bf16.msra.mxu0 %v1461_v25  ;;  %979 = vmatprep.subr.bf16.mxu1 %v1466_v26  ;;  %v1554_v25 = vld [vmem:[%s2053_s1 + $0x464] ss:$8 sps:$4 sm:$0xff]   ;;  %v1552_v26 = vld [vmem:[%s2053_s1 + $0x460] ss:$8 sps:$4 sm:$0xff]  }
  0x55   :  { %1061 = vmatprep.subr.bf16.mxu0 %v1469_v27  ;;  %v1557_v27 = vld [vmem:[%s2053_s1 + $0x474] ss:$8 sps:$4 sm:$0xff]  }
  0x57   :  { %980 = vmatpush1.bf16.msra.mxu1 %v1464_v28  ;;  %v1555_v28 = vld [vmem:[%s2053_s1 + $0x470] ss:$8 sps:$4 sm:$0xff]  }
  0x58   :  { %1062 = vmatpush1.bf16.msra.mxu0 %v1467_v29  ;;  %981 = vmatprep.subr.bf16.mxu1 %v1472_v30  ;;  %v1558_v29 = vld [vmem:[%s2054_s0 + $0x20] ss:$0 sps:$4 sm:$0xff]  }
  0x59   :  { %1063 = vmatprep.subr.bf16.mxu0 %v1475_v31 }
  0x5b   :  { %982 = vmatpush1.bf16.msra.mxu1 %v1470_v34  ;;  %v166_v34 = vlaneseq }
  0x5c   :  { %1064 = vmatpush1.bf16.msra.mxu0 %v1473_v35  ;;  %983 = vmatprep.subr.bf16.mxu1 %v1478_v38 }
  0x5d   :  { %1065 = vmatprep.subr.bf16.mxu0 %v1481_v39  ;;  %v167_v35 = vshrl.u32 %v166_v34, 7 }
  0x5f   :  { %984 = vmatpush1.bf16.msra.mxu1 %v1476_v40  ;;  %v168_v36 = vsub.s32 0, %v167_v35  ;;  %v172_v38 = vsub.s32 1, %v167_v35 }
  0x60   :  { %1066 = vmatpush1.bf16.msra.mxu0 %v1479_v41  ;;  %985 = vmatprep.subr.bf16.mxu1 %v1484_v42 }
  0x61   :  { %1067 = vmatprep.subr.bf16.mxu0 %v1487_v43  ;;  %v169_v39 = vrot.slane %v164_v37, %v168_v36  ;;  %v173_v40 = vrot.slane %v164_v37, %v172_v38 }
  0x63   :  { %986 = vmatpush1.bf16.msra.mxu1 %v1482_v44 }
  0x64   :  { %1068 = vmatpush1.bf16.msra.mxu0 %v1485_v45  ;;  %987 = vmatprep.subr.bf16.mxu1 %v1490_v46 }
  0x65   :  { %1069 = vmatprep.subr.bf16.mxu0 %v1493_v47 }
  0x67   :  { %988 = vmatpush1.bf16.msra.mxu1 %v1488_v48 }
  0x68   :  { %1070 = vmatpush1.bf16.msra.mxu0 %v1491_v49  ;;  %989 = vmatprep.subr.bf16.mxu1 %v1496_v50 }
  0x69   :  { %1071 = vmatprep.subr.bf16.mxu0 %v1499_v51 }
  0x6b   :  { %990 = vmatpush1.bf16.msra.mxu1 %v1494_v52 }
  0x6c   :  { %1072 = vmatpush1.bf16.msra.mxu0 %v1497_v53  ;;  %991 = vmatprep.subr.bf16.mxu1 %v1502_v54 }
  0x6d   :  { %1073 = vmatprep.subr.bf16.mxu0 %v1505_v55 }
  0x6f   :  { %992 = vmatpush1.bf16.msra.mxu1 %v1500_v56 }
  0x70   :  { %1074 = vmatpush1.bf16.msra.mxu0 %v1503_v57  ;;  %993 = vmatprep.subr.bf16.mxu1 %v1508_v58 }
  0x71   :  { %1075 = vmatprep.subr.bf16.mxu0 %v1511_v59 }
  0x73   :  { %994 = vmatpush1.bf16.msra.mxu1 %v1506_v60 }
  0x74   :  { %1076 = vmatpush1.bf16.msra.mxu0 %v1509_v61  ;;  %995 = vmatprep.subr.bf16.mxu1 %v1514_v62 }
  0x75   :  { %1077 = vmatprep.subr.bf16.mxu0 %v1517_v63 }
  0x77   :  { %996 = vmatpush1.bf16.msra.mxu1 %v1512_v0 }
  0x78   :  { %1078 = vmatpush1.bf16.msra.mxu0 %v1515_v1  ;;  %997 = vmatprep.subr.bf16.mxu1 %v1520_v2 }
  0x79   :  { %1079 = vmatprep.subr.bf16.mxu0 %v1523_v3 }
  0x7b   :  { %998 = vmatpush1.bf16.msra.mxu1 %v1518_v4 }
  0x7c   :  { %1080 = vmatpush1.bf16.msra.mxu0 %v1521_v5  ;;  %999 = vmatprep.subr.bf16.mxu1 %v1526_v6 }
  0x7d   :  { %1081 = vmatprep.subr.bf16.mxu0 %v1529_v7 }
  0x7f   :  { %1000 = vmatpush1.bf16.msra.mxu1 %v1524_v8 }
  0x80   :  { %1082 = vmatpush1.bf16.msra.mxu0 %v1527_v9 }
  0x81   :  { %1092 = vmatprep.subr.bf16.mxu0 %v1536_v10 }
  0x82   :  { %1002 = vmatmul.mubr.bf16.vlgmr.msra.gmra.mrb[0].mxu1 %v1162_v11 }
  0x83   :  { %1084 = vmatmul.mubr.bf16.vlgmr.msra.gmra.mrb[0].mxu0 %v1166_v12 }
  0x84   :  { %1093 = vmatpush1.bf16.msra.mxu0 %v1534_v13  ;;  %1124 = vmatprep.mubr.bf16.mxu0 %v1567_v16 }
  0x85   :  { %1094 = vmatprep.subr.bf16.mxu0 %v1539_v14 }
  0x88   :  { %1095 = vmatpush1.bf16.msra.mxu0 %v1537_v15 }
  0x89   :  { %1096 = vmatprep.subr.bf16.mxu0 %v1542_v17 }
  0x8c   :  { %1097 = vmatpush1.bf16.msra.mxu0 %v1540_v18 }
  0x8d   :  { %1098 = vmatprep.subr.bf16.mxu0 %v1545_v19 }
  0x90   :  { %1099 = vmatpush1.bf16.msra.mxu0 %v1543_v20 }
  0x91   :  { %1100 = vmatprep.subr.bf16.mxu0 %v1548_v21 }
  0x94   :  { %1101 = vmatpush1.bf16.msra.mxu0 %v1546_v22 }
  0x95   :  { %1102 = vmatprep.subr.bf16.mxu0 %v1551_v23 }
  0x98   :  { %1103 = vmatpush1.bf16.msra.mxu0 %v1549_v24 }
  0x99   :  { %1104 = vmatprep.subr.bf16.mxu0 %v1554_v25 }
  0x9c   :  { %1105 = vmatpush1.bf16.msra.mxu0 %v1552_v26 }
  0x9d   :  { %1106 = vmatprep.subr.bf16.mxu0 %v1557_v27 }
  0xa0   :  { %1107 = vmatpush1.bf16.msra.mxu0 %v1555_v28 }
  0xa3   :  { %1125 = vmatmul.mubr.bf16.vlgmr.msra.gmra.mrb[0].mxu0 %v1558_v29 }
 0x155   :  { %v1003_v30 = vpop.f32.mrb[0].mxu1 }
 0x156   :  { %v1005_v31 = vpop.f32.mrb[1].mxu1  ;;  %v1317_v41 = vadd.f32 %v1003_v30, %v169_v39 }
 0x157   :  { %v1007_v32 = vpop.f32.mrb[2].mxu1  ;;  %v1319_v42 = vadd.f32 %v1005_v31, %v173_v40 }
 0x158   :  { %v1008_v33 = vpop.f32.mrb[3].mxu1 }
 0x176   :  { %v1126_v43 = vpop.f32.mrb[0].mxu0 }
 0x177   :  { %v1318_v44 = vadd.f32 %v1317_v41, %v1126_v43  ;;  %v1128_v45 = vpop.f32.mrb[1].mxu0 }
 0x178   :  { %v1320_v46 = vadd.f32 %v1319_v42, %v1128_v45  ;;  %v1130_v47 = vpop.f32.mrb[2].mxu0 }
 0x179   :  { %v1313_v48 = vmul.f32 -1.442695, %v1318_v44  ;;  %v1131_v49 = vpop.f32.mrb[3].mxu0 }
 0x17a   :  { %v1314_v50 = vmul.f32 -1.442695, %v1320_v46 }
 0x17b   :  { %1559 = vpow2.f32 %v1313_v48 }
 0x17c   :  { %1561 = vpow2.f32 %v1314_v50 }
 0x185   :  { %v1560_v51 = vpop.eup %1559 }
 0x186   :  { %v1562_v52 = vpop.eup %1561  ;;  %v1139_v53 = vadd.f32 1.0, %v1560_v51 }
 0x187   :  { %v1140_v54 = vadd.f32 1.0, %v1562_v52 }
 0x188   :  { %1563 = vrcp.f32 %v1139_v53 }
 0x189   :  { %1565 = vrcp.f32 %v1140_v54 }
 0x192   :  { %v1564_v55 = vpop.eup %1563 }
 0x193   :  { %v1566_v56 = vpop.eup %1565  ;;  %v1145_v57 = vmul.f32 %v1564_v55, %v1318_v44 }
 0x194   :  { %v1146_v58 = vmul.f32 %v1566_v56, %v1320_v46 }
 0x196   :  { %v1316_v59 = vpack.c.bf16 %v1146_v58, %v1145_v57 }
 0x198   :  { %1155 = vst [vmem:[%s2056_s3] sm:$0xff] %v1316_v59 }

// kernel: cspdarknet_forward.58
= control target key start
LH: loop header
LB: loop body
LE: loop exit
PB: predicated region body
PF: predicated region fallthrough
CT: control target
= control target key end

     0   :  { %s1130_s6 = smov 0   ;;  %s1926_s0 = inlined_call_operand.vmem [shape: bf16[2,13,13,128], index: 0, kind: input, shape index: {}]   ;;  %s1927_s1 = inlined_call_operand.vmem [shape: bf16[2,1,1,512], index: 1, kind: output, shape index: {}]  }
   0x1 LB: > { %s1049_s7 = sadd.s32 4294967295, %s1117_s6   ;;  %p1053_p0 = scmp.ge.s32.totalorder %s1117_s6, 1  ;;  %s1117_s6 = sphi %s1130_s6, %s11_s6  }
   0x2   : > { %p87_p1 = scmp.lt.s32.totalorder %s1117_s6, 3 }
   0x4   : > { %p88_p2 = pnand %p1053_p0, %p87_p1 }
   0x6   : > { %91 = sbr.rel (%p88_p2) target bundleno = 179 (0xb3), region = 24 }
   0xd   : > { %p106_p3 = scmp.lt.s32.totalorder %s1049_s7, 1  ;;  %vm213_vm0 = vsmask.f32 3328  ;;  %vm214_vm1 = vsmask.f32 7440  ;;  %vm432_vm3 = vcmask 1042432  }
   0xe   : > { %vm1322_vm2 = vmor %vm213_vm0, %vm214_vm1  ;;  %vm433_vm4 = vcmask 1046532   ;;  %vm516_vm6 = vsmask.f32 2304  ;;  %vm517_vm7 = vsmask.f32 6416  ;;  %vm636_vm9 = vcmask 1041408  }
   0xf   : > { %s2106_s7 = smov (!%p106_p3, %s1049_s7), 1  ;;  %vm1487_vm5 = vmor %vm432_vm3, %vm433_vm4  ;;  %vm637_vm10 = vcmask 1045508   ;;  %vm947_vm12 = vcmask 1040384   ;;  %vm948_vm13 = vsmask.f32 256 }
  0x10   : > { %s1099_s8 = smul.u32 104, %s2106_s7  ;;  %vm1626_vm8 = vmor %vm516_vm6, %vm517_vm7  ;;  %s1055_s12 = sshll.u32 %s2106_s7, 2 }
  0x11   : > { %vm1779_vm11 = vmor %vm636_vm9, %vm637_vm10  ;;  %s114_s15 = scalar_lea.vmem %s1927_s1, %s1055_s12 }
  0x12   : > { %s1144_s11 = scalar_lea.vmem %s1926_s0, %s1099_s8  ;;  %vm1911_vm14 = vmand %vm947_vm12, %vm948_vm13 }
  0x13   : > { %v115_v0 = vld [vmem:[%s1144_s11] sm:$0xf]  ;;  %v116_v1 = vld [vmem:[%s1144_s11 + $0x4] sm:$0x7]  ;;  %v117_v2 = vld [vmem:[%s1144_s11 + $0x8] sm:$0xf] }
  0x14   : > { %v118_v3 = vld [vmem:[%s1144_s11 + $0xc] sm:$0x7]  ;;  %v119_v4 = vld [vmem:[%s1144_s11 + $0x10] sm:$0xf]  ;;  %v120_v5 = vld [vmem:[%s1144_s11 + $0x14] sm:$0x7]  ;;  %v141_v6 = vmax.bf16 %v117_v2, %v115_v0 }
  0x15   : > { %v1153_v7 = vld [vmem:[%s1144_s11 + $0x18] sm:$0xf]  ;;  %v1156_v8 = vld [vmem:[%s1144_s11 + $0x1c] sm:$0x7]  ;;  %v1159_v9 = vld [vmem:[%s1144_s11 + $0x20] sm:$0xf]  ;;  %v142_v10 = vmax.bf16 %v118_v3, %v116_v1  ;;  %v143_v11 = vmax.bf16 %v119_v4, %v117_v2  ;;  %v144_v12 = vmax.bf16 %v120_v5, %v118_v3 }
  0x16   : > { %v1162_v13 = vld [vmem:[%s1144_s11 + $0x24] sm:$0x7]  ;;  %v1165_v14 = vld [vmem:[%s1144_s11 + $0x28] sm:$0xf]  ;;  %v1168_v15 = vld [vmem:[%s1144_s11 + $0x2c] sm:$0x7]  ;;  %v145_v16 = vmax.bf16 %v1153_v7, %v119_v4  ;;  %v146_v17 = vmax.bf16 %v1156_v8, %v120_v5  ;;  %v147_v18 = vmax.bf16 %v1159_v9, %v1153_v7  ;;  %v159_v19 = vmax.bf16 %v141_v6, %v119_v4 }
  0x17   : > { %v1175_v20 = vld [vmem:[%s1144_s11 + $0x30] sm:$0xf]  ;;  %v1178_v21 = vld [vmem:[%s1144_s11 + $0x34] sm:$0x7]  ;;  %v1181_v22 = vld [vmem:[%s1144_s11 + $0x38] sm:$0xf]  ;;  %v148_v23 = vmax.bf16 %v1162_v13, %v1156_v8  ;;  %v149_v24 = vmax.bf16 %v1165_v14, %v1159_v9  ;;  %v150_v25 = vmax.bf16 %v1168_v15, %v1162_v13  ;;  %v160_v26 = vmax.bf16 %v142_v10, %v120_v5 }
  0x18   : > { %v1190_v27 = vld [vmem:[%s1144_s11 + $0x3c] sm:$0x7]  ;;  %v1193_v28 = vld [vmem:[%s1144_s11 + $0x40] sm:$0xf]  ;;  %v1196_v29 = vld [vmem:[%s1144_s11 + $0x44] sm:$0x7]  ;;  %v151_v30 = vmax.bf16 %v1175_v20, %v1165_v14  ;;  %v152_v31 = vmax.bf16 %v1178_v21, %v1168_v15  ;;  %v153_v32 = vmax.bf16 %v1181_v22, %v1175_v20  ;;  %v161_v33 = vmax.bf16 %v143_v11, %v1153_v7 }
  0x19   : > { %v133_v34 = vld [vmem:[%s1144_s11 + $0x48] sm:$0xf]  ;;  %v134_v35 = vld [vmem:[%s1144_s11 + $0x4c] sm:$0x7]  ;;  %v154_v36 = vmax.bf16 %v1190_v27, %v1178_v21  ;;  %v155_v37 = vmax.bf16 %v1193_v28, %v1181_v22  ;;  %v156_v38 = vmax.bf16 %v1196_v29, %v1190_v27  ;;  %v162_v39 = vmax.bf16 %v144_v12, %v1156_v8  ;;  %v135_v40 = vld [vmem:[%s1144_s11 + $0x50] sm:$0xf] }
  0x1a   : > { %v136_v41 = vld [vmem:[%s1144_s11 + $0x54] sm:$0x7]  ;;  %v157_v42 = vmax.bf16 %v133_v34, %v1193_v28  ;;  %v158_v43 = vmax.bf16 %v134_v35, %v1196_v29  ;;  %v163_v44 = vmax.bf16 %v145_v16, %v1159_v9  ;;  %v164_v45 = vmax.bf16 %v146_v17, %v1162_v13  ;;  %v137_v62 = vld [vmem:[%s1144_s11 + $0x58] sm:$0xf]  ;;  %v138_v63 = vld [vmem:[%s1144_s11 + $0x5c] sm:$0x7] }
  0x1b   : > { %v165_v46 = vmax.bf16 %v147_v18, %v1165_v14  ;;  %v166_v47 = vmax.bf16 %v148_v23, %v1168_v15  ;;  %v167_v48 = vmax.bf16 %v149_v24, %v1175_v20  ;;  %v168_v49 = vmax.bf16 %v150_v25, %v1178_v21  ;;  %v139_v23 = vld [vmem:[%s1144_s11 + $0x60] sm:$0xf]  ;;  %v140_v24 = vld [vmem:[%s1144_s11 + $0x64] sm:$0x7] }
  0x1c   : > { %v169_v50 = vmax.bf16 %v151_v30, %v1181_v22  ;;  %v170_v51 = vmax.bf16 %v152_v31, %v1190_v27  ;;  %v171_v52 = vmax.bf16 %v153_v32, %v1193_v28  ;;  %v172_v53 = vmax.bf16 %v154_v36, %v1196_v29 }
  0x1d   : > { %v173_v54 = vmax.bf16 %v155_v37, %v133_v34  ;;  %v174_v55 = vmax.bf16 %v156_v38, %v134_v35  ;;  %v175_v56 = vmax.bf16 %v157_v42, %v135_v40  ;;  %v176_v57 = vmax.bf16 %v158_v43, %v136_v41 }
  0x1e   : > { %v177_v58 = vmax.bf16 %v159_v19, %v1153_v7  ;;  %v178_v59 = vmax.bf16 %v160_v26, %v1156_v8  ;;  %v179_v60 = vmax.bf16 %v161_v33, %v1159_v9  ;;  %v180_v61 = vmax.bf16 %v162_v39, %v1162_v13 }
  0x1f   : > { %v181_v0 = vmax.bf16 %v163_v44, %v1165_v14  ;;  %v182_v1 = vmax.bf16 %v164_v45, %v1168_v15  ;;  %v183_v2 = vmax.bf16 %v165_v46, %v1175_v20  ;;  %v184_v3 = vmax.bf16 %v166_v47, %v1178_v21 }
  0x20   : > { %v185_v4 = vmax.bf16 %v167_v48, %v1181_v22  ;;  %v186_v5 = vmax.bf16 %v168_v49, %v1190_v27  ;;  %v187_v6 = vmax.bf16 %v169_v50, %v1193_v28  ;;  %v188_v7 = vmax.bf16 %v170_v51, %v1196_v29 }
  0x21   : > { %v189_v8 = vmax.bf16 %v171_v52, %v133_v34  ;;  %v190_v10 = vmax.bf16 %v172_v53, %v134_v35  ;;  %v191_v11 = vmax.bf16 %v173_v54, %v135_v40  ;;  %v192_v12 = vmax.bf16 %v174_v55, %v136_v41 }
  0x22   : > { %v193_v16 = vmax.bf16 %v175_v56, %v137_v62  ;;  %v194_v17 = vmax.bf16 %v176_v57, %v138_v63  ;;  %v1243_v18 = vmax.bf16 %v177_v58, %v1159_v9  ;;  %v1246_v19 = vmax.bf16 %v178_v59, %v1162_v13 }
  0x23   : > { %v1251_v25 = vmax.bf16 %v179_v60, %v1165_v14  ;;  %v1254_v26 = vmax.bf16 %v180_v61, %v1168_v15  ;;  %v1257_v30 = vmax.bf16 %v181_v0, %v1175_v20  ;;  %v1260_v31 = vmax.bf16 %v182_v1, %v1178_v21 }
  0x24   : > { %1988 = vst [vmem:[#allocation2_spill] sm:$0xff] %v1243_v18  ;;  %1989 = vst [vmem:[#allocation3_spill] sm:$0xff] %v1246_v19  ;;  %v1263_v9 = vmax.bf16 %v183_v2, %v1181_v22  ;;  %v1266_v13 = vmax.bf16 %v184_v3, %v1190_v27  ;;  %v1269_v32 = vmax.bf16 %v185_v4, %v1193_v28  ;;  %v217_v28 = vshrl.u32 %v1243_v18, 16 }
  0x25   : > { %1990 = vst [vmem:[#allocation4_spill] sm:$0xff] %v1251_v25  ;;  %1991 = vst [vmem:[#allocation5_spill] sm:$0xff] %v1254_v26  ;;  %v1272_v14 = vmax.bf16 %v186_v5, %v1196_v29  ;;  %v1274_v15 = vmax.bf16 %v187_v6, %v133_v34  ;;  %v1276_v33 = vmax.bf16 %v188_v7, %v134_v35  ;;  %v220_v29 = vshll.u32 %v1243_v18, 16 }
  0x26   : > { %1992 = vst [vmem:[#allocation6_spill] sm:$0xff] %v1257_v30  ;;  %1993 = vst [vmem:[#allocation7_spill] sm:$0xff] %v1260_v31  ;;  %v1278_v20 = vmax.bf16 %v189_v8, %v135_v40  ;;  %v1280_v21 = vmax.bf16 %v190_v10, %v136_v41  ;;  %v1282_v36 = vmax.bf16 %v191_v11, %v137_v62  ;;  %v1960_v34 = vshll.u32 %v1246_v19, 16 }
  0x27   : > { %1994 = vst [vmem:[#allocation8_spill] sm:$0xff] %v1263_v9  ;;  %1995 = vst [vmem:[#allocation9_spill] sm:$0xff] %v1266_v13  ;;  %v1284_v22 = vmax.bf16 %v192_v12, %v138_v63  ;;  %v1286_v27 = vmax.bf16 %v193_v16, %v139_v23  ;;  %v1288_v37 = vmax.bf16 %v194_v17, %v140_v24  ;;  %v1961_v35 = vshrl.u32 %v1246_v19, 16 }
  0x28   : > { %1996 = vst [vmem:[#allocation10_spill] sm:$0xff] %v1269_v32  ;;  %1997 = vst [vmem:[#allocation11_spill] sm:$0xff] %v1272_v14  ;;  %v1959_v38 = vshrl.u32 %v1251_v25, 16  ;;  %v1958_v39 = vshll.u32 %v1251_v25, 16  ;;  %v1956_v40 = vshll.u32 %v1254_v26, 16  ;;  %v1957_v41 = vshrl.u32 %v1254_v26, 16 }
  0x29   : > { %1998 = vst [vmem:[#allocation12_spill] sm:$0xff] %v1274_v15  ;;  %1999 = vst [vmem:[#allocation13_spill] sm:$0xff] %v1276_v33  ;;  %v219_v42 = vrot.slane %v217_v28, 4  ;;  %v222_v43 = vrot.slane %v220_v29, 5  ;;  %v1304_v44 = vrot.slane %v1960_v34, 5  ;;  %v1955_v45 = vshrl.u32 %v1257_v30, 16 }
  0x2a   : > { %2000 = vst [vmem:[#allocation14_spill] sm:$0xff] %v1278_v20  ;;  %2001 = vst [vmem:[#allocation15_spill] sm:$0xff] %v1280_v21  ;;  %v237_v46 = vrot.slane %v1959_v38, 4  ;;  %v240_v47 = vrot.slane %v1958_v39, 5  ;;  %v1313_v48 = vrot.slane %v1956_v40, 5  ;;  %v1954_v49 = vshll.u32 %v1257_v30, 16 }
  0x2b   : > { %2002 = vst [vmem:[#allocation16_spill] sm:$0xff] %v1282_v36  ;;  %v223_v50 = vor.u32 %v222_v43, %v219_v42  ;;  %v255_v51 = vrot.slane %v1955_v45, 4  ;;  %v1952_v52 = vshll.u32 %v1260_v31, 16  ;;  %v1953_v53 = vshrl.u32 %v1260_v31, 16 }
  0x2c   : > { %v241_v55 = vor.u32 %v240_v47, %v237_v46  ;;  %v258_v56 = vrot.slane %v1954_v49, 5  ;;  %v1951_v57 = vshrl.u32 %v1263_v9, 16  ;;  %v1950_v58 = vshll.u32 %v1263_v9, 16 }
  0x2d   : > { %v224_v59 = vrot.slane %v223_v50, 4  ;;  %v1332_v60 = vrot.slane %v1952_v52, 5  ;;  %v1948_v61 = vshll.u32 %v1266_v13, 16  ;;  %v1949_v62 = vshrl.u32 %v1266_v13, 16 }
  0x2e   : > { %v242_v63 = vrot.slane %v241_v55, 4  ;;  %v259_v0 = vor.u32 %v258_v56, %v255_v51  ;;  %v273_v1 = vrot.slane %v1951_v57, 4  ;;  %v276_v2 = vrot.slane %v1950_v58, 5 }
  0x2f   : > { %v229_v3 = vsel %vm1322_vm2, %v224_v59, %v1304_v44  ;;  %v1345_v4 = vrot.slane %v1948_v61, 5  ;;  %v1947_v5 = vshrl.u32 %v1269_v32, 16  ;;  %v1946_v6 = vshll.u32 %v1269_v32, 16 }
  0x30   : > { %v247_v7 = vsel %vm1322_vm2, %v242_v63, %v1313_v48  ;;  %v260_v8 = vrot.slane %v259_v0, 4  ;;  %v277_v10 = vor.u32 %v276_v2, %v273_v1  ;;  %v1937_v11 = vshll.u32 %v1272_v14, 16 }
  0x31   : > { %v291_v12 = vrot.slane %v1947_v5, 4  ;;  %v294_v16 = vrot.slane %v1946_v6, 5  ;;  %v1945_v17 = vshrl.u32 %v1272_v14, 16  ;;  %v1934_v23 = vshrl.u32 %v1274_v15, 16 }
  0x32   : > { %v265_v24 = vsel %vm1322_vm2, %v260_v8, %v1332_v60  ;;  %v278_v42 = vrot.slane %v277_v10, 4  ;;  %v300_v43 = vrot.slane %v1937_v11, 5  ;;  %v1932_v44 = vshll.u32 %v1274_v15, 16 }
  0x33   : > { %v295_v46 = vor.u32 %v294_v16, %v291_v12  ;;  %v309_v47 = vrot.slane %v1934_v23, 4  ;;  %v1930_v48 = vshll.u32 %v1276_v33, 16  ;;  %v1944_v50 = vshrl.u32 %v1276_v33, 16 }
  0x34   : > { %v283_v51 = vsel %vm1322_vm2, %v278_v42, %v1345_v4  ;;  %v312_v55 = vrot.slane %v1932_v44, 5  ;;  %v1928_v56 = vshrl.u32 %v1278_v20, 16  ;;  %v1929_v59 = vshll.u32 %v1278_v20, 16 }
  0x35   : > { %v296_v60 = vrot.slane %v295_v46, 4  ;;  %v318_v63 = vrot.slane %v1930_v48, 5  ;;  %v1931_v0 = vshll.u32 %v1280_v21, 16  ;;  %v1943_v1 = vshrl.u32 %v1280_v21, 16 }
  0x36   : > { %v313_v2 = vor.u32 %v312_v55, %v309_v47  ;;  %v327_v8 = vrot.slane %v1928_v56, 4  ;;  %v330_v4 = vrot.slane %v1929_v59, 5  ;;  %v1933_v10 = vshrl.u32 %v1282_v36, 16 }
  0x37   : > { %v301_v12 = vsel %vm1322_vm2, %v296_v60, %v300_v43  ;;  %v336_v16 = vrot.slane %v1931_v0, 5  ;;  %v1935_v42 = vshll.u32 %v1282_v36, 16  ;;  %v1936_v46 = vshll.u32 %v1284_v22, 16 }
  0x38   : > { %v314_v47 = vrot.slane %v313_v2, 4  ;;  %v331_v55 = vor.u32 %v330_v4, %v327_v8  ;;  %v345_v56 = vrot.slane %v1933_v10, 4  ;;  %v1941_v59 = vshrl.u32 %v1284_v22, 16 }
  0x39   : > { %v348_v48 = vrot.slane %v1935_v42, 5  ;;  %v354_v43 = vrot.slane %v1936_v46, 5  ;;  %v1940_v60 = vshrl.u32 %v1286_v27, 16  ;;  %v1939_v0 = vshll.u32 %v1286_v27, 16 }
  0x3a   : > { %v319_v44 = vsel %vm1322_vm2, %v314_v47, %v318_v63  ;;  %v332_v2 = vrot.slane %v331_v55, 4  ;;  %v1938_v8 = vshll.u32 %v1288_v37, 16  ;;  %v1942_v4 = vshrl.u32 %v1288_v37, 16 }
  0x3b   : > { %v349_v10 = vor.u32 %v348_v48, %v345_v56  ;;  %v363_v23 = vrot.slane %v1940_v60, 4  ;;  %v366_v42 = vrot.slane %v1939_v0, 5  ;;  %v1409_v46 = vmax.bf16 %v229_v3, %v1243_v18 }
  0x3c   : > { %v337_v11 = vsel %vm1322_vm2, %v332_v2, %v336_v16  ;;  %v372_v63 = vrot.slane %v1938_v8, 5  ;;  %v1418_v47 = vmax.bf16 %v1961_v35, %v1246_v19  ;;  %v1421_v48 = vmax.bf16 %v247_v7, %v1251_v25 }
  0x3d   : > { %v350_v56 = vrot.slane %v349_v10, 4  ;;  %v367_v55 = vor.u32 %v366_v42, %v363_v23  ;;  %v1426_v3 = vmax.bf16 %v1957_v41, %v1254_v26  ;;  %v1429_v16 = vmax.bf16 %v265_v24, %v1257_v30 }
  0x3e   : > { %v1434_v2 = vmax.bf16 %v1953_v53, %v1260_v31  ;;  %v1437_v8 = vmax.bf16 %v283_v51, %v1263_v9  ;;  %v1442_v7 = vmax.bf16 %v1949_v62, %v1266_v13  ;;  %v1445_v23 = vmax.bf16 %v301_v12, %v1269_v32 }
  0x3f   : > { %v355_v24 = vsel %vm1322_vm2, %v350_v56, %v354_v43  ;;  %v368_v10 = vrot.slane %v367_v55, 4  ;;  %v1452_v42 = vmax.bf16 %v1945_v17, %v1272_v14  ;;  %v1455_v51 = vmax.bf16 %v319_v44, %v1274_v15 }
  0x40   : > { %v1460_v0 = vmax.bf16 %v1944_v50, %v1276_v33  ;;  %v1463_v12 = vmax.bf16 %v337_v11, %v1278_v20  ;;  %v1468_v43 = vmax.bf16 %v1943_v1, %v1280_v21  ;;  %v1471_v56 = vmax.bf16 %v355_v24, %v1282_v36 }
  0x41   : > { %v373_v44 = vsel %vm1322_vm2, %v368_v10, %v372_v63  ;;  %v1478_v55 = vmax.bf16 %v1941_v59, %v1284_v22  ;;  %v1483_v11 = vmax.bf16 %v1942_v4, %v1288_v37  ;;  %v1065_v24 = vrot.slane %v1243_v18, 9 }
  0x42   : > { %2005 = vst [vmem:[#allocation17_spill] sm:$0xff] %v1463_v12  ;;  %2006 = vst [vmem:[#allocation18_spill] sm:$0xff] %v1468_v43  ;;  %v1493_v54 = vmax.bf16 %v373_v44, %v1286_v27  ;;  %v437_v63 = vrot.slane %v1246_v19, 5  ;;  %v1066_v10 = vrot.slane %v1251_v25, 9  ;;  %v442_v59 = vrot.slane %v1254_v26, 5 }
  0x43   : > { %2007 = vst [vmem:[#allocation19_spill] sm:$0xff] %v1471_v56  ;;  %2008 = vst [vmem:[#allocation20_spill] sm:$0xff] %v1478_v55  ;;  %v1067_v4 = vrot.slane %v1257_v30, 9  ;;  %v447_v1 = vrot.slane %v1260_v31, 5  ;;  %v1068_v50 = vrot.slane %v1263_v9, 9  ;;  %v452_v17 = vrot.slane %v1266_v13, 5 }
  0x44   : > { %2009 = vst [vmem:[#allocation21_spill] sm:$0xff] %v1483_v11  ;;  %2012 = vst [vmem:[#allocation22_spill] sm:$0xff] %v1493_v54  ;;  %v1504_v6 = vsel %vm1487_vm5, %v1065_v24, %v437_v63  ;;  %v1506_v44 = vrot.slane %v437_v63, 4  ;;  %v1510_v5 = vsel %vm1487_vm5, %v1066_v10, %v442_v59  ;;  %v1512_v61 = vrot.slane %v442_v59, 4 }
  0x45   : > { %v1516_v62 = vsel %vm1487_vm5, %v1067_v4, %v447_v1  ;;  %v1518_v58 = vrot.slane %v447_v1, 4  ;;  %v1522_v57 = vsel %vm1487_vm5, %v1068_v50, %v452_v17  ;;  %v1524_v24 = vrot.slane %v452_v17, 4 }
  0x46   : > { %v1069_v63 = vrot.slane %v1269_v32, 9  ;;  %v457_v52 = vrot.slane %v1272_v14, 5  ;;  %v1070_v10 = vrot.slane %v1274_v15, 9  ;;  %v462_v59 = vrot.slane %v1276_v33, 5 }
  0x47   : > { %v1071_v53 = vrot.slane %v1278_v20, 9  ;;  %v467_v4 = vrot.slane %v1280_v21, 5  ;;  %v1072_v1 = vrot.slane %v1282_v36, 9  ;;  %v472_v49 = vrot.slane %v1284_v22, 5 }
  0x48   : > { %v1536_v17 = vsel %vm1487_vm5, %v1069_v63, %v457_v52  ;;  %v1538_v50 = vrot.slane %v457_v52, 4  ;;  %v1542_v45 = vsel %vm1487_vm5, %v1070_v10, %v462_v59  ;;  %v1544_v40 = vrot.slane %v462_v59, 4 }
  0x49   : > { %v1548_v41 = vsel %vm1487_vm5, %v1071_v53, %v467_v4  ;;  %v1550_v39 = vrot.slane %v467_v4, 4  ;;  %v1554_v38 = vsel %vm1487_vm5, %v1072_v1, %v472_v49  ;;  %v1556_v63 = vrot.slane %v472_v49, 4 }
  0x4a   : > { %2014 = vst [vmem:[#allocation24_spill] sm:$0xff] %v1554_v38  ;;  %v1073_v52 = vrot.slane %v1286_v27, 9  ;;  %v477_v34 = vrot.slane %v1288_v37, 5  ;;  %v519_v60 = vrot.slane %v217_v28, 5  ;;  %v2019_v53 = vshll.u32 %v1246_v19, 16 }
  0x4b   : > { %2013 = vst [vmem:[#allocation23_spill] sm:$0xff] %v1550_v39  ;;  %2015 = vst [vmem:[#allocation25_spill] sm:$0xff] %v1556_v63  ;;  %v2020_v4 = vshrl.u32 %v1251_v25, 16  ;;  %v2021_v49 = vshll.u32 %v1251_v25, 16  ;;  %v2022_v11 = vshrl.u32 %v1254_v26, 16  ;;  %v2029_v38 = vshll.u32 %v1260_v31, 16 }
  0x4c   : > { %v1574_v35 = vsel %vm1487_vm5, %v1073_v52, %v477_v34  ;;  %v1576_v10 = vrot.slane %v477_v34, 4  ;;  %v520_v34 = vrot.slane %v220_v29, 6  ;;  %v2018_v52 = vshrl.u32 %v1246_v19, 16 }
  0x4d   : > { %2016 = vst [vmem:[#allocation26_spill] sm:$0xff] %v1574_v35  ;;  %v524_v56 = vrot.slane %v2019_v53, 6  ;;  %v528_v55 = vrot.slane %v2020_v4, 5  ;;  %v529_v54 = vrot.slane %v2021_v49, 6  ;;  %v1618_v28 = vrot.slane %v2022_v11, 5 }
  0x4e   : > { %2017 = vst [vmem:[#allocation27_spill] sm:$0xff] %v1576_v10  ;;  %v1608_v59 = vrot.slane %v2018_v52, 5  ;;  %v521_v1 = vor.u32 %v520_v34, %v519_v60  ;;  %v2023_v29 = vshll.u32 %v1254_v26, 16  ;;  %v2024_v52 = vshrl.u32 %v1257_v30, 16 }
  0x4f   : > { %v530_v60 = vor.u32 %v529_v54, %v528_v55  ;;  %v2027_v11 = vshll.u32 %v1257_v30, 16  ;;  %v2030_v49 = vshrl.u32 %v1263_v9, 16  ;;  %v2032_v26 = vshrl.u32 %v1266_v13, 16 }
  0x50   : > { %v533_v18 = vrot.slane %v2023_v29, 6  ;;  %v537_v10 = vrot.slane %v2024_v52, 5  ;;  %v525_v4 = vor.u32 %v524_v56, %v1608_v59  ;;  %v522_v25 = vrot.slane %v521_v1, 4 }
  0x51   : > { %v538_v34 = vrot.slane %v2027_v11, 6  ;;  %v2028_v52 = vshrl.u32 %v1260_v31, 16  ;;  %v531_v35 = vrot.slane %v530_v60, 4  ;;  %v542_v56 = vrot.slane %v2029_v38, 6 }
  0x52   : > { %v534_v29 = vor.u32 %v533_v18, %v1618_v28  ;;  %v546_v55 = vrot.slane %v2030_v49, 5  ;;  %v526_v54 = vsel %vm1626_vm8, %v522_v25, %v525_v4  ;;  %v2031_v18 = vshll.u32 %v1263_v9, 16 }
  0x53   : > { %v1638_v19 = vrot.slane %v2028_v52, 5  ;;  %v539_v63 = vor.u32 %v538_v34, %v537_v10  ;;  %v1651_v52 = vrot.slane %v2032_v26, 5  ;;  %v2033_v49 = vshll.u32 %v1266_v13, 16 }
  0x54   : > { %v547_v11 = vrot.slane %v2031_v18, 6  ;;  %v535_v10 = vsel %vm1626_vm8, %v531_v35, %v534_v29  ;;  %v2034_v4 = vshrl.u32 %v1269_v32, 16  ;;  %v2035_v18 = vshll.u32 %v1269_v32, 16 }
  0x55   : > { %v540_v60 = vrot.slane %v539_v63, 4  ;;  %v543_v38 = vor.u32 %v542_v56, %v1638_v19  ;;  %v551_v34 = vrot.slane %v2033_v49, 6  ;;  %v554_v25 = vrot.slane %v1651_v52, 4 }
  0x56   : > { %v548_v31 = vor.u32 %v547_v11, %v546_v55  ;;  %v555_v1 = vrot.slane %v2034_v4, 5  ;;  %v556_v9 = vrot.slane %v2035_v18, 6  ;;  %v2036_v63 = vshrl.u32 %v1272_v14, 16 }
  0x57   : > { %v544_v26 = vsel %vm1626_vm8, %v540_v60, %v543_v38  ;;  %v552_v35 = vor.u32 %v551_v34, %v1651_v52  ;;  %v2037_v56 = vshll.u32 %v1272_v14, 16  ;;  %v2038_v13 = vshrl.u32 %v1274_v15, 16 }
  0x58   : > { %v559_v29 = vrot.slane %v2036_v63, 5  ;;  %v549_v55 = vrot.slane %v548_v31, 4  ;;  %v557_v11 = vor.u32 %v556_v9, %v555_v1  ;;  %v2039_v4 = vshll.u32 %v1274_v15, 16 }
  0x59   : > { %v560_v49 = vrot.slane %v2037_v56, 6  ;;  %v564_v30 = vrot.slane %v2038_v13, 5  ;;  %v2040_v60 = vshrl.u32 %v1276_v33, 16  ;;  %v2041_v52 = vshll.u32 %v1276_v33, 16 }
  0x5a   : > { %v565_v32 = vrot.slane %v2039_v4, 6  ;;  %v563_v43 = vrot.slane %v559_v29, 4  ;;  %v553_v63 = vsel %vm1626_vm8, %v549_v55, %v552_v35  ;;  %v558_v56 = vrot.slane %v557_v11, 4 }
  0x5b   : > { %v561_v18 = vor.u32 %v560_v49, %v559_v29  ;;  %v568_v38 = vrot.slane %v2040_v60, 5  ;;  %v569_v34 = vrot.slane %v2041_v52, 6  ;;  %v2042_v9 = vshrl.u32 %v1278_v20, 16 }
  0x5c   : > { %v566_v31 = vor.u32 %v565_v32, %v564_v30  ;;  %v2043_v4 = vshll.u32 %v1278_v20, 16  ;;  %v2044_v29 = vshrl.u32 %v1280_v21, 16  ;;  %v2045_v35 = vshll.u32 %v1280_v21, 16 }
  0x5d   : > { %v573_v1 = vrot.slane %v2042_v9, 5  ;;  %v570_v13 = vor.u32 %v569_v34, %v568_v38  ;;  %v572_v14 = vrot.slane %v568_v38, 4  ;;  %v562_v60 = vsel %vm1626_vm8, %v558_v56, %v561_v18 }
  0x5e   : > { %v574_v49 = vrot.slane %v2043_v4, 6  ;;  %v577_v15 = vrot.slane %v2044_v29, 5  ;;  %v567_v52 = vrot.slane %v566_v31, 4  ;;  %v578_v30 = vrot.slane %v2045_v35, 6 }
  0x5f   : > { %v2046_v32 = vshrl.u32 %v1282_v36, 16  ;;  %v2047_v34 = vshll.u32 %v1282_v36, 16  ;;  %v2048_v4 = vshrl.u32 %v1284_v22, 16  ;;  %v2049_v18 = vshll.u32 %v1284_v22, 16 }
  0x60   : > { %v575_v11 = vor.u32 %v574_v49, %v573_v1  ;;  %v581_v38 = vrot.slane %v577_v15, 4  ;;  %v571_v20 = vsel %vm1626_vm8, %v567_v52, %v570_v13  ;;  %v579_v33 = vor.u32 %v578_v30, %v577_v15 }
  0x61   : > { %v582_v55 = vrot.slane %v2046_v32, 5  ;;  %v583_v9 = vrot.slane %v2047_v34, 6  ;;  %v586_v29 = vrot.slane %v2048_v4, 5  ;;  %v587_v56 = vrot.slane %v2049_v18, 6 }
  0x62   : > { %v2050_v31 = vshrl.u32 %v1286_v27, 16  ;;  %v576_v21 = vrot.slane %v575_v11, 4  ;;  %v2051_v49 = vshll.u32 %v1286_v27, 16  ;;  %v2052_v39 = vshrl.u32 %v1288_v37, 16 }
  0x63   : > { %v584_v32 = vor.u32 %v583_v9, %v582_v55  ;;  %v590_v1 = vrot.slane %v586_v29, 4  ;;  %v588_v34 = vor.u32 %v587_v56, %v586_v29  ;;  %v2053_v12 = vshll.u32 %v1288_v37, 16 }
  0x64   : > { %v591_v35 = vrot.slane %v2050_v31, 5  ;;  %v592_v36 = vrot.slane %v2051_v49, 6  ;;  %v595_v4 = vrot.slane %v2052_v39, 5  ;;  %v2054_v15 = vmax.bf16 %v1504_v6, %v1409_v46  ;;  %v2081_v49 = vld [vmem:[#allocation22_spill] sm:$0xff] }
  0x65   : > { %v596_v13 = vrot.slane %v2053_v12, 6  ;;  %v580_v30 = vsel %vm1626_vm8, %v576_v21, %v579_v33  ;;  %v585_v55 = vrot.slane %v584_v32, 4  ;;  %v2055_v9 = vmax.bf16 %v1506_v44, %v1418_v47  ;;  %v2078_v32 = vld [vmem:[#allocation20_spill] sm:$0xff] }
  0x66   : > { %v1711_v52 = vmax.bf16 %v526_v54, %v2054_v15  ;;  %v593_v11 = vor.u32 %v592_v36, %v591_v35  ;;  %v2056_v29 = vrot.slane %v1608_v59, 4  ;;  %v599_v56 = vrot.slane %v595_v4, 4 }
  0x67   : > { %v597_v39 = vor.u32 %v596_v13, %v595_v4  ;;  %v2057_v12 = vmax.bf16 %v1510_v5, %v1421_v48  ;;  %v2058_v46 = vmax.bf16 %v1512_v61, %v1426_v3  ;;  %v2059_v33 = vrot.slane %v1618_v28, 4  ;;  %v2088_v13 = vld [vmem:[#allocation2_spill] sm:$0xff] }
  0x68   : > { %v1720_v18 = vmax.bf16 %v2056_v29, %v2055_v9  ;;  %v589_v36 = vsel %vm1626_vm8, %v585_v55, %v588_v34  ;;  %v594_v47 = vrot.slane %v593_v11, 4  ;;  %v2060_v44 = vmax.bf16 %v1516_v62, %v1429_v16  ;;  %v2090_v55 = vld [vmem:[#allocation4_spill] sm:$0xff]  ;;  %v2091_v9 = vld [vmem:[#allocation5_spill] sm:$0xff] }
  0x69   : > { %v620_v6 = vmax.bf16 %v535_v10, %v2057_v12  ;;  %v621_v21 = vmax.bf16 %v2059_v33, %v2058_v46  ;;  %v2061_v54 = vmax.bf16 %v1518_v58, %v1434_v2  ;;  %v2062_v5 = vrot.slane %v1638_v19, 4  ;;  %v2093_v46 = vld [vmem:[#allocation7_spill] sm:$0xff] }
  0x6a   : > { %v622_v59 = vmax.bf16 %v544_v26, %v2060_v44  ;;  %v2063_v61 = vmax.bf16 %v1522_v57, %v1437_v8  ;;  %v2064_v28 = vmax.bf16 %v1524_v24, %v1442_v7  ;;  %v2065_v31 = vmax.bf16 %v1536_v17, %v1445_v23  ;;  %v2069_v7 = vld [vmem:[#allocation17_spill] sm:$0xff]  ;;  %v2071_v17 = vld [vmem:[#allocation23_spill] sm:$0xff] }
  0x6b   : > { %v623_v48 = vmax.bf16 %v2062_v5, %v2061_v54  ;;  %v2066_v62 = vmax.bf16 %v1538_v50, %v1452_v42  ;;  %v598_v19 = vsel %vm1626_vm8, %v594_v47, %v597_v39  ;;  %v2067_v58 = vmax.bf16 %v1542_v45, %v1455_v51  ;;  %v2075_v50 = vld [vmem:[#allocation19_spill] sm:$0xff]  ;;  %v2080_v51 = vld [vmem:[#allocation26_spill] sm:$0xff] }
  0x6c   : > { %v624_v3 = vmax.bf16 %v553_v63, %v2063_v61  ;;  %v625_v10 = vmax.bf16 %v554_v25, %v2064_v28  ;;  %v626_v35 = vmax.bf16 %v562_v60, %v2065_v31  ;;  %v2068_v8 = vmax.bf16 %v1544_v40, %v1460_v0  ;;  %v2072_v25 = vld [vmem:[#allocation18_spill] sm:$0xff]  ;;  %v2077_v60 = vld [vmem:[#allocation25_spill] sm:$0xff]  ;;  %v2085_v0 = vld [vmem:[#allocation27_spill] sm:$0xff] }
  0x6d   : > { %v627_v16 = vmax.bf16 %v563_v43, %v2066_v62  ;;  %v628_v57 = vmax.bf16 %v571_v20, %v2067_v58  ;;  %v2070_v24 = vmax.bf16 %v1548_v41, %v2069_v7  ;;  %v2073_v26 = vmax.bf16 %v2071_v17, %v2072_v25  ;;  %v2074_v43 = vld [vmem:[#allocation24_spill] sm:$0xff]  ;;  %v2092_v39 = vld [vmem:[#allocation6_spill] sm:$0xff] }
  0x6e   : > { %v629_v2 = vmax.bf16 %v572_v14, %v2068_v8  ;;  %v2076_v53 = vmax.bf16 %v2074_v43, %v2075_v50  ;;  %v2079_v45 = vmax.bf16 %v2077_v60, %v2078_v32  ;;  %v2082_v40 = vmax.bf16 %v2080_v51, %v2081_v49  ;;  %v2096_v61 = vld [vmem:[#allocation10_spill] sm:$0xff]  ;;  %v2098_v25 = vld [vmem:[#allocation12_spill] sm:$0xff]  ;;  %v2099_v43 = vld [vmem:[#allocation13_spill] sm:$0xff] }
  0x6f   : > { %v630_v23 = vmax.bf16 %v580_v30, %v2070_v24  ;;  %v631_v42 = vmax.bf16 %v581_v38, %v2073_v26  ;;  %v2086_v38 = vld [vmem:[#allocation21_spill] sm:$0xff]  ;;  %v1074_v15 = vrot.slane %v2088_v13, 10  ;;  %v2089_v30 = vld [vmem:[#allocation3_spill] sm:$0xff]  ;;  %v1075_v11 = vrot.slane %v2090_v55, 10  ;;  %v2102_v51 = vld [vmem:[#allocation16_spill] sm:$0xff] }
  0x70   : > { %v632_v63 = vmax.bf16 %v589_v36, %v2076_v53  ;;  %v633_v20 = vmax.bf16 %v590_v1, %v2079_v45  ;;  %v1775_v14 = vmax.bf16 %v598_v19, %v2082_v40  ;;  %v2087_v34 = vmax.bf16 %v2085_v0, %v2086_v38  ;;  %v2094_v36 = vld [vmem:[#allocation8_spill] sm:$0xff]  ;;  %v2097_v24 = vld [vmem:[#allocation11_spill] sm:$0xff]  ;;  %v2100_v53 = vld [vmem:[#allocation14_spill] sm:$0xff] }
  0x71   : > { %v641_v1 = vrot.slane %v2089_v30, 6  ;;  %v646_v29 = vrot.slane %v2091_v9, 6  ;;  %v1076_v12 = vrot.slane %v2092_v39, 10  ;;  %v651_v33 = vrot.slane %v2093_v46, 6  ;;  %v2101_v32 = vld [vmem:[#allocation15_spill] sm:$0xff] }
  0x72   : > { %v1786_v4 = vmax.bf16 %v599_v56, %v2087_v34  ;;  %v1077_v47 = vrot.slane %v2094_v36, 10  ;;  %v2095_v56 = vld [vmem:[#allocation9_spill] sm:$0xff]  ;;  %v1078_v28 = vrot.slane %v2096_v61, 10  ;;  %v661_v17 = vrot.slane %v2097_v24, 6 }
  0x73   : > { %v642_v44 = vsel %vm1779_vm11, %v1074_v15, %v641_v1  ;;  %v643_v54 = vrot.slane %v641_v1, 4  ;;  %v656_v5 = vrot.slane %v2095_v56, 6  ;;  %v647_v31 = vsel %vm1779_vm11, %v1075_v11, %v646_v29 }
  0x74   : > { %v648_v62 = vrot.slane %v646_v29, 4  ;;  %v652_v19 = vsel %vm1779_vm11, %v1076_v12, %v651_v33  ;;  %v653_v58 = vrot.slane %v651_v33, 4  ;;  %v1079_v26 = vrot.slane %v2098_v25, 10 }
  0x75   : > { %v657_v8 = vsel %vm1779_vm11, %v1077_v47, %v656_v5  ;;  %v658_v7 = vrot.slane %v656_v5, 4  ;;  %v666_v50 = vrot.slane %v2099_v43, 6  ;;  %v1080_v60 = vrot.slane %v2100_v53, 10 }
  0x76   : > { %v671_v45 = vrot.slane %v2101_v32, 6  ;;  %v1081_v49 = vrot.slane %v2102_v51, 10  ;;  %v662_v40 = vsel %vm1779_vm11, %v1078_v28, %v661_v17  ;;  %v663_v0 = vrot.slane %v661_v17, 4 }
  0x77   : > { %v676_v38 = vrot.slane %v1284_v22, 6  ;;  %v1082_v34 = vrot.slane %v1286_v27, 10  ;;  %v667_v13 = vsel %vm1779_vm11, %v1079_v26, %v666_v50  ;;  %v668_v15 = vrot.slane %v666_v50, 4 }
  0x78   : > { %v672_v30 = vsel %vm1779_vm11, %v1080_v60, %v671_v45  ;;  %v673_v1 = vrot.slane %v671_v45, 4  ;;  %v681_v9 = vrot.slane %v1288_v37, 6  ;;  %v702_v29 = vmax.bf16 %v642_v44, %v1711_v52 }
  0x79   : > { %v677_v55 = vsel %vm1779_vm11, %v1081_v49, %v676_v38  ;;  %v678_v11 = vrot.slane %v676_v38, 4  ;;  %v703_v22 = vmax.bf16 %v643_v54, %v1720_v18  ;;  %v704_v39 = vmax.bf16 %v647_v31, %v620_v6 }
  0x7a   : > { %v705_v27 = vmax.bf16 %v648_v62, %v621_v21  ;;  %v706_v12 = vmax.bf16 %v652_v19, %v622_v59  ;;  %v682_v46 = vsel %vm1779_vm11, %v1082_v34, %v681_v9  ;;  %v683_v33 = vrot.slane %v681_v9, 4 }
  0x7b   : > { %v707_v36 = vmax.bf16 %v653_v58, %v623_v48  ;;  %v708_v47 = vmax.bf16 %v657_v8, %v624_v3  ;;  %v709_v56 = vmax.bf16 %v658_v7, %v625_v10  ;;  %v1826_v5 = vmax.bf16 %v662_v40, %v626_v35 }
  0x7c   : > { %v1828_v61 = vmax.bf16 %v663_v0, %v627_v16  ;;  %v712_v28 = vmax.bf16 %v667_v13, %v628_v57  ;;  %v713_v37 = vmax.bf16 %v668_v15, %v629_v2  ;;  %v714_v24 = vmax.bf16 %v672_v30, %v630_v23 }
  0x7d   : > { %v715_v52 = vmax.bf16 %v673_v1, %v631_v42  ;;  %v716_v44 = vmax.bf16 %v677_v55, %v632_v63  ;;  %v717_v18 = vmax.bf16 %v678_v11, %v633_v20  ;;  %v718_v6 = vmax.bf16 %v682_v46, %v1775_v14 }
  0x7e   : > { %v719_v21 = vmax.bf16 %v683_v33, %v1786_v4  ;;  %v720_v59 = vmax.bf16 %v704_v39, %v702_v29  ;;  %v721_v54 = vmax.bf16 %v705_v27, %v703_v22  ;;  %v722_v31 = vmax.bf16 %v706_v12, %v704_v39 }
  0x7f   : > { %v723_v48 = vmax.bf16 %v707_v36, %v705_v27  ;;  %v724_v3 = vmax.bf16 %v708_v47, %v706_v12  ;;  %v725_v10 = vmax.bf16 %v709_v56, %v707_v36  ;;  %v726_v35 = vmax.bf16 %v1826_v5, %v708_v47 }
  0x80   : > { %v727_v16 = vmax.bf16 %v1828_v61, %v709_v56  ;;  %v728_v57 = vmax.bf16 %v712_v28, %v1826_v5  ;;  %v729_v2 = vmax.bf16 %v713_v37, %v1828_v61  ;;  %v730_v23 = vmax.bf16 %v720_v59, %v706_v12 }
  0x81   : > { %v731_v42 = vmax.bf16 %v721_v54, %v707_v36  ;;  %v732_v63 = vmax.bf16 %v722_v31, %v708_v47  ;;  %v733_v20 = vmax.bf16 %v723_v48, %v709_v56  ;;  %v734_v14 = vmax.bf16 %v724_v3, %v1826_v5 }
  0x82   : > { %v735_v4 = vmax.bf16 %v725_v10, %v1828_v61  ;;  %v736_v62 = vmax.bf16 %v726_v35, %v712_v28  ;;  %v737_v19 = vmax.bf16 %v727_v16, %v713_v37  ;;  %v738_v58 = vmax.bf16 %v728_v57, %v714_v24 }
  0x83   : > { %v739_v8 = vmax.bf16 %v729_v2, %v715_v52  ;;  %v740_v7 = vmax.bf16 %v730_v23, %v708_v47  ;;  %v1838_v17 = vmax.bf16 %v731_v42, %v709_v56  ;;  %v742_v25 = vmax.bf16 %v732_v63, %v1826_v5 }
  0x84   : > { %v743_v26 = vmax.bf16 %v733_v20, %v1828_v61  ;;  %v744_v43 = vmax.bf16 %v734_v14, %v712_v28  ;;  %v745_v50 = vmax.bf16 %v735_v4, %v713_v37  ;;  %v746_v53 = vmax.bf16 %v736_v62, %v714_v24 }
  0x85   : > { %v747_v60 = vmax.bf16 %v737_v19, %v715_v52  ;;  %v748_v32 = vmax.bf16 %v738_v58, %v716_v44  ;;  %v749_v45 = vmax.bf16 %v739_v8, %v717_v18  ;;  %v1843_v51 = vmax.bf16 %v740_v7, %v1826_v5 }
  0x86   : > { %v751_v49 = vmax.bf16 %v1838_v17, %v1828_v61  ;;  %v1847_v40 = vmax.bf16 %v742_v25, %v712_v28  ;;  %v1849_v0 = vmax.bf16 %v743_v26, %v713_v37  ;;  %v1851_v38 = vmax.bf16 %v744_v43, %v714_v24 }
  0x87   : > { %v1853_v34 = vmax.bf16 %v745_v50, %v715_v52  ;;  %v1855_v13 = vmax.bf16 %v746_v53, %v716_v44  ;;  %v1857_v15 = vmax.bf16 %v747_v60, %v717_v18  ;;  %v1859_v30 = vmax.bf16 %v748_v32, %v718_v6 }
  0x88   : > { %v1861_v1 = vmax.bf16 %v749_v45, %v719_v21  ;;  %v761_v55 = vshrl.u32 %v1843_v51, 16  ;;  %v764_v11 = vshll.u32 %v1843_v51, 16  ;;  %v770_v9 = vshrl.u32 %v1847_v40, 16 }
  0x89   : > { %v773_v29 = vshll.u32 %v1847_v40, 16  ;;  %v779_v22 = vshrl.u32 %v1851_v38, 16  ;;  %v782_v27 = vshll.u32 %v1851_v38, 16  ;;  %v788_v12 = vshrl.u32 %v1855_v13, 16 }
  0x8a   : > { %v763_v39 = vrot.slane %v761_v55, 4  ;;  %v791_v46 = vshll.u32 %v1855_v13, 16  ;;  %v766_v33 = vrot.slane %v764_v11, 5  ;;  %v772_v36 = vrot.slane %v770_v9, 4 }
  0x8b   : > { %v775_v47 = vrot.slane %v773_v29, 5  ;;  %v781_v56 = vrot.slane %v779_v22, 4  ;;  %v784_v28 = vrot.slane %v782_v27, 5  ;;  %v790_v37 = vrot.slane %v788_v12, 4 }
  0x8c   : > { %v793_v24 = vrot.slane %v791_v46, 5  ;;  %v797_v52 = vshrl.u32 %v1859_v30, 16  ;;  %v767_v44 = vor.u32 %v766_v33, %v763_v39  ;;  %v800_v6 = vshll.u32 %v1859_v30, 16 }
  0x8d   : > { %v776_v18 = vor.u32 %v775_v47, %v772_v36  ;;  %v1083_v21 = vrot.slane %v1843_v51, 9  ;;  %v785_v59 = vor.u32 %v784_v28, %v781_v56  ;;  %v1084_v48 = vrot.slane %v1847_v40, 9 }
  0x8e   : > { %v794_v54 = vor.u32 %v793_v24, %v790_v37  ;;  %v799_v31 = vrot.slane %v797_v52, 4  ;;  %v768_v3 = vrot.slane %v767_v44, 4  ;;  %v802_v35 = vrot.slane %v800_v6, 5 }
  0x8f   : > { %v777_v10 = vrot.slane %v776_v18, 4  ;;  %v1085_v16 = vrot.slane %v1851_v38, 9  ;;  %v786_v57 = vrot.slane %v785_v59, 4  ;;  %v1086_v23 = vrot.slane %v1855_v13, 9 }
  0x90   : > { %v795_v2 = vrot.slane %v794_v54, 4  ;;  %v1087_v42 = vrot.slane %v1859_v30, 9  ;;  %v803_v63 = vor.u32 %v802_v35, %v799_v31  ;;  %v810_v20 = vmax.bf16 %v768_v3, %v1843_v51 }
  0x91   : > { %v811_v14 = vmax.bf16 %v777_v10, %v1847_v40  ;;  %v840_v4 = vrot.slane %v761_v55, 5  ;;  %v812_v62 = vmax.bf16 %v786_v57, %v1851_v38  ;;  %v841_v58 = vrot.slane %v764_v11, 6 }
  0x92   : > { %v813_v19 = vmax.bf16 %v795_v2, %v1855_v13  ;;  %v844_v8 = vrot.slane %v770_v9, 5  ;;  %v804_v7 = vrot.slane %v803_v63, 4  ;;  %v835_v25 = vmax.bf16 %v1083_v21, %v810_v20 }
  0x93   : > { %v836_v26 = vmax.bf16 %v1084_v48, %v811_v14  ;;  %v845_v43 = vrot.slane %v773_v29, 6  ;;  %v837_v50 = vmax.bf16 %v1085_v16, %v812_v62  ;;  %v842_v60 = vor.u32 %v841_v58, %v840_v4 }
  0x94   : > { %v838_v53 = vmax.bf16 %v1086_v23, %v813_v19  ;;  %v848_v32 = vrot.slane %v779_v22, 5  ;;  %v814_v45 = vmax.bf16 %v804_v7, %v1859_v30  ;;  %v849_v33 = vrot.slane %v782_v27, 6  ;;  %v1110_v19 = vld.sshfl [vmem:[%s1144_s11 + $0x30] sm:$0x33 pattern:$0x75316420] }
  0x95   : > { %v846_v39 = vor.u32 %v845_v43, %v844_v8  ;;  %v852_v36 = vrot.slane %v788_v12, 5  ;;  %v843_v55 = vrot.slane %v842_v60, 4  ;;  %v853_v47 = vrot.slane %v791_v46, 6 }
  0x96   : > { %v856_v56 = vrot.slane %v797_v52, 5  ;;  %v857_v28 = vrot.slane %v800_v6, 6  ;;  %v839_v37 = vmax.bf16 %v1087_v42, %v814_v45  ;;  %v850_v9 = vor.u32 %v849_v33, %v848_v32  ;;  %v990_v45 = vld [vmem:[%s114_s15 + $0x2] sm:$0x1] }
  0x97   : > { %v847_v11 = vrot.slane %v846_v39, 4  ;;  %v1088_v24 = vrot.slane %v1843_v51, 10  ;;  %v854_v44 = vor.u32 %v853_v47, %v852_v36  ;;  %v865_v18 = vmax.bf16 %v843_v55, %v835_v25  ;;  %v950_v39 = vld [vmem:[%s114_s15] sm:$0x1] }
  0x98   : > { %v858_v29 = vor.u32 %v857_v28, %v856_v56  ;;  %v877_v22 = vrot.slane %v751_v49, 6  ;;  %v851_v21 = vrot.slane %v850_v9, 4  ;;  %v1089_v27 = vrot.slane %v1847_v40, 10 }
  0x99   : > { %v866_v59 = vmax.bf16 %v847_v11, %v836_v26  ;;  %v881_v12 = vrot.slane %v1849_v0, 6  ;;  %v855_v46 = vrot.slane %v854_v44, 4  ;;  %v1090_v51 = vrot.slane %v1851_v38, 10 }
  0x9a   : > { %v859_v52 = vrot.slane %v858_v29, 4  ;;  %v878_v6 = vsel %vm1779_vm11, %v1088_v24, %v877_v22  ;;  %v867_v54 = vmax.bf16 %v851_v21, %v837_v50  ;;  %v885_v61 = vrot.slane %v1853_v34, 6  ;;  %v993_v24 = vld [vmem:[%s114_s15 + $0x3] sm:$0x1] }
  0x9b   : > { %v882_v31 = vsel %vm1779_vm11, %v1089_v27, %v881_v12  ;;  %v1091_v17 = vrot.slane %v1855_v13, 10  ;;  %v868_v49 = vmax.bf16 %v855_v46, %v838_v53  ;;  %v889_v40 = vrot.slane %v1857_v15, 6 }
  0x9c   : > { %v869_v48 = vmax.bf16 %v859_v52, %v839_v37  ;;  %v1092_v0 = vrot.slane %v1859_v30, 10  ;;  %v886_v3 = vsel %vm1779_vm11, %v1090_v51, %v885_v61  ;;  %v893_v38 = vrot.slane %v1861_v1, 6 }
  0x9d   : > { %v900_v10 = vmax.bf16 %v878_v6, %v865_v18  ;;  %v901_v35 = vmax.bf16 %v882_v31, %v866_v59  ;;  %v890_v16 = vsel %vm1779_vm11, %v1091_v17, %v889_v40  ;;  %v902_v34 = vmax.bf16 %v886_v3, %v867_v54 }
  0x9e   : > { %v933_v13 = vlaneseq  ;;  %v894_v57 = vsel %vm1779_vm11, %v1092_v0, %v893_v38  ;;  %v903_v15 = vmax.bf16 %v890_v16, %v868_v49  ;;  %v1119_v30 = vmov 1966171168  }
  0x9f   : > { %v905_v2 = vmax.bf16 %v901_v35, %v900_v10  ;;  %v931_v23 = vunpack.c.l.s4 %v1119_v30  ;;  %v904_v63 = vmax.bf16 %v894_v57, %v869_v48  ;;  %v937_v25 = vcombine.high %v1110_v19, %v1110_v19 }
  0xa0   : > { %v934_v42 = vshrl.u32 %v933_v13, 7 }
  0xa1   : > { %v906_v20 = vmax.bf16 %v905_v2, %v902_v34  ;;  %v932_v14 = vunpack.c.0.s8 %v931_v23 }
  0xa3   : > { %v907_v1 = vmax.bf16 %v906_v20, %v903_v15  ;;  %v935_v4 = vsub.s32 %v932_v14, %v934_v42 }
  0xa5   : > { %v908_v62 = vmax.bf16 %v907_v1, %v904_v63  ;;  %v960_v58 = vrot.slane %v1826_v5, %v935_v4  ;;  %v980_v8 = vrot.slane %v902_v34, %v935_v4  ;;  %v944_v60 = vrot.slane %v937_v25, %v935_v4  ;;  %v970_v5 = vld [vmem:[%s114_s15 + $0x1] sm:$0x1] }
  0xa7   : > { %v910_v41 = vshrl.u32 %v908_v62, 16  ;;  %v1094_v7 = vrot.slane %v908_v62, 9  ;;  %v967_v26 = vrot.slane %v960_v58, %v935_v4  ;;  %v981_v43 = vcombine.high %v980_v8, %v980_v8 }
  0xa8   : > { %v1096_v47 = vrot.slane %v908_v62, 10  ;;  %v945_v56 = vcombine.high %v944_v60, %v944_v60 }
  0xa9   : > { %v915_v50 = vmax.bf16 %v910_v41, %v908_v62  ;;  %v1095_v53 = vrot.slane %v910_v41, 9  ;;  %v968_v33 = vcombine.high %v967_v26, %v967_v26  ;;  %v988_v36 = vrot.slane %v981_v43, %v935_v4 }
  0xaa   : > { %v951_v9 = vsel %vm1911_vm14, %v945_v56, %v950_v39 }
  0xab   : > { %v920_v55 = vmax.bf16 %v1094_v7, %v915_v50  ;;  %v971_v28 = vsel %vm1911_vm14, %v968_v33, %v970_v5  ;;  %v991_v37 = vsel %vm1911_vm14, %v988_v36, %v990_v45  ;;  %952 = vst [vmem:[%s114_s15] sm:$0x1] %v951_v9 }
  0xac   : > { %972 = vst [vmem:[%s114_s15 + $0x1] sm:$0x1] %v971_v28  ;;  %992 = vst [vmem:[%s114_s15 + $0x2] sm:$0x1] %v991_v37 }
  0xad   : > { %v924_v11 = vmax.bf16 %v1095_v53, %v920_v55 }
  0xaf   : > { %v928_v44 = vmax.bf16 %v1096_v47, %v924_v11 }
  0xb1   : > { %v994_v29 = vsel %vm1911_vm14, %v928_v44, %v993_v24 }
  0xb2   : > { %995 = vst [vmem:[%s114_s15 + $0x3] sm:$0x1] %v994_v29 }
  0xb3 PF: > { %s11_s6 = sadd.s32 1, %s1117_s6  }
  0xb4   : > { %p8_p4 = scmp.ge.s32.totalorder %s11_s6, 4  }
  0xb6   :  { %10 = sbr.rel (!%p8_p4) target bundleno = 1 (0x1), region = 54 }

// kernel: cspdarknet_forward.59
= control target key start
LH: loop header
LB: loop body
LE: loop exit
PB: predicated region body
PF: predicated region fallthrough
CT: control target
= control target key end

     0   :  { %s943_s1 = inlined_call_operand.vmem [shape: bf16[512,256], index: 1, kind: input, shape index: {}]   ;;  %s944_s0 = inlined_call_operand.vmem [shape: bf16[8,512], index: 0, kind: input, shape index: {}]   ;;  %s945_s2 = inlined_call_operand.vmem [shape: f32[1,256], index: 2, kind: input, shape index: {}]   ;;  %s946_s3 = inlined_call_operand.vmem [shape: bf16[8,256], index: 3, kind: output, shape index: {}]  }
   0x1   :  { %v611_v0 = vld [vmem:[%s943_s1 + $0x4] ss:$8 sps:$4 sm:$0xff]   ;;  %v615_v2 = vld [vmem:[%s943_s1] ss:$8 sps:$4 sm:$0xff]   ;;  %v617_v4 = vld [vmem:[%s943_s1 + $0x14] ss:$8 sps:$4 sm:$0xff]  }
   0x2   :  { %v613_v1 = vld [vmem:[%s943_s1 + $0x104] ss:$8 sps:$4 sm:$0xff]   ;;  %426 = vmatprep.subr.bf16.mxu1 %v611_v0  ;;  %v616_v3 = vld [vmem:[%s943_s1 + $0x100] ss:$8 sps:$4 sm:$0xff]   ;;  %v619_v5 = vld [vmem:[%s943_s1 + $0x114] ss:$8 sps:$4 sm:$0xff]  }
   0x3   :  { %467 = vmatprep.subr.bf16.mxu0 %v613_v1  ;;  %427 = vmatpush1.bf16.msra.mxu1 %v615_v2  ;;  %v621_v6 = vld [vmem:[%s943_s1 + $0x10] ss:$8 sps:$4 sm:$0xff]   ;;  %v623_v8 = vld [vmem:[%s943_s1 + $0x24] ss:$8 sps:$4 sm:$0xff]   ;;  %v627_v10 = vld [vmem:[%s943_s1 + $0x20] ss:$8 sps:$4 sm:$0xff]  }
   0x4   :  { %468 = vmatpush1.bf16.msra.mxu0 %v616_v3  ;;  %428 = vmatprep.subr.bf16.mxu1 %v617_v4  ;;  %v622_v7 = vld [vmem:[%s943_s1 + $0x110] ss:$8 sps:$4 sm:$0xff]   ;;  %v625_v9 = vld [vmem:[%s943_s1 + $0x124] ss:$8 sps:$4 sm:$0xff]   ;;  %v628_v11 = vld [vmem:[%s943_s1 + $0x120] ss:$8 sps:$4 sm:$0xff]  }
   0x5   :  { %469 = vmatprep.subr.bf16.mxu0 %v619_v5  ;;  %v629_v12 = vld [vmem:[%s943_s1 + $0x34] ss:$8 sps:$4 sm:$0xff]   ;;  %v633_v14 = vld [vmem:[%s943_s1 + $0x30] ss:$8 sps:$4 sm:$0xff]   ;;  %v635_v16 = vld [vmem:[%s943_s1 + $0x44] ss:$8 sps:$4 sm:$0xff]  }
   0x6   :  { %v631_v13 = vld [vmem:[%s943_s1 + $0x134] ss:$8 sps:$4 sm:$0xff]   ;;  %v634_v15 = vld [vmem:[%s943_s1 + $0x130] ss:$8 sps:$4 sm:$0xff]   ;;  %v637_v17 = vld [vmem:[%s943_s1 + $0x144] ss:$8 sps:$4 sm:$0xff]  }
   0x7   :  { %429 = vmatpush1.bf16.msra.mxu1 %v621_v6  ;;  %v639_v18 = vld [vmem:[%s943_s1 + $0x40] ss:$8 sps:$4 sm:$0xff]   ;;  %v641_v20 = vld [vmem:[%s943_s1 + $0x54] ss:$8 sps:$4 sm:$0xff]   ;;  %v645_v22 = vld [vmem:[%s943_s1 + $0x50] ss:$8 sps:$4 sm:$0xff]   ;;  %v82_v6 = vlaneseq }
   0x8   :  { %470 = vmatpush1.bf16.msra.mxu0 %v622_v7  ;;  %430 = vmatprep.subr.bf16.mxu1 %v623_v8  ;;  %v640_v19 = vld [vmem:[%s943_s1 + $0x140] ss:$8 sps:$4 sm:$0xff]   ;;  %v643_v21 = vld [vmem:[%s943_s1 + $0x154] ss:$8 sps:$4 sm:$0xff]   ;;  %v646_v23 = vld [vmem:[%s943_s1 + $0x150] ss:$8 sps:$4 sm:$0xff]  }
   0x9   :  { %471 = vmatprep.subr.bf16.mxu0 %v625_v9  ;;  %v647_v24 = vld [vmem:[%s943_s1 + $0x64] ss:$8 sps:$4 sm:$0xff]   ;;  %v651_v26 = vld [vmem:[%s943_s1 + $0x60] ss:$8 sps:$4 sm:$0xff]   ;;  %v653_v28 = vld [vmem:[%s943_s1 + $0x74] ss:$8 sps:$4 sm:$0xff]  }
   0xa   :  { %v649_v25 = vld [vmem:[%s943_s1 + $0x164] ss:$8 sps:$4 sm:$0xff]   ;;  %v652_v27 = vld [vmem:[%s943_s1 + $0x160] ss:$8 sps:$4 sm:$0xff]   ;;  %v655_v29 = vld [vmem:[%s943_s1 + $0x174] ss:$8 sps:$4 sm:$0xff]  }
   0xb   :  { %431 = vmatpush1.bf16.msra.mxu1 %v627_v10  ;;  %v657_v30 = vld [vmem:[%s943_s1 + $0x70] ss:$8 sps:$4 sm:$0xff]   ;;  %v659_v32 = vld [vmem:[%s943_s1 + $0x84] ss:$8 sps:$4 sm:$0xff]   ;;  %v663_v34 = vld [vmem:[%s943_s1 + $0x80] ss:$8 sps:$4 sm:$0xff]  }
   0xc   :  { %472 = vmatpush1.bf16.msra.mxu0 %v628_v11  ;;  %432 = vmatprep.subr.bf16.mxu1 %v629_v12  ;;  %v658_v31 = vld [vmem:[%s943_s1 + $0x170] ss:$8 sps:$4 sm:$0xff]   ;;  %v661_v33 = vld [vmem:[%s943_s1 + $0x184] ss:$8 sps:$4 sm:$0xff]   ;;  %v664_v35 = vld [vmem:[%s943_s1 + $0x180] ss:$8 sps:$4 sm:$0xff]  }
   0xd   :  { %473 = vmatprep.subr.bf16.mxu0 %v631_v13  ;;  %v665_v36 = vld [vmem:[%s943_s1 + $0x94] ss:$8 sps:$4 sm:$0xff]   ;;  %v669_v38 = vld [vmem:[%s943_s1 + $0x90] ss:$8 sps:$4 sm:$0xff]   ;;  %v671_v40 = vld [vmem:[%s943_s1 + $0xa4] ss:$8 sps:$4 sm:$0xff]  }
   0xe   :  { %v667_v37 = vld [vmem:[%s943_s1 + $0x194] ss:$8 sps:$4 sm:$0xff]   ;;  %v670_v39 = vld [vmem:[%s943_s1 + $0x190] ss:$8 sps:$4 sm:$0xff]   ;;  %v673_v41 = vld [vmem:[%s943_s1 + $0x1a4] ss:$8 sps:$4 sm:$0xff]  }
   0xf   :  { %433 = vmatpush1.bf16.msra.mxu1 %v633_v14  ;;  %v675_v42 = vld [vmem:[%s943_s1 + $0xa0] ss:$8 sps:$4 sm:$0xff]   ;;  %v677_v44 = vld [vmem:[%s943_s1 + $0xb4] ss:$8 sps:$4 sm:$0xff]   ;;  %v681_v49 = vld [vmem:[%s943_s1 + $0xb0] ss:$8 sps:$4 sm:$0xff]  }
  0x10   :  { %474 = vmatpush1.bf16.msra.mxu0 %v634_v15  ;;  %434 = vmatprep.subr.bf16.mxu1 %v635_v16  ;;  %v676_v43 = vld [vmem:[%s943_s1 + $0x1a0] ss:$8 sps:$4 sm:$0xff]   ;;  %v679_v45 = vld [vmem:[%s943_s1 + $0x1b4] ss:$8 sps:$4 sm:$0xff]   ;;  %v682_v50 = vld [vmem:[%s943_s1 + $0x1b0] ss:$8 sps:$4 sm:$0xff]  }
  0x11   :  { %475 = vmatprep.subr.bf16.mxu0 %v637_v17  ;;  %v14_v46 = vld [vmem:[%s944_s0] sm:$0xff]  ;;  %v15_v48 = vld [vmem:[%s944_s0 + $0x8] sm:$0xff]  ;;  %v689_v56 = vld [vmem:[%s943_s1 + $0xd4] ss:$8 sps:$4 sm:$0xff]   ;;  %v83_v7 = vshrl.u32 %v82_v6, 7 }
  0x12   :  { %v536_v47 = vcombine.high %v14_v46, %v14_v46  ;;  %v538_v51 = vcombine.high %v15_v48, %v15_v48  ;;  %v683_v52 = vld [vmem:[%s943_s1 + $0xc4] ss:$8 sps:$4 sm:$0xff]   ;;  %v687_v54 = vld [vmem:[%s943_s1 + $0xc0] ss:$8 sps:$4 sm:$0xff]   ;;  %v691_v57 = vld [vmem:[%s943_s1 + $0x1d4] ss:$8 sps:$4 sm:$0xff]   ;;  %v535_v4 = vcombine.low %v14_v46, %v14_v46  ;;  %v537_v5 = vcombine.low %v15_v48, %v15_v48 }
  0x13   :  { %435 = vmatpush1.bf16.msra.mxu1 %v639_v18  ;;  %v685_v53 = vld [vmem:[%s943_s1 + $0x1c4] ss:$8 sps:$4 sm:$0xff]   ;;  %v688_v55 = vld [vmem:[%s943_s1 + $0x1c0] ss:$8 sps:$4 sm:$0xff]   ;;  %v693_v58 = vld [vmem:[%s943_s1 + $0xd0] ss:$8 sps:$4 sm:$0xff]  }
  0x14   :  { %476 = vmatpush1.bf16.msra.mxu0 %v640_v19  ;;  %436 = vmatprep.subr.bf16.mxu1 %v641_v20  ;;  %v694_v59 = vld [vmem:[%s943_s1 + $0x1d0] ss:$8 sps:$4 sm:$0xff]   ;;  %v695_v60 = vld [vmem:[%s943_s1 + $0xe4] ss:$8 sps:$4 sm:$0xff]   ;;  %v699_v62 = vld [vmem:[%s943_s1 + $0xe0] ss:$8 sps:$4 sm:$0xff]  }
  0x15   :  { %477 = vmatprep.subr.bf16.mxu0 %v643_v21  ;;  %458 = vmatprep.mubr.bf16.mxu1 %v536_v47  ;;  %v697_v61 = vld [vmem:[%s943_s1 + $0x1e4] ss:$8 sps:$4 sm:$0xff]   ;;  %v700_v63 = vld [vmem:[%s943_s1 + $0x1e0] ss:$8 sps:$4 sm:$0xff]   ;;  %v701_v0 = vld [vmem:[%s943_s1 + $0xf4] ss:$8 sps:$4 sm:$0xff]  }
  0x16   :  { %499 = vmatprep.mubr.bf16.mxu0 %v538_v51  ;;  %v703_v1 = vld [vmem:[%s943_s1 + $0x1f4] ss:$8 sps:$4 sm:$0xff]   ;;  %v705_v2 = vld [vmem:[%s943_s1 + $0xf0] ss:$8 sps:$4 sm:$0xff]   ;;  %v84_v8 = vsub.s32 0, %v83_v7  ;;  %v88_v10 = vsub.s32 1, %v83_v7 }
  0x17   :  { %437 = vmatpush1.bf16.msra.mxu1 %v645_v22  ;;  %v706_v3 = vld [vmem:[%s943_s1 + $0x1f0] ss:$8 sps:$4 sm:$0xff]   ;;  %v80_v9 = vld [vmem:[%s945_s2] sm:$0x3] }
  0x18   :  { %478 = vmatpush1.bf16.msra.mxu0 %v646_v23  ;;  %438 = vmatprep.subr.bf16.mxu1 %v647_v24  ;;  %v85_v11 = vrot.slane %v80_v9, %v84_v8  ;;  %v89_v12 = vrot.slane %v80_v9, %v88_v10 }
  0x19   :  { %479 = vmatprep.subr.bf16.mxu0 %v649_v25 }
  0x1b   :  { %439 = vmatpush1.bf16.msra.mxu1 %v651_v26 }
  0x1c   :  { %480 = vmatpush1.bf16.msra.mxu0 %v652_v27  ;;  %440 = vmatprep.subr.bf16.mxu1 %v653_v28 }
  0x1d   :  { %481 = vmatprep.subr.bf16.mxu0 %v655_v29 }
  0x1f   :  { %441 = vmatpush1.bf16.msra.mxu1 %v657_v30 }
  0x20   :  { %482 = vmatpush1.bf16.msra.mxu0 %v658_v31  ;;  %442 = vmatprep.subr.bf16.mxu1 %v659_v32 }
  0x21   :  { %483 = vmatprep.subr.bf16.mxu0 %v661_v33 }
  0x23   :  { %443 = vmatpush1.bf16.msra.mxu1 %v663_v34 }
  0x24   :  { %484 = vmatpush1.bf16.msra.mxu0 %v664_v35  ;;  %444 = vmatprep.subr.bf16.mxu1 %v665_v36 }
  0x25   :  { %485 = vmatprep.subr.bf16.mxu0 %v667_v37 }
  0x27   :  { %445 = vmatpush1.bf16.msra.mxu1 %v669_v38 }
  0x28   :  { %486 = vmatpush1.bf16.msra.mxu0 %v670_v39  ;;  %446 = vmatprep.subr.bf16.mxu1 %v671_v40 }
  0x29   :  { %487 = vmatprep.subr.bf16.mxu0 %v673_v41 }
  0x2b   :  { %447 = vmatpush1.bf16.msra.mxu1 %v675_v42 }
  0x2c   :  { %488 = vmatpush1.bf16.msra.mxu0 %v676_v43  ;;  %448 = vmatprep.subr.bf16.mxu1 %v677_v44 }
  0x2d   :  { %489 = vmatprep.subr.bf16.mxu0 %v679_v45 }
  0x2f   :  { %449 = vmatpush1.bf16.msra.mxu1 %v681_v49 }
  0x30   :  { %490 = vmatpush1.bf16.msra.mxu0 %v682_v50  ;;  %450 = vmatprep.subr.bf16.mxu1 %v683_v52 }
  0x31   :  { %491 = vmatprep.subr.bf16.mxu0 %v685_v53 }
  0x33   :  { %451 = vmatpush1.bf16.msra.mxu1 %v687_v54 }
  0x34   :  { %492 = vmatpush1.bf16.msra.mxu0 %v688_v55  ;;  %452 = vmatprep.subr.bf16.mxu1 %v689_v56 }
  0x35   :  { %493 = vmatprep.subr.bf16.mxu0 %v691_v57 }
  0x37   :  { %453 = vmatpush1.bf16.msra.mxu1 %v693_v58 }
  0x38   :  { %494 = vmatpush1.bf16.msra.mxu0 %v694_v59  ;;  %454 = vmatprep.subr.bf16.mxu1 %v695_v60 }
  0x39   :  { %495 = vmatprep.subr.bf16.mxu0 %v697_v61 }
  0x3b   :  { %455 = vmatpush1.bf16.msra.mxu1 %v699_v62 }
  0x3c   :  { %496 = vmatpush1.bf16.msra.mxu0 %v700_v63  ;;  %456 = vmatprep.subr.bf16.mxu1 %v701_v0 }
  0x3d   :  { %497 = vmatprep.subr.bf16.mxu0 %v703_v1 }
  0x3f   :  { %457 = vmatpush1.bf16.msra.mxu1 %v705_v2 }
  0x40   :  { %498 = vmatpush1.bf16.msra.mxu0 %v706_v3 }
  0x42   :  { %459 = vmatmul.mubr.bf16.vlgmr.msra.gmra.mrb[0].mxu1 %v535_v4 }
  0x43   :  { %500 = vmatmul.mubr.bf16.vlgmr.msra.gmra.mrb[0].mxu0 %v537_v5 }
 0x115   :  { %v460_v13 = vpop.f32.mrb[0].mxu1 }
 0x116   :  { %v501_v14 = vpop.f32.mrb[0].mxu0  ;;  %v461_v15 = vadd.f32 %v460_v13, %v85_v11  ;;  %v462_v16 = vpop.f32.mrb[1].mxu1 }
 0x117   :  { %v503_v17 = vpop.f32.mrb[1].mxu0  ;;  %v463_v18 = vadd.f32 %v462_v16, %v89_v12  ;;  %v464_v19 = vpop.f32.mrb[2].mxu1 }
 0x118   :  { %v505_v20 = vpop.f32.mrb[2].mxu0  ;;  %v502_v21 = vadd.f32 %v501_v14, %v461_v15  ;;  %v465_v22 = vpop.f32.mrb[3].mxu1 }
 0x119   :  { %v506_v23 = vpop.f32.mrb[3].mxu0  ;;  %v504_v24 = vadd.f32 %v503_v17, %v463_v18 }
 0x11a   :  { %v603_v25 = vmul.f32 -1.442695, %v502_v21 }
 0x11b   :  { %v604_v26 = vmul.f32 -1.442695, %v504_v24 }
 0x11c   :  { %711 = vpow2.f32 %v603_v25 }
 0x11d   :  { %713 = vpow2.f32 %v604_v26 }
 0x126   :  { %v712_v27 = vpop.eup %711 }
 0x127   :  { %v714_v28 = vpop.eup %713  ;;  %v514_v29 = vadd.f32 1.0, %v712_v27 }
 0x128   :  { %v515_v30 = vadd.f32 1.0, %v714_v28 }
 0x129   :  { %715 = vrcp.f32 %v514_v29 }
 0x12a   :  { %717 = vrcp.f32 %v515_v30 }
 0x133   :  { %v716_v31 = vpop.eup %715 }
 0x134   :  { %v718_v32 = vpop.eup %717  ;;  %v520_v33 = vmul.f32 %v716_v31, %v502_v21 }
 0x135   :  { %v521_v34 = vmul.f32 %v718_v32, %v504_v24 }
 0x137   :  { %v606_v35 = vpack.c.bf16 %v521_v34, %v520_v33 }
 0x139   :  { %530 = vst [vmem:[%s946_s3] sm:$0xff] %v606_v35 }

// kernel: cspdarknet_forward.60
= control target key start
LH: loop header
LB: loop body
LE: loop exit
PB: predicated region body
PF: predicated region fallthrough
CT: control target
= control target key end

     0   :  { %v49_v35 = vlaneseq  ;;  %s515_s1 = inlined_call_operand.vmem [shape: bf16[256,256], index: 1, kind: input, shape index: {}]   ;;  %s516_s0 = inlined_call_operand.vmem [shape: bf16[8,256], index: 0, kind: input, shape index: {}]   ;;  %s517_s2 = inlined_call_operand.vmem [shape: f32[1,256], index: 2, kind: input, shape index: {}]   ;;  %s518_s3 = inlined_call_operand.vmem [shape: bf16[8,256], index: 3, kind: output, shape index: {}]  }
   0x1   :  { %v332_v0 = vld [vmem:[%s515_s1 + $0x4] ss:$8 sps:$4 sm:$0xff]   ;;  %v334_v1 = vld [vmem:[%s515_s1] ss:$8 sps:$4 sm:$0xff]   ;;  %v335_v2 = vld [vmem:[%s515_s1 + $0x14] ss:$8 sps:$4 sm:$0xff]  }
   0x2   :  { %226 = vmatprep.subr.bf16.mxu0 %v332_v0  ;;  %v337_v3 = vld [vmem:[%s515_s1 + $0x10] ss:$8 sps:$4 sm:$0xff]   ;;  %v338_v4 = vld [vmem:[%s515_s1 + $0x24] ss:$8 sps:$4 sm:$0xff]   ;;  %v340_v5 = vld [vmem:[%s515_s1 + $0x20] ss:$8 sps:$4 sm:$0xff]  }
   0x3   :  { %227 = vmatpush1.bf16.msra.mxu0 %v334_v1  ;;  %v341_v6 = vld [vmem:[%s515_s1 + $0x34] ss:$8 sps:$4 sm:$0xff]   ;;  %v343_v7 = vld [vmem:[%s515_s1 + $0x30] ss:$8 sps:$4 sm:$0xff]   ;;  %v344_v8 = vld [vmem:[%s515_s1 + $0x44] ss:$8 sps:$4 sm:$0xff]  }
   0x4   :  { %228 = vmatprep.subr.bf16.mxu0 %v335_v2  ;;  %v346_v9 = vld [vmem:[%s515_s1 + $0x40] ss:$8 sps:$4 sm:$0xff]   ;;  %v347_v10 = vld [vmem:[%s515_s1 + $0x54] ss:$8 sps:$4 sm:$0xff]   ;;  %v349_v11 = vld [vmem:[%s515_s1 + $0x50] ss:$8 sps:$4 sm:$0xff]  }
   0x5   :  { %v350_v12 = vld [vmem:[%s515_s1 + $0x64] ss:$8 sps:$4 sm:$0xff]   ;;  %v352_v15 = vld [vmem:[%s515_s1 + $0x60] ss:$8 sps:$4 sm:$0xff]   ;;  %v353_v16 = vld [vmem:[%s515_s1 + $0x74] ss:$8 sps:$4 sm:$0xff]  }
   0x6   :  { %v14_v13 = vld [vmem:[%s516_s0] sm:$0xff]  ;;  %v355_v17 = vld [vmem:[%s515_s1 + $0x70] ss:$8 sps:$4 sm:$0xff]   ;;  %v359_v20 = vld [vmem:[%s515_s1 + $0x94] ss:$8 sps:$4 sm:$0xff]   ;;  %v50_v36 = vshrl.u32 %v49_v35, 7 }
   0x7   :  { %229 = vmatpush1.bf16.msra.mxu0 %v337_v3  ;;  %v295_v14 = vcombine.high %v14_v13, %v14_v13  ;;  %v356_v18 = vld [vmem:[%s515_s1 + $0x84] ss:$8 sps:$4 sm:$0xff]   ;;  %v358_v19 = vld [vmem:[%s515_s1 + $0x80] ss:$8 sps:$4 sm:$0xff]   ;;  %v361_v21 = vld [vmem:[%s515_s1 + $0x90] ss:$8 sps:$4 sm:$0xff]   ;;  %v294_v34 = vcombine.low %v14_v13, %v14_v13 }
   0x8   :  { %230 = vmatprep.subr.bf16.mxu0 %v338_v4  ;;  %v362_v22 = vld [vmem:[%s515_s1 + $0xa4] ss:$8 sps:$4 sm:$0xff]   ;;  %v364_v23 = vld [vmem:[%s515_s1 + $0xa0] ss:$8 sps:$4 sm:$0xff]   ;;  %v365_v24 = vld [vmem:[%s515_s1 + $0xb4] ss:$8 sps:$4 sm:$0xff]  }
   0x9   :  { %258 = vmatprep.mubr.bf16.mxu0 %v295_v14  ;;  %v367_v25 = vld [vmem:[%s515_s1 + $0xb0] ss:$8 sps:$4 sm:$0xff]   ;;  %v368_v26 = vld [vmem:[%s515_s1 + $0xc4] ss:$8 sps:$4 sm:$0xff]   ;;  %v370_v27 = vld [vmem:[%s515_s1 + $0xc0] ss:$8 sps:$4 sm:$0xff]  }
   0xa   :  { %v371_v28 = vld [vmem:[%s515_s1 + $0xd4] ss:$8 sps:$4 sm:$0xff]   ;;  %v373_v29 = vld [vmem:[%s515_s1 + $0xd0] ss:$8 sps:$4 sm:$0xff]   ;;  %v374_v30 = vld [vmem:[%s515_s1 + $0xe4] ss:$8 sps:$4 sm:$0xff]  }
   0xb   :  { %231 = vmatpush1.bf16.msra.mxu0 %v340_v5  ;;  %v376_v31 = vld [vmem:[%s515_s1 + $0xe0] ss:$8 sps:$4 sm:$0xff]   ;;  %v377_v32 = vld [vmem:[%s515_s1 + $0xf4] ss:$8 sps:$4 sm:$0xff]   ;;  %v379_v33 = vld [vmem:[%s515_s1 + $0xf0] ss:$8 sps:$4 sm:$0xff]  }
   0xc   :  { %232 = vmatprep.subr.bf16.mxu0 %v341_v6  ;;  %v51_v37 = vsub.s32 0, %v50_v36  ;;  %v47_v38 = vld [vmem:[%s517_s2] sm:$0x3]  ;;  %v55_v39 = vsub.s32 1, %v50_v36 }
   0xe   :  { %v52_v40 = vrot.slane %v47_v38, %v51_v37  ;;  %v56_v41 = vrot.slane %v47_v38, %v55_v39 }
   0xf   :  { %233 = vmatpush1.bf16.msra.mxu0 %v343_v7 }
  0x10   :  { %234 = vmatprep.subr.bf16.mxu0 %v344_v8 }
  0x13   :  { %235 = vmatpush1.bf16.msra.mxu0 %v346_v9 }
  0x14   :  { %236 = vmatprep.subr.bf16.mxu0 %v347_v10 }
  0x17   :  { %237 = vmatpush1.bf16.msra.mxu0 %v349_v11 }
  0x18   :  { %238 = vmatprep.subr.bf16.mxu0 %v350_v12 }
  0x1b   :  { %239 = vmatpush1.bf16.msra.mxu0 %v352_v15 }
  0x1c   :  { %240 = vmatprep.subr.bf16.mxu0 %v353_v16 }
  0x1f   :  { %241 = vmatpush1.bf16.msra.mxu0 %v355_v17 }
  0x20   :  { %242 = vmatprep.subr.bf16.mxu0 %v356_v18 }
  0x23   :  { %243 = vmatpush1.bf16.msra.mxu0 %v358_v19 }
  0x24   :  { %244 = vmatprep.subr.bf16.mxu0 %v359_v20 }
  0x27   :  { %245 = vmatpush1.bf16.msra.mxu0 %v361_v21 }
  0x28   :  { %246 = vmatprep.subr.bf16.mxu0 %v362_v22 }
  0x2b   :  { %247 = vmatpush1.bf16.msra.mxu0 %v364_v23 }
  0x2c   :  { %248 = vmatprep.subr.bf16.mxu0 %v365_v24 }
  0x2f   :  { %249 = vmatpush1.bf16.msra.mxu0 %v367_v25 }
  0x30   :  { %250 = vmatprep.subr.bf16.mxu0 %v368_v26 }
  0x33   :  { %251 = vmatpush1.bf16.msra.mxu0 %v370_v27 }
  0x34   :  { %252 = vmatprep.subr.bf16.mxu0 %v371_v28 }
  0x37   :  { %253 = vmatpush1.bf16.msra.mxu0 %v373_v29 }
  0x38   :  { %254 = vmatprep.subr.bf16.mxu0 %v374_v30 }
  0x3b   :  { %255 = vmatpush1.bf16.msra.mxu0 %v376_v31 }
  0x3c   :  { %256 = vmatprep.subr.bf16.mxu0 %v377_v32 }
  0x3f   :  { %257 = vmatpush1.bf16.msra.mxu0 %v379_v33 }
  0x42   :  { %259 = vmatmul.mubr.bf16.vlgmr.msra.gmra.mrb[0].mxu0 %v294_v34 }
 0x115   :  { %v260_v42 = vpop.f32.mrb[0].mxu0 }
 0x116   :  { %v261_v43 = vadd.f32 %v260_v42, %v52_v40  ;;  %v262_v44 = vpop.f32.mrb[1].mxu0 }
 0x117   :  { %v263_v45 = vadd.f32 %v262_v44, %v56_v41  ;;  %v264_v46 = vpop.f32.mrb[2].mxu0 }
 0x118   :  { %v328_v47 = vmul.f32 -1.442695, %v261_v43  ;;  %v265_v48 = vpop.f32.mrb[3].mxu0 }
 0x119   :  { %v329_v49 = vmul.f32 -1.442695, %v263_v45 }
 0x11a   :  { %382 = vpow2.f32 %v328_v47 }
 0x11b   :  { %384 = vpow2.f32 %v329_v49 }
 0x124   :  { %v383_v50 = vpop.eup %382 }
 0x125   :  { %v385_v51 = vpop.eup %384  ;;  %v273_v52 = vadd.f32 1.0, %v383_v50 }
 0x126   :  { %v274_v53 = vadd.f32 1.0, %v385_v51 }
 0x127   :  { %386 = vrcp.f32 %v273_v52 }
 0x128   :  { %388 = vrcp.f32 %v274_v53 }
 0x131   :  { %v387_v54 = vpop.eup %386 }
 0x132   :  { %v389_v55 = vpop.eup %388  ;;  %v279_v56 = vmul.f32 %v387_v54, %v261_v43 }
 0x133   :  { %v280_v57 = vmul.f32 %v389_v55, %v263_v45 }
 0x135   :  { %v331_v58 = vpack.c.bf16 %v280_v57, %v279_v56 }
 0x137   :  { %289 = vst [vmem:[%s518_s3] sm:$0xff] %v331_v58 }

// kernel: cspdarknet_forward.63
= control target key start
LH: loop header
LB: loop body
LE: loop exit
PB: predicated region body
PF: predicated region fallthrough
CT: control target
= control target key end

     0   :  { %v431_v1 = vmov 0   ;;  %v299_v35 = vlaneseq  ;;  %s570_s3 = inlined_call_operand.vmem [shape: bf16[128,256], index: 3, kind: input, shape index: {}]   ;;  %s571_s2 = inlined_call_operand.vmem [shape: bf16[128,256], index: 2, kind: input, shape index: {}]   ;;  %s572_s1 = inlined_call_operand.vmem [shape: bf16[8,128], index: 1, kind: input, shape index: {}]   ;;  %s573_s0 = inlined_call_operand.vmem [shape: bf16[8,128], index: 0, kind: input, shape index: {}]   ;;  %s574_s4 = inlined_call_operand.vmem [shape: f32[1,256], index: 4, kind: input, shape index: {}]   ;;  %s575_s5 = inlined_call_operand.vmem [shape: bf16[8,256], index: 5, kind: output, shape index: {}]  }
   0x1   :  { %v375_v0 = vld [vmem:[%s570_s3 + $0x4] ss:$8 sps:$4 sm:$0xff]   ;;  %167 = vmatprep.mubr.bf16.mxu0 %v431_v1  ;;  %288 = vmatprep.mubr.bf16.mxu1 %v431_v1  ;;  %v379_v3 = vld [vmem:[%s570_s3] ss:$8 sps:$4 sm:$0xff]   ;;  %v381_v5 = vld [vmem:[%s570_s3 + $0x14] ss:$8 sps:$4 sm:$0xff]  }
   0x2   :  { %v377_v2 = vld [vmem:[%s571_s2 + $0x4] ss:$8 sps:$4 sm:$0xff]   ;;  %135 = vmatprep.subr.bf16.mxu0 %v375_v0  ;;  %v380_v4 = vld [vmem:[%s571_s2] ss:$8 sps:$4 sm:$0xff]   ;;  %v383_v6 = vld [vmem:[%s571_s2 + $0x14] ss:$8 sps:$4 sm:$0xff]  }
   0x3   :  { %256 = vmatprep.subr.bf16.mxu1 %v377_v2  ;;  %136 = vmatpush1.bf16.msra.mxu0 %v379_v3  ;;  %v385_v7 = vld [vmem:[%s570_s3 + $0x10] ss:$8 sps:$4 sm:$0xff]   ;;  %v387_v9 = vld [vmem:[%s570_s3 + $0x24] ss:$8 sps:$4 sm:$0xff]   ;;  %v391_v11 = vld [vmem:[%s570_s3 + $0x20] ss:$8 sps:$4 sm:$0xff]  }
   0x4   :  { %257 = vmatpush1.bf16.msra.mxu1 %v380_v4  ;;  %137 = vmatprep.subr.bf16.mxu0 %v381_v5  ;;  %v386_v8 = vld [vmem:[%s571_s2 + $0x10] ss:$8 sps:$4 sm:$0xff]   ;;  %v389_v10 = vld [vmem:[%s571_s2 + $0x24] ss:$8 sps:$4 sm:$0xff]   ;;  %v392_v12 = vld [vmem:[%s571_s2 + $0x20] ss:$8 sps:$4 sm:$0xff]  }
   0x5   :  { %258 = vmatprep.subr.bf16.mxu1 %v383_v6  ;;  %v393_v13 = vld [vmem:[%s570_s3 + $0x34] ss:$8 sps:$4 sm:$0xff]   ;;  %v397_v15 = vld [vmem:[%s570_s3 + $0x30] ss:$8 sps:$4 sm:$0xff]   ;;  %v399_v17 = vld [vmem:[%s570_s3 + $0x44] ss:$8 sps:$4 sm:$0xff]  }
   0x6   :  { %v395_v14 = vld [vmem:[%s571_s2 + $0x34] ss:$8 sps:$4 sm:$0xff]   ;;  %v398_v16 = vld [vmem:[%s571_s2 + $0x30] ss:$8 sps:$4 sm:$0xff]   ;;  %v401_v18 = vld [vmem:[%s571_s2 + $0x44] ss:$8 sps:$4 sm:$0xff]  }
   0x7   :  { %138 = vmatpush1.bf16.msra.mxu0 %v385_v7  ;;  %v403_v19 = vld [vmem:[%s570_s3 + $0x40] ss:$8 sps:$4 sm:$0xff]   ;;  %v405_v21 = vld [vmem:[%s570_s3 + $0x54] ss:$8 sps:$4 sm:$0xff]   ;;  %v409_v23 = vld [vmem:[%s570_s3 + $0x50] ss:$8 sps:$4 sm:$0xff]  }
   0x8   :  { %259 = vmatpush1.bf16.msra.mxu1 %v386_v8  ;;  %139 = vmatprep.subr.bf16.mxu0 %v387_v9  ;;  %v404_v20 = vld [vmem:[%s571_s2 + $0x40] ss:$8 sps:$4 sm:$0xff]   ;;  %v407_v22 = vld [vmem:[%s571_s2 + $0x54] ss:$8 sps:$4 sm:$0xff]   ;;  %v410_v24 = vld [vmem:[%s571_s2 + $0x50] ss:$8 sps:$4 sm:$0xff]  }
   0x9   :  { %260 = vmatprep.subr.bf16.mxu1 %v389_v10  ;;  %v411_v25 = vld [vmem:[%s570_s3 + $0x64] ss:$8 sps:$4 sm:$0xff]   ;;  %v415_v27 = vld [vmem:[%s570_s3 + $0x60] ss:$8 sps:$4 sm:$0xff]   ;;  %v417_v29 = vld [vmem:[%s570_s3 + $0x74] ss:$8 sps:$4 sm:$0xff]  }
   0xa   :  { %v413_v26 = vld [vmem:[%s571_s2 + $0x64] ss:$8 sps:$4 sm:$0xff]   ;;  %v416_v28 = vld [vmem:[%s571_s2 + $0x60] ss:$8 sps:$4 sm:$0xff]   ;;  %v419_v30 = vld [vmem:[%s571_s2 + $0x74] ss:$8 sps:$4 sm:$0xff]  }
   0xb   :  { %140 = vmatpush1.bf16.msra.mxu0 %v391_v11  ;;  %v421_v31 = vld [vmem:[%s570_s3 + $0x70] ss:$8 sps:$4 sm:$0xff]   ;;  %v38_v33 = vld [vmem:[%s572_s1] sm:$0xf]  ;;  %v300_v36 = vshrl.u32 %v299_v35, 7 }
   0xc   :  { %261 = vmatpush1.bf16.msra.mxu1 %v392_v12  ;;  %141 = vmatprep.subr.bf16.mxu0 %v393_v13  ;;  %v422_v32 = vld [vmem:[%s571_s2 + $0x70] ss:$8 sps:$4 sm:$0xff]   ;;  %v21_v34 = vld [vmem:[%s573_s0] sm:$0xf] }
   0xd   :  { %262 = vmatprep.subr.bf16.mxu1 %v395_v14  ;;  %v301_v37 = vsub.s32 0, %v300_v36  ;;  %v297_v38 = vld [vmem:[%s574_s4] sm:$0x3]  ;;  %v305_v39 = vsub.s32 1, %v300_v36 }
   0xf   :  { %142 = vmatpush1.bf16.msra.mxu0 %v397_v15  ;;  %v302_v40 = vrot.slane %v297_v38, %v301_v37  ;;  %v306_v43 = vrot.slane %v297_v38, %v305_v39 }
  0x10   :  { %263 = vmatpush1.bf16.msra.mxu1 %v398_v16  ;;  %143 = vmatprep.subr.bf16.mxu0 %v399_v17 }
  0x11   :  { %264 = vmatprep.subr.bf16.mxu1 %v401_v18 }
  0x13   :  { %144 = vmatpush1.bf16.msra.mxu0 %v403_v19 }
  0x14   :  { %265 = vmatpush1.bf16.msra.mxu1 %v404_v20  ;;  %145 = vmatprep.subr.bf16.mxu0 %v405_v21 }
  0x15   :  { %266 = vmatprep.subr.bf16.mxu1 %v407_v22 }
  0x17   :  { %146 = vmatpush1.bf16.msra.mxu0 %v409_v23 }
  0x18   :  { %267 = vmatpush1.bf16.msra.mxu1 %v410_v24  ;;  %147 = vmatprep.subr.bf16.mxu0 %v411_v25 }
  0x19   :  { %268 = vmatprep.subr.bf16.mxu1 %v413_v26 }
  0x1b   :  { %148 = vmatpush1.bf16.msra.mxu0 %v415_v27 }
  0x1c   :  { %269 = vmatpush1.bf16.msra.mxu1 %v416_v28  ;;  %149 = vmatprep.subr.bf16.mxu0 %v417_v29 }
  0x1d   :  { %270 = vmatprep.subr.bf16.mxu1 %v419_v30 }
  0x1f   :  { %150 = vmatpush1.bf16.msra.mxu0 %v421_v31 }
  0x20   :  { %271 = vmatpush1.bf16.msra.mxu1 %v422_v32 }
  0x22   :  { %168 = vmatmul.mubr.bf16.vlgmr.msra.gmra.mrb[0].mxu0 %v38_v33 }
  0x23   :  { %289 = vmatmul.mubr.bf16.vlgmr.msra.gmra.mrb[0].mxu1 %v21_v34 }
  0xf5   :  { %v169_v41 = vpop.f32.mrb[0].mxu0 }
  0xf6   :  { %v290_v42 = vpop.f32.mrb[0].mxu1  ;;  %v171_v45 = vpop.f32.mrb[1].mxu0 }
  0xf7   :  { %v291_v44 = vadd.f32 %v290_v42, %v169_v41  ;;  %v292_v46 = vpop.f32.mrb[1].mxu1  ;;  %v173_v48 = vpop.f32.mrb[2].mxu0 }
  0xf8   :  { %v293_v47 = vadd.f32 %v292_v46, %v171_v45  ;;  %v294_v49 = vpop.f32.mrb[2].mxu1  ;;  %v174_v51 = vpop.f32.mrb[3].mxu0 }
  0xf9   :  { %v309_v50 = vadd.f32 %v302_v40, %v291_v44  ;;  %v295_v52 = vpop.f32.mrb[3].mxu1 }
  0xfa   :  { %v310_v53 = vadd.f32 %v306_v43, %v293_v47 }
  0xfb   :  { %v370_v54 = vmul.f32 -1.442695, %v309_v50 }
  0xfc   :  { %v371_v55 = vmul.f32 -1.442695, %v310_v53 }
  0xfd   :  { %423 = vpow2.f32 %v370_v54 }
  0xfe   :  { %425 = vpow2.f32 %v371_v55 }
 0x107   :  { %v424_v56 = vpop.eup %423 }
 0x108   :  { %v426_v57 = vpop.eup %425  ;;  %v317_v58 = vadd.f32 1.0, %v424_v56 }
 0x109   :  { %v318_v59 = vadd.f32 1.0, %v426_v57 }
 0x10a   :  { %427 = vrcp.f32 %v317_v58 }
 0x10b   :  { %429 = vrcp.f32 %v318_v59 }
 0x114   :  { %v428_v60 = vpop.eup %427 }
 0x115   :  { %v430_v61 = vpop.eup %429  ;;  %v323_v62 = vmul.f32 %v428_v60, %v309_v50 }
 0x116   :  { %v324_v63 = vmul.f32 %v430_v61, %v310_v53 }
 0x118   :  { %v373_v0 = vpack.c.bf16 %v324_v63, %v323_v62 }
 0x11a   :  { %333 = vst [vmem:[%s575_s5] sm:$0xff] %v373_v0 }

// kernel: cspdarknet_forward.62
= control target key start
LH: loop header
LB: loop body
LE: loop exit
PB: predicated region body
PF: predicated region fallthrough
CT: control target
= control target key end

     0   :  { %vm1142_vm0 = vmmov 0   ;;  %s1408_s1 = inlined_call_operand.vmem [shape: bf16[1152,128], index: 1, kind: input, shape index: {}]   ;;  %s1409_s0 = inlined_call_operand.vmem [shape: bf16[8,1152], index: 0, kind: input, shape index: {}]   ;;  %s1410_s2 = inlined_call_operand.vmem [shape: f32[1,128], index: 2, kind: input, shape index: {}]   ;;  %s1411_s3 = inlined_call_operand.vmem [shape: bf16[8,128], index: 3, kind: input, shape index: {}]   ;;  %s1412_s4 = inlined_call_operand.vmem [shape: bf16[8,128], index: 4, kind: output, shape index: {}]  }
   0x1   :  { %v1056_v0 = vld [vmem:[%s1408_s1 + $0x40] sm:$0xff]   ;;  %v1060_v4 = vld [vmem:[%s1408_s1 + $0x48] sm:$0xff]   ;;  %v1064_v8 = vld [vmem:[%s1408_s1 + $0x50] sm:$0xff]  }
   0x2   :  { %v1057_v1 = vld [vmem:[%s1408_s1] sm:$0xff]   ;;  %937 = vmatprep.subr.bf16.mxu0 %v1056_v0  ;;  %v1061_v5 = vld [vmem:[%s1408_s1 + $0x8] sm:$0xff]   ;;  %v1065_v9 = vld [vmem:[%s1408_s1 + $0x10] sm:$0xff]  }
   0x3   :  { %v1058_v2 = vld [vmem:[%s1408_s1 + $0xc0] sm:$0xff]   ;;  %938 = vmatpush3.bf16.msra.mxu0 %v1057_v1  ;;  %v1062_v6 = vld [vmem:[%s1408_s1 + $0xc8] sm:$0xff]   ;;  %v1066_v10 = vld [vmem:[%s1408_s1 + $0xd0] sm:$0xff]  }
   0x4   :  { %v1059_v3 = vld [vmem:[%s1408_s1 + $0x80] sm:$0xff]   ;;  %959 = vmatprep.subr.bf16.mxu1 %v1058_v2  ;;  %939 = vmatprep.subr.bf16.mxu0 %v1060_v4  ;;  %v1063_v7 = vld [vmem:[%s1408_s1 + $0x88] sm:$0xff]   ;;  %v1067_v11 = vld [vmem:[%s1408_s1 + $0x90] sm:$0xff]  }
   0x5   :  { %960 = vmatpush3.bf16.msra.mxu1 %v1059_v3  ;;  %v1068_v12 = vld [vmem:[%s1408_s1 + $0x58] sm:$0xff]   ;;  %v1072_v16 = vld [vmem:[%s1408_s1 + $0x60] sm:$0xff]   ;;  %v1076_v20 = vld [vmem:[%s1408_s1 + $0x68] sm:$0xff]  }
   0x6   :  { %961 = vmatprep.subr.bf16.mxu1 %v1062_v6  ;;  %v1069_v13 = vld [vmem:[%s1408_s1 + $0x18] sm:$0xff]   ;;  %v1073_v17 = vld [vmem:[%s1408_s1 + $0x20] sm:$0xff]   ;;  %v1077_v21 = vld [vmem:[%s1408_s1 + $0x28] sm:$0xff]  }
   0x7   :  { %940 = vmatpush3.bf16.msra.mxu0 %v1061_v5  ;;  %v1070_v14 = vld [vmem:[%s1408_s1 + $0xd8] sm:$0xff]   ;;  %v1074_v18 = vld [vmem:[%s1408_s1 + $0xe0] sm:$0xff]   ;;  %v1078_v22 = vld [vmem:[%s1408_s1 + $0xe8] sm:$0xff]  }
   0x8   :  { %941 = vmatprep.subr.bf16.mxu0 %v1064_v8  ;;  %v1071_v15 = vld [vmem:[%s1408_s1 + $0x98] sm:$0xff]   ;;  %v1075_v19 = vld [vmem:[%s1408_s1 + $0xa0] sm:$0xff]   ;;  %v1079_v23 = vld [vmem:[%s1408_s1 + $0xa8] sm:$0xff]  }
   0x9   :  { %962 = vmatpush3.bf16.msra.mxu1 %v1063_v7  ;;  %v1080_v24 = vld [vmem:[%s1408_s1 + $0x70] sm:$0xff]   ;;  %v1084_v28 = vld [vmem:[%s1408_s1 + $0x78] sm:$0xff]   ;;  %v18_v31 = vld [vmem:[%s1409_s0] sm:$0xff] }
   0xa   :  { %963 = vmatprep.subr.bf16.mxu1 %v1066_v10  ;;  %v1081_v25 = vld [vmem:[%s1408_s1 + $0x30] sm:$0xff]   ;;  %v1085_v29 = vld [vmem:[%s1408_s1 + $0x38] sm:$0xff]   ;;  %v855_v32 = vcombine.low %v18_v31, %v18_v31  ;;  %v856_v33 = vcombine.high %v18_v31, %v18_v31  ;;  %v1090_v35 = vld [vmem:[%s1408_s1 + $0x140] sm:$0xff]  }
   0xb   :  { %942 = vmatpush3.bf16.msra.mxu0 %v1065_v9  ;;  %v1082_v26 = vld [vmem:[%s1408_s1 + $0xf0] sm:$0xff]   ;;  %v1086_v30 = vld [vmem:[%s1408_s1 + $0xf8] sm:$0xff]   ;;  %v19_v36 = vld [vmem:[%s1409_s0 + $0x8] sm:$0xff]  ;;  %v1141_v9 = vmov 0.0  }
   0xc   :  { %943 = vmatprep.subr.bf16.mxu0 %v1068_v12  ;;  %v1083_v27 = vld [vmem:[%s1408_s1 + $0xb0] sm:$0xff]   ;;  %v1089_v34 = vld [vmem:[%s1408_s1 + $0xb8] sm:$0xff]   ;;  %670 = vmatprep.mubr.bf16.mxu0 %v856_v33  ;;  %v857_v37 = vcombine.low %v19_v36, %v19_v36  ;;  %v858_v38 = vcombine.high %v19_v36, %v19_v36  ;;  %v1093_v39 = vld [vmem:[%s1408_s1 + $0x100] sm:$0xff]  }
   0xd   :  { %964 = vmatpush3.bf16.msra.mxu1 %v1067_v11  ;;  %v1094_v40 = vld [vmem:[%s1408_s1 + $0x1c0] sm:$0xff]   ;;  %v1096_v42 = vld [vmem:[%s1408_s1 + $0x148] sm:$0xff]   ;;  %v1100_v46 = vld [vmem:[%s1408_s1 + $0x150] sm:$0xff]  }
   0xe   :  { %965 = vmatprep.subr.bf16.mxu1 %v1070_v14  ;;  %710 = vmatprep.mubr.bf16.mxu1 %v858_v38  ;;  %v1095_v41 = vld [vmem:[%s1408_s1 + $0x180] sm:$0xff]   ;;  %v1097_v43 = vld [vmem:[%s1408_s1 + $0x108] sm:$0xff]   ;;  %v1101_v47 = vld [vmem:[%s1408_s1 + $0x110] sm:$0xff]  }
   0xf   :  { %944 = vmatpush3.bf16.msra.mxu0 %v1069_v13  ;;  %v1098_v44 = vld [vmem:[%s1408_s1 + $0x1c8] sm:$0xff]   ;;  %v1102_v48 = vld [vmem:[%s1408_s1 + $0x1d0] sm:$0xff]   ;;  %v1104_v50 = vld [vmem:[%s1408_s1 + $0x158] sm:$0xff]  }
  0x10   :  { %945 = vmatprep.subr.bf16.mxu0 %v1072_v16  ;;  %v1099_v45 = vld [vmem:[%s1408_s1 + $0x188] sm:$0xff]   ;;  %v1103_v49 = vld [vmem:[%s1408_s1 + $0x190] sm:$0xff]   ;;  %v1105_v51 = vld [vmem:[%s1408_s1 + $0x118] sm:$0xff]  }
  0x11   :  { %966 = vmatpush3.bf16.msra.mxu1 %v1071_v15  ;;  %v1106_v52 = vld [vmem:[%s1408_s1 + $0x1d8] sm:$0xff]   ;;  %v1108_v54 = vld [vmem:[%s1408_s1 + $0x160] sm:$0xff]   ;;  %v1112_v58 = vld [vmem:[%s1408_s1 + $0x168] sm:$0xff]  }
  0x12   :  { %967 = vmatprep.subr.bf16.mxu1 %v1074_v18  ;;  %v1107_v53 = vld [vmem:[%s1408_s1 + $0x198] sm:$0xff]   ;;  %v1109_v55 = vld [vmem:[%s1408_s1 + $0x120] sm:$0xff]   ;;  %v1113_v59 = vld [vmem:[%s1408_s1 + $0x128] sm:$0xff]  }
  0x13   :  { %946 = vmatpush3.bf16.msra.mxu0 %v1073_v17  ;;  %v1110_v56 = vld [vmem:[%s1408_s1 + $0x1e0] sm:$0xff]   ;;  %v1114_v60 = vld [vmem:[%s1408_s1 + $0x1e8] sm:$0xff]   ;;  %v1116_v62 = vld [vmem:[%s1408_s1 + $0x170] sm:$0xff]  }
  0x14   :  { %947 = vmatprep.subr.bf16.mxu0 %v1076_v20  ;;  %v1111_v57 = vld [vmem:[%s1408_s1 + $0x1a0] sm:$0xff]   ;;  %v1115_v61 = vld [vmem:[%s1408_s1 + $0x1a8] sm:$0xff]   ;;  %v1117_v63 = vld [vmem:[%s1408_s1 + $0x130] sm:$0xff]  }
  0x15   :  { %968 = vmatpush3.bf16.msra.mxu1 %v1075_v19  ;;  %v1118_v0 = vld [vmem:[%s1408_s1 + $0x1f0] sm:$0xff]   ;;  %v1120_v2 = vld [vmem:[%s1408_s1 + $0x178] sm:$0xff]   ;;  %v1128_v13 = vld [vmem:[%s1408_s1 + $0x200] sm:$0xff]  }
  0x16   :  { %969 = vmatprep.subr.bf16.mxu1 %v1078_v22  ;;  %v1119_v1 = vld [vmem:[%s1408_s1 + $0x1b0] sm:$0xff]   ;;  %v1121_v3 = vld [vmem:[%s1408_s1 + $0x138] sm:$0xff]   ;;  %v1129_v14 = vld [vmem:[%s1408_s1 + $0x208] sm:$0xff]  }
  0x17   :  { %948 = vmatpush3.bf16.msra.mxu0 %v1077_v21  ;;  %v1122_v4 = vld [vmem:[%s1408_s1 + $0x1f8] sm:$0xff]   ;;  %v20_v5 = vld [vmem:[%s1409_s0 + $0x10] sm:$0xff]  ;;  %v1132_v17 = vld [vmem:[%s1408_s1 + $0x220] sm:$0xff]  }
  0x18   :  { %949 = vmatprep.subr.bf16.mxu0 %v1080_v24  ;;  %v859_v6 = vcombine.low %v20_v5, %v20_v5  ;;  %v860_v7 = vcombine.high %v20_v5, %v20_v5  ;;  %v1125_v8 = vld [vmem:[%s1408_s1 + $0x1b8] sm:$0xff]   ;;  %v1130_v15 = vld [vmem:[%s1408_s1 + $0x210] sm:$0xff]   ;;  %v1133_v18 = vld [vmem:[%s1408_s1 + $0x228] sm:$0xff]  }
  0x19   :  { %970 = vmatpush3.bf16.msra.mxu1 %v1079_v23  ;;  %v21_v10 = vld [vmem:[%s1409_s0 + $0x18] sm:$0xff]  ;;  %v1134_v19 = vld [vmem:[%s1408_s1 + $0x230] sm:$0xff]   ;;  %v1136_v21 = vld [vmem:[%s1409_s0 + $0x20] ss:$0 sps:$4 sm:$0xff]  }
  0x1a   :  { %971 = vmatprep.subr.bf16.mxu1 %v1082_v26  ;;  %v861_v11 = vcombine.low %v21_v10, %v21_v10  ;;  %v862_v12 = vcombine.high %v21_v10, %v21_v10  ;;  %v1131_v16 = vld [vmem:[%s1408_s1 + $0x218] sm:$0xff]   ;;  %v854_v23 = vld [vmem:[%s1410_s2] ss:$0 sm:$0xff] }
  0x1b   :  { %950 = vmatpush3.bf16.msra.mxu0 %v1081_v25  ;;  %v1135_v20 = vld [vmem:[%s1408_s1 + $0x238] sm:$0xff]  }
  0x1c   :  { %951 = vmatprep.subr.bf16.mxu0 %v1084_v28 }
  0x1d   :  { %972 = vmatpush3.bf16.msra.mxu1 %v1083_v27 }
  0x1e   :  { %973 = vmatprep.subr.bf16.mxu1 %v1086_v30 }
  0x1f   :  { %952 = vmatpush3.bf16.msra.mxu0 %v1085_v29 }
  0x20   :  { %981 = vmatprep.subr.bf16.mxu0 %v1090_v35 }
  0x21   :  { %974 = vmatpush3.bf16.msra.mxu1 %v1089_v34 }
  0x22   :  { %671 = vmatmul.mubr.bf16.vlgmr.msra.gmra.mrb[0].mxu0 %v855_v32  ;;  %1003 = vmatprep.subr.bf16.mxu1 %v1094_v40 }
  0x23   :  { %982 = vmatpush3.bf16.msra.mxu0 %v1093_v39  ;;  %750 = vmatprep.mubr.bf16.mxu0 %v860_v7 }
  0x24   :  { %711 = vmatmul.mubr.bf16.vlgmr.msra.gmra.mrb[0].mxu1 %v857_v37  ;;  %983 = vmatprep.subr.bf16.mxu0 %v1096_v42 }
  0x25   :  { %1004 = vmatpush3.bf16.msra.mxu1 %v1095_v41  ;;  %790 = vmatprep.mubr.bf16.mxu1 %v862_v12 }
  0x26   :  { %1005 = vmatprep.subr.bf16.mxu1 %v1098_v44 }
  0x27   :  { %984 = vmatpush3.bf16.msra.mxu0 %v1097_v43 }
  0x28   :  { %985 = vmatprep.subr.bf16.mxu0 %v1100_v46 }
  0x29   :  { %1006 = vmatpush3.bf16.msra.mxu1 %v1099_v45 }
  0x2a   :  { %1007 = vmatprep.subr.bf16.mxu1 %v1102_v48 }
  0x2b   :  { %986 = vmatpush3.bf16.msra.mxu0 %v1101_v47 }
  0x2c   :  { %987 = vmatprep.subr.bf16.mxu0 %v1104_v50 }
  0x2d   :  { %1008 = vmatpush3.bf16.msra.mxu1 %v1103_v49 }
  0x2e   :  { %1009 = vmatprep.subr.bf16.mxu1 %v1106_v52 }
  0x2f   :  { %988 = vmatpush3.bf16.msra.mxu0 %v1105_v51 }
  0x30   :  { %989 = vmatprep.subr.bf16.mxu0 %v1108_v54 }
  0x31   :  { %1010 = vmatpush3.bf16.msra.mxu1 %v1107_v53 }
  0x32   :  { %1011 = vmatprep.subr.bf16.mxu1 %v1110_v56 }
  0x33   :  { %990 = vmatpush3.bf16.msra.mxu0 %v1109_v55  ;;  %v845_v55 = vld [vmem:[%s1411_s3] sm:$0xf] }
  0x34   :  { %991 = vmatprep.subr.bf16.mxu0 %v1112_v58  ;;  %v846_v56 = vunpack.c.l.bf16 %v845_v55 }
  0x35   :  { %1012 = vmatpush3.bf16.msra.mxu1 %v1111_v57 }
  0x36   :  { %1013 = vmatprep.subr.bf16.mxu1 %v1114_v60 }
  0x37   :  { %992 = vmatpush3.bf16.msra.mxu0 %v1113_v59 }
  0x38   :  { %993 = vmatprep.subr.bf16.mxu0 %v1116_v62 }
  0x39   :  { %1014 = vmatpush3.bf16.msra.mxu1 %v1115_v61 }
  0x3a   :  { %1015 = vmatprep.subr.bf16.mxu1 %v1118_v0 }
  0x3b   :  { %994 = vmatpush3.bf16.msra.mxu0 %v1117_v63 }
  0x3c   :  { %995 = vmatprep.subr.bf16.mxu0 %v1120_v2 }
  0x3d   :  { %1016 = vmatpush3.bf16.msra.mxu1 %v1119_v1 }
  0x3e   :  { %1017 = vmatprep.subr.bf16.mxu1 %v1122_v4 }
  0x3f   :  { %996 = vmatpush3.bf16.msra.mxu0 %v1121_v3 }
  0x40   :  { %1034 = vmatprep.subr.bf16.mxu0 %v1141_v9 }
  0x41   :  { %1018 = vmatpush3.bf16.msra.mxu1 %v1125_v8 }
  0x42   :  { %751 = vmatmul.mubr.bf16.vlgmr.msra.gmra.mrb[4].mxu0 %v859_v6 }
  0x43   :  { %1035 = vmatpush3.bf16.msra.mxu0 %v1128_v13  ;;  %1050 = vmatprep.mubr.msk.bf16.mxu0 %vm1142_vm0, %v1141_v9 }
  0x44   :  { %791 = vmatmul.mubr.bf16.vlgmr.msra.gmra.mrb[4].mxu1 %v861_v11  ;;  %1036 = vmatprep.subr.bf16.mxu0 %v1141_v9 }
  0x47   :  { %1037 = vmatpush3.bf16.msra.mxu0 %v1129_v14 }
  0x48   :  { %1038 = vmatprep.subr.bf16.mxu0 %v1141_v9 }
  0x4b   :  { %1039 = vmatpush3.bf16.msra.mxu0 %v1130_v15 }
  0x4c   :  { %1040 = vmatprep.subr.bf16.mxu0 %v1141_v9 }
  0x4f   :  { %1041 = vmatpush3.bf16.msra.mxu0 %v1131_v16 }
  0x50   :  { %1042 = vmatprep.subr.bf16.mxu0 %v1141_v9 }
  0x53   :  { %1043 = vmatpush3.bf16.msra.mxu0 %v1132_v17 }
  0x54   :  { %1044 = vmatprep.subr.bf16.mxu0 %v1141_v9 }
  0x57   :  { %1045 = vmatpush3.bf16.msra.mxu0 %v1133_v18 }
  0x58   :  { %1046 = vmatprep.subr.bf16.mxu0 %v1141_v9 }
  0x5b   :  { %1047 = vmatpush3.bf16.msra.mxu0 %v1134_v19 }
  0x5c   :  { %1048 = vmatprep.subr.bf16.mxu0 %v1141_v9 }
  0x5f   :  { %1049 = vmatpush3.bf16.msra.mxu0 %v1135_v20 }
  0x62   :  { %1051 = vmatmul.mubr.bf16.vlgmr.msra.gmra.mrb[8].mxu0 %v1136_v21 }
  0xf5   :  { %v953_v22 = vpop.f32.mrb[0].mxu0 }
  0xf6   :  { %v954_v24 = vpop.f32.mrb[1].mxu0 }
  0xf7   :  { %v955_v25 = vadd.f32 %v954_v24, %v953_v22  ;;  %v956_v26 = vpop.f32.mrb[2].mxu0  ;;  %v975_v27 = vpop.f32.mrb[0].mxu1 }
  0xf8   :  { %v957_v28 = vpop.f32.mrb[3].mxu0  ;;  %v976_v29 = vpop.f32.mrb[1].mxu1 }
  0xf9   :  { %v673_v30 = vadd.f32 %v955_v25, %v854_v23  ;;  %v977_v31 = vadd.f32 %v976_v29, %v975_v27  ;;  %v978_v32 = vpop.f32.mrb[2].mxu1 }
  0xfa   :  { %v979_v33 = vpop.f32.mrb[3].mxu1 }
  0xfb   :  { %v713_v34 = vadd.f32 %v977_v31, %v673_v30 }
 0x115   :  { %v997_v35 = vpop.f32.mrb[4].mxu0 }
 0x116   :  { %v998_v36 = vpop.f32.mrb[5].mxu0 }
 0x117   :  { %v999_v37 = vadd.f32 %v998_v36, %v997_v35  ;;  %v1000_v38 = vpop.f32.mrb[6].mxu0  ;;  %v1019_v39 = vpop.f32.mrb[4].mxu1 }
 0x118   :  { %v1001_v40 = vpop.f32.mrb[7].mxu0  ;;  %v1020_v41 = vpop.f32.mrb[5].mxu1 }
 0x119   :  { %v753_v42 = vadd.f32 %v999_v37, %v713_v34  ;;  %v1021_v43 = vadd.f32 %v1020_v41, %v1019_v39  ;;  %v1022_v44 = vpop.f32.mrb[6].mxu1 }
 0x11a   :  { %v1023_v45 = vpop.f32.mrb[7].mxu1 }
 0x11b   :  { %v793_v46 = vadd.f32 %v1021_v43, %v753_v42 }
 0x135   :  { %v832_v47 = vpop.f32.mrb[8].mxu0 }
 0x136   :  { %v833_v48 = vadd.f32 %v832_v47, %v793_v46  ;;  %v1052_v49 = vpop.f32.mrb[9].mxu0 }
 0x137   :  { %v835_v50 = vpop.f32.mrb[10].mxu0 }
 0x138   :  { %v936_v51 = vmul.f32 -1.442695, %v833_v48  ;;  %v1053_v52 = vpop.f32.mrb[11].mxu0 }
 0x13a   :  { %1137 = vpow2.f32 %v936_v51 }
 0x144   :  { %v1138_v53 = vpop.eup %1137 }
 0x145   :  { %v841_v54 = vadd.f32 1.0, %v1138_v53 }
 0x147   :  { %1139 = vrcp.f32 %v841_v54 }
 0x151   :  { %v1140_v57 = vpop.eup %1139 }
 0x152   :  { %v844_v58 = vmul.f32 %v1140_v57, %v833_v48 }
 0x154   :  { %v847_v59 = vadd.f32 %v846_v56, %v844_v58 }
 0x156   :  { %v848_v60 = vpack.c.bf16 %v847_v59, %v847_v59 }
 0x158   :  { %849 = vst [vmem:[%s1412_s4] sm:$0xf] %v848_v60 }

</bundles_post_ra>
